<compile_context>
chip_gen: v5e
topology: v5e:2x2
jax: 0.10.0
libtpu: 0.0.40
codegen_flags: <defaults>
</compile_context>

<pallas_src>
import functools

import jax
import jax.numpy as jnp
from jax.experimental import pallas as pl
from jax.experimental.pallas import tpu as pltpu


def _round_up(x, m):
    return ((x + m - 1) // m) * m


def _mlp_pe_kernel(pospe, viewpe, inC, has_mask, *refs):
    refs = list(refs)
    data_ref = refs.pop(0)                          # (TN, inC+6): [feat|view|pts]
    masks_ref = refs.pop(0) if has_mask else None   # (TN, 2*(3*pospe+3*viewpe))
    w1_ref, b1_ref, w2_ref, b2_ref, w3_ref, b3_ref, out_ref = refs

    f32 = jnp.float32
    data = data_ref[...]
    fv = data[:, 0:inC + 3]                 # [features | viewdirs]
    view = data[:, inC:inC + 3]
    pts = data[:, inC + 3:inC + 6]

    def freq_row(pe):
        # exact powers of two, built in-kernel (no captured constant, no DMA)
        e = jax.lax.broadcasted_iota(jnp.int32, (1, pe), 1)
        return jnp.left_shift(jnp.int32(1), e).astype(f32)

    # Batch all PE angles into one block: [pos_x..pos_z | view_x..view_z],
    # each coordinate-major like torch's positional_encoding reshape.
    ang_pieces = []
    if pospe > 0:
        fb = freq_row(pospe)
        ang_pieces += [pts[:, d:d + 1] * fb for d in range(3)]
    if viewpe > 0:
        fb = freq_row(viewpe)
        ang_pieces += [view[:, d:d + 1] * fb for d in range(3)]

    parts = [fv]
    if ang_pieces:
        ang = (jnp.concatenate(ang_pieces, axis=-1)
               if len(ang_pieces) > 1 else ang_pieces[0])
        # ONE sin and ONE cos per tile (EUP was the binding unit before).
        sc = jnp.concatenate([jnp.sin(ang), jnp.cos(ang)], axis=-1)
        if has_mask:
            sc = sc * masks_ref[...].astype(f32)
        parts.append(sc)
    x = jnp.concatenate(parts, axis=-1) if len(parts) > 1 else parts[0]

    # Single wide-K layer-1 matmul against the host-permuted w1.
    h = jnp.dot(x, w1_ref[...], preferred_element_type=f32) + b1_ref[...]
    h = jnp.maximum(h, 0.0)
    h = jnp.dot(h, w2_ref[...], preferred_element_type=f32) + b2_ref[...]
    h = jnp.maximum(h, 0.0)
    o = jnp.dot(h, w3_ref[...], preferred_element_type=f32) + b3_ref[...]
    out_ref[...] = (1.0 / (1.0 + jnp.exp(-o))).astype(out_ref.dtype)


def mlp_render_pe_forward(pts, viewdirs, features, params,
                          mask_pos=None, mask_view=None,
                          viewpe=6, pospe=6, tile_n=1024,
                          mask_dtype=jnp.float32, vmem_limit_bytes=None):
    """Pallas implementation of MLPRender_PE.forward.

    mask_pos / mask_view correspond to mask['pos'] / mask['view'] (None or a
    full (N, 2*pe*3) array).  mask_dtype=jnp.bfloat16 halves mask HBM traffic
    and is exact for binary {0,1} masks; the default float32 is always exact.
    """
    N = pts.shape[0]
    inC = features.shape[-1]
    w1, b1, w2, b2, w3, b3 = params
    w1 = jnp.asarray(w1, jnp.float32)
    featureC = w1.shape[1]
    in_mlpC = 3 + 2 * viewpe * 3 + 2 * pospe * 3 + inC
    assert w1.shape == (in_mlpC, featureC)
    b1 = jnp.asarray(b1, jnp.float32).reshape(1, featureC)
    w2 = jnp.asarray(w2, jnp.float32)
    b2 = jnp.asarray(b2, jnp.float32).reshape(1, -1)
    w3 = jnp.asarray(w3, jnp.float32)
    b3 = jnp.asarray(b3, jnp.float32).reshape(1, -1)

    # Tile sizing: multiple of 16 (covers f32 and bf16 sublane packing), never
    # larger than the (row-padded) problem, and capped so the grid has >= 2
    # steps whenever there is enough work (v7x dual-TensorCore sharding).  The
    # default 1024-row tile fits easily in the v5e 16 MiB scoped-VMEM default.
    SUB = 16
    tile_n = max(SUB, min(int(tile_n), _round_up(N, SUB)))
    if N > SUB:
        tile_n = min(tile_n, _round_up(-(-N // 2), SUB))
    tile_n = _round_up(tile_n, SUB)
    Np = _round_up(N, tile_n)

    def pad_rows(a):
        return a if a.shape[0] == Np else jnp.pad(a, ((0, Np - a.shape[0]), (0, 0)))

    # One packed, row-streamed per-point array: [features | viewdirs | pts].
    data = pad_rows(jnp.concatenate([features.astype(jnp.float32),
                                     viewdirs.astype(jnp.float32),
                                     pts.astype(jnp.float32)], axis=-1))

    has_mp = (mask_pos is not None) and pospe > 0
    has_mv = (mask_view is not None) and viewpe > 0
    has_mask = has_mp or has_mv
    masks = None
    if has_mask:
        # Pack in the kernel's column order: [sin_pos|sin_view|cos_pos|cos_view],
        # filling any absent mask with ones.
        sin_parts, cos_parts = [], []
        if pospe > 0:
            w = 3 * pospe
            if has_mp:
                m = jnp.asarray(mask_pos, jnp.float32)
                sin_parts.append(m[:, :w]); cos_parts.append(m[:, w:2 * w])
            else:
                one = jnp.ones((N, w), jnp.float32)
                sin_parts.append(one); cos_parts.append(one)
        if viewpe > 0:
            w = 3 * viewpe
            if has_mv:
                m = jnp.asarray(mask_view, jnp.float32)
                sin_parts.append(m[:, :w]); cos_parts.append(m[:, w:2 * w])
            else:
                one = jnp.ones((N, w), jnp.float32)
                sin_parts.append(one); cos_parts.append(one)
        masks = pad_rows(jnp.concatenate(sin_parts + cos_parts, axis=-1)
                         .astype(mask_dtype))

    # Host-side row permutation of w1 so layer 1 is one wide-K matmul against
    # the kernel's [feat|view|sin_pos|sin_view|cos_pos|cos_view] input order.
    base = inC + 3
    if pospe > 0 and viewpe > 0:
        ps = w1[base:base + 3 * pospe]
        pc = w1[base + 3 * pospe:base + 6 * pospe]
        vs = w1[base + 6 * pospe:base + 6 * pospe + 3 * viewpe]
        vc = w1[base + 6 * pospe + 3 * viewpe:]
        w1p = jnp.concatenate([w1[:base], ps, vs, pc, vc], axis=0)
    else:
        w1p = w1   # zero or one PE block: original row order already matches

    inputs, in_specs = [], []

    def add_row(a):                      # row-streamed (one DMA per grid step)
        inputs.append(a)
        in_specs.append(pl.BlockSpec((tile_n, a.shape[-1]), lambda i: (i, 0)))

    def add_const(a):                    # whole array resident in VMEM
        inputs.append(a)
        in_specs.append(pl.BlockSpec(a.shape, lambda i: (0, 0)))

    add_row(data)
    if masks is not None:
        add_row(masks)
    for c in (w1p, b1, w2, b2, w3, b3):
        add_const(c)

    kernel = functools.partial(_mlp_pe_kernel, pospe, viewpe, inC, has_mask)

    cp_kwargs = dict(dimension_semantics=("parallel",))
    if vmem_limit_bytes is not None:
        cp_kwargs["vmem_limit_bytes"] = vmem_limit_bytes

    out = pl.pallas_call(
        kernel,
        out_shape=jax.ShapeDtypeStruct((Np, 3), jnp.float32),
        grid=(Np // tile_n,),
        in_specs=in_specs,
        out_specs=pl.BlockSpec((tile_n, 3), lambda i: (i, 0)),
        compiler_params=pltpu.CompilerParams(**cp_kwargs),
    )(*inputs)
    return out[:N]


def ref_forward(pts, viewdirs, features, params, mask_pos, mask_view,
                viewpe, pospe):
    """Pure-JAX reference mirroring the PyTorch module (HIGHEST-precision dots)."""
    hp = jax.lax.Precision.HIGHEST

    def pe(x, freqs):
        fb = (2 ** jnp.arange(freqs)).astype(jnp.float32)
        p = (x[..., None] * fb).reshape(x.shape[:-1] + (freqs * x.shape[-1],))
        return jnp.concatenate([jnp.sin(p), jnp.cos(p)], axis=-1)

    indata = [features, viewdirs]
    if pospe > 0:
        e = pe(pts, pospe)
        indata.append(e if mask_pos is None else e * mask_pos)
    if viewpe > 0:
        e = pe(viewdirs, viewpe)
        indata.append(e if mask_view is None else e * mask_view)
    x = jnp.concatenate(indata, axis=-1)
    w1, b1, w2, b2, w3, b3 = params
    h = jnp.maximum(jnp.dot(x, w1, precision=hp) + b1, 0.0)
    h = jnp.maximum(jnp.dot(h, w2, precision=hp) + b2, 0.0)
    return jax.nn.sigmoid(jnp.dot(h, w3, precision=hp) + b3)


if __name__ == "__main__":
    key = jax.random.PRNGKey(0)
    N, inC, viewpe, pospe, featureC = 300, 4, 6, 6, 128
    in_mlpC = 3 + 2 * viewpe * 3 + 2 * pospe * 3 + inC   # = 79

    ks = jax.random.split(key, 11)
    pts = jax.random.normal(ks[0], (N, 3), jnp.float32)
    viewdirs = jax.random.normal(ks[1], (N, 3), jnp.float32)
    viewdirs = viewdirs / jnp.linalg.norm(viewdirs, axis=-1, keepdims=True)
    features = jax.random.normal(ks[2], (N, inC), jnp.float32)

    def linear_init(kw, kb, fan_in, fan_out, zero_bias=False):
        bound = 1.0 / float(fan_in) ** 0.5
        w = jax.random.uniform(kw, (fan_in, fan_out), jnp.float32, -bound, bound)
        b = (jnp.zeros((1, fan_out), jnp.float32) if zero_bias else
             jax.random.uniform(kb, (1, fan_out), jnp.float32, -bound, bound))
        return w, b

    w1, b1 = linear_init(ks[3], ks[4], in_mlpC, featureC)
    w2, b2 = linear_init(ks[5], ks[6], featureC, featureC)
    w3, b3 = linear_init(ks[7], ks[8], featureC, 3, zero_bias=True)  # constant_(bias, 0)
    params = (w1, b1, w2, b2, w3, b3)

    mask_pos = (jax.random.uniform(ks[9], (N, 2 * pospe * 3)) > 0.5).astype(jnp.float32)
    mask_view = (jax.random.uniform(ks[10], (N, 2 * viewpe * 3)) > 0.5).astype(jnp.float32)

    cases = [
        dict(mask_pos=None, mask_view=None),                       # {'pos':None,'view':None}
        dict(mask_pos=mask_pos, mask_view=mask_view,
             mask_dtype=jnp.bfloat16),                             # binary masks, bf16 stream
        dict(mask_pos=mask_pos, mask_view=None),                   # only 'pos' masked
    ]
    for cfg in cases:
        md = cfg.pop("mask_dtype", jnp.float32)
        out = jax.block_until_ready(
            mlp_render_pe_forward(pts, viewdirs, features, params,
                                  viewpe=viewpe, pospe=pospe,
                                  mask_dtype=md, **cfg))
        ref = ref_forward(pts, viewdirs, features, params,
                          cfg["mask_pos"], cfg["mask_view"], viewpe, pospe)
        assert out.shape == (N, 3)
        assert bool(jnp.all(jnp.isfinite(out)))
        # Outputs are a sigmoid in (0,1); atol covers MXU f32 multi-pass
        # matmul + transcendental implementation deltas vs the
        # HIGHEST-precision XLA reference, while still catching any
        # structural (permutation / mask / ordering) bug.
        assert jnp.allclose(out, ref, atol=5e-3, rtol=0.0), \
            float(jnp.max(jnp.abs(out - ref)))
    print("KERNEL_OK")
</pallas_src>

<mosaic_0001>
module attributes {stable_mosaic.version = 11 : i64} {
  func.func @_mlp_pe_kernel(%arg0: i32, %arg1: memref<160x10xf32, #tpu.memory_space<vmem>>, %arg2: memref<79x128xf32, #tpu.memory_space<vmem>>, %arg3: memref<1x128xf32, #tpu.memory_space<vmem>>, %arg4: memref<128x128xf32, #tpu.memory_space<vmem>>, %arg5: memref<1x128xf32, #tpu.memory_space<vmem>>, %arg6: memref<128x3xf32, #tpu.memory_space<vmem>>, %arg7: memref<1x3xf32, #tpu.memory_space<vmem>>, %arg8: memref<160x3xf32, #tpu.memory_space<vmem>>) attributes {dimension_semantics = [#tpu.dimension_semantics<parallel>], iteration_bounds = array<i64: 2>, scalar_prefetch = 0 : i64, scratch_operands = 0 : i64, tpu.core_type = #tpu.core_type<tc>, window_params = [{transform_indices = @transform_0, window_bounds = array<i64: 160, 10>}, {pipeline_mode = #tpu.pipeline_mode<synchronous>, transform_indices = @transform_1, window_bounds = array<i64: 79, 128>}, {pipeline_mode = #tpu.pipeline_mode<synchronous>, transform_indices = @transform_2, window_bounds = array<i64: 1, 128>}, {pipeline_mode = #tpu.pipeline_mode<synchronous>, transform_indices = @transform_3, window_bounds = array<i64: 128, 128>}, {pipeline_mode = #tpu.pipeline_mode<synchronous>, transform_indices = @transform_4, window_bounds = array<i64: 1, 128>}, {pipeline_mode = #tpu.pipeline_mode<synchronous>, transform_indices = @transform_5, window_bounds = array<i64: 128, 3>}, {pipeline_mode = #tpu.pipeline_mode<synchronous>, transform_indices = @transform_6, window_bounds = array<i64: 1, 3>}, {transform_indices = @transform_7, window_bounds = array<i64: 160, 3>}]} {
    %c0 = arith.constant 0 : index
    %c0_0 = arith.constant 0 : index
    %0 = vector.load %arg1[%c0, %c0_0] : memref<160x10xf32, #tpu.memory_space<vmem>>, vector<160x10xf32>
    %1 = vector.extract_strided_slice %0 {offsets = [0, 0], sizes = [160, 7], strides = [1, 1]} : vector<160x10xf32> to vector<160x7xf32>
    %2 = vector.extract_strided_slice %0 {offsets = [0, 4], sizes = [160, 3], strides = [1, 1]} : vector<160x10xf32> to vector<160x3xf32>
    %3 = vector.extract_strided_slice %0 {offsets = [0, 7], sizes = [160, 3], strides = [1, 1]} : vector<160x10xf32> to vector<160x3xf32>
    %4 = tpu.iota {dimensions = array<i32: 1>} : vector<1x6xi32>
    %c1_i32 = arith.constant 1 : i32
    %5 = vector.broadcast %c1_i32 : i32 to vector<1x6xi32>
    %6 = arith.shli %5, %4 : vector<1x6xi32>
    %7 = arith.sitofp %6 : vector<1x6xi32> to vector<1x6xf32>
    %8 = vector.extract_strided_slice %3 {offsets = [0, 0], sizes = [160, 1], strides = [1, 1]} : vector<160x3xf32> to vector<160x1xf32>
    %9 = vector.broadcast %8 : vector<160x1xf32> to vector<160x6xf32>
    %10 = vector.broadcast %7 : vector<1x6xf32> to vector<160x6xf32>
    %11 = arith.mulf %9, %10 : vector<160x6xf32>
    %12 = vector.extract_strided_slice %3 {offsets = [0, 1], sizes = [160, 1], strides = [1, 1]} : vector<160x3xf32> to vector<160x1xf32>
    %13 = vector.broadcast %12 : vector<160x1xf32> to vector<160x6xf32>
    %14 = vector.broadcast %7 : vector<1x6xf32> to vector<160x6xf32>
    %15 = arith.mulf %13, %14 : vector<160x6xf32>
    %16 = vector.extract_strided_slice %3 {offsets = [0, 2], sizes = [160, 1], strides = [1, 1]} : vector<160x3xf32> to vector<160x1xf32>
    %17 = vector.broadcast %16 : vector<160x1xf32> to vector<160x6xf32>
    %18 = vector.broadcast %7 : vector<1x6xf32> to vector<160x6xf32>
    %19 = arith.mulf %17, %18 : vector<160x6xf32>
    %20 = tpu.iota {dimensions = array<i32: 1>} : vector<1x6xi32>
    %c1_i32_1 = arith.constant 1 : i32
    %21 = vector.broadcast %c1_i32_1 : i32 to vector<1x6xi32>
    %22 = arith.shli %21, %20 : vector<1x6xi32>
    %23 = arith.sitofp %22 : vector<1x6xi32> to vector<1x6xf32>
    %24 = vector.extract_strided_slice %2 {offsets = [0, 0], sizes = [160, 1], strides = [1, 1]} : vector<160x3xf32> to vector<160x1xf32>
    %25 = vector.broadcast %24 : vector<160x1xf32> to vector<160x6xf32>
    %26 = vector.broadcast %23 : vector<1x6xf32> to vector<160x6xf32>
    %27 = arith.mulf %25, %26 : vector<160x6xf32>
    %28 = vector.extract_strided_slice %2 {offsets = [0, 1], sizes = [160, 1], strides = [1, 1]} : vector<160x3xf32> to vector<160x1xf32>
    %29 = vector.broadcast %28 : vector<160x1xf32> to vector<160x6xf32>
    %30 = vector.broadcast %23 : vector<1x6xf32> to vector<160x6xf32>
    %31 = arith.mulf %29, %30 : vector<160x6xf32>
    %32 = vector.extract_strided_slice %2 {offsets = [0, 2], sizes = [160, 1], strides = [1, 1]} : vector<160x3xf32> to vector<160x1xf32>
    %33 = vector.broadcast %32 : vector<160x1xf32> to vector<160x6xf32>
    %34 = vector.broadcast %23 : vector<1x6xf32> to vector<160x6xf32>
    %35 = arith.mulf %33, %34 : vector<160x6xf32>
    %36 = tpu.concatenate %11, %15, %19, %27, %31, %35 in 1 : vector<160x6xf32>, vector<160x6xf32>, vector<160x6xf32>, vector<160x6xf32>, vector<160x6xf32>, vector<160x6xf32> -> vector<160x36xf32>
    %37 = math.sin %36 : vector<160x36xf32>
    %38 = math.cos %36 : vector<160x36xf32>
    %39 = tpu.concatenate %37, %38 in 1 : vector<160x36xf32>, vector<160x36xf32> -> vector<160x72xf32>
    %40 = tpu.concatenate %1, %39 in 1 : vector<160x7xf32>, vector<160x72xf32> -> vector<160x79xf32>
    %c0_2 = arith.constant 0 : index
    %c0_3 = arith.constant 0 : index
    %41 = vector.load %arg2[%c0_2, %c0_3] : memref<79x128xf32, #tpu.memory_space<vmem>>, vector<79x128xf32>
    %cst = arith.constant dense<0.000000e+00> : vector<160x128xf32>
    %42 = tpu.matmul %40, %41, %cst {dimension_numbers = #tpu.dot_dimension_numbers<[1], [0], [0], [1], [0, 0, 1, 1], [], []>} : vector<160x79xf32>, vector<79x128xf32>, vector<160x128xf32> -> vector<160x128xf32>
    %c0_4 = arith.constant 0 : index
    %c0_5 = arith.constant 0 : index
    %43 = vector.load %arg3[%c0_4, %c0_5] : memref<1x128xf32, #tpu.memory_space<vmem>>, vector<1x128xf32>
    %44 = vector.broadcast %43 : vector<1x128xf32> to vector<160x128xf32>
    %45 = arith.addf %42, %44 : vector<160x128xf32>
    %cst_6 = arith.constant 0.000000e+00 : f32
    %46 = vector.broadcast %cst_6 : f32 to vector<160x128xf32>
    %47 = arith.maximumf %45, %46 : vector<160x128xf32>
    %c0_7 = arith.constant 0 : index
    %c0_8 = arith.constant 0 : index
    %48 = vector.load %arg4[%c0_7, %c0_8] : memref<128x128xf32, #tpu.memory_space<vmem>>, vector<128x128xf32>
    %cst_9 = arith.constant dense<0.000000e+00> : vector<160x128xf32>
    %49 = tpu.matmul %47, %48, %cst_9 {dimension_numbers = #tpu.dot_dimension_numbers<[1], [0], [0], [1], [0, 0, 1, 1], [], []>} : vector<160x128xf32>, vector<128x128xf32>, vector<160x128xf32> -> vector<160x128xf32>
    %c0_10 = arith.constant 0 : index
    %c0_11 = arith.constant 0 : index
    %50 = vector.load %arg5[%c0_10, %c0_11] : memref<1x128xf32, #tpu.memory_space<vmem>>, vector<1x128xf32>
    %51 = vector.broadcast %50 : vector<1x128xf32> to vector<160x128xf32>
    %52 = arith.addf %49, %51 : vector<160x128xf32>
    %cst_12 = arith.constant 0.000000e+00 : f32
    %53 = vector.broadcast %cst_12 : f32 to vector<160x128xf32>
    %54 = arith.maximumf %52, %53 : vector<160x128xf32>
    %c0_13 = arith.constant 0 : index
    %c0_14 = arith.constant 0 : index
    %55 = vector.load %arg6[%c0_13, %c0_14] : memref<128x3xf32, #tpu.memory_space<vmem>>, vector<128x3xf32>
    %cst_15 = arith.constant dense<0.000000e+00> : vector<160x3xf32>
    %56 = tpu.matmul %54, %55, %cst_15 {dimension_numbers = #tpu.dot_dimension_numbers<[1], [0], [0], [1], [0, 0, 1, 1], [], []>} : vector<160x128xf32>, vector<128x3xf32>, vector<160x3xf32> -> vector<160x3xf32>
    %c0_16 = arith.constant 0 : index
    %c0_17 = arith.constant 0 : index
    %57 = vector.load %arg7[%c0_16, %c0_17] : memref<1x3xf32, #tpu.memory_space<vmem>>, vector<1x3xf32>
    %58 = vector.broadcast %57 : vector<1x3xf32> to vector<160x3xf32>
    %59 = arith.addf %56, %58 : vector<160x3xf32>
    %cst_18 = arith.constant 0.000000e+00 : f32
    %60 = vector.broadcast %cst_18 : f32 to vector<160x3xf32>
    %61 = arith.subf %60, %59 : vector<160x3xf32>
    %62 = math.exp %61 : vector<160x3xf32>
    %cst_19 = arith.constant 1.000000e+00 : f32
    %63 = vector.broadcast %cst_19 : f32 to vector<160x3xf32>
    %64 = arith.addf %63, %62 : vector<160x3xf32>
    %cst_20 = arith.constant 1.000000e+00 : f32
    %65 = vector.broadcast %cst_20 : f32 to vector<160x3xf32>
    %66 = arith.divf %65, %64 : vector<160x3xf32>
    %c0_21 = arith.constant 0 : index
    %c0_22 = arith.constant 0 : index
    %67 = vector.load %arg8[%c0_21, %c0_22] : memref<160x3xf32, #tpu.memory_space<vmem>>, vector<160x3xf32>
    tpu.vector_store %arg8[%c0_21, %c0_22], %66 {strides = array<i32>} : memref<160x3xf32, #tpu.memory_space<vmem>>, vector<160x3xf32>,
    return
  }
  func.func @transform_0(%arg0: i32) -> (i32, i32) {
    %c0_i32 = arith.constant 0 : i32
    %c0_i32_0 = arith.constant 0 : i32
    return %arg0, %c0_i32 : i32, i32
  }
  func.func @transform_1(%arg0: i32) -> (i32, i32) {
    %c0_i32 = arith.constant 0 : i32
    %c0_i32_0 = arith.constant 0 : i32
    %c0_i32_1 = arith.constant 0 : i32
    return %c0_i32, %c0_i32_0 : i32, i32
  }
  func.func @transform_2(%arg0: i32) -> (i32, i32) {
    %c0_i32 = arith.constant 0 : i32
    %c0_i32_0 = arith.constant 0 : i32
    %c0_i32_1 = arith.constant 0 : i32
    return %c0_i32, %c0_i32_0 : i32, i32
  }
  func.func @transform_3(%arg0: i32) -> (i32, i32) {
    %c0_i32 = arith.constant 0 : i32
    %c0_i32_0 = arith.constant 0 : i32
    %c0_i32_1 = arith.constant 0 : i32
    return %c0_i32, %c0_i32_0 : i32, i32
  }
  func.func @transform_4(%arg0: i32) -> (i32, i32) {
    %c0_i32 = arith.constant 0 : i32
    %c0_i32_0 = arith.constant 0 : i32
    %c0_i32_1 = arith.constant 0 : i32
    return %c0_i32, %c0_i32_0 : i32, i32
  }
  func.func @transform_5(%arg0: i32) -> (i32, i32) {
    %c0_i32 = arith.constant 0 : i32
    %c0_i32_0 = arith.constant 0 : i32
    %c0_i32_1 = arith.constant 0 : i32
    return %c0_i32, %c0_i32_0 : i32, i32
  }
  func.func @transform_6(%arg0: i32) -> (i32, i32) {
    %c0_i32 = arith.constant 0 : i32
    %c0_i32_0 = arith.constant 0 : i32
    %c0_i32_1 = arith.constant 0 : i32
    return %c0_i32, %c0_i32_0 : i32, i32
  }
  func.func @transform_7(%arg0: i32) -> (i32, i32) {
    %c0_i32 = arith.constant 0 : i32
    %c0_i32_0 = arith.constant 0 : i32
    return %arg0, %c0_i32 : i32, i32
  }
}

</mosaic_0001>

<bundles_post_ra>
// kernel: tpu_custom_call.1
= control target key start
LH: loop header
LB: loop body
LE: loop exit
PB: predicated region body
PF: predicated region fallthrough
CT: control target
= control target key end

     0   :  { %s9118_s24 = smov 0   ;;  %s14801_s0 = inlined_call_operand.vmem [shape: f32[320,10], index: 0, kind: input, shape index: {}]   ;;  %s14802_s1 = inlined_call_operand.vmem [shape: f32[79,128], index: 1, kind: input, shape index: {}]   ;;  %s14803_s2 = inlined_call_operand.vmem [shape: f32[1,128], index: 2, kind: input, shape index: {}]   ;;  %s14804_s3 = inlined_call_operand.vmem [shape: f32[128,128], index: 3, kind: input, shape index: {}]   ;;  %s14805_s4 = inlined_call_operand.vmem [shape: f32[1,128], index: 4, kind: input, shape index: {}]   ;;  %s14806_s5 = inlined_call_operand.vmem [shape: f32[128,3], index: 5, kind: input, shape index: {}]   ;;  %s14807_s6 = inlined_call_operand.vmem [shape: f32[1,3], index: 6, kind: input, shape index: {}]   ;;  %s14808_s7 = inlined_call_operand.vmem [shape: f32[320,3], index: 7, kind: output, shape index: {}]  }
   0x1 LB: > { %s8660_s25 = sadd.s32 4294967295, %s9055_s24   ;;  %p8664_p0 = scmp.ge.s32.totalorder %s9055_s24, 1  ;;  %s9055_s24 = sphi %s9118_s24, %s17_s24  }
   0x2   : > { %p238_p1 = scmp.lt.s32.totalorder %s9055_s24, 3 }
   0x4   : > { %p239_p2 = pnand %p8664_p0, %p238_p1 }
   0x6   : > { %242 = sbr.rel (%p239_p2) target bundleno = 2033 (0x7f1), region = 48 }
   0xb   : > { %s270_s26 = smul.u32 20, %s8660_s25  ;;  %v9057_v0 = vmov 7   ;;  %v9058_v21 = vmov 8   ;;  %v14809_v24 = vmov 9   ;;  %v14811_v29 = vmov 5   ;;  %s9064_s8 = smov 6  }
   0xc   : > { %8883 = vset.pattern.permute.xlu2 %v9057_v0  ;;  %8882 = vset.pattern.permute.xlu1 %v9057_v0  ;;  %v14815_v33 = vmov 6   ;;  %v14813_v37 = vmov 4   ;;  %v302_v53 = vlaneseq  ;;  %v9063_v58 = vmov 1   ;;  %s9065_s9 = smov 12   ;;  %s9066_s10 = smov 24  }
   0xd   : > { %8881 = vset.pattern.permute.xlu0 %v9057_v0  ;;  %p271_p3 = scmp.lt.s32.totalorder %s270_s26, 39  ;;  %s9067_s11 = smov 18   ;;  %vm14880_vm0 = vcmask 48128   ;;  %vm14879_vm1 = vcmask 97280   ;;  %vm14906_vm2 = vcmask 146432   ;;  %vm14909_vm3 = vcmask 195584  }
   0xe   : > { %v303_v54 = vand.u32 127, %v302_v53  ;;  %s9068_s12 = smov 30   ;;  %vm14910_vm4 = vcmask 244736   ;;  %s9076_s13 = smov 36  }
   0xf   : > { %s15754_s26 = smov (!%p271_p3, %s270_s26), 39  ;;  %s9077_s14 = smov 7  }
  0x10   : > { %s8665_s27 = sshll.u32 %s15754_s26, 3  ;;  %v304_v59 = vshll.u32 %v9063_v58, %v303_v54 }
  0x11   : > { %s9134_s30 = scalar_lea.vmem %s14801_s0, %s8665_s27 }
  0x12   : > { %v9137_v1 = vld [vmem:[%s9134_s30 + $0x20] sm:$0xff]  ;;  %v9140_v2 = vld [vmem:[%s9134_s30 + $0x10] sm:$0xff]  ;;  %v9149_v4 = vld [vmem:[%s9134_s30 + $0x28] sm:$0xff]  ;;  %v9303_v60 = vcvt.s32.f32 %v304_v59 }
  0x13   : > { %v9143_v3 = vld [vmem:[%s9134_s30] sm:$0xff]  ;;  %328 = vperm.xlu2 %8883, %v9137_v1   ;;  %318 = vperm.xlu1 %8882, %v9140_v2   ;;  %v9152_v5 = vld [vmem:[%s9134_s30 + $0x18] sm:$0xff]  ;;  %v9155_v6 = vld [vmem:[%s9134_s30 + $0x8] sm:$0xff] }
  0x14   : > { %308 = vperm.xlu0 %8881, %v9143_v3   ;;  %v9161_v7 = vld [vmem:[%s9134_s30 + $0x40] sm:$0xff]  ;;  %v9164_v8 = vld [vmem:[%s9134_s30 + $0x38] sm:$0xff]  ;;  %v9167_v9 = vld [vmem:[%s9134_s30 + $0x30] sm:$0xff]  ;;  %15107 = vst [vmem:[#allocation20_spill] sm:$0xff] %v9303_v60 }
  0x15   : > { %v9173_v10 = vld [vmem:[%s9134_s30 + $0x58] sm:$0xff]  ;;  %v9176_v11 = vld [vmem:[%s9134_s30 + $0x50] sm:$0xff]  ;;  %v9179_v12 = vld [vmem:[%s9134_s30 + $0x48] sm:$0xff] }
  0x16   : > { %v9185_v13 = vld [vmem:[%s9134_s30 + $0x70] sm:$0xff]  ;;  %v9188_v14 = vld [vmem:[%s9134_s30 + $0x68] sm:$0xff]  ;;  %v9191_v15 = vld [vmem:[%s9134_s30 + $0x60] sm:$0xff] }
  0x17   : > { %v299_v16 = vld [vmem:[%s9134_s30 + $0x88] sm:$0xff]  ;;  %v298_v17 = vld [vmem:[%s9134_s30 + $0x80] sm:$0xff]  ;;  %v297_v18 = vld [vmem:[%s9134_s30 + $0x78] sm:$0xff] }
  0x18   : > { %v301_v19 = vld [vmem:[%s9134_s30 + $0x98] sm:$0xff]  ;;  %v300_v20 = vld [vmem:[%s9134_s30 + $0x90] sm:$0xff] }
  0x1b   : > { %333 = vperm.xlu2 %8883, %v9149_v4   ;;  %323 = vperm.xlu1 %8882, %v9152_v5  }
  0x1c   : > { %313 = vperm.xlu0 %8881, %v9155_v6  }
  0x23   : > { %348 = vperm.xlu2 %8883, %v9161_v7   ;;  %343 = vperm.xlu1 %8882, %v9164_v8  }
  0x24   : > { %338 = vperm.xlu0 %8881, %v9167_v9  }
  0x2b   : > { %363 = vperm.xlu2 %8883, %v9173_v10   ;;  %358 = vperm.xlu1 %8882, %v9176_v11  }
  0x2c   : > { %353 = vperm.xlu0 %8881, %v9179_v12  }
  0x33   : > { %378 = vperm.xlu2 %8883, %v9185_v13   ;;  %373 = vperm.xlu1 %8882, %v9188_v14  }
  0x34   : > { %368 = vperm.xlu0 %8881, %v9191_v15  }
  0x3b   : > { %393 = vperm.xlu2 %8883, %v299_v16   ;;  %388 = vperm.xlu1 %8882, %v298_v17  }
  0x3c   : > { %383 = vperm.xlu0 %8881, %v297_v18  }
  0x43   : > { %8884 = vset.pattern.permute.xlu2 %v9058_v21  ;;  %403 = vperm.xlu1 %8882, %v301_v19  }
  0x44   : > { %398 = vperm.xlu0 %8881, %v300_v20   ;;  %427 = vperm.xlu2 %8884, %v9143_v3  }
  0x4b   : > { %8886 = vset.pattern.permute.xlu1 %v9058_v21 }
  0x4c   : > { %8885 = vset.pattern.permute.xlu0 %v9058_v21  ;;  %435 = vperm.xlu1 %8886, %v9140_v2  }
  0x4d   : > { %439 = vperm.xlu2 %8884, %v9152_v5   ;;  %431 = vperm.xlu0 %8885, %v9155_v6  }
  0x54   : > { %443 = vperm.xlu1 %8886, %v9137_v1  }
  0x55   : > { %447 = vperm.xlu2 %8884, %v9149_v4   ;;  %451 = vperm.xlu0 %8885, %v9167_v9  }
  0x5c   : > { %455 = vperm.xlu1 %8886, %v9164_v8  }
  0x5d   : > { %459 = vperm.xlu2 %8884, %v9161_v7   ;;  %463 = vperm.xlu0 %8885, %v9179_v12  }
  0x64   : > { %467 = vperm.xlu1 %8886, %v9176_v11  }
  0x65   : > { %471 = vperm.xlu2 %8884, %v9173_v10   ;;  %475 = vperm.xlu0 %8885, %v9191_v15  }
  0x6c   : > { %479 = vperm.xlu1 %8886, %v9188_v14  }
  0x6d   : > { %483 = vperm.xlu2 %8884, %v9185_v13   ;;  %487 = vperm.xlu0 %8885, %v297_v18   ;;  %v9216_v22 = vpop.permute.xlu2 %328 }
  0x6e   : > { %15089 = vst [vmem:[#allocation2_spill] sm:$0xff] %v9216_v22 }
  0x74   : > { %491 = vperm.xlu1 %8886, %v298_v17  }
  0x75   : > { %495 = vperm.xlu2 %8884, %v299_v16   ;;  %499 = vperm.xlu0 %8885, %v300_v20   ;;  %v9218_v23 = vpop.permute.xlu2 %333 }
  0x76   : > { %15090 = vst [vmem:[#allocation3_spill] sm:$0xff] %v9218_v23 }
  0x7c   : > { %503 = vperm.xlu1 %8886, %v301_v19  }
  0x7d   : > { %8887 = vset.pattern.permute.xlu2 %v14809_v24  ;;  %8888 = vset.pattern.permute.xlu0 %v14809_v24  ;;  %v9222_v25 = vpop.permute.xlu2 %348 }
  0x7e   : > { %15091 = vst [vmem:[#allocation4_spill] sm:$0xff] %v9222_v25  ;;  %527 = vperm.xlu2 %8887, %v9143_v3   ;;  %531 = vperm.xlu0 %8888, %v9155_v6  }
  0x84   : > { %8889 = vset.pattern.permute.xlu1 %v14809_v24 }
  0x85   : > { %v9227_v26 = vpop.permute.xlu2 %363  ;;  %535 = vperm.xlu1 %8889, %v9140_v2   ;;  %v9230_v27 = vpop.permute.xlu1 %318 }
  0x86   : > { %15092 = vst [vmem:[#allocation5_spill] sm:$0xff] %v9227_v26  ;;  %539 = vperm.xlu2 %8887, %v9152_v5   ;;  %v9233_v28 = vpop.permute.xlu0 %308  ;;  %8894 = vset.pattern.permute.xlu0 %v14811_v29 }
  0x87   : > { %735 = vperm.xlu0 %8894, %v9140_v2  }
  0x8d   : > { %v9237_v30 = vpop.permute.xlu2 %378  ;;  %543 = vperm.xlu1 %8889, %v9137_v1   ;;  %v9240_v31 = vpop.permute.xlu1 %323 }
  0x8e   : > { %15093 = vst [vmem:[#allocation6_spill] sm:$0xff] %v9237_v30  ;;  %547 = vperm.xlu2 %8887, %v9149_v4   ;;  %v9243_v32 = vpop.permute.xlu0 %313  ;;  %v14823_v30 = vmov 683565275  }
  0x8f   : > { %8895 = vset.pattern.permute.xlu0 %v14815_v33 }
  0x90   : > { %827 = vperm.xlu0 %8895, %v9143_v3  }
  0x95   : > { %v9247_v34 = vpop.permute.xlu2 %393  ;;  %555 = vperm.xlu1 %8889, %v9164_v8   ;;  %v9250_v35 = vpop.permute.xlu1 %343 }
  0x96   : > { %15094 = vst [vmem:[#allocation7_spill] sm:$0xff] %v9247_v34  ;;  %559 = vperm.xlu2 %8887, %v9161_v7   ;;  %v9253_v36 = vpop.permute.xlu0 %338 }
  0x97   : > { %15095 = vst [vmem:[#allocation8_spill] sm:$0xff] %v9250_v35 }
  0x98   : > { %15096 = vst [vmem:[#allocation9_spill] sm:$0xff] %v9253_v36 }
  0x9d   : > { %8890 = vset.pattern.permute.xlu1 %v14813_v37  ;;  %v9256_v38 = vpop.permute.xlu1 %358 }
  0x9e   : > { %15097 = vst [vmem:[#allocation10_spill] sm:$0xff] %v9256_v38  ;;  %8891 = vset.pattern.permute.xlu2 %v14811_v29  ;;  %v9259_v39 = vpop.permute.xlu0 %353  ;;  %627 = vperm.xlu1 %8890, %v9143_v3   ;;  %v428_v40 = vpop.permute.xlu2 %427  ;;  %v15123_v38 = vmov 920167782  }
  0x9f   : > { %15098 = vst [vmem:[#allocation11_spill] sm:$0xff] %v9259_v39  ;;  %727 = vperm.xlu2 %8891, %v9143_v3   ;;  %v506_v61 = vmul.f32 %v428_v40, %v9303_v60 }
  0xa5   : > { %v9263_v41 = vpop.permute.xlu1 %373 }
  0xa6   : > { %15099 = vst [vmem:[#allocation12_spill] sm:$0xff] %v9263_v41  ;;  %v9265_v42 = vpop.permute.xlu0 %368  ;;  %631 = vperm.xlu1 %8890, %v9155_v6  }
  0xa7   : > { %15100 = vst [vmem:[#allocation13_spill] sm:$0xff] %v9265_v42  ;;  %v9268_v43 = vpop.permute.xlu2 %439  ;;  %731 = vperm.xlu2 %8891, %v9155_v6  }
  0xad   : > { %v9271_v44 = vpop.permute.xlu1 %388 }
  0xae   : > { %15101 = vst [vmem:[#allocation14_spill] sm:$0xff] %v9271_v44  ;;  %v9273_v45 = vpop.permute.xlu0 %383  ;;  %8892 = vset.pattern.permute.xlu1 %v14815_v33 }
  0xaf   : > { %15102 = vst [vmem:[#allocation15_spill] sm:$0xff] %v9273_v45  ;;  %v9276_v46 = vpop.permute.xlu2 %447  ;;  %831 = vperm.xlu1 %8892, %v9155_v6   ;;  %8893 = vset.pattern.permute.xlu2 %v14813_v37  ;;  %v15120_v45 = vmov 6  }
  0xb0   : > { %635 = vperm.xlu2 %8893, %v9140_v2  }
  0xb5   : > { %v9281_v47 = vpop.permute.xlu1 %403 }
  0xb6   : > { %15103 = vst [vmem:[#allocation16_spill] sm:$0xff] %v9281_v47  ;;  %v9283_v48 = vpop.permute.xlu0 %398 }
  0xb7   : > { %15104 = vst [vmem:[#allocation17_spill] sm:$0xff] %v9283_v48  ;;  %v9285_v49 = vpop.permute.xlu2 %459  ;;  %835 = vperm.xlu1 %8892, %v9140_v2  }
  0xb8   : > { %639 = vperm.xlu2 %8893, %v9152_v5  }
  0xbe   : > { %v436_v50 = vpop.permute.xlu1 %435 }
  0xbf   : > { %v9289_v51 = vpop.permute.xlu2 %471  ;;  %v432_v52 = vpop.permute.xlu0 %431  ;;  %8896 = vset.pattern.permute.xlu1 %v14811_v29 }
  0xc0   : > { %15105 = vst [vmem:[#allocation18_spill] sm:$0xff] %v9289_v51  ;;  %739 = vperm.xlu1 %8896, %v9152_v5   ;;  %8897 = vset.pattern.permute.xlu2 %v14815_v33 }
  0xc1   : > { %839 = vperm.xlu2 %8897, %v9152_v5  }
  0xc6   : > { %v9295_v55 = vpop.permute.xlu1 %443 }
  0xc7   : > { %v9297_v56 = vpop.permute.xlu2 %483  ;;  %v9299_v57 = vpop.permute.xlu0 %451 }
  0xc8   : > { %15106 = vst [vmem:[#allocation19_spill] sm:$0xff] %v9297_v56  ;;  %743 = vperm.xlu1 %8896, %v9137_v1  }
  0xc9   : > { %843 = vperm.xlu2 %8897, %v9137_v1  }
  0xce   : > { %v9306_v62 = vpop.permute.xlu1 %455 }
  0xcf   : > { %v9308_v63 = vpop.permute.xlu2 %495  ;;  %v9310_v0 = vpop.permute.xlu0 %463 }
  0xd0   : > { %15108 = vst [vmem:[#allocation21_spill] sm:$0xff] %v9308_v63  ;;  %946 = vrot.lane.b32.xlu1 %v506_v61, %s9064_s8 }
  0xd1   : > { %15109 = vst [vmem:[#allocation22_spill] sm:$0xff] %v9310_v0  ;;  %8898 = vset.pattern.permute.xlu2 %v14813_v37 }
  0xd2   : > { %647 = vperm.xlu2 %8898, %v9149_v4  }
  0xd6   : > { %v9315_v2 = vpop.permute.xlu1 %467 }
  0xd7   : > { %v9317_v3 = vpop.permute.xlu0 %475 }
  0xd8   : > { %15110 = vst [vmem:[#allocation23_spill] sm:$0xff] %v9317_v3  ;;  %v528_v5 = vpop.permute.xlu2 %527  ;;  %747 = vperm.xlu1 %8896, %v9149_v4  }
  0xd9   : > { %v606_v6 = vmul.f32 %v528_v5, %v9303_v60 }
  0xdb   : > { %1026 = vrot.lane.b32.xlu0 %v606_v6, %s9065_s9  ;;  %v507_v6 = vmul.f32 %v432_v52, %v9303_v60 }
  0xde   : > { %v9322_v16 = vpop.permute.xlu1 %479 }
  0xdf   : > { %15111 = vst [vmem:[#allocation24_spill] sm:$0xff] %v9322_v16  ;;  %v9324_v17 = vpop.permute.xlu0 %487 }
  0xe0   : > { %15112 = vst [vmem:[#allocation25_spill] sm:$0xff] %v9324_v17  ;;  %v9326_v18 = vpop.permute.xlu2 %539 }
  0xe3   : > { %847 = vperm.xlu0 %8895, %v9149_v4  }
  0xe6   : > { %v9329_v19 = vpop.permute.xlu1 %491 }
  0xe7   : > { %15113 = vst [vmem:[#allocation26_spill] sm:$0xff] %v9329_v19  ;;  %v9331_v20 = vpop.permute.xlu0 %499 }
  0xe8   : > { %15114 = vst [vmem:[#allocation27_spill] sm:$0xff] %v9331_v20  ;;  %v9333_v21 = vpop.permute.xlu2 %547 }
  0xee   : > { %v9335_v40 = vpop.permute.xlu1 %503 }
  0xef   : > { %15115 = vst [vmem:[#allocation28_spill] sm:$0xff] %v9335_v40 }
  0xf0   : > { %v532_v53 = vpop.permute.xlu0 %531  ;;  %v9337_v54 = vpop.permute.xlu2 %559 }
  0xf1   : > { %v607_v58 = vmul.f32 %v532_v53, %v9303_v60 }
  0xf3   : > { %1028 = vrot.lane.b32.xlu0 %v607_v58, %s9065_s9  ;;  %v508_v58 = vmul.f32 %v436_v50, %v9303_v60 }
  0xf7   : > { %v536_v59 = vpop.permute.xlu1 %535 }
  0xf9   : > { %v728_v61 = vpop.permute.xlu2 %727  ;;  %v736_v24 = vpop.permute.xlu0 %735 }
  0xfa   : > { %v806_v5 = vmul.f32 %v728_v61, %v9303_v60 }
  0xfb   : > { %851 = vperm.xlu0 %8895, %v9167_v9  }
  0xfc   : > { %1186 = vrot.lane.b32.xlu1 %v806_v5, %s9066_s10 }
  0xff   : > { %v544_v4 = vpop.permute.xlu1 %543 }
 0x101   : > { %v732_v61 = vpop.permute.xlu2 %731 }
 0x102   : > { %v807_v29 = vmul.f32 %v732_v61, %v9303_v60 }
 0x103   : > { %8899 = vset.pattern.permute.xlu0 %v14813_v37 }
 0x104   : > { %948 = vrot.lane.b32.xlu1 %v507_v6, %s9064_s8  ;;  %643 = vperm.xlu0 %8899, %v9137_v1   ;;  %v509_v6 = vmul.f32 %v9268_v43, %v9303_v60  ;;  %v828_v1 = vpop.permute.xlu0 %827 }
 0x105   : > { %v906_v50 = vmul.f32 %v828_v1, %v9303_v60 }
 0x107   : > { %v9348_v53 = vpop.permute.xlu1 %555 }
 0x10a   : > { %v636_v61 = vpop.permute.xlu2 %635 }
 0x10b   : > { %v708_v43 = vmul.f32 %v636_v61, %v9303_v60 }
 0x10c   : > { %751 = vperm.xlu1 %8896, %v9167_v9   ;;  %950 = vrot.lane.b32.xlu0 %v508_v58, %s9064_s8 }
 0x110   : > { %v628_v5 = vpop.permute.xlu1 %627 }
 0x111   : > { %v706_v52 = vmul.f32 %v628_v5, %v9303_v60 }
 0x113   : > { %1106 = vrot.lane.b32.xlu2 %v706_v52, %s9067_s11 }
 0x114   : > { %1188 = vrot.lane.b32.xlu1 %v807_v29, %s9066_s10  ;;  %952 = vrot.lane.b32.xlu0 %v509_v6, %s9064_s8  ;;  %v808_v29 = vmul.f32 %v736_v24, %v9303_v60 }
 0x115   : > { %8900 = vset.pattern.permute.xlu1 %v14813_v37  ;;  %v640_v37 = vpop.permute.xlu2 %639 }
 0x116   : > { %v709_v24 = vmul.f32 %v640_v37, %v9303_v60 }
 0x118   : > { %v632_v58 = vpop.permute.xlu1 %631 }
 0x119   : > { %v707_v52 = vmul.f32 %v632_v58, %v9303_v60  ;;  %v608_v58 = vmul.f32 %v536_v59, %v9303_v60  ;;  %v610_v59 = vmul.f32 %v544_v4, %v9303_v60 }
 0x11b   : > { %1266 = vrot.lane.b32.xlu2 %v906_v50, %s9068_s12 }
 0x11c   : > { %655 = vperm.xlu1 %8900, %v9164_v8  }
 0x121   : > { %v832_v5 = vpop.permute.xlu1 %831 }
 0x122   : > { %v907_v1 = vmul.f32 %v832_v5, %v9303_v60 }
 0x123   : > { %651 = vperm.xlu2 %8898, %v9167_v9  }
 0x124   : > { %1110 = vrot.lane.b32.xlu1 %v708_v43, %s9067_s11  ;;  %v840_v43 = vpop.permute.xlu2 %839 }
 0x125   : > { %v909_v5 = vmul.f32 %v840_v43, %v9303_v60 }
 0x129   : > { %v836_v6 = vpop.permute.xlu1 %835 }
 0x12a   : > { %v908_v37 = vmul.f32 %v836_v6, %v9303_v60  ;;  %v511_v6 = vmul.f32 %v9276_v46, %v9303_v60 }
 0x12b   : > { %1108 = vrot.lane.b32.xlu2 %v707_v52, %s9067_s11  ;;  %v609_v52 = vmul.f32 %v9326_v18, %v9303_v60  ;;  %v510_v18 = vmul.f32 %v9295_v55, %v9303_v60  ;;  %v15117_v55 = vmov 9  }
 0x12c   : > { %1190 = vrot.lane.b32.xlu1 %v808_v29, %s9066_s10  ;;  %8901 = vset.pattern.permute.xlu2 %v14815_v33  ;;  %v15116_v29 = vmov 5  }
 0x132   : > { %v740_v50 = vpop.permute.xlu1 %739 }
 0x133   : > { %v809_v61 = vmul.f32 %v740_v50, %v9303_v60  ;;  %1268 = vrot.lane.b32.xlu2 %v907_v1, %s9068_s12 }
 0x134   : > { %659 = vperm.xlu1 %8900, %v9161_v7  }
 0x135   : > { %1192 = vrot.lane.b32.xlu0 %v809_v61, %s9066_s10 }
 0x13a   : > { %v744_v1 = vpop.permute.xlu1 %743 }
 0x13b   : > { %1030 = vrot.lane.b32.xlu2 %v608_v58, %s9065_s9  ;;  %v810_v61 = vmul.f32 %v744_v1, %v9303_v60 }
 0x13c   : > { %1112 = vrot.lane.b32.xlu1 %v709_v24, %s9067_s11 }
 0x13d   : > { %663 = vperm.xlu0 %8899, %v9179_v12  }
 0x142   : > { %v947_v24 = vpop.permute.xlu1 %946 }
 0x143   : > { %855 = vperm.xlu2 %8901, %v9164_v8  }
 0x144   : > { %1272 = vrot.lane.b32.xlu1 %v909_v5, %s9068_s12 }
 0x145   : > { %8902 = vset.pattern.permute.xlu0 %v15116_v29 }
 0x146   : > { %755 = vperm.xlu0 %8902, %v9164_v8   ;;  %v844_v8 = vpop.permute.xlu2 %843 }
 0x14b   : > { %1270 = vrot.lane.b32.xlu2 %v908_v37, %s9068_s12  ;;  %v406_v37 = vmul.f32 %v9233_v28, %v9303_v60 }
 0x14c   : > { %1034 = vrot.lane.b32.xlu1 %v610_v59, %s9065_s9 }
 0x14d   : > { %v1027_v50 = vpop.permute.xlu0 %1026  ;;  %v1327_v59 = vsel %vm14880_vm0, %v406_v37, %v947_v24 }
 0x14e   : > { %759 = vperm.xlu0 %8902, %v9161_v7   ;;  %v648_v58 = vpop.permute.xlu2 %647  ;;  %v1348_v1 = vsel %vm14879_vm1, %v1327_v59, %v1027_v50 }
 0x153   : > { %1032 = vrot.lane.b32.xlu2 %v609_v52, %s9065_s9 }
 0x155   : > { %v9398_v4 = vpop.permute.xlu0 %847 }
 0x156   : > { %1194 = vrot.lane.b32.xlu0 %v810_v61, %s9066_s10 }
 0x15b   : > { %859 = vperm.xlu2 %8901, %v9161_v7   ;;  %v9408_v7 = vpop.permute.xlu1 %747 }
 0x15e   : > { %956 = vrot.lane.b32.xlu0 %v511_v6, %s9064_s8 }
 0x163   : > { %954 = vrot.lane.b32.xlu2 %v510_v18, %s9064_s8 }
 0x164   : > { %8903 = vset.pattern.permute.xlu2 %v15116_v29 }
 0x165   : > { %v1029_v43 = vpop.permute.xlu0 %1028 }
 0x166   : > { %767 = vperm.xlu0 %8902, %v9176_v11  }
 0x16b   : > { %763 = vperm.xlu2 %8903, %v9179_v12  }
 0x16d   : > { %v852_v46 = vpop.permute.xlu0 %851  ;;  %v1107_v5 = vpop.permute.xlu2 %1106 }
 0x16e   : > { %8906 = vset.pattern.permute.xlu0 %v15117_v55  ;;  %v1187_v52 = vpop.permute.xlu1 %1186  ;;  %v1369_v61 = vsel %vm14906_vm2, %v1348_v1, %v1107_v5 }
 0x16f   : > { %551 = vperm.xlu0 %8906, %v9167_v9   ;;  %v1390_v6 = vsel %vm14909_vm3, %v1369_v61, %v1187_v52  ;;  %v910_v61 = vmul.f32 %v844_v8, %v9303_v60  ;;  %v407_v8 = vmul.f32 %v9243_v32, %v9303_v60 }
 0x173   : > { %8904 = vset.pattern.permute.xlu2 %v14815_v33 }
 0x174   : > { %863 = vperm.xlu2 %8904, %v9179_v12  }
 0x175   : > { %v1267_v28 = vpop.permute.xlu2 %1266 }
 0x176   : > { %v9422_v18 = vsel %vm14910_vm4, %v1390_v6, %v1267_v28  ;;  %v644_v9 = vpop.permute.xlu0 %643  ;;  %v949_v37 = vpop.permute.xlu1 %948 }
 0x177   : > { %15118 = vst [vmem:[#allocation29_spill] sm:$0xff] %v9422_v18  ;;  %v1434_v24 = vand.u32 2139095040, %v9422_v18  ;;  %563 = vperm.xlu0 %8906, %v9179_v12   ;;  %v710_v50 = vmul.f32 %v644_v9, %v9303_v60  ;;  %v611_v12 = vmul.f32 %v9333_v21, %v9303_v60  ;;  %v912_v21 = vmul.f32 %v852_v46, %v9303_v60 }
 0x179   : > { %v1435_v5 = vshrl.u32 %v1434_v24, 23  ;;  %1114 = vrot.lane.b32.xlu1 %v710_v50, %s9067_s11 }
 0x17b   : > { %v8667_v59 = vadd.s32 4294967169, %v1435_v5 }
 0x17c   : > { %8905 = vset.pattern.permute.xlu2 %v15117_v55 }
 0x17d   : > { %v1441_v1 = vadd.s32 1, %v8667_v59  ;;  %567 = vperm.xlu2 %8905, %v9176_v11   ;;  %v652_v52 = vpop.permute.xlu2 %651  ;;  %v1328_v59 = vsel %vm14880_vm0, %v407_v8, %v949_v37 }
 0x17e   : > { %v712_v6 = vmul.f32 %v652_v52, %v9303_v60  ;;  %v9436_v9 = vpop.permute.xlu1 %751 }
 0x17f   : > { %vm1442_vm5 = vcmp.gt.s32.totalorder %v1441_v1, 0  ;;  %571 = vperm.xlu0 %8906, %v9173_v10   ;;  %v812_v63 = vmul.f32 %v9436_v9, %v9303_v60 }
 0x180   : > { %v1443_v28 = vsel %vm1442_vm5, %v1441_v1, 0  ;;  %v14817_v1 = vmov 1326507024  }
 0x181   : > { %1274 = vrot.lane.b32.xlu1 %v910_v61, %s9068_s12  ;;  %v1445_v24 = vand.u32 31, %v1443_v28  ;;  %v1349_v61 = vsel %vm14879_vm1, %v1328_v59, %v1029_v43  ;;  %v14825_v43 = vmov 2131351028  }
 0x183   : > { %v9443_v5 = vsub.s32 32, %v1445_v24  ;;  %v1448_v19 = vshll.u32 %v14823_v30, %v1445_v24 }
 0x185   : > { %1036 = vrot.lane.b32.xlu2 %v611_v12, %s9065_s9  ;;  %v1109_v50 = vpop.permute.xlu2 %1108  ;;  %v1461_v52 = vshrl.u32 %v14817_v1, %v9443_v5  ;;  %v711_v12 = vmul.f32 %v648_v58, %v9303_v60  ;;  %v9459_v1 = vshrl.u32 %v1443_v28, 5  ;;  %v14821_v58 = vmov 2102212464  }
 0x186   : > { %8907 = vset.pattern.permute.xlu2 %v14815_v33  ;;  %v1189_v33 = vpop.permute.xlu1 %1188  ;;  %v1370_v37 = vsel %vm14906_vm2, %v1349_v61, %v1109_v50  ;;  %v1455_v59 = vshrl.u32 %v14821_v58, %v9443_v5  ;;  %v1457_v48 = vshll.u32 %v14821_v58, %v1445_v24  ;;  %v14827_v50 = vmov 2475754826  }
 0x187   : > { %1118 = vrot.lane.b32.xlu0 %v712_v6, %s9067_s11  ;;  %v14819_v6 = vmov 920167782   ;;  %v1449_v61 = vshrl.u32 %v14827_v50, %v9443_v5  ;;  %v1391_v8 = vsel %vm14909_vm3, %v1370_v37, %v1189_v33  ;;  %v1451_v28 = vshll.u32 %v14827_v50, %v1445_v24 }
 0x188   : > { %v1458_v32 = vshrl.u32 %v14819_v6, %v9443_v5  ;;  %v1460_v46 = vshll.u32 %v14819_v6, %v1445_v24  ;;  %v911_v58 = vmul.f32 %v9398_v4, %v9303_v60  ;;  %v15121_v33 = vand.u32 2147483647, %v9422_v18 }
 0x189   : > { %667 = vperm.xlu1 %8900, %v9176_v11   ;;  %vm1466_vm6 = vcmp.lt.s32.totalorder %v9459_v1, 4  ;;  %vm1463_vm7 = vcmp.lt.s32.totalorder %v9459_v1, 1  ;;  %vm1465_vm8 = vcmp.lt.s32.totalorder %v9459_v1, 3  ;;  %vm1464_vm9 = vcmp.lt.s32.totalorder %v9459_v1, 2 }
 0x18a   : > { %v1462_v6 = vor.u32 %v1461_v52, %v1460_v46  ;;  %v1459_v44 = vor.u32 %v1458_v32, %v1457_v48  ;;  %v1438_v52 = vand.u32 8388607, %v15121_v33 }
 0x18c   : > { %v1476_v48 = vsel %vm1466_vm6, %v1462_v6, 1326507024  ;;  %v1439_v32 = vor.u32 8388608, %v1438_v52 }
 0x18d   : > { %867 = vperm.xlu2 %8907, %v9176_v11   ;;  %v1269_v47 = vpop.permute.xlu2 %1268  ;;  %v1452_v11 = vshrl.u32 %v14825_v43, %v9443_v5 }
 0x18e   : > { %v9472_v34 = vsel %vm14910_vm4, %v1391_v8, %v1269_v47  ;;  %v9486_v47 = vor.u32 %v1449_v61, %v1448_v19  ;;  %v811_v19 = vmul.f32 %v9408_v7, %v9303_v60  ;;  %v1477_v8 = vsel %vm1465_vm8, %v1459_v44, %v1476_v48  ;;  %v9516_v61 = vpop.permute.xlu0 %950 }
 0x18f   : > { %1278 = vrot.lane.b32.xlu0 %v912_v21, %s9068_s12  ;;  %v1454_v21 = vshll.u32 %v14825_v43, %v1445_v24  ;;  %15119 = vst [vmem:[#allocation30_spill] sm:$0xff] %v9472_v34  ;;  %v9481_v37 = vor.u32 %v1452_v11, %v1451_v28  ;;  %v1589_v4 = vand.u32 2139095040, %v9472_v34  ;;  %v1472_v24 = vsel %vm1466_vm6, %v1459_v44, 920167782 }
 0x190   : > { %v9520_v28 = vshll.u32 %v1439_v32, 8  ;;  %v512_v48 = vmul.f32 %v9299_v57, %v9303_v60  ;;  %v15129_v0 = vand.u32 2147483647, %v9472_v34 }
 0x191   : > { %1116 = vrot.lane.b32.xlu1 %v711_v12, %s9067_s11  ;;  %v9483_v46 = vor.u32 %v1455_v59, %v1454_v21  ;;  %v15122_v12 = vmov 4   ;;  %v1471_v11 = vsel %vm1463_vm7, %v9486_v47, %v9481_v37  ;;  %v1590_v59 = vshrl.u32 %v1589_v4, 23 }
 0x192   : > { %8910 = vset.pattern.permute.xlu1 %v15120_v45  ;;  %v1480_v4 = vand.u32 65535, %v9520_v28  ;;  %v1481_v57 = vshrl.u32 %v9520_v28, 16  ;;  %v1593_v23 = vand.u32 8388607, %v15129_v0 }
 0x193   : > { %v1475_v6 = vsel %vm1463_vm7, %v9481_v37, %v9483_v46  ;;  %v8670_v21 = vadd.s32 4294967169, %v1590_v59 }
 0x194   : > { %v1478_v7 = vsel %vm1464_vm9, %v1475_v6, %v1477_v8 }
 0x195   : > { %1276 = vrot.lane.b32.xlu2 %v911_v58, %s9068_s12  ;;  %v1473_v58 = vsel %vm1465_vm8, %v9483_v46, %v1472_v24  ;;  %v1483_v33 = vshrl.u32 %v1478_v7, 16  ;;  %v1596_v24 = vadd.s32 1, %v8670_v21  ;;  %v1482_v8 = vand.u32 65535, %v1478_v7  ;;  %v9533_v59 = vpop.permute.xlu2 %1030 }
 0x196   : > { %8908 = vset.pattern.permute.xlu2 %v15122_v12  ;;  %v1474_v44 = vsel %vm1464_vm9, %v1471_v11, %v1473_v58  ;;  %v9529_v32 = vpop.permute.xlu0 %952 }
 0x197   : > { %v1505_v52 = vshrl.u32 %v1474_v44, 16  ;;  %v1504_v11 = vand.u32 65535, %v1474_v44  ;;  %vm1597_vm10 = vcmp.gt.s32.totalorder %v1596_v24, 0  ;;  %v1484_v30 = vmul.u32 %v1482_v8, %v1480_v4 }
 0x198   : > { %v1598_v43 = vsel %vm1597_vm10, %v1596_v24, 0  ;;  %v1487_v24 = vmul.u32 %v1483_v33, %v1481_v57 }
 0x199   : > { %1196 = vrot.lane.b32.xlu1 %v811_v19, %s9066_s10  ;;  %v9526_v19 = vmul.u32 %v1483_v33, %v1480_v4  ;;  %v1507_v6 = vmul.u32 %v1505_v52, %v1480_v4  ;;  %v1506_v7 = vmul.u32 %v1504_v11, %v1480_v4  ;;  %v9539_v44 = vmul.u32 %v1504_v11, %v1481_v57 }
 0x19a   : > { %v1600_v20 = vand.u32 31, %v1598_v43  ;;  %v9568_v36 = vshrl.u32 %v1598_v43, 5 }
 0x19b   : > { %v1488_v58 = vshll.u32 %v9526_v19, 16  ;;  %v1510_v21 = vshll.u32 %v1507_v6, 16  ;;  %v14829_v56 = vshll.u32 %v9539_v44, 16 }
 0x19c   : > { %v9555_v9 = vsub.s32 32, %v1600_v20  ;;  %vm1621_vm15 = vcmp.lt.s32.totalorder %v9568_v36, 4  ;;  %vm1618_vm5 = vcmp.lt.s32.totalorder %v9568_v36, 1  ;;  %vm1620_vm10 = vcmp.lt.s32.totalorder %v9568_v36, 3 }
 0x19d   : > { %671 = vperm.xlu2 %8908, %v9173_v10   ;;  %vm1492_vm11 = vc.u32 %v1484_v30, %v1488_v58  ;;  %v1494_v50 = vadd.s32 %v1488_v58, %v1484_v30  ;;  %vm1514_vm12 = vc.u32 %v1506_v7, %v1510_v21  ;;  %v9541_v40 = vadd.s32 %v1510_v21, %v1506_v7  ;;  %v9557_v58 = vpop.permute.xlu2 %855 }
 0x19e   : > { %v1509_v30 = vmul.u32 %v1505_v52, %v1481_v57  ;;  %v1613_v17 = vshrl.u32 %v15123_v38, %v9555_v9  ;;  %v15124_v52 = vmov 1326507024  }
 0x19f   : > { %vm1518_vm14 = vc.u32 %v9541_v40, %v14829_v56 }
 0x1a1   : > { %958 = vrot.lane.b32.xlu1 %v512_v48, %s9064_s8  ;;  %v9537_v48 = vmul.u32 %v1482_v8, %v1481_v57  ;;  %v14830_v8 = vmov 0   ;;  %v1616_v57 = vshrl.u32 %v15124_v52, %v9555_v9 }
 0x1a2   : > { %v1493_v4 = vsel %vm1492_vm11, 1, %v14830_v8  ;;  %v1515_v11 = vsel %vm1514_vm12, 1, %v14830_v8  ;;  %v1519_v41 = vsel %vm1518_vm14, 1, %v14830_v8 }
 0x1a3   : > { %v1495_v21 = vadd.s32 %v1493_v4, %v1487_v24  ;;  %v1517_v7 = vadd.s32 %v1515_v11, %v1509_v30  ;;  %v15125_v24 = vmov 2102212464   ;;  %v15126_v11 = vmov 2475754826  }
 0x1a4   : > { %v1612_v4 = vshll.u32 %v15125_v24, %v1600_v20  ;;  %v1604_v30 = vshrl.u32 %v15126_v11, %v9555_v9  ;;  %v1606_v16 = vshll.u32 %v15126_v11, %v1600_v20  ;;  %v1491_v0 = vshrl.u32 %v9537_v48, 16 }
 0x1a5   : > { %8909 = vset.pattern.permute.xlu2 %v15116_v29  ;;  %v1521_v56 = vadd.s32 %v1519_v41, %v1517_v7  ;;  %v1511_v41 = vshrl.u32 %v1507_v6, 16  ;;  %v1513_v6 = vshrl.u32 %v9539_v44, 16 }
 0x1a6   : > { %771 = vperm.xlu2 %8909, %v9173_v10   ;;  %v1490_v10 = vshll.u32 %v9537_v48, 16  ;;  %v1614_v43 = vor.u32 %v1613_v17, %v1612_v4  ;;  %v9594_v17 = vpop.permute.xlu2 %1270  ;;  %v15130_v48 = vshll.u32 %v9539_v44, 16 }
 0x1a7   : > { %v9547_v42 = vpop.permute.xlu0 %1192  ;;  %v1522_v25 = vadd.s32 %v1521_v56, %v1511_v41 }
 0x1a8   : > { %vm1496_vm13 = vc.u32 %v1494_v50, %v1490_v10  ;;  %v1615_v50 = vshll.u32 %v15123_v38, %v1600_v20 }
 0x1a9   : > { %v1497_v33 = vsel %vm1496_vm13, 1, %v14830_v8  ;;  %v15127_v8 = vmov 2131351028  }
 0x1aa   : > { %v1499_v10 = vadd.s32 %v1497_v33, %v1495_v21  ;;  %v1607_v26 = vshrl.u32 %v15127_v8, %v9555_v9  ;;  %v1489_v21 = vshrl.u32 %v9526_v19, 16  ;;  %v15128_v33 = vmov 683565275  }
 0x1ab   : > { %v1603_v39 = vshll.u32 %v15128_v33, %v1600_v20  ;;  %v1609_v51 = vshll.u32 %v15127_v8, %v1600_v20  ;;  %v1617_v35 = vor.u32 %v1616_v57, %v1615_v50  ;;  %v1627_v20 = vsel %vm1621_vm15, %v1614_v43, 920167782 }
 0x1ac   : > { %v1500_v3 = vadd.s32 %v1499_v10, %v1489_v21  ;;  %v1447_v56 = vshrl.u32 %v15128_v33, %v9443_v5  ;;  %v1594_v50 = vor.u32 8388608, %v1593_v23  ;;  %v9634_v57 = vadd.s32 %v9541_v40, %v15130_v48 }
 0x1ad   : > { %v9587_v22 = vor.u32 %v1604_v30, %v1603_v39  ;;  %v1468_v39 = vsel %vm1466_vm6, %v9483_v46, 2102212464  ;;  %vm1619_vm6 = vcmp.lt.s32.totalorder %v9568_v36, 2 }
 0x1ae   : > { %1198 = vrot.lane.b32.xlu2 %v812_v63, %s9066_s10  ;;  %v513_v63 = vmul.f32 %v9306_v62, %v9303_v60  ;;  %v1610_v62 = vshrl.u32 %v15125_v24, %v9555_v9  ;;  %v1467_v23 = vsel %vm1463_vm7, %v1447_v56, %v9486_v47  ;;  %v1469_v46 = vsel %vm1465_vm8, %v9481_v37, %v1468_v39  ;;  %v9647_v44 = vpop.permute.xlu2 %1032 }
 0x1af   : > { %v9580_v7 = vpop.permute.xlu0 %663  ;;  %v1470_v37 = vsel %vm1464_vm9, %v1467_v23, %v1469_v46 }
 0x1b0   : > { %v9591_v19 = vor.u32 %v1610_v62, %v1609_v51  ;;  %v1523_v51 = vadd.s32 %v1522_v25, %v1513_v6  ;;  %v9643_v62 = vshll.u32 %v1594_v50, 8  ;;  %v1524_v6 = vmul.u32 %v9520_v28, %v1470_v37 }
 0x1b1   : > { %v514_v50 = vmul.f32 %v9285_v49, %v9303_v60  ;;  %v9665_v49 = vpop.permute.xlu1 %655  ;;  %v15131_v37 = vmov 0  }
 0x1b2   : > { %v1527_v10 = vadd.s32 1, %v1523_v51 }
 0x1b6   : > { %960 = vrot.lane.b32.xlu2 %v513_v63, %s9064_s8  ;;  %v9589_v63 = vor.u32 %v1607_v26, %v1606_v16  ;;  %v1631_v26 = vsel %vm1621_vm15, %v1617_v35, 1326507024  ;;  %v9609_v16 = vadd.s32 %v1500_v3, %v1491_v0  ;;  %v1628_v35 = vsel %vm1620_vm10, %v9591_v19, %v1627_v20  ;;  %v9658_v23 = vpop.permute.xlu2 %859 }
 0x1b7   : > { %v1632_v3 = vsel %vm1620_vm10, %v1614_v43, %v1631_v26  ;;  %v1635_v20 = vand.u32 65535, %v9643_v62 }
 0x1b8   : > { %v1626_v5 = vsel %vm1618_vm5, %v9587_v22, %v9589_v63  ;;  %v1630_v25 = vsel %vm1618_vm5, %v9589_v63, %v9591_v19  ;;  %v756_v30 = vpop.permute.xlu0 %755  ;;  %vm1526_vm11 = vc.u32 %v9609_v16, %v9634_v57 }
 0x1b9   : > { %v1629_v4 = vsel %vm1619_vm6, %v1626_v5, %v1628_v35  ;;  %v1633_v47 = vsel %vm1619_vm6, %v1630_v25, %v1632_v3  ;;  %v813_v21 = vmul.f32 %v756_v30, %v9303_v60  ;;  %v1528_v41 = vsel %vm1526_vm11, %v1527_v10, %v1523_v51 }
 0x1ba   : > { %v1660_v40 = vshrl.u32 %v1629_v4, 16  ;;  %v1638_v43 = vshrl.u32 %v1633_v47, 16  ;;  %v1529_v56 = vadd.s32 %v1528_v41, %v1524_v6  ;;  %v1659_v26 = vand.u32 65535, %v1629_v4 }
 0x1bb   : > { %1200 = vrot.lane.b32.xlu0 %v813_v21, %s9066_s10  ;;  %v1637_v39 = vand.u32 65535, %v1633_v47  ;;  %v1636_v5 = vshrl.u32 %v9643_v62, 16 }
 0x1bc   : > { %v1662_v1 = vmul.u32 %v1660_v40, %v1635_v20  ;;  %v1640_v0 = vmul.u32 %v1638_v43, %v1635_v20  ;;  %v1530_v51 = vadd.s32 536870912, %v1529_v56  ;;  %v1661_v25 = vmul.u32 %v1659_v26, %v1635_v20 }
 0x1bd   : > { %v1663_v3 = vmul.u32 %v1659_v26, %v1636_v5  ;;  %v1641_v46 = vmul.u32 %v1637_v39, %v1636_v5  ;;  %v1642_v26 = vmul.u32 %v1638_v43, %v1636_v5  ;;  %v1111_v43 = vpop.permute.xlu1 %1110 }
 0x1be   : > { %775 = vperm.xlu2 %8909, %v9191_v15   ;;  %v1665_v28 = vshll.u32 %v1662_v1, 16  ;;  %v1643_v35 = vshll.u32 %v1640_v0, 16  ;;  %v9662_v48 = vshrl.u32 %v1530_v51, 30  ;;  %v9679_v34 = vpop.permute.xlu2 %954 }
 0x1bf   : > { %v1667_v30 = vshll.u32 %v1663_v3, 16  ;;  %v1645_v47 = vshll.u32 %v1641_v46, 16 }
 0x1c0   : > { %vm1669_vm7 = vc.u32 %v1661_v25, %v1665_v28  ;;  %v1671_v10 = vadd.s32 %v1665_v28, %v1661_v25  ;;  %v1532_v41 = vshll.u32 %v9662_v48, 30 }
 0x1c1   : > { %v1670_v21 = vsel %vm1669_vm7, 1, %v15131_v37 }
 0x1c2   : > { %vm1673_vm9 = vc.u32 %v1671_v10, %v1667_v30  ;;  %v9676_v25 = vsub.s32 %v1529_v56, %v1532_v41  ;;  %v1644_v56 = vshrl.u32 %v1640_v0, 16 }
 0x1c3   : > { %962 = vrot.lane.b32.xlu0 %v514_v50, %s9064_s8  ;;  %v1674_v28 = vsel %vm1673_vm9, 1, %v15131_v37 }
 0x1c4   : > { %vm1534_vm13 = vcmp.lt.s32.totalorder %v9676_v25, 0 }
 0x1c6   : > { %8912 = vset.pattern.permute.xlu2 %v15120_v45 }
 0x1c7   : > { %875 = vperm.xlu2 %8912, %v9191_v15   ;;  %v1639_v15 = vmul.u32 %v1637_v39, %v1635_v20  ;;  %v1664_v20 = vmul.u32 %v1660_v40, %v1636_v5  ;;  %v614_v39 = vmul.f32 %v9337_v54, %v9303_v60  ;;  %v1666_v5 = vshrl.u32 %v1662_v1, 16 }
 0x1c9   : > { %vm1647_vm8 = vc.u32 %v1639_v15, %v1643_v35  ;;  %v1649_v4 = vadd.s32 %v1643_v35, %v1639_v15  ;;  %v1672_v50 = vadd.s32 %v1670_v21, %v1664_v20  ;;  %v9674_v35 = vpop.permute.xlu0 %759  ;;  %v9689_v20 = vpop.permute.xlu2 %763 }
 0x1ca   : > { %v1648_v6 = vsel %vm1647_vm8, 1, %v15131_v37 }
 0x1cb   : > { %vm1651_vm12 = vc.u32 %v1649_v4, %v1645_v47  ;;  %583 = vperm.xlu0 %8906, %v9185_v13   ;;  %v1650_v51 = vadd.s32 %v1648_v6, %v1642_v26  ;;  %v1676_v40 = vadd.s32 %v1674_v28, %v1672_v50  ;;  %v1535_v13 = vsub.s32 0, %v9676_v25  ;;  %v1191_v28 = vpop.permute.xlu1 %1190 }
 0x1cc   : > { %v1652_v15 = vsel %vm1651_vm12, 1, %v15131_v37  ;;  %v715_v4 = vmul.f32 %v9580_v7, %v9303_v60  ;;  %v1668_v6 = vshrl.u32 %v1663_v3, 16  ;;  %v1646_v26 = vshrl.u32 %v1641_v46, 16 }
 0x1cd   : > { %v1654_v54 = vadd.s32 %v1652_v15, %v1650_v51  ;;  %v1677_v47 = vadd.s32 %v1676_v40, %v1666_v5  ;;  %v1536_v41 = vsel %vm1534_vm13, %v1535_v13, %v9676_v25  ;;  %v1623_v7 = vsel %vm1621_vm15, %v9591_v19, 2102212464 }
 0x1ce   : > { %v1537_v0 = vclz %v1536_v41  ;;  %v1602_v50 = vshrl.u32 %v15128_v33, %v9555_v9  ;;  %v9707_v46 = vadd.s32 %v1671_v10, %v1667_v30  ;;  %v408_v10 = vmul.f32 %v9230_v27, %v9303_v60 }
 0x1cf   : > { %8913 = vset.pattern.permute.xlu2 %v15117_v55  ;;  %v1655_v21 = vadd.s32 %v1654_v54, %v1644_v56  ;;  %v1678_v1 = vadd.s32 %v1677_v47, %v1668_v6  ;;  %v914_v5 = vmul.f32 %v9658_v23, %v9303_v60 }
 0x1d0   : > { %579 = vperm.xlu2 %8913, %v9188_v14   ;;  %v1622_v3 = vsel %vm1618_vm5, %v1602_v50, %v9587_v22  ;;  %v8668_v19 = vadd.s32 4294967294, %v1537_v0  ;;  %v1329_v36 = vsel %vm14880_vm0, %v408_v10, %v9516_v61  ;;  %v1525_v0 = vadd.s32 %v9634_v57, %v9609_v16 }
 0x1d1   : > { %v9699_v51 = vadd.s32 %v1655_v21, %v1646_v26  ;;  %v1682_v15 = vadd.s32 1, %v1678_v1  ;;  %v864_v40 = vpop.permute.xlu2 %863  ;;  %v1350_v56 = vsel %vm14879_vm1, %v1329_v36, %v9533_v59 }
 0x1d2   : > { %vm8669_vm15 = vcmp.lt.s32.totalorder %v8668_v19, 0  ;;  %v1371_v41 = vsel %vm14906_vm2, %v1350_v56, %v1111_v43 }
 0x1d3   : > { %1124 = vrot.lane.b32.xlu0 %v715_v4, %s9067_s11  ;;  %vm1681_vm14 = vc.u32 %v9699_v51, %v9707_v46  ;;  %v1540_v13 = vsel %vm8669_vm15, 0, %v8668_v19  ;;  %v9723_v4 = vpop.permute.xlu1 %659  ;;  %v1392_v23 = vsel %vm14909_vm3, %v1371_v41, %v1191_v28  ;;  %v9019_v41 = vld [vmem:[%s9134_s30 + $0x58] sm:$0xff] }
 0x1d4   : > { %v1683_v22 = vsel %vm1681_vm14, %v1682_v15, %v1678_v1  ;;  %v9738_v61 = vsel %vm14910_vm4, %v1392_v23, %v9594_v17  ;;  %v1541_v59 = vsub.s32 32, %v1540_v13  ;;  %v9742_v1 = vld [vmem:[%s9134_s30 + $0x70] sm:$0xff]  ;;  %v915_v15 = vmul.f32 %v864_v40, %v9303_v60 }
 0x1d5   : > { %15133 = vst [vmem:[#allocation32_spill] sm:$0xff] %v9738_v61 }
 0x1d6   : > { %15134 = vst [vmem:[#allocation33_spill] sm:$0xff] %v9742_v1  ;;  %v1543_v17 = vshrl.u32 %v1525_v0, %v1541_v59 }
 0x1d8   : > { %1042 = vrot.lane.b32.xlu2 %v614_v39, %s9065_s9  ;;  %v9692_v39 = vpop.permute.xlu0 %1194 }
 0x1d9   : > { %8915 = vset.pattern.permute.xlu2 %v15120_v45  ;;  %v9727_v47 = vpop.permute.xlu2 %567 }
 0x1da   : > { %15132 = vst [vmem:[#allocation31_spill] sm:$0xff] %v9727_v47 }
 0x1db   : > { %1284 = vrot.lane.b32.xlu0 %v915_v15, %s9068_s12  ;;  %v15136_v15 = vand.u32 2147483647, %v9422_v18 }
 0x1dd   : > { %vm9785_vm11 = vcmp.le.f32.partialorder %v15136_v15, 0.7853982 }
 0x1e0   : > { %879 = vperm.xlu2 %8915, %v9188_v14   ;;  %v1624_v14 = vsel %vm1620_vm10, %v9589_v63, %v1623_v7  ;;  %v9714_v54 = vpop.permute.xlu0 %956  ;;  %v1744_v7 = vand.u32 2139095040, %v9738_v61 }
 0x1e1   : > { %v1625_v9 = vsel %vm1619_vm6, %v1622_v3, %v1624_v14  ;;  %v9748_v3 = vpop.permute.xlu1 %1112  ;;  %v9750_v14 = vpop.permute.xlu2 %1036  ;;  %vm1433_vm6 = vcmp.lt.s32.totalorder %v9422_v18, 0 }
 0x1e2   : > { %v1679_v63 = vmul.u32 %v9643_v62, %v1625_v9  ;;  %v1545_v62 = vsub.s32 4294967266, %v1540_v13  ;;  %v1745_v19 = vshrl.u32 %v1744_v7, 23  ;;  %v1542_v9 = vshll.u32 %v9676_v25, %v1540_v13 }
 0x1e4   : > { %v1684_v30 = vadd.s32 %v1683_v22, %v1679_v63  ;;  %v1546_v6 = vadd.s32 127, %v1545_v62  ;;  %v1544_v57 = vor.u32 %v1543_v17, %v1542_v9  ;;  %v8673_v10 = vadd.s32 4294967169, %v1745_v19  ;;  %v9020_v17 = vld [vmem:[%s9134_s30 + $0x60] sm:$0xff] }
 0x1e6   : > { %v1685_v27 = vadd.s32 536870912, %v1684_v30  ;;  %v1547_v43 = vshll.u32 %v1546_v6, 23  ;;  %v1551_v25 = vcvt.s32.f32 %v1544_v57 }
 0x1e8   : > { %8916 = vset.pattern.permute.xlu2 %v15122_v12  ;;  %v9730_v21 = vpop.permute.xlu0 %767  ;;  %v9734_v26 = vshrl.u32 %v1685_v27, 30  ;;  %v1548_v22 = vor.u32 4788187, %v1547_v43  ;;  %v9769_v27 = vld [vmem:[%s9134_s30 + $0x88] sm:$0xff] }
 0x1e9   : > { %1282 = vrot.lane.b32.xlu2 %v914_v5, %s9068_s12  ;;  %v9763_v13 = vpop.permute.xlu1 %1272  ;;  %v9765_v36 = vpop.permute.xlu2 %867  ;;  %595 = vperm.xlu0 %8906, %v9769_v27  }
 0x1ea   : > { %v1687_v50 = vshll.u32 %v9734_v26, 30  ;;  %v1549_v5 = vand.u32 2147483647, %v1548_v22  ;;  %15135 = vst [vmem:[#allocation34_spill] sm:$0xff] %v9765_v36  ;;  %v409_v22 = vmul.f32 %v9240_v31, %v9303_v60  ;;  %v613_v31 = vmul.f32 %v9348_v53, %v9303_v60 }
 0x1ec   : > { %v9754_v63 = vsub.s32 %v1684_v30, %v1687_v50  ;;  %v1751_v30 = vadd.s32 1, %v8673_v10  ;;  %v1552_v56 = vmul.f32 %v1551_v25, %v1549_v5  ;;  %v1330_v10 = vsel %vm14880_vm0, %v409_v22, %v9529_v32 }
 0x1ed   : > { %v815_v25 = vmul.f32 %v9689_v20, %v9303_v60 }
 0x1ee   : > { %v1690_v40 = vsub.s32 0, %v9754_v63  ;;  %vm1689_vm5 = vcmp.lt.s32.totalorder %v9754_v63, 0  ;;  %vm1752_vm10 = vcmp.gt.s32.totalorder %v1751_v30, 0  ;;  %v1553_v6 = vxor.u32 2147483648, %v1552_v56 }
 0x1ef   : > { %v1753_v59 = vsel %vm1752_vm10, %v1751_v30, 0 }
 0x1f0   : > { %v552_v28 = vpop.permute.xlu0 %551  ;;  %v1691_v62 = vsel %vm1689_vm5, %v1690_v40, %v9754_v63  ;;  %v1554_v0 = vsel %vm1433_vm6, %v1553_v6, %v1552_v56  ;;  %v1755_v43 = vand.u32 31, %v1753_v59  ;;  %v1351_v40 = vsel %vm14879_vm1, %v1330_v10, %v9647_v44 }
 0x1f1   : > { %683 = vperm.xlu2 %8916, %v9742_v1   ;;  %v612_v16 = vmul.f32 %v552_v28, %v9303_v60  ;;  %v1692_v23 = vclz %v1691_v62  ;;  %8924 = vset.pattern.permute.xlu0 %v15122_v12  ;;  %v9778_v50 = vpop.permute.xlu1 %1034  ;;  %v9780_v28 = vpop.permute.xlu2 %1276  ;;  %v9793_v9 = vsel %vm9785_vm11, %v9422_v18, %v1554_v0  ;;  %v1372_v20 = vsel %vm14906_vm2, %v1351_v40, %v9748_v3 }
 0x1f2   : > { %675 = vperm.xlu0 %8924, %v9020_v17   ;;  %v9801_v57 = vmul.f32 %v9793_v9, %v9793_v9  ;;  %v713_v6 = vmul.f32 %v9665_v49, %v9303_v60  ;;  %v1770_v0 = vshll.u32 %v15123_v38, %v1755_v43  ;;  %v1767_v22 = vshll.u32 %v15125_v24, %v1755_v43 }
 0x1f3   : > { %1038 = vrot.lane.b32.xlu1 %v612_v16, %s9065_s9  ;;  %v8671_v7 = vadd.s32 4294967294, %v1692_v23  ;;  %v9797_v16 = vsub.s32 32, %v1755_v43  ;;  %v516_v23 = vmul.f32 %v9315_v2, %v9303_v60  ;;  %v1393_v40 = vsel %vm14909_vm3, %v1372_v20, %v9547_v42 }
 0x1f4   : > { %v1567_v32 = vmul.f32 -0.00019511016, %v9801_v57  ;;  %v1758_v36 = vshll.u32 %v15128_v33, %v1755_v43 }
 0x1f5   : > { %vm8672_vm7 = vcmp.lt.s32.totalorder %v8671_v7, 0  ;;  %v1771_v56 = vshrl.u32 %v15124_v52, %v9797_v16  ;;  %v1768_v44 = vshrl.u32 %v15123_v38, %v9797_v16  ;;  %v1762_v3 = vshrl.u32 %v15127_v8, %v9797_v16 }
 0x1f6   : > { %v9805_v5 = vsel %vm8672_vm7, 0, %v8671_v7  ;;  %v1765_v15 = vshrl.u32 %v15125_v24, %v9797_v16  ;;  %v1759_v49 = vshrl.u32 %v15126_v11, %v9797_v16 }
 0x1f7   : > { %v1700_v30 = vsub.s32 4294967266, %v9805_v5  ;;  %v1772_v10 = vor.u32 %v1771_v56, %v1770_v0  ;;  %v1769_v7 = vor.u32 %v1768_v44, %v1767_v22  ;;  %v1560_v56 = vmul.f32 -0.001358992, %v9801_v57 }
 0x1f8   : > { %v15142_v0 = vand.u32 2147483647, %v9738_v61  ;;  %v1680_v44 = vadd.s32 %v9707_v46, %v9699_v51 }
 0x1f9   : > { %8917 = vset.pattern.permute.xlu2 %v15116_v29  ;;  %v9816_v62 = vpop.permute.xlu1 %1114  ;;  %v9827_v53 = vpop.permute.xlu2 %671  ;;  %v1701_v2 = vadd.s32 127, %v1700_v30  ;;  %v9855_v30 = vsel %vm14910_vm4, %v1393_v40, %v9763_v13  ;;  %v9872_v40 = vld [vmem:[%s9134_s30 + $0x80] sm:$0xff] }
 0x1fa   : > { %783 = vperm.xlu2 %8917, %v9742_v1   ;;  %15140 = vst [vmem:[#allocation36_spill] sm:$0xff] %v9827_v53  ;;  %v1696_v53 = vsub.s32 32, %v9805_v5  ;;  %v1748_v42 = vand.u32 8388607, %v15142_v0 }
 0x1fb   : > { %871 = vperm.xlu1 %8910, %v9019_v41   ;;  %v9819_v41 = vld [vmem:[%s9134_s30 + $0x78] sm:$0xff]  ;;  %15141 = vst [vmem:[#allocation37_spill] sm:$0xff] %v9855_v30  ;;  %v1702_v22 = vshll.u32 %v1701_v2, 23 }
 0x1fc   : > { %15139 = vst [vmem:[#allocation35_spill] sm:$0xff] %v9819_v41  ;;  %687 = vperm.xlu0 %8924, %v9819_v41   ;;  %v1698_v51 = vshrl.u32 %v1680_v44, %v1696_v53  ;;  %v1749_v2 = vor.u32 8388608, %v1748_v42  ;;  %v1697_v53 = vshll.u32 %v9754_v63, %v9805_v5  ;;  %v1555_v5 = vsub.s32 4, %v9662_v48 }
 0x1fe   : > { %v1699_v42 = vor.u32 %v1698_v51, %v1697_v53 }
 0x201   : > { %v9884_v46 = vpop.permute.xlu1 %1274 }
 0x202   : > { %8920 = vset.pattern.permute.xlu2 %v15117_v55 }
 0x203   : > { %8911 = vset.pattern.permute.xlu1 %v15117_v55  ;;  %1204 = vrot.lane.b32.xlu2 %v815_v25, %s9066_s10  ;;  %v1761_v25 = vshll.u32 %v15126_v11, %v1755_v43 }
 0x204   : > { %575 = vperm.xlu1 %8911, %v9020_v17   ;;  %v9837_v17 = vshrl.u32 %v1753_v59, 5  ;;  %v1568_v59 = vadd.f32 0.008332121, %v1567_v32  ;;  %691 = vperm.xlu0 %8924, %v9872_v40  }
 0x205   : > { %v9860_v32 = vor.u32 %v1762_v3, %v1761_v25  ;;  %v1899_v25 = vand.u32 2139095040, %v9855_v30 }
 0x206   : > { %vm1776_vm8 = vcmp.lt.s32.totalorder %v9837_v17, 4  ;;  %v1569_v3 = vmul.f32 %v1568_v59, %v9801_v57  ;;  %vm1773_vm9 = vcmp.lt.s32.totalorder %v9837_v17, 1  ;;  %vm1775_vm12 = vcmp.lt.s32.totalorder %v9837_v17, 3 }
 0x207   : > { %v1786_v13 = vsel %vm1776_vm8, %v1772_v10, 1326507024  ;;  %vm1774_vm13 = vcmp.lt.s32.totalorder %v9837_v17, 2 }
 0x208   : > { %v1787_v10 = vsel %vm1775_vm12, %v1769_v7, %v1786_v13  ;;  %v1570_v0 = vadd.f32 -0.16666654, %v1569_v3  ;;  %v9917_v3 = vpop.permute.xlu0 %563 }
 0x20b   : > { %966 = vrot.lane.b32.xlu2 %v516_v23, %s9064_s8  ;;  %v1703_v23 = vor.u32 4788187, %v1702_v22  ;;  %v9913_v22 = vshll.u32 %v1749_v2, 8 }
 0x20c   : > { %1040 = vrot.lane.b32.xlu1 %v613_v31, %s9065_s9  ;;  %v1764_v31 = vshll.u32 %v15127_v8, %v1755_v43  ;;  %v9867_v43 = vor.u32 %v1759_v49, %v1758_v36  ;;  %v1561_v36 = vadd.f32 0.041655596, %v1560_v56  ;;  %v1900_v56 = vshrl.u32 %v1899_v25, 23 }
 0x20d   : > { %8914 = vset.pattern.permute.xlu1 %v15122_v12  ;;  %v1704_v13 = vand.u32 2147483647, %v1703_v23  ;;  %v1790_v23 = vand.u32 65535, %v9913_v22 }
 0x20e   : > { %v9862_v20 = vor.u32 %v1765_v15, %v1764_v31  ;;  %v1782_v15 = vsel %vm1776_vm8, %v1769_v7, 920167782  ;;  %v9879_v31 = vpop.permute.xlu2 %771  ;;  %v1781_v59 = vsel %vm1773_vm9, %v9867_v43, %v9860_v32  ;;  %v1562_v63 = vmul.f32 %v1561_v36, %v9801_v57 }
 0x20f   : > { %15143 = vst [vmem:[#allocation38_spill] sm:$0xff] %v9879_v31  ;;  %v8676_v51 = vadd.s32 4294967169, %v1900_v56  ;;  %v1571_v36 = vmul.f32 %v1570_v0, %v9801_v57 }
 0x210   : > { %v1785_v49 = vsel %vm1773_vm9, %v9860_v32, %v9862_v20  ;;  %v1563_v2 = vadd.f32 -0.4999988, %v1562_v63 }
 0x211   : > { %v9905_v7 = vsel %vm1774_vm13, %v1785_v49, %v1787_v10  ;;  %v1706_v10 = vcvt.s32.f32 %v1699_v42  ;;  %v1572_v42 = vadd.f32 1.0, %v1571_v36 }
 0x212   : > { %v1793_v25 = vshrl.u32 %v9905_v7, 16  ;;  %v1564_v63 = vmul.f32 %v1563_v2, %v9801_v57  ;;  %v15147_v57 = vld [vmem:[#allocation30_spill] sm:$0xff]  ;;  %v9951_v2 = vpop.permute.xlu0 %571 }
 0x213   : > { %591 = vperm.xlu2 %8920, %v9872_v40   ;;  %v9947_v36 = vmul.f32 %v1572_v42, %v9793_v9  ;;  %vm1588_vm15 = vcmp.lt.s32.totalorder %v15147_v57, 0 }
 0x214   : > { %1120 = vrot.lane.b32.xlu1 %v713_v6, %s9067_s11  ;;  %v1783_v6 = vsel %vm1775_vm12, %v9862_v20, %v1782_v15  ;;  %v913_v15 = vmul.f32 %v9557_v58, %v9303_v60  ;;  %v1556_v58 = vsel %vm1433_vm6, %v1555_v5, %v9662_v48  ;;  %v9930_v56 = vmul.u32 %v1793_v25, %v1790_v23 }
 0x215   : > { %v9911_v44 = vsel %vm1774_vm13, %v1781_v59, %v1783_v6  ;;  %v1707_v59 = vmul.f32 %v1706_v10, %v1704_v13  ;;  %v668_v6 = vpop.permute.xlu1 %667  ;;  %v9934_v0 = vsel %vm9785_vm11, 0, %v1556_v58  ;;  %15146 = vst [vmem:[#allocation41_spill] sm:$0xff] %v9947_v36  ;;  %v9954_v58 = vld [vmem:[%s9134_s30 + $0x68] sm:$0xff] }
 0x216   : > { %v9920_v49 = vpop.permute.xlu2 %1198  ;;  %v1815_v53 = vshrl.u32 %v9911_v44, 16  ;;  %15145 = vst [vmem:[#allocation40_spill] sm:$0xff] %v9934_v0  ;;  %v716_v48 = vmul.f32 %v668_v6, %v9303_v60  ;;  %v1814_v13 = vand.u32 65535, %v9911_v44  ;;  %v1575_v10 = vadd.s32 3, %v9934_v0 }
 0x217   : > { %15144 = vst [vmem:[#allocation39_spill] sm:$0xff] %v9920_v49  ;;  %v1906_v49 = vadd.s32 1, %v8676_v51  ;;  %v1708_v5 = vxor.u32 2147483648, %v1707_v59  ;;  %v1791_v51 = vshrl.u32 %v9913_v22, 16  ;;  %v1798_v19 = vshll.u32 %v9930_v56, 16 }
 0x218   : > { %v9936_v61 = vmul.u32 %v1815_v53, %v1790_v23  ;;  %15148 = vst [vmem:[#allocation42_spill] sm:$0xff] %v9954_v58  ;;  %v9958_v44 = vadd.f32 1.0, %v1564_v63  ;;  %v15150_v6 = vand.u32 2147483647, %v15147_v57  ;;  %v1816_v47 = vmul.u32 %v1814_v13, %v1790_v23 }
 0x219   : > { %vm1907_vm14 = vcmp.gt.s32.totalorder %v1906_v49, 0  ;;  %v9973_v41 = vmul.u32 %v1814_v13, %v1791_v51  ;;  %v1576_v1 = vand.u32 3, %v1575_v10  ;;  %v14842_v0 = vxor.u32 2147483648, %v9947_v36 }
 0x21a   : > { %15149 = vst [vmem:[#allocation43_spill] sm:$0xff] %v9958_v44  ;;  %vm9962_vm5 = vcmp.le.f32.partialorder %v15150_v6, 0.7853982  ;;  %v1908_v63 = vsel %vm1907_vm14, %v1906_v49, 0  ;;  %v714_v6 = vmul.f32 %v9723_v4, %v9303_v60  ;;  %v816_v4 = vmul.f32 %v9730_v21, %v9303_v60  ;;  %v10030_v29 = vpop.permute.xlu0 %1118 }
 0x21b   : > { %1126 = vrot.lane.b32.xlu2 %v716_v48, %s9067_s11  ;;  %v1819_v13 = vmul.u32 %v1815_v53, %v1791_v51  ;;  %v14843_v10 = vshll.u32 %v9973_v41, 16  ;;  %vm1578_vm7 = vcmp.eq.s32.totalorder %v1576_v1, 0  ;;  %vm1581_vm14 = vcmp.eq.s32.totalorder %v1576_v1, 2  ;;  %v15158_v53 = vld [vmem:[#allocation2_spill] sm:$0xff] }
 0x21c   : > { %1280 = vrot.lane.b32.xlu1 %v913_v15, %s9068_s12  ;;  %v1792_v15 = vand.u32 65535, %v9905_v7  ;;  %v1820_v7 = vshll.u32 %v9936_v61, 16  ;;  %8923 = vset.pattern.permute.xlu2 %v15120_v45 }
 0x21e   : > { %v1794_v9 = vmul.u32 %v1792_v15, %v1790_v23  ;;  %v9966_v42 = vmul.u32 %v1792_v15, %v1791_v51  ;;  %v9969_v31 = vpop.permute.xlu2 %960  ;;  %vm1824_vm6 = vc.u32 %v1816_v47, %v1820_v7  ;;  %v9978_v15 = vadd.s32 %v1820_v7, %v1816_v47 }
 0x21f   : > { %15153 = vst [vmem:[#allocation44_spill] sm:$0xff] %v9969_v31  ;;  %v14845_v31 = vxor.u32 2147483648, %v9958_v44  ;;  %v1825_v7 = vsel %vm1824_vm6, 1, %v15131_v37  ;;  %vm1577_vm6 = vcmp.lt.s32.totalorder %v1576_v1, 2 }
 0x220   : > { %vm1802_vm10 = vc.u32 %v1794_v9, %v1798_v19  ;;  %v1804_v55 = vadd.s32 %v1798_v19, %v1794_v9  ;;  %v1800_v49 = vshll.u32 %v9966_v42, 16  ;;  %v1710_v19 = vsub.s32 4, %v9734_v26 }
 0x221   : > { %v1803_v47 = vsel %vm1802_vm10, 1, %v15131_v37  ;;  %vm10007_vm10 = vc.u32 %v9978_v15, %v14843_v10  ;;  %v1827_v10 = vadd.s32 %v1825_v7, %v1819_v13  ;;  %v15163_v13 = vand.u32 2147483647, %v9855_v30 }
 0x222   : > { %vm9994_vm11 = vc.u32 %v1804_v55, %v1800_v49  ;;  %v1580_v55 = vsel %vm1578_vm7, %v9958_v44, %v14842_v0  ;;  %v1829_v1 = vsel %vm10007_vm10, 1, %v15131_v37  ;;  %vm14856_vm7 = vweird.f32 %v9422_v18 }
 0x223   : > { %1206 = vrot.lane.b32.xlu2 %v816_v4, %s9066_s10  ;;  %v1807_v44 = vsel %vm9994_vm11, 1, %v15131_v37  ;;  %v10046_v7 = vand.u32 8388607, %v15163_v13 }
 0x224   : > { %679 = vperm.xlu1 %8914, %v9954_v58   ;;  %v1709_v58 = vsel %vm1588_vm15, %v1708_v5, %v1707_v59  ;;  %v9988_v59 = vand.u32 31, %v1908_v63  ;;  %v1797_v5 = vmul.u32 %v1793_v25, %v1791_v51  ;;  %v1583_v25 = vsel %vm1581_vm14, %v14845_v31, %v9947_v36 }
 0x225   : > { %v9985_v23 = vsel %vm9962_vm5, %v15147_v57, %v1709_v58  ;;  %v410_v51 = vmul.f32 %v15158_v53, %v9303_v60  ;;  %v1584_v31 = vsel %vm1577_vm6, %v1580_v55, %v1583_v25  ;;  %v1757_v53 = vshrl.u32 %v15128_v33, %v9797_v16 }
 0x226   : > { %v10002_v58 = vmul.f32 %v9985_v23, %v9985_v23  ;;  %v10021_v9 = vsub.s32 32, %v9988_v59  ;;  %v10023_v49 = vpop.permute.xlu2 %775  ;;  %v1805_v0 = vadd.s32 %v1803_v47, %v1797_v5  ;;  %v10050_v16 = vsel %vm14856_vm7, nan, %v1584_v31 }
 0x227   : > { %15159 = vst [vmem:[#allocation2_spill] sm:$0xff] %v10023_v49  ;;  %v1777_v21 = vsel %vm1773_vm9, %v1757_v53, %v9867_v43  ;;  %v1778_v55 = vsel %vm1776_vm8, %v9862_v20, 2102212464  ;;  %v814_v31 = vmul.f32 %v9674_v35, %v9303_v60  ;;  %v1925_v20 = vshll.u32 %v15123_v38, %v9988_v59  ;;  %v1117_v35 = vpop.permute.xlu1 %1116 }
 0x228   : > { %v1722_v47 = vmul.f32 -0.00019511016, %v10002_v58  ;;  %v1926_v25 = vshrl.u32 %v15124_v52, %v10021_v9  ;;  %v1809_v13 = vadd.s32 %v1807_v44, %v1805_v0  ;;  %v1920_v43 = vshrl.u32 %v15125_v24, %v10021_v9 }
 0x229   : > { %v1923_v53 = vshrl.u32 %v15123_v38, %v10021_v9  ;;  %v1821_v0 = vshrl.u32 %v9936_v61, 16  ;;  %v10074_v44 = vshrl.u32 %v1908_v63, 5  ;;  %v1919_v18 = vshll.u32 %v15127_v8, %v9988_v59 }
 0x22a   : > { %v1922_v36 = vshll.u32 %v15125_v24, %v9988_v59  ;;  %v1779_v61 = vsel %vm1775_vm12, %v9860_v32, %v1778_v55  ;;  %v1801_v63 = vshrl.u32 %v9966_v42, 16  ;;  %v1914_v30 = vshrl.u32 %v15126_v11, %v10021_v9  ;;  %v10099_v32 = vpop.permute.xlu0 %1278 }
 0x22b   : > { %891 = vperm.xlu2 %8923, %v9872_v40   ;;  %v1927_v40 = vor.u32 %v1926_v25, %v1925_v20  ;;  %v1823_v20 = vshrl.u32 %v9973_v41, 16  ;;  %vm1931_vm8 = vcmp.lt.s32.totalorder %v10074_v44, 4  ;;  %15166 = vst [vmem:[#allocation46_spill] sm:$0xff] %v10099_v32  ;;  %vm1928_vm9 = vcmp.lt.s32.totalorder %v10074_v44, 1 }
 0x22c   : > { %1122 = vrot.lane.b32.xlu1 %v714_v6, %s9067_s11  ;;  %v15160_v6 = vld [vmem:[#allocation3_spill] sm:$0xff]  ;;  %v1924_v52 = vor.u32 %v1923_v53, %v1922_v36  ;;  %v617_v36 = vmul.f32 %v9951_v2, %v9303_v60  ;;  %vm1930_vm12 = vcmp.lt.s32.totalorder %v10074_v44, 3  ;;  %v1711_v53 = vsel %vm1588_vm15, %v1710_v19, %v9734_v26 }
 0x22d   : > { %8918 = vset.pattern.permute.xlu1 %v15120_v45  ;;  %v10028_v4 = vmul.f32 %v15160_v6, %v9303_v60  ;;  %15161 = vst [vmem:[#allocation3_spill] sm:$0xff] %v10030_v29  ;;  %v15162_v6 = vld [vmem:[#allocation22_spill] sm:$0xff]  ;;  %v1831_v29 = vadd.s32 %v1829_v1, %v1827_v10  ;;  %v1715_v10 = vmul.f32 -0.001358992, %v10002_v58  ;;  %v1916_v1 = vshll.u32 %v15126_v11, %v9988_v59 }
 0x22e   : > { %v515_v5 = vmul.f32 %v15162_v6, %v9303_v60  ;;  %15164 = vst [vmem:[#allocation22_spill] sm:$0xff] %v10050_v16  ;;  %v1799_v6 = vshrl.u32 %v9930_v56, 16  ;;  %v1917_v16 = vshrl.u32 %v15127_v8, %v10021_v9  ;;  %v1723_v56 = vadd.f32 0.008332121, %v1722_v47  ;;  %v10094_v8 = vpop.permute.xlu2 %875 }
 0x22f   : > { %v10092_v45 = vor.u32 %v1920_v43, %v1919_v18  ;;  %15165 = vst [vmem:[#allocation45_spill] sm:$0xff] %v10094_v8  ;;  %v1716_v42 = vadd.f32 0.041655596, %v1715_v10  ;;  %v1331_v18 = vsel %vm14880_vm0, %v410_v51, %v9679_v34  ;;  %v1937_v34 = vsel %vm1931_vm8, %v1924_v52, 920167782  ;;  %v1197_v10 = vpop.permute.xlu1 %1196 }
 0x230   : > { %v1810_v47 = vadd.s32 %v1809_v13, %v1799_v6  ;;  %v10090_v49 = vor.u32 %v1917_v16, %v1916_v1  ;;  %v1724_v25 = vmul.f32 %v1723_v56, %v10002_v58  ;;  %v1941_v16 = vsel %vm1931_vm8, %v1927_v40, 1326507024 }
 0x231   : > { %v15167_v6 = vshll.u32 %v9973_v41, 16  ;;  %v1717_v51 = vmul.f32 %v1716_v42, %v10002_v58  ;;  %v1780_v56 = vsel %vm1774_vm13, %v1777_v21, %v1779_v61  ;;  %vm1929_vm14 = vcmp.lt.s32.totalorder %v10074_v44, 2 }
 0x232   : > { %v10109_v55 = vadd.s32 %v1810_v47, %v1801_v63  ;;  %v1940_v2 = vsel %vm1928_vm9, %v10090_v49, %v10092_v45  ;;  %v1725_v41 = vadd.f32 -0.16666654, %v1724_v25  ;;  %v10165_v21 = vpop.permute.xlu0 %1200 }
 0x233   : > { %v10114_v13 = vadd.s32 %v9978_v15, %v15167_v6  ;;  %1048 = vrot.lane.b32.xlu2 %v617_v36, %s9065_s9  ;;  %v1942_v15 = vsel %vm1930_vm12, %v1924_v52, %v1941_v16  ;;  %v1718_v1 = vadd.f32 -0.4999988, %v1717_v51 }
 0x234   : > { %1202 = vrot.lane.b32.xlu1 %v814_v31, %s9066_s10  ;;  %v1832_v31 = vadd.s32 %v1831_v29, %v1821_v0  ;;  %v1913_v29 = vshll.u32 %v15128_v33, %v9988_v59  ;;  %8925 = vset.pattern.permute.xlu2 %v15122_v12  ;;  %v1904_v0 = vor.u32 8388608, %v10046_v7  ;;  %v10157_v17 = vsel %vm1929_vm14, %v1940_v2, %v1942_v15 }
 0x235   : > { %vm1836_vm11 = vc.u32 %v10109_v55, %v10114_v13  ;;  %v1726_v19 = vmul.f32 %v1725_v41, %v10002_v58  ;;  %v1948_v25 = vshrl.u32 %v10157_v17, 16  ;;  %v1719_v48 = vmul.f32 %v1718_v1, %v10002_v58  ;;  %v15174_v58 = vld [vmem:[#allocation4_spill] sm:$0xff] }
 0x236   : > { %v1833_v43 = vadd.s32 %v1832_v31, %v1823_v20  ;;  %v10117_v59 = vor.u32 %v1914_v30, %v1913_v29  ;;  %v1352_v30 = vsel %vm14879_vm1, %v1331_v18, %v9778_v50  ;;  %v10167_v40 = vshll.u32 %v1904_v0, 8  ;;  %v10174_v47 = vpop.permute.xlu2 %579 }
 0x237   : > { %v1373_v52 = vsel %vm14906_vm2, %v1352_v30, %v9816_v62  ;;  %v1938_v62 = vsel %vm1930_vm12, %v10092_v45, %v1937_v34  ;;  %15169 = vst [vmem:[#allocation48_spill] sm:$0xff] %v10174_v47  ;;  %v1834_v31 = vmul.u32 %v9913_v22, %v1780_v56  ;;  %v1727_v20 = vadd.f32 1.0, %v1726_v19 }
 0x238   : > { %v1837_v50 = vadd.s32 1, %v1833_v43  ;;  %v1936_v26 = vsel %vm1928_vm9, %v10117_v59, %v10090_v49  ;;  %v1945_v22 = vand.u32 65535, %v10167_v40  ;;  %v10208_v2 = vadd.f32 1.0, %v1719_v48  ;;  %v15178_v48 = vld [vmem:[#allocation23_spill] sm:$0xff] }
 0x239   : > { %v414_v41 = vmul.f32 %v15174_v58, %v9303_v60  ;;  %v1947_v15 = vand.u32 65535, %v10157_v17 }
 0x23a   : > { %v10202_v36 = vmul.u32 %v1948_v25, %v1945_v22  ;;  %v963_v34 = vpop.permute.xlu0 %962  ;;  %15173 = vst [vmem:[#allocation52_spill] sm:$0xff] %v10208_v2  ;;  %v14859_v19 = vxor.u32 2147483648, %v10208_v2 }
 0x23b   : > { %695 = vperm.xlu2 %8925, %v9769_v27  }
 0x23c   : > { %964 = vrot.lane.b32.xlu1 %v515_v5, %s9064_s8  ;;  %v1332_v5 = vsel %vm14880_vm0, %v10028_v4, %v9714_v54  ;;  %v1394_v54 = vsel %vm14909_vm3, %v1373_v52, %v9692_v39  ;;  %v615_v39 = vmul.f32 %v9917_v3, %v9303_v60  ;;  %v1953_v0 = vshll.u32 %v10202_v36, 16 }
 0x23d   : > { %v1353_v7 = vsel %vm14879_vm1, %v1332_v5, %v9750_v14  ;;  %v10171_v61 = vsel %vm14910_vm4, %v1394_v54, %v9884_v46  ;;  %v10178_v14 = vsel %vm1929_vm14, %v1936_v26, %v1938_v62  ;;  %v1838_v46 = vsel %vm1836_vm11, %v1837_v50, %v1833_v43  ;;  %v15176_v62 = vld [vmem:[#allocation33_spill] sm:$0xff] }
 0x23e   : > { %v1374_v4 = vsel %vm14906_vm2, %v1353_v7, %v1117_v35  ;;  %15168 = vst [vmem:[#allocation47_spill] sm:$0xff] %v10171_v61  ;;  %v10184_v35 = vsel %vm9962_vm5, 0, %v1711_v53  ;;  %v2054_v42 = vand.u32 2139095040, %v10171_v61  ;;  %v1970_v29 = vshrl.u32 %v10178_v14, 16  ;;  %v1043_v52 = vpop.permute.xlu2 %1042 }
 0x23f   : > { %v1395_v63 = vsel %vm14909_vm3, %v1374_v4, %v1197_v10  ;;  %15170 = vst [vmem:[#allocation49_spill] sm:$0xff] %v10184_v35  ;;  %v1839_v16 = vadd.s32 %v1838_v46, %v1834_v31  ;;  %v1730_v18 = vadd.s32 3, %v10184_v35  ;;  %v10206_v43 = vmul.f32 %v1727_v20, %v9985_v23 }
 0x240   : > { %v10195_v3 = vsel %vm14910_vm4, %v1395_v63, %v9780_v28  ;;  %v2055_v28 = vshrl.u32 %v2054_v42, 23  ;;  %v10213_v30 = vmul.u32 %v1970_v29, %v1945_v22  ;;  %v1946_v53 = vshrl.u32 %v10167_v40, 16 }
 0x241   : > { %15171 = vst [vmem:[#allocation50_spill] sm:$0xff] %v10195_v3  ;;  %v2209_v6 = vand.u32 2139095040, %v10195_v3  ;;  %v1840_v51 = vadd.s32 536870912, %v1839_v16  ;;  %v1969_v56 = vand.u32 65535, %v10178_v14  ;;  %v1335_v50 = vsel %vm14880_vm0, %v414_v41, %v963_v34 }
 0x242   : > { %15172 = vst [vmem:[#allocation51_spill] sm:$0xff] %v10206_v43  ;;  %v15175_v5 = vmov 5   ;;  %v1731_v10 = vand.u32 3, %v1730_v18  ;;  %v8679_v26 = vadd.s32 4294967169, %v2055_v28  ;;  %v10223_v17 = vsel %vm14879_vm1, %v1335_v50, %v1043_v52 }
 0x243   : > { %v2210_v23 = vshrl.u32 %v2209_v6, 23  ;;  %8926 = vset.pattern.permute.xlu2 %v15175_v5  ;;  %v14858_v7 = vxor.u32 2147483648, %v10206_v43  ;;  %v1949_v54 = vmul.u32 %v1947_v15, %v1945_v22  ;;  %v1975_v4 = vshll.u32 %v10213_v30, 16 }
 0x244   : > { %1044 = vrot.lane.b32.xlu1 %v615_v39, %s9065_s9  ;;  %795 = vperm.xlu2 %8926, %v9769_v27   ;;  %v10228_v1 = vshrl.u32 %v1840_v51, 30  ;;  %v10230_v63 = vmul.u32 %v1947_v15, %v1946_v53  ;;  %v1971_v14 = vmul.u32 %v1969_v56, %v1945_v22  ;;  %v10232_v39 = vmul.u32 %v1969_v56, %v1946_v53 }
 0x245   : > { %vm1957_vm13 = vc.u32 %v1949_v54, %v1953_v0  ;;  %v8682_v31 = vadd.s32 4294967169, %v2210_v23  ;;  %vm1733_vm15 = vcmp.eq.s32.totalorder %v1731_v10, 0  ;;  %vm1736_vm5 = vcmp.eq.s32.totalorder %v1731_v10, 2  ;;  %v15180_v23 = vld [vmem:[#allocation35_spill] sm:$0xff] }
 0x246   : > { %15177 = vst [vmem:[#allocation4_spill] sm:$0xff] %v10228_v1  ;;  %v1959_v27 = vadd.s32 %v1953_v0, %v1949_v54  ;;  %v2061_v46 = vadd.s32 1, %v8679_v26  ;;  %v1735_v20 = vsel %vm1733_vm15, %v10208_v2, %v14858_v7  ;;  %v1738_v42 = vsel %vm1736_vm5, %v14859_v19, %v10206_v43 }
 0x247   : > { %v518_v18 = vmul.f32 %v15178_v48, %v9303_v60  ;;  %vm1979_vm10 = vc.u32 %v1971_v14, %v1975_v4  ;;  %v1981_v22 = vadd.s32 %v1975_v4, %v1971_v14  ;;  %v1842_v6 = vshll.u32 %v10228_v1, 30 }
 0x248   : > { %v1952_v28 = vmul.u32 %v1948_v25, %v1946_v53  ;;  %v1955_v34 = vshll.u32 %v10230_v63, 16  ;;  %vm1732_vm6 = vcmp.lt.s32.totalorder %v1731_v10, 2  ;;  %v1958_v58 = vsel %vm1957_vm13, 1, %v15131_v37 }
 0x249   : > { %v1977_v41 = vshll.u32 %v10232_v39, 16  ;;  %v2216_v15 = vadd.s32 1, %v8682_v31  ;;  %v1739_v51 = vsel %vm1732_vm6, %v1735_v20, %v1738_v42  ;;  %v1980_v56 = vsel %vm1979_vm10, 1, %v15131_v37  ;;  %v15182_v20 = vld [vmem:[#allocation31_spill] sm:$0xff] }
 0x24a   : > { %vm1961_vm11 = vc.u32 %v1959_v27, %v1955_v34  ;;  %vm2062_vm15 = vcmp.gt.s32.totalorder %v2061_v46, 0  ;;  %v15179_v0 = vmov 9   ;;  %vm14878_vm5 = vweird.f32 %v15147_v57 }
 0x24b   : > { %v1974_v25 = vmul.u32 %v1970_v29, %v1946_v53  ;;  %vm1983_vm7 = vc.u32 %v1981_v22, %v1977_v41  ;;  %v10253_v52 = vsel %vm14878_vm5, nan, %v1739_v51  ;;  %v10255_v50 = vsub.s32 %v1839_v16, %v1842_v6 }
 0x24c   : > { %883 = vperm.xlu1 %8918, %v15176_v62   ;;  %970 = vrot.lane.b32.xlu2 %v518_v18, %s9064_s8  ;;  %15181 = vst [vmem:[#allocation33_spill] sm:$0xff] %v10253_v52  ;;  %v1960_v10 = vadd.s32 %v1958_v58, %v1952_v28  ;;  %v1962_v26 = vsel %vm1961_vm11, 1, %v15131_v37  ;;  %v2063_v54 = vsel %vm2062_vm15, %v2061_v46, 0  ;;  %vm2217_vm13 = vcmp.gt.s32.totalorder %v2216_v15, 0  ;;  %v10270_v28 = vpop.permute.xlu1 %958 }
 0x24d   : > { %v1982_v62 = vadd.s32 %v1980_v56, %v1974_v25  ;;  %v1984_v4 = vsel %vm1983_vm7, 1, %v15131_v37  ;;  %v2065_v31 = vand.u32 31, %v2063_v54  ;;  %v2218_v29 = vsel %vm2217_vm13, %v2216_v15, 0  ;;  %15183 = vst [vmem:[#allocation23_spill] sm:$0xff] %v10270_v28 }
 0x24e   : > { %v1964_v14 = vadd.s32 %v1962_v26, %v1960_v10  ;;  %v1845_v53 = vsub.s32 0, %v10255_v50  ;;  %v616_v42 = vmul.f32 %v15182_v20, %v9303_v60  ;;  %vm1844_vm10 = vcmp.lt.s32.totalorder %v10255_v50, 0 }
 0x24f   : > { %v1986_v27 = vadd.s32 %v1984_v4, %v1982_v62  ;;  %v1912_v16 = vshrl.u32 %v15128_v33, %v10021_v9  ;;  %v1933_v46 = vsel %vm1931_vm8, %v10092_v45, 2102212464  ;;  %v1954_v48 = vshrl.u32 %v10202_v36, 16 }
 0x250   : > { %v1976_v18 = vshrl.u32 %v10213_v30, 16  ;;  %v2220_v6 = vand.u32 31, %v2218_v29  ;;  %v10276_v15 = vsub.s32 32, %v2065_v31  ;;  %v10280_v45 = vsel %vm1844_vm10, %v1845_v53, %v10255_v50 }
 0x251   : > { %v1932_v34 = vsel %vm1928_vm9, %v1912_v16, %v10117_v59  ;;  %v1965_v58 = vadd.s32 %v1964_v14, %v1954_v48  ;;  %v1934_v9 = vsel %vm1930_vm12, %v10090_v49, %v1933_v46  ;;  %v14857_v30 = vand.u32 2147483647, %v10171_v61 }
 0x252   : > { %v1987_v36 = vadd.s32 %v1986_v27, %v1976_v18  ;;  %v1956_v51 = vshrl.u32 %v10230_v63, 16  ;;  %v1978_v56 = vshrl.u32 %v10232_v39, 16  ;;  %v10288_v59 = vsub.s32 32, %v2220_v6 }
 0x253   : > { %v10293_v10 = vsel %vm1929_vm14, %v1932_v34, %v1934_v9  ;;  %v2069_v49 = vshrl.u32 %v15126_v11, %v10276_v15  ;;  %v10299_v62 = vadd.s32 %v1981_v22, %v1977_v41  ;;  %v10305_v63 = vand.u32 8388607, %v14857_v30 }
 0x254   : > { %8919 = vset.pattern.permute.xlu1 %v15179_v0  ;;  %v10295_v26 = vadd.s32 %v1965_v58, %v1956_v51  ;;  %v10301_v4 = vadd.s32 %v1987_v36, %v1978_v56  ;;  %v2078_v39 = vshrl.u32 %v15123_v38, %v10276_v15  ;;  %v10309_v14 = vshrl.u32 %v2063_v54, 5 }
 0x255   : > { %587 = vperm.xlu1 %8919, %v15180_v23   ;;  %15185 = vst [vmem:[#allocation31_spill] sm:$0xff] %v10299_v62  ;;  %v2068_v44 = vshll.u32 %v15128_v33, %v2065_v31  ;;  %v2071_v53 = vshll.u32 %v15126_v11, %v2065_v31  ;;  %v15186_v27 = vmov 2131351028   ;;  %v2077_v41 = vshll.u32 %v15125_v24, %v2065_v31 }
 0x256   : > { %15184 = vst [vmem:[#allocation35_spill] sm:$0xff] %v10295_v26  ;;  %v2074_v20 = vshll.u32 %v15186_v27, %v2065_v31  ;;  %v2072_v22 = vshrl.u32 %v15186_v27, %v10276_v15  ;;  %v2233_v46 = vshrl.u32 %v15123_v38, %v10288_v59  ;;  %vm1991_vm7 = vc.u32 %v10295_v26, %v10299_v62 }
 0x257   : > { %v10326_v54 = vor.u32 %v2069_v49, %v2068_v44  ;;  %v2075_v18 = vshrl.u32 %v15125_v24, %v10276_v15  ;;  %v2080_v34 = vshll.u32 %v15123_v38, %v2065_v31  ;;  %v2079_v9 = vor.u32 %v2078_v39, %v2077_v41 }
 0x258   : > { %v10334_v51 = vshrl.u32 %v2218_v29, 5  ;;  %v2232_v56 = vshll.u32 %v15125_v24, %v2220_v6  ;;  %v2224_v30 = vshrl.u32 %v15126_v11, %v10288_v59  ;;  %v2227_v49 = vshrl.u32 %v15186_v27, %v10288_v59 }
 0x259   : > { %v2230_v44 = vshrl.u32 %v15125_v24, %v10288_v59  ;;  %v2235_v31 = vshll.u32 %v15123_v38, %v2220_v6  ;;  %v10344_v7 = vor.u32 %v2072_v22, %v2071_v53  ;;  %vm2086_vm8 = vcmp.lt.s32.totalorder %v10309_v14, 4 }
 0x25a   : > { %v2234_v29 = vor.u32 %v2233_v46, %v2232_v56  ;;  %v2223_v41 = vshll.u32 %v15128_v33, %v2220_v6  ;;  %v2226_v19 = vshll.u32 %v15126_v11, %v2220_v6  ;;  %v2229_v25 = vshll.u32 %v15186_v27, %v2220_v6 }
 0x25b   : > { %v1992_v52 = vadd.s32 1, %v10301_v4  ;;  %v10351_v57 = vor.u32 %v2075_v18, %v2074_v20  ;;  %v2092_v61 = vsel %vm2086_vm8, %v2079_v9, 920167782  ;;  %v15189_v53 = vand.u32 2147483647, %v10195_v3 }
 0x25c   : > { %v10359_v46 = vor.u32 %v2227_v49, %v2226_v19  ;;  %vm2241_vm9 = vcmp.lt.s32.totalorder %v10334_v51, 4  ;;  %v2059_v6 = vor.u32 8388608, %v10305_v63  ;;  %vm2083_vm12 = vcmp.lt.s32.totalorder %v10309_v14, 1 }
 0x25d   : > { %1046 = vrot.lane.b32.xlu1 %v616_v42, %s9065_s9  ;;  %v15187_v42 = vmov 1326507024   ;;  %v2213_v22 = vand.u32 8388607, %v15189_v53  ;;  %v2247_v18 = vsel %vm2241_vm9, %v2234_v29, 920167782  ;;  %v2091_v19 = vsel %vm2083_vm12, %v10326_v54, %v10344_v7 }
 0x25e   : > { %8921 = vset.pattern.permute.xlu1 %v15175_v5  ;;  %v2081_v16 = vshrl.u32 %v15187_v42, %v10276_v15  ;;  %v2236_v58 = vshrl.u32 %v15187_v42, %v10288_v59  ;;  %v15191_v56 = vmov 6   ;;  %vm2085_vm14 = vcmp.lt.s32.totalorder %v10309_v14, 3 }
 0x25f   : > { %v2093_v49 = vsel %vm2085_vm14, %v10351_v57, %v2092_v61  ;;  %vm2238_vm6 = vcmp.lt.s32.totalorder %v10334_v51, 1  ;;  %vm2240_vm11 = vcmp.lt.s32.totalorder %v10334_v51, 3  ;;  %vm2084_vm15 = vcmp.lt.s32.totalorder %v10309_v14, 2 }
 0x260   : > { %v2082_v39 = vor.u32 %v2081_v16, %v2080_v34  ;;  %v2237_v36 = vor.u32 %v2236_v58, %v2235_v31  ;;  %v10357_v16 = vor.u32 %v2224_v30, %v2223_v41  ;;  %v10361_v34 = vor.u32 %v2230_v44, %v2229_v25  ;;  %v10370_v58 = vpop.permute.xlu0 %583 }
 0x261   : > { %15190 = vst [vmem:[#allocation54_spill] sm:$0xff] %v10370_v58  ;;  %v2095_v44 = vsel %vm2083_vm12, %v10344_v7, %v10351_v57  ;;  %v2214_v31 = vor.u32 8388608, %v2213_v22  ;;  %v1989_v53 = vmul.u32 %v10167_v40, %v10293_v10  ;;  %v2094_v22 = vsel %vm2084_vm15, %v2091_v19, %v2093_v49  ;;  %v15193_v40 = vld [vmem:[#allocation34_spill] sm:$0xff] }
 0x262   : > { %v2096_v20 = vsel %vm2086_vm8, %v2082_v39, 1326507024  ;;  %v2251_v25 = vsel %vm2241_vm9, %v2237_v36, 1326507024  ;;  %v2248_v61 = vsel %vm2240_vm11, %v10361_v34, %v2247_v18  ;;  %v1993_v39 = vsel %vm1991_vm7, %v1992_v52, %v10301_v4 }
 0x263   : > { %v2097_v36 = vsel %vm2085_vm14, %v2079_v9, %v2096_v20  ;;  %v2250_v9 = vsel %vm2238_vm6, %v10359_v46, %v10361_v34  ;;  %v2252_v41 = vsel %vm2240_vm11, %v2234_v29, %v2251_v25  ;;  %vm14881_vm13 = vcmp.lt.s32.totalorder %v10334_v51, 2 }
 0x264   : > { %v15192_v52 = vclz %v10280_v45  ;;  %v2098_v20 = vsel %vm2084_vm15, %v2095_v44, %v2097_v36  ;;  %v10421_v18 = vshll.u32 %v2059_v6, 8  ;;  %v10427_v29 = vadd.s32 %v1993_v39, %v1989_v53 }
 0x265   : > { %v10321_v48 = vpop.permute.xlu1 %1038  ;;  %787 = vperm.xlu1 %8921, %v15180_v23   ;;  %v916_v10 = vmul.f32 %v15193_v40, %v9303_v60  ;;  %v10433_v19 = vsel %vm14881_vm13, %v2250_v9, %v2252_v41  ;;  %v10435_v45 = vshll.u32 %v2214_v31, 8  ;;  %v2125_v25 = vshrl.u32 %v2094_v22, 16 }
 0x266   : > { %15188 = vst [vmem:[#allocation53_spill] sm:$0xff] %v10321_v48  ;;  %v8674_v4 = vadd.s32 4294967294, %v15192_v52  ;;  %v2100_v44 = vand.u32 65535, %v10421_v18  ;;  %v2124_v31 = vand.u32 65535, %v2094_v22  ;;  %v15195_v52 = vld [vmem:[#allocation8_spill] sm:$0xff]  ;;  %v2102_v2 = vand.u32 65535, %v2098_v20 }
 0x267   : > { %v2255_v39 = vand.u32 65535, %v10435_v45  ;;  %v413_v40 = vmul.f32 %v15195_v52, %v9303_v60  ;;  %v2101_v35 = vshrl.u32 %v10421_v18, 16 }
 0x268   : > { %vm8675_vm10 = vcmp.lt.s32.totalorder %v8674_v4, 0  ;;  %v10445_v9 = vmul.u32 %v2125_v25, %v2100_v44  ;;  %v2126_v32 = vmul.u32 %v2124_v31, %v2100_v44  ;;  %v2104_v24 = vmul.u32 %v2102_v2, %v2100_v44 }
 0x269   : > { %v10457_v58 = vsel %vm8675_vm10, 0, %v8674_v4  ;;  %v10470_v4 = vpop.permute.xlu2 %879  ;;  %v10479_v27 = vmul.u32 %v2124_v31, %v2101_v35  ;;  %v2129_v11 = vmul.u32 %v2125_v25, %v2101_v35  ;;  %v10483_v38 = vmul.u32 %v2102_v2, %v2101_v35 }
 0x26a   : > { %v2130_v52 = vshll.u32 %v10445_v9, 16 }
 0x26b   : > { %v14882_v2 = vshll.u32 %v10479_v27, 16 }
 0x26c   : > { %vm2134_vm7 = vc.u32 %v2126_v32, %v2130_v52 }
 0x26d   : > { %v872_v30 = vpop.permute.xlu1 %871  ;;  %8922 = vset.pattern.permute.xlu1 %v15191_v56 }
 0x26e   : > { %v917_v63 = vmul.f32 %v872_v30, %v9303_v60  ;;  %887 = vperm.xlu1 %8922, %v15180_v23   ;;  %v2246_v23 = vsel %vm2238_vm6, %v10357_v16, %v10359_v46 }
 0x26f   : > { %v10425_v30 = vsel %vm14881_vm13, %v2246_v23, %v2248_v61  ;;  %v10441_v23 = vpop.permute.xlu0 %1124  ;;  %v1995_v61 = vadd.s32 536870912, %v10427_v29 }
 0x270   : > { %1288 = vrot.lane.b32.xlu0 %v917_v63, %s9068_s12  ;;  %v2103_v63 = vshrl.u32 %v2098_v20, 16  ;;  %v14869_v6 = vshrl.u32 %v10425_v30, 16  ;;  %15194 = vst [vmem:[#allocation34_spill] sm:$0xff] %v10441_v23  ;;  %v15197_v23 = vshrl.u32 %v10433_v19, 16  ;;  %v2279_v43 = vand.u32 65535, %v10425_v30  ;;  %v15200_v20 = vld [vmem:[#allocation44_spill] sm:$0xff] }
 0x271   : > { %v10463_v22 = vshrl.u32 %v1995_v61, 30  ;;  %v1334_v28 = vsel %vm14880_vm0, %v413_v40, %v15200_v20  ;;  %v10487_v40 = vadd.s32 %v2130_v52, %v2126_v32  ;;  %v2135_v32 = vsel %vm2134_vm7, 1, %v15131_v37 }
 0x272   : > { %v10447_v41 = vmul.u32 %v2103_v63, %v2100_v44  ;;  %v10451_v53 = vmul.u32 %v14869_v6, %v2255_v39  ;;  %v10461_v3 = vmul.u32 %v15197_v23, %v2255_v39  ;;  %v2256_v23 = vshrl.u32 %v10435_v45, 16 }
 0x273   : > { %15198 = vst [vmem:[#allocation8_spill] sm:$0xff] %v10463_v22  ;;  %v2281_v1 = vmul.u32 %v2279_v43, %v2255_v39  ;;  %v2110_v44 = vshll.u32 %v10483_v38, 16  ;;  %vm10505_vm0 = vc.u32 %v10487_v40, %v14882_v2  ;;  %v15210_v2 = vshrl.u32 %v10433_v19, 16 }
 0x274   : > { %v2108_v48 = vshll.u32 %v10447_v41, 16  ;;  %v2285_v61 = vshll.u32 %v10451_v53, 16  ;;  %v2263_v42 = vshll.u32 %v10461_v3, 16  ;;  %v10485_v47 = vmul.u32 %v2279_v43, %v2256_v23 }
 0x275   : > { %v2139_v62 = vsel %vm10505_vm0, 1, %v15131_v37 }
 0x276   : > { %v576_v49 = vpop.permute.xlu1 %575  ;;  %1286 = vrot.lane.b32.xlu1 %v916_v10, %s9068_s12  ;;  %v15196_v10 = vld [vmem:[#allocation18_spill] sm:$0xff]  ;;  %vm2112_vm10 = vc.u32 %v2104_v24, %v2108_v48  ;;  %v2114_v25 = vadd.s32 %v2108_v48, %v2104_v24  ;;  %vm2289_vm5 = vc.u32 %v2281_v1, %v2285_v61  ;;  %v10493_v31 = vadd.s32 %v2285_v61, %v2281_v1 }
 0x277   : > { %v517_v36 = vmul.f32 %v15196_v10, %v9303_v60  ;;  %v618_v6 = vmul.f32 %v576_v49, %v9303_v60  ;;  %v2257_v10 = vand.u32 65535, %v10433_v19  ;;  %15199 = vst [vmem:[#allocation18_spill] sm:$0xff] %v10470_v4  ;;  %v2113_v24 = vsel %vm2112_vm10, 1, %v15131_v37 }
 0x278   : > { %vm10511_vm13 = vc.u32 %v2114_v25, %v2110_v44  ;;  %v15207_v61 = vshrl.u32 %v10425_v30, 16  ;;  %v2137_v44 = vadd.s32 %v2135_v32, %v2129_v11  ;;  %v10532_v30 = vpop.permute.xlu2 %1282  ;;  %vm15232_vm10 = vcmask 48128  }
 0x279   : > { %1050 = vrot.lane.b32.xlu0 %v618_v6, %s9065_s9  ;;  %v2259_v6 = vmul.u32 %v2257_v10, %v2255_v39  ;;  %v10489_v20 = vmul.u32 %v2257_v10, %v2256_v23  ;;  %v15202_v39 = vld [vmem:[#allocation36_spill] sm:$0xff]  ;;  %v14883_v10 = vshll.u32 %v10485_v47, 16  ;;  %v2117_v11 = vsel %vm10511_vm13, 1, %v15131_v37 }
 0x27a   : > { %v717_v52 = vmul.f32 %v15202_v39, %v9303_v60  ;;  %v10526_v39 = vld [vmem:[%s9134_s30 + $0x90] sm:$0xff] }
 0x27b   : > { %v2269_v43 = vadd.s32 %v2263_v42, %v2259_v6  ;;  %v2265_v1 = vshll.u32 %v10489_v20, 16  ;;  %vm10521_vm7 = vc.u32 %v10493_v31, %v14883_v10 }
 0x27e   : > { %v1041_v49 = vpop.permute.xlu1 %1040  ;;  %968 = vrot.lane.b32.xlu1 %v517_v36, %s9064_s8  ;;  %v10491_v36 = vpop.permute.xlu0 %1284 }
 0x27f   : > { %v1355_v4 = vsel %vm14879_vm1, %v1334_v28, %v1041_v49  ;;  %15201 = vst [vmem:[#allocation44_spill] sm:$0xff] %v10491_v36  ;;  %v2107_v28 = vmul.u32 %v2103_v63, %v2101_v35  ;;  %vm2267_vm1 = vc.u32 %v2259_v6, %v2263_v42  ;;  %v2290_v42 = vsel %vm2289_vm5, 1, %v15131_v37 }
 0x280   : > { %v2268_v63 = vsel %vm2267_vm1, 1, %v15131_v37  ;;  %v2284_v49 = vmul.u32 %v15207_v61, %v2256_v23  ;;  %v2262_v36 = vmul.u32 %v15210_v2, %v2256_v23  ;;  %vm2271_vm1 = vc.u32 %v2269_v43, %v2265_v1 }
 0x281   : > { %699 = vperm.xlu0 %8924, %v10526_v39   ;;  %v2115_v10 = vadd.s32 %v2113_v24, %v2107_v28  ;;  %v2294_v23 = vsel %vm10521_vm7, 1, %v15131_v37  ;;  %v1997_v28 = vshll.u32 %v10463_v22, 30  ;;  %v2272_v2 = vsel %vm2271_vm1, 1, %v15131_v37 }
 0x282   : > { %v2292_v26 = vadd.s32 %v2290_v42, %v2284_v49  ;;  %v2270_v19 = vadd.s32 %v2268_v63, %v2262_v36  ;;  %v2141_v43 = vadd.s32 %v2139_v62, %v2137_v44  ;;  %v1851_v36 = vsub.s32 32, %v10457_v58 }
 0x283   : > { %v2131_v1 = vshrl.u32 %v10445_v9, 16  ;;  %v10556_v63 = vsub.s32 %v10427_v29, %v1997_v28  ;;  %v2109_v49 = vshrl.u32 %v10447_v41, 16  ;;  %v2286_v62 = vshrl.u32 %v10451_v53, 16 }
 0x284   : > { %v2296_v35 = vadd.s32 %v2294_v23, %v2292_v26  ;;  %v2274_v42 = vadd.s32 %v2272_v2, %v2270_v19  ;;  %v1835_v26 = vadd.s32 %v10114_v13, %v10109_v55  ;;  %v2264_v9 = vshrl.u32 %v10461_v3, 16 }
 0x285   : > { %v2142_v6 = vadd.s32 %v2141_v43, %v2131_v1  ;;  %v2133_v53 = vshrl.u32 %v10479_v27, 16  ;;  %v2000_v23 = vsub.s32 0, %v10556_v63  ;;  %v2111_v55 = vshrl.u32 %v10483_v38, 16 }
 0x286   : > { %v1121_v25 = vpop.permute.xlu1 %1120  ;;  %1128 = vrot.lane.b32.xlu1 %v717_v52, %s9067_s11  ;;  %v10549_v32 = vpop.permute.xlu0 %595  ;;  %v2119_v52 = vadd.s32 %v2117_v11, %v2115_v10  ;;  %v2297_v41 = vadd.s32 %v2296_v35, %v2286_v62  ;;  %v2288_v13 = vshrl.u32 %v10485_v47, 16  ;;  %v2067_v3 = vshrl.u32 %v15128_v33, %v10276_v15 }
 0x287   : > { %v1376_v61 = vsel %vm14906_vm2, %v1355_v4, %v1121_v25  ;;  %v1855_v4 = vsub.s32 4294967266, %v10457_v58  ;;  %15211 = vst [vmem:[#allocation36_spill] sm:$0xff] %v10549_v32  ;;  %v15213_v25 = vld [vmem:[#allocation42_spill] sm:$0xff]  ;;  %v10570_v11 = vpop.permute.xlu2 %683  ;;  %v2266_v28 = vshrl.u32 %v10489_v20, 16  ;;  %v2243_v38 = vsel %vm2241_vm9, %v10361_v34, 2102212464 }
 0x288   : > { %v1397_v8 = vsel %vm14909_vm3, %v1376_v61, %v10165_v21  ;;  %v15212_v21 = vld [vmem:[#allocation38_spill] sm:$0xff]  ;;  %v2120_v44 = vadd.s32 %v2119_v52, %v2109_v49  ;;  %v1853_v61 = vshrl.u32 %v1835_v26, %v1851_v36  ;;  %v2298_v52 = vadd.s32 %v2297_v41, %v2288_v13 }
 0x289   : > { %v817_v24 = vmul.f32 %v15212_v21, %v9303_v60  ;;  %v1856_v48 = vadd.s32 127, %v1855_v4  ;;  %8928 = vset.pattern.permute.xlu0 %v15175_v5  ;;  %v2275_v5 = vadd.s32 %v2274_v42, %v2264_v9  ;;  %v2143_v4 = vadd.s32 %v2142_v6, %v2133_v53 }
 0x28a   : > { %779 = vperm.xlu0 %8928, %v15213_v25   ;;  %v10581_v43 = vadd.s32 %v2120_v44, %v2111_v55  ;;  %v1852_v15 = vshll.u32 %v10255_v50, %v10457_v58  ;;  %vm1999_vm0 = vcmp.lt.s32.totalorder %v10556_v63, 0  ;;  %v2087_v35 = vsel %vm2083_vm12, %v2067_v3, %v10326_v54  ;;  %v9025_v58 = vld [vmem:[%s9134_s30 + $0x88] sm:$0xff]  ;;  %v15218_v44 = vld [vmem:[#allocation24_spill] sm:$0xff] }
 0x28b   : > { %v1857_v19 = vshll.u32 %v1856_v48, 23  ;;  %v10592_v20 = vadd.s32 %v2275_v5, %v2266_v28  ;;  %v15215_v36 = vshll.u32 %v10479_v27, 16  ;;  %v2244_v54 = vsel %vm2240_vm11, %v10359_v46, %v2243_v38 }
 0x28c   : > { %v1854_v42 = vor.u32 %v1853_v61, %v1852_v15  ;;  %v2001_v48 = vsel %vm1999_vm0, %v2000_v23, %v10556_v63  ;;  %vm15217_vm9 = vcmp.lt.s32.totalorder %v10334_v51, 2  ;;  %v519_v14 = vmul.f32 %v15218_v44, %v9303_v60 }
 0x28d   : > { %v10603_v50 = vadd.s32 %v10487_v40, %v15215_v36  ;;  %v9026_v40 = vld [vmem:[%s9134_s30 + $0x80] sm:$0xff]  ;;  %v2002_v62 = vclz %v2001_v48  ;;  %vm15235_vm7 = vcmask 97280  }
 0x28e   : > { %v1281_v10 = vpop.permute.xlu1 %1280  ;;  %1208 = vrot.lane.b32.xlu1 %v817_v24, %s9066_s10  ;;  %v676_v2 = vpop.permute.xlu0 %675  ;;  %v1858_v24 = vor.u32 4788187, %v1857_v19  ;;  %v1861_v6 = vcvt.s32.f32 %v1854_v42  ;;  %v15226_v42 = vld [vmem:[#allocation45_spill] sm:$0xff] }
 0x28f   : > { %v10567_v29 = vsel %vm14910_vm4, %v1397_v8, %v1281_v10  ;;  %v2088_v8 = vsel %vm2086_vm8, %v10351_v57, 2102212464  ;;  %v718_v21 = vmul.f32 %v676_v2, %v9303_v60  ;;  %v2222_v57 = vshrl.u32 %v15128_v33, %v10288_v59  ;;  %v10630_v26 = vpop.permute.xlu2 %783 }
 0x290   : > { %15214 = vst [vmem:[#allocation38_spill] sm:$0xff] %v10567_v29  ;;  %v2089_v34 = vsel %vm2085_vm14, %v10344_v7, %v2088_v8  ;;  %v2147_v59 = vadd.s32 1, %v2143_v4  ;;  %v15216_v7 = vshll.u32 %v10485_v47, 16  ;;  %vm2146_vm5 = vc.u32 %v10581_v43, %v10603_v50  ;;  %v15219_v8 = vld [vmem:[#allocation32_spill] sm:$0xff] }
 0x291   : > { %1130 = vrot.lane.b32.xlu2 %v718_v21, %s9067_s11  ;;  %v2242_v1 = vsel %vm2238_vm6, %v2222_v57, %v10357_v16  ;;  %v2302_v16 = vadd.s32 1, %v2298_v52  ;;  %v2090_v49 = vsel %vm2084_vm15, %v2087_v35, %v2089_v34  ;;  %v1859_v47 = vand.u32 2147483647, %v1858_v24 }
 0x292   : > { %v10616_v27 = vadd.s32 %v10493_v31, %v15216_v7  ;;  %791 = vperm.xlu0 %8928, %v9026_v40   ;;  %v2245_v46 = vsel %vm15217_vm9, %v2242_v1, %v2244_v54  ;;  %v2148_v10 = vsel %vm2146_vm5, %v2147_v59, %v2143_v4  ;;  %v2144_v9 = vmul.u32 %v10421_v18, %v2090_v49  ;;  %v15220_v4 = vld [vmem:[#allocation2_spill] sm:$0xff] }
 0x293   : > { %v2299_v41 = vmul.u32 %v10435_v45, %v2245_v46  ;;  %v1862_v61 = vmul.f32 %v1861_v6, %v1859_v47  ;;  %v8677_v51 = vadd.s32 4294967294, %v2002_v62  ;;  %v2519_v23 = vand.u32 2139095040, %v10567_v29  ;;  %v9027_v46 = vld [vmem:[%s9134_s30 + $0x98] sm:$0xff]  ;;  %v15227_v62 = vld [vmem:[#allocation35_spill] sm:$0xff] }
 0x294   : > { %vm2301_vm8 = vc.u32 %v10592_v20, %v10616_v27  ;;  %v2149_v53 = vadd.s32 %v2148_v10, %v2144_v9  ;;  %vm1743_vm14 = vcmp.lt.s32.totalorder %v15219_v8, 0  ;;  %v818_v28 = vmul.f32 %v15220_v4, %v9303_v60  ;;  %v15228_v10 = vld [vmem:[#allocation31_spill] sm:$0xff] }
 0x295   : > { %v2303_v25 = vsel %vm2301_vm8, %v2302_v16, %v2298_v52  ;;  %v1863_v19 = vxor.u32 2147483648, %v1862_v61  ;;  %vm8678_vm12 = vcmp.lt.s32.totalorder %v8677_v51, 0  ;;  %v2520_v15 = vshrl.u32 %v2519_v23, 23 }
 0x296   : > { %895 = vperm.xlu1 %8922, %v9025_v58   ;;  %v680_v31 = vpop.permute.xlu1 %679  ;;  %v2304_v5 = vadd.s32 %v2303_v25, %v2299_v41  ;;  %v2150_v18 = vadd.s32 536870912, %v2149_v53  ;;  %v2005_v52 = vsel %vm8678_vm12, 0, %v8677_v51  ;;  %v918_v48 = vmul.f32 %v15226_v42, %v9303_v60  ;;  %v15237_v42 = vld [vmem:[#allocation9_spill] sm:$0xff] }
 0x297   : > { %v719_v3 = vmul.f32 %v680_v31, %v9303_v60  ;;  %v10647_v2 = vpop.permute.xlu2 %1204  ;;  %v1864_v38 = vsel %vm1743_vm14, %v1863_v19, %v1862_v61  ;;  %v2010_v34 = vsub.s32 4294967266, %v2005_v52  ;;  %v8688_v58 = vadd.s32 4294967169, %v2520_v15  ;;  %v15229_v19 = vld [vmem:[#allocation48_spill] sm:$0xff] }
 0x298   : > { %v2305_v13 = vadd.s32 536870912, %v2304_v5  ;;  %15221 = vst [vmem:[#allocation42_spill] sm:$0xff] %v10647_v2  ;;  %v10651_v21 = vshrl.u32 %v2150_v18, 30  ;;  %v2006_v49 = vsub.s32 32, %v2005_v52  ;;  %v1990_v6 = vadd.s32 %v15228_v10, %v15227_v62  ;;  %v15239_v62 = vld [vmem:[#allocation40_spill] sm:$0xff] }
 0x299   : > { %799 = vperm.xlu2 %8926, %v10526_v39   ;;  %v2011_v40 = vadd.s32 127, %v2010_v34  ;;  %v2526_v16 = vadd.s32 1, %v8688_v58  ;;  %v720_v61 = vmul.f32 %v10570_v11, %v9303_v60  ;;  %v2007_v51 = vshll.u32 %v10556_v63, %v2005_v52  ;;  %v15230_v11 = vld [vmem:[#allocation11_spill] sm:$0xff]  ;;  %v15231_v63 = vld [vmem:[#allocation4_spill] sm:$0xff]  ;;  %v15233_v58 = vld [vmem:[#allocation5_spill] sm:$0xff] }
 0x29a   : > { %972 = vrot.lane.b32.xlu0 %v519_v14, %s9064_s8  ;;  %15222 = vst [vmem:[#allocation24_spill] sm:$0xff] %v10651_v21  ;;  %v10653_v57 = vshrl.u32 %v2305_v13, 30  ;;  %v2152_v36 = vshll.u32 %v10651_v21, 30  ;;  %v2008_v14 = vshrl.u32 %v1990_v6, %v2006_v49  ;;  %v619_v18 = vmul.f32 %v15229_v19, %v9303_v60  ;;  %v15245_v19 = vld [vmem:[#allocation19_spill] sm:$0xff]  ;;  %v15268_v21 = vld [vmem:[#allocation53_spill] sm:$0xff] }
 0x29b   : > { %v2012_v9 = vshll.u32 %v2011_v40, 23  ;;  %vm2527_vm11 = vcmp.gt.s32.totalorder %v2526_v16, 0  ;;  %v1865_v4 = vsub.s32 4, %v15231_v63  ;;  %v10730_v10 = vand.u32 3, %v15239_v62 }
 0x29c   : > { %v2307_v1 = vshll.u32 %v10653_v57, 30  ;;  %v2528_v23 = vsel %vm2527_vm11, %v2526_v16, 0  ;;  %v15238_v16 = vld [vmem:[#allocation25_spill] sm:$0xff]  ;;  %v15257_v62 = vmov 2475754826  }
 0x29d   : > { %v521_v49 = vmul.f32 %v15238_v16, %v9303_v60  ;;  %v1866_v6 = vsel %vm1743_vm14, %v1865_v4, %v15231_v63  ;;  %vm4677_vm0 = vcmp.eq.s32.totalorder %v10730_v10, 0  ;;  %vm4680_vm5 = vcmp.eq.s32.totalorder %v10730_v10, 2  ;;  %vm15261_vm14 = vmmov %vm15232_vm10 }
 0x29e   : > { %8927 = vset.pattern.permute.xlu1 %v15179_v0  ;;  %v1123_v55 = vpop.permute.xlu1 %1122  ;;  %v10684_v47 = vsub.s32 %v2304_v5, %v2307_v1  ;;  %v2013_v5 = vor.u32 4788187, %v2012_v9  ;;  %vm4676_vm12 = vcmp.lt.s32.totalorder %v10730_v10, 2 }
 0x29f   : > { %599 = vperm.xlu1 %8927, %v10526_v39   ;;  %v1377_v45 = vsel %vm14906_vm2, %v10223_v17, %v1123_v55  ;;  %v15223_v17 = vand.u32 2147483647, %v15219_v8  ;;  %v2009_v55 = vor.u32 %v2008_v14, %v2007_v51 }
 0x2a0   : > { %v2310_v41 = vsub.s32 0, %v10684_v47  ;;  %vm2309_vm13 = vcmp.lt.s32.totalorder %v10684_v47, 0 }
 0x2a1   : > { %vm10659_vm6 = vcmp.le.f32.partialorder %v15223_v17, 0.7853982  ;;  %8929 = vset.pattern.permute.xlu2 %v15191_v56  ;;  %v2016_v1 = vcvt.s32.f32 %v2009_v55 }
 0x2a2   : > { %1132 = vrot.lane.b32.xlu0 %v719_v3, %s9067_s11  ;;  %v10667_v35 = vsel %vm10659_vm6, %v15219_v8, %v1864_v38  ;;  %899 = vperm.xlu2 %8929, %v10526_v39   ;;  %v10686_v39 = vpop.permute.xlu2 %966  ;;  %v2311_v13 = vsel %vm2309_vm13, %v2310_v41, %v10684_v47  ;;  %v2530_v3 = vand.u32 31, %v2528_v23  ;;  %v2014_v38 = vand.u32 2147483647, %v2013_v5  ;;  %v15241_v41 = vld [vmem:[#allocation12_spill] sm:$0xff] }
 0x2a3   : > { %v10675_v54 = vmul.f32 %v10667_v35, %v10667_v35  ;;  %v2312_v17 = vclz %v2311_v13  ;;  %v15248_v13 = vld [vmem:[#allocation27_spill] sm:$0xff]  ;;  %v10766_v4 = vsel %vm10659_vm6, 0, %v1866_v6 }
 0x2a4   : > { %15251 = vst [vmem:[#allocation4_spill] sm:$0xff] %v10766_v4  ;;  %v2536_v32 = vshll.u32 %v15257_v62, %v2530_v3 }
 0x2a5   : > { %v1877_v31 = vmul.f32 -0.00019511016, %v10675_v54  ;;  %v8683_v5 = vadd.s32 4294967294, %v2312_v17 }
 0x2a6   : > { %v1203_v59 = vpop.permute.xlu1 %1202 }
 0x2a7   : > { %1210 = vrot.lane.b32.xlu1 %v818_v28, %s9066_s10  ;;  %v10678_v7 = vsel %vm14909_vm3, %v1377_v45, %v1203_v59  ;;  %v415_v45 = vmul.f32 %v15230_v11, %v9303_v60  ;;  %v10717_v59 = vmul.f32 %v15233_v58, %v9303_v60  ;;  %v10757_v11 = vmul.f32 %v15248_v13, %v9303_v60 }
 0x2a8   : > { %8931 = vset.pattern.permute.xlu1 %v15122_v12  ;;  %v10682_v12 = vsub.s32 %v2149_v53, %v2152_v36  ;;  %v1878_v53 = vadd.f32 0.008332121, %v1877_v31  ;;  %v10727_v31 = vsub.s32 32, %v2530_v3  ;;  %v10777_v24 = vsel %vm14910_vm4, %v10678_v7, %v10532_v30 }
 0x2a9   : > { %15234 = vst [vmem:[#allocation2_spill] sm:$0xff] %v10717_v59  ;;  %vm8684_vm9 = vcmp.lt.s32.totalorder %v8683_v5, 0  ;;  %v15255_v58 = vmov 2102212464  }
 0x2aa   : > { %803 = vperm.xlu0 %8928, %v9027_v46   ;;  %v2155_v25 = vsub.s32 0, %v10682_v12  ;;  %8930 = vset.pattern.permute.xlu2 %v15179_v0  ;;  %vm2154_vm15 = vcmp.lt.s32.totalorder %v10682_v12, 0  ;;  %v1879_v28 = vmul.f32 %v1878_v53, %v10675_v54  ;;  %v10712_v15 = vpop.permute.xlu2 %591  ;;  %v15243_v53 = vld [vmem:[#allocation13_spill] sm:$0xff]  ;;  %15254 = vst [vmem:[#allocation5_spill] sm:$0xff] %v10777_v24  ;;  %v2534_v6 = vshrl.u32 %v15257_v62, %v10727_v31 }
 0x2ab   : > { %603 = vperm.xlu2 %8930, %v9027_v46   ;;  %v10745_v51 = vmul.f32 %v15243_v53, %v9303_v60  ;;  %v2540_v30 = vshrl.u32 %v15255_v58, %v10727_v31 }
 0x2ac   : > { %v2156_v0 = vsel %vm2154_vm15, %v2155_v25, %v10682_v12  ;;  %v1880_v9 = vadd.f32 -0.16666654, %v1879_v28  ;;  %v2017_v25 = vmul.f32 %v2016_v1, %v2014_v38  ;;  %v15252_v28 = vld [vmem:[#allocation37_spill] sm:$0xff]  ;;  %v15253_v38 = vmov 920167782   ;;  %vm15269_vm15 = vmmov %vm15235_vm7 }
 0x2ad   : > { %v2157_v52 = vclz %v2156_v0  ;;  %15244 = vst [vmem:[#allocation31_spill] sm:$0xff] %v10745_v51  ;;  %v15246_v0 = vld [vmem:[#allocation21_spill] sm:$0xff]  ;;  %vm14905_vm1 = vcmp.lt.s32.totalorder %v15252_v28, 0  ;;  %v2542_v1 = vshll.u32 %v15255_v58, %v2530_v3  ;;  %v15262_v13 = vand.u32 2147483647, %v15252_v28 }
 0x2ae   : > { %v965_v44 = vpop.permute.xlu1 %964  ;;  %v10753_v55 = vmul.f32 %v15246_v0, %v9303_v60  ;;  %v1881_v17 = vmul.f32 %v1880_v9, %v10675_v54  ;;  %v15258_v9 = vmov 2131351028   ;;  %v2674_v0 = vand.u32 2139095040, %v10777_v24 }
 0x2af   : > { %1290 = vrot.lane.b32.xlu1 %v918_v48, %s9068_s12  ;;  %v1336_v34 = vsel %vm15232_vm10, %v415_v45, %v965_v44  ;;  %v412_v48 = vmul.f32 %v15237_v42, %v9303_v60  ;;  %v8680_v44 = vadd.s32 4294967294, %v2157_v52  ;;  %v15249_v45 = vld [vmem:[#allocation28_spill] sm:$0xff]  ;;  %v2543_v52 = vshrl.u32 %v15253_v38, %v10727_v31 }
 0x2b0   : > { %15247 = vst [vmem:[#allocation48_spill] sm:$0xff] %v10753_v55  ;;  %v10761_v63 = vmul.f32 %v15249_v45, %v9303_v60  ;;  %vm10802_vm6 = vcmp.le.f32.partialorder %v15262_v13, 0.7853982  ;;  %v15263_v45 = vmov 0  ;;  %v15267_v13 = vand.u32 2147483647, %v10567_v29 }
 0x2b1   : > { %vm8681_vm8 = vcmp.lt.s32.totalorder %v8680_v44, 0  ;;  %v15264_v45 = vsel %vm10802_vm6, 4294967295, %v15263_v45  ;;  %v2675_v59 = vshrl.u32 %v2674_v0, 23  ;;  %v15277_v29 = vld [vmem:[#allocation29_spill] sm:$0xff]  ;;  %v15332_v8 = vld [vmem:[#allocation2_spill] sm:$0xff] }
 0x2b2   : > { %1134 = vrot.lane.b32.xlu0 %v720_v61, %s9067_s11  ;;  %v10741_v61 = vmul.f32 %v15241_v41, %v9303_v60  ;;  %15250 = vst [vmem:[#allocation11_spill] sm:$0xff] %v10761_v63  ;;  %v10783_v16 = vpop.permute.xlu2 %1126  ;;  %v15260_v41 = vld [vmem:[#allocation23_spill] sm:$0xff]  ;;  %v2523_v51 = vand.u32 8388607, %v15267_v13  ;;  %v15292_v63 = vld [vmem:[#allocation52_spill] sm:$0xff] }
 0x2b3   : > { %8933 = vset.pattern.permute.xlu0 %v15191_v56  ;;  %8932 = vset.pattern.permute.xlu2 %v15191_v56  ;;  %v15240_v56 = vld [vmem:[#allocation10_spill] sm:$0xff]  ;;  %v1333_v53 = vsel %vm15261_vm14, %v412_v48, %v15260_v41  ;;  %15265 = vst [vmem:[#allocation25_spill] sm:$0xff] %v15264_v45  ;;  %v2539_v48 = vshll.u32 %v15258_v9, %v2530_v3 }
 0x2b4   : > { %v10737_v14 = vmul.f32 %v15240_v56, %v9303_v60  ;;  %15242 = vst [vmem:[#allocation35_spill] sm:$0xff] %v10741_v61  ;;  %v2537_v56 = vshrl.u32 %v15258_v9, %v10727_v31  ;;  %v2533_v61 = vshll.u32 %v15128_v33, %v2530_v3 }
 0x2b6   : > { %v1045_v36 = vpop.permute.xlu1 %1044  ;;  %v10819_v2 = vor.u32 %v2534_v6, %v2533_v61 }
 0x2b7   : > { %1052 = vrot.lane.b32.xlu1 %v619_v18, %s9065_s9  ;;  %v10720_v40 = vsel %vm15235_vm7, %v1336_v34, %v1045_v36  ;;  %v10749_v18 = vmul.f32 %v15245_v19, %v9303_v60  ;;  %v2018_v34 = vxor.u32 2147483648, %v2017_v25  ;;  %v2544_v19 = vor.u32 %v2543_v52, %v2542_v1  ;;  %v15266_v1 = vld [vmem:[#allocation18_spill] sm:$0xff] }
 0x2b8   : > { %15236 = vst [vmem:[#allocation45_spill] sm:$0xff] %v10720_v40  ;;  %v10807_v36 = vsel %vm8681_vm8, 0, %v8680_v44  ;;  %v10813_v52 = vsel %vm8684_vm9, 0, %v8683_v5  ;;  %v919_v41 = vmul.f32 %v15266_v1, %v9303_v60  ;;  %v10821_v44 = vor.u32 %v2537_v56, %v2536_v32  ;;  %v15272_v56 = vld [vmem:[#allocation43_spill] sm:$0xff]  ;;  %vm15286_vm8 = vmmov %vm15261_vm14 }
 0x2b9   : > { %v10823_v40 = vor.u32 %v2540_v30, %v2539_v48  ;;  %v1354_v5 = vsel %vm15269_vm15, %v1333_v53, %v15268_v21  ;;  %v2019_v61 = vsel %vm14905_vm1, %v2018_v34, %v2017_v25  ;;  %v15273_v21 = vxor.u32 2147483648, %v15272_v56  ;;  %v15274_v34 = vld [vmem:[#allocation3_spill] sm:$0xff] }
 0x2ba   : > { %976 = vrot.lane.b32.xlu0 %v521_v49, %s9064_s8  ;;  %v10785_v49 = vshrl.u32 %v2528_v23, 5  ;;  %v2545_v23 = vshll.u32 %v15253_v38, %v2530_v3  ;;  %v2165_v3 = vsub.s32 4294967266, %v10807_v36  ;;  %v1375_v0 = vsel %vm14906_vm2, %v1354_v5, %v15274_v34 }
 0x2bb   : > { %v2524_v48 = vor.u32 8388608, %v2523_v51  ;;  %v2161_v5 = vsub.s32 32, %v10807_v36  ;;  %v10864_v51 = vpop.permute.xlu2 %1206 }
 0x2bc   : > { %vm2551_vm11 = vcmp.lt.s32.totalorder %v10785_v49, 4  ;;  %vm2548_vm13 = vcmp.lt.s32.totalorder %v10785_v49, 1  ;;  %vm2550_vm10 = vcmp.lt.s32.totalorder %v10785_v49, 3  ;;  %vm14908_vm7 = vcmp.lt.s32.totalorder %v10785_v49, 2 }
 0x2bd   : > { %v2557_v1 = vsel %vm2551_vm11, %v2544_v19, 920167782  ;;  %v2560_v34 = vsel %vm2548_vm13, %v10821_v44, %v10823_v40  ;;  %v10886_v32 = vshll.u32 %v2524_v48, 8 }
 0x2be   : > { %v10793_v7 = vpop.permute.xlu1 %883  ;;  %v2558_v13 = vsel %vm2550_vm10, %v10823_v40, %v2557_v1 }
 0x2bf   : > { %703 = vperm.xlu1 %8931, %v9027_v46   ;;  %v15256_v46 = vmov 1326507024   ;;  %15259 = vst [vmem:[#allocation9_spill] sm:$0xff] %v10793_v7 }
 0x2c0   : > { %v2546_v42 = vshrl.u32 %v15256_v46, %v10727_v31 }
 0x2c2   : > { %v2547_v7 = vor.u32 %v2546_v42, %v2545_v23  ;;  %v15270_v42 = vld [vmem:[#allocation41_spill] sm:$0xff]  ;;  %v2320_v23 = vsub.s32 4294967266, %v10813_v52 }
 0x2c3   : > { %v15271_v6 = vxor.u32 2147483648, %v15270_v42  ;;  %v4682_v53 = vsel %vm4680_vm5, %v15273_v21, %v15270_v42  ;;  %v8691_v21 = vadd.s32 4294967169, %v2675_v59  ;;  %v10876_v59 = vsel %vm10802_vm6, %v15252_v28, %v2019_v61 }
 0x2c4   : > { %v2561_v25 = vsel %vm2551_vm11, %v2547_v7, 1326507024  ;;  %15275 = vst [vmem:[#allocation40_spill] sm:$0xff] %v10876_v59  ;;  %v2321_v10 = vadd.s32 127, %v2320_v23  ;;  %v1870_v61 = vmul.f32 -0.001358992, %v10675_v54 }
 0x2c5   : > { %v4679_v30 = vsel %vm4677_vm0, %v15272_v56, %v15271_v6  ;;  %v1882_v6 = vadd.f32 1.0, %v1881_v17  ;;  %v2166_v56 = vadd.s32 127, %v2165_v3  ;;  %v2562_v1 = vsel %vm2550_vm10, %v2544_v19, %v2561_v25  ;;  %v15276_v17 = vld [vmem:[#allocation39_spill] sm:$0xff] }
 0x2c6   : > { %v4683_v7 = vsel %vm4676_vm12, %v4679_v30, %v4682_v53  ;;  %v1396_v3 = vsel %vm14909_vm3, %v1375_v0, %v15276_v17  ;;  %v2145_v53 = vadd.s32 %v10603_v50, %v10581_v43  ;;  %vm15278_vm0 = vweird.f32 %v15277_v29  ;;  %v15281_v50 = vld [vmem:[#allocation46_spill] sm:$0xff]  ;;  %vm15287_vm12 = vmmov %vm15269_vm15 }
 0x2c7   : > { %1292 = vrot.lane.b32.xlu1 %v919_v41, %s9068_s12  ;;  %v2556_v41 = vsel %vm2548_vm13, %v10819_v2, %v10821_v44  ;;  %v10859_v42 = vpop.permute.xlu1 %587  ;;  %v10890_v19 = vsel %vm15278_vm0, nan, %v4683_v7  ;;  %v2167_v25 = vshll.u32 %v2166_v56, 23  ;;  %v2316_v23 = vsub.s32 32, %v10813_v52  ;;  %v688_v56 = vpop.permute.xlu0 %687 }
 0x2c8   : > { %v10882_v30 = vsel %vm14908_vm7, %v2556_v41, %v2558_v13  ;;  %15279 = vst [vmem:[#allocation10_spill] sm:$0xff] %v10890_v19  ;;  %v10896_v0 = vsel %vm14908_vm7, %v2560_v34, %v2562_v1  ;;  %v2681_v41 = vadd.s32 1, %v8691_v21  ;;  %v10902_v43 = vmul.f32 %v10876_v59, %v10876_v59 }
 0x2c9   : > { %v2163_v29 = vshrl.u32 %v2145_v53, %v2161_v5  ;;  %v10906_v48 = vsel %vm14910_vm4, %v1396_v3, %v15281_v50  ;;  %v10910_v7 = vmul.f32 %v1882_v6, %v10667_v35  ;;  %v2300_v21 = vadd.s32 %v10616_v27, %v10592_v20 }
 0x2ca   : > { %15280 = vst [vmem:[#allocation12_spill] sm:$0xff] %v10902_v43  ;;  %v2322_v34 = vshll.u32 %v2321_v10, 23  ;;  %v2162_v5 = vshll.u32 %v10682_v12, %v10807_v36  ;;  %v2565_v17 = vand.u32 65535, %v10886_v32  ;;  %v14891_v3 = vshrl.u32 %v10896_v0, 16 }
 0x2cb   : > { %15282 = vst [vmem:[#allocation13_spill] sm:$0xff] %v10906_v48  ;;  %v1871_v50 = vadd.f32 0.041655596, %v1870_v61  ;;  %v2168_v13 = vor.u32 4788187, %v2167_v25  ;;  %v2318_v59 = vshrl.u32 %v2300_v21, %v2316_v23  ;;  %v2364_v35 = vand.u32 2139095040, %v10906_v48 }
 0x2cc   : > { %15283 = vst [vmem:[#allocation19_spill] sm:$0xff] %v10910_v7  ;;  %vm2682_vm5 = vcmp.gt.s32.totalorder %v2681_v41, 0  ;;  %v2032_v20 = vmul.f32 -0.00019511016, %v10902_v43  ;;  %v2164_v27 = vor.u32 %v2163_v29, %v2162_v5  ;;  %v820_v6 = vmul.f32 %v10630_v26, %v9303_v60  ;;  %v892_v29 = vpop.permute.xlu2 %891 }
 0x2cd   : > { %v15285_v10 = vshrl.u32 %v10882_v30, 16  ;;  %v2317_v36 = vshll.u32 %v10684_v47, %v10813_v52  ;;  %v1337_v61 = vsel %vm15286_vm8, %v10737_v14, %v10686_v39  ;;  %v721_v25 = vmul.f32 %v688_v56, %v9303_v60 }
 0x2ce   : > { %v10938_v23 = vmul.u32 %v14891_v3, %v2565_v17  ;;  %v2589_v26 = vand.u32 65535, %v10882_v30  ;;  %v2683_v21 = vsel %vm2682_vm5, %v2681_v41, 0  ;;  %v2169_v47 = vand.u32 2147483647, %v2168_v13 }
 0x2cf   : > { %974 = vrot.lane.b32.xlu1 %v10749_v18, %s9064_s8  ;;  %v15284_v18 = vld [vmem:[#allocation49_spill] sm:$0xff]  ;;  %v1047_v53 = vpop.permute.xlu1 %1046  ;;  %v10927_v12 = vmul.u32 %v15285_v10, %v2565_v17  ;;  %v2319_v52 = vor.u32 %v2318_v59, %v2317_v36  ;;  %1136 = vrot.lane.b32.xlu0 %v721_v25, %s9067_s11  ;;  %v1872_v39 = vmul.f32 %v1871_v50, %v10675_v54  ;;  %v2566_v14 = vshrl.u32 %v10886_v32, 16 }
 0x2d0   : > { %v10915_v1 = vand.u32 3, %v15284_v18  ;;  %v2323_v18 = vor.u32 4788187, %v2322_v34  ;;  %v10942_v5 = vsel %vm15287_vm12, %v1337_v61, %v1047_v53  ;;  %v2365_v34 = vshrl.u32 %v2364_v35, 23 }
 0x2d1   : > { %v2567_v56 = vand.u32 65535, %v10896_v0  ;;  %v2595_v10 = vshll.u32 %v10927_v12, 16  ;;  %v10951_v41 = vadd.f32 0.008332121, %v2032_v20  ;;  %v2171_v53 = vcvt.s32.f32 %v2164_v27 }
 0x2d2   : > { %vm4831_vm9 = vcmp.eq.s32.totalorder %v10915_v1, 0  ;;  %vm4834_vm14 = vcmp.eq.s32.totalorder %v10915_v1, 2  ;;  %v2324_v13 = vand.u32 2147483647, %v2323_v18  ;;  %v2685_v59 = vand.u32 31, %v2683_v21 }
 0x2d3   : > { %15288 = vst [vmem:[#allocation21_spill] sm:$0xff] %v10951_v41  ;;  %v2573_v35 = vshll.u32 %v10938_v23, 16  ;;  %v2591_v36 = vmul.u32 %v2589_v26, %v2565_v17  ;;  %v10954_v61 = vmul.u32 %v2589_v26, %v2566_v14  ;;  %v10957_v50 = vand.u32 3, %v10766_v4  ;;  %v15291_v4 = vld [vmem:[#allocation51_spill] sm:$0xff] }
 0x2d4   : > { %v10959_v25 = vmul.f32 %v2171_v53, %v2169_v47  ;;  %v2326_v3 = vcvt.s32.f32 %v2319_v52  ;;  %v8685_v45 = vadd.s32 4294967169, %v2365_v34  ;;  %v1873_v20 = vadd.f32 -0.4999988, %v1872_v39 }
 0x2d5   : > { %v2569_v22 = vmul.u32 %v2567_v56, %v2565_v17  ;;  %v10963_v27 = vmul.u32 %v2567_v56, %v2566_v14  ;;  %vm2599_vm15 = vc.u32 %v2591_v36, %v2595_v10  ;;  %v10965_v18 = vadd.s32 %v2595_v10, %v2591_v36 }
 0x2d6   : > { %v2327_v41 = vmul.f32 %v2326_v3, %v2324_v13  ;;  %v10967_v26 = vsub.s32 32, %v2685_v59  ;;  %v15293_v47 = vxor.u32 2147483648, %v15292_v63  ;;  %v14899_v39 = vshll.u32 %v10954_v61, 16 }
 0x2d7   : > { %1214 = vrot.lane.b32.xlu1 %v820_v6, %s9066_s10  ;;  %v692_v6 = vpop.permute.xlu0 %691  ;;  %v10961_v28 = vpop.permute.xlu1 %787  ;;  %vm10977_vm0 = vc.u32 %v2569_v22, %v2573_v35  ;;  %v2579_v17 = vadd.s32 %v2573_v35, %v2569_v22  ;;  %v15296_v3 = vxor.u32 2147483648, %v15291_v4  ;;  %v2600_v53 = vsel %vm2599_vm15, 1, %v15131_v37 }
 0x2d8   : > { %15289 = vst [vmem:[#allocation27_spill] sm:$0xff] %v10961_v28  ;;  %v722_v43 = vmul.f32 %v692_v6, %v9303_v60  ;;  %v10975_v52 = vsel %vm4834_vm14, %v15293_v47, %v15291_v4  ;;  %v1874_v13 = vmul.f32 %v1873_v20, %v10675_v54  ;;  %v10994_v22 = vadd.s32 1, %v8685_v45  ;;  %v15299_v47 = vld [vmem:[#allocation50_spill] sm:$0xff] }
 0x2d9   : > { %15290 = vst [vmem:[#allocation28_spill] sm:$0xff] %v10967_v26  ;;  %v10987_v56 = vsel %vm4831_vm9, %v15292_v63, %v15296_v3  ;;  %v2575_v35 = vshll.u32 %v10963_v27, 16  ;;  %v15297_v4 = vshrl.u32 %v10882_v30, 16  ;;  %vm2603_vm5 = vc.u32 %v10965_v18, %v14899_v39  ;;  %v11002_v63 = vpop.permute.xlu2 %1048 }
 0x2da   : > { %1138 = vrot.lane.b32.xlu0 %v722_v43, %s9067_s11  ;;  %15298 = vst [vmem:[#allocation23_spill] sm:$0xff] %v11002_v63  ;;  %vm14907_vm8 = vcmp.lt.s32.totalorder %v15299_v47, 0  ;;  %v2328_v43 = vxor.u32 2147483648, %v2327_v41  ;;  %v15300_v54 = vshrl.u32 %v10896_v0, 16  ;;  %v2578_v45 = vsel %vm10977_vm0, 1, %v15131_v37 }
 0x2db   : > { %v2594_v6 = vmul.u32 %v15297_v4, %v2566_v14  ;;  %v2698_v30 = vshrl.u32 %v15253_v38, %v10967_v26  ;;  %vm2581_vm9 = vc.u32 %v2579_v17, %v2575_v35  ;;  %v2701_v39 = vshrl.u32 %v15256_v46, %v10967_v26 }
 0x2dc   : > { %v2572_v20 = vmul.u32 %v15300_v54, %v2566_v14  ;;  %v2604_v36 = vsel %vm2603_vm5, 1, %v15131_v37  ;;  %v922_v10 = vmul.f32 %v892_v29, %v9303_v60  ;;  %v2689_v0 = vshrl.u32 %v15257_v62, %v10967_v26  ;;  %v15301_v54 = vld [vmem:[#allocation47_spill] sm:$0xff] }
 0x2dd   : > { %v2602_v3 = vadd.s32 %v2600_v53, %v2594_v6  ;;  %v2697_v14 = vshll.u32 %v15255_v58, %v2685_v59  ;;  %vm2053_vm12 = vcmp.lt.s32.totalorder %v15301_v54, 0  ;;  %v11023_v17 = vshrl.u32 %v2683_v21, 5 }
 0x2de   : > { %v2692_v53 = vshrl.u32 %v15258_v9, %v10967_v26  ;;  %v2695_v35 = vshrl.u32 %v15255_v58, %v10967_v26  ;;  %v2700_v6 = vshll.u32 %v15253_v38, %v2685_v59  ;;  %v2580_v29 = vadd.s32 %v2578_v45, %v2572_v20 }
 0x2df   : > { %v2582_v4 = vsel %vm2581_vm9, 1, %v15131_v37  ;;  %v2688_v28 = vshll.u32 %v15128_v33, %v2685_v59  ;;  %v2699_v63 = vor.u32 %v2698_v30, %v2697_v14  ;;  %v15302_v55 = vand.u32 2147483647, %v15299_v47 }
 0x2e0   : > { %v11020_v34 = vpop.permute.xlu1 %887  ;;  %v2606_v21 = vadd.s32 %v2604_v36, %v2602_v3  ;;  %v2691_v19 = vshll.u32 %v15257_v62, %v2685_v59  ;;  %v2694_v46 = vshll.u32 %v15258_v9, %v2685_v59  ;;  %v2702_v26 = vor.u32 %v2701_v39, %v2700_v6 }
 0x2e1   : > { %vm11034_vm14 = vcmp.le.f32.partialorder %v15302_v55, 0.7853982  ;;  %v2596_v38 = vshrl.u32 %v10927_v12, 16  ;;  %v15305_v20 = vand.u32 2147483647, %v10777_v24  ;;  %v11043_v37 = vor.u32 %v2689_v0, %v2688_v28 }
 0x2e2   : > { %1298 = vrot.lane.b32.xlu0 %v922_v10, %s9068_s12  ;;  %v11046_v30 = vadd.f32 1.0, %v1874_v13  ;;  %v11048_v55 = vor.u32 %v2692_v53, %v2691_v19  ;;  %v11050_v14 = vor.u32 %v2695_v35, %v2694_v46  ;;  %vm2706_vm15 = vcmp.lt.s32.totalorder %v11023_v17, 4  ;;  %v696_v13 = vpop.permute.xlu2 %695 }
 0x2e3   : > { %v2678_v45 = vand.u32 8388607, %v15305_v20  ;;  %v1379_v59 = vsel %vm14906_vm2, %v10942_v5, %v10783_v16  ;;  %vm4985_vm0 = vcmp.eq.s32.totalorder %v10957_v50, 0  ;;  %vm2372_vm5 = vcmp.gt.s32.totalorder %v10994_v22, 0 }
 0x2e4   : > { %15306 = vst [vmem:[#allocation18_spill] sm:$0xff] %v11046_v30  ;;  %v2584_v28 = vadd.s32 %v2582_v4, %v2580_v29  ;;  %v2712_v12 = vsel %vm2706_vm15, %v2699_v63, 920167782  ;;  %v621_v19 = vmul.f32 %v10859_v42, %v9303_v60  ;;  %v2329_v46 = vsel %vm14907_vm8, %v2328_v43, %v2327_v41 }
 0x2e5   : > { %v2574_v39 = vshrl.u32 %v10938_v23, 16  ;;  %v2607_v10 = vadd.s32 %v2606_v21, %v2596_v38  ;;  %v2716_v16 = vsel %vm2706_vm15, %v2702_v26, 1326507024  ;;  %v723_v5 = vmul.f32 %v696_v13, %v9303_v60 }
 0x2e6   : > { %vm2703_vm9 = vcmp.lt.s32.totalorder %v11023_v17, 1  ;;  %vm2705_vm1 = vcmp.lt.s32.totalorder %v11023_v17, 3  ;;  %1056 = vrot.lane.b32.xlu1 %v621_v19, %s9065_s9  ;;  %v1400_v42 = vsel %vm14909_vm3, %v1379_v59, %v10864_v51  ;;  %vm4830_vm2 = vcmp.lt.s32.totalorder %v10915_v1, 2 }
 0x2e7   : > { %vm4988_vm8 = vcmp.eq.s32.totalorder %v10957_v50, 2  ;;  %v15307_v38 = vand.u32 2147483647, %v15301_v54  ;;  %v2679_v41 = vor.u32 8388608, %v2678_v45  ;;  %v2711_v26 = vsel %vm2703_vm9, %v11043_v37, %v11048_v55 }
 0x2e8   : > { %v1287_v36 = vpop.permute.xlu1 %1286  ;;  %v2713_v51 = vsel %vm2705_vm1, %v11050_v14, %v2712_v12  ;;  %vm4984_vm3 = vcmp.lt.s32.totalorder %v10957_v50, 2  ;;  %v15311_v3 = vxor.u32 2147483648, %v10959_v25  ;;  %v2585_v0 = vadd.s32 %v2584_v28, %v2574_v39 }
 0x2e9   : > { %vm11077_vm7 = vcmp.le.f32.partialorder %v15307_v38, 0.7853982  ;;  %v11089_v43 = vsel %vm14910_vm4, %v1400_v42, %v1287_v36  ;;  %v2715_v53 = vsel %vm2703_vm9, %v11048_v55, %v11050_v14  ;;  %v2717_v35 = vsel %vm2705_vm1, %v2699_v63, %v2716_v16 }
 0x2ea   : > { %15310 = vst [vmem:[#allocation53_spill] sm:$0xff] %v11089_v43  ;;  %v2174_v4 = vsel %vm2053_vm12, %v15311_v3, %v10959_v25  ;;  %v14912_v6 = vand.u32 2147483647, %v10906_v48  ;;  %v2598_v29 = vshrl.u32 %v10954_v61, 16  ;;  %vm2704_vm4 = vcmp.lt.s32.totalorder %v11023_v17, 2  ;;  %1140 = vrot.lane.b32.xlu0 %v723_v5, %s9067_s11 }
 0x2eb   : > { %v14911_v21 = vxor.u32 2147483648, %v11046_v30  ;;  %v11110_v25 = vsel %vm11034_vm14, %v15299_v47, %v2329_v46  ;;  %v2373_v20 = vsel %vm2372_vm5, %v10994_v22, 0  ;;  %v2576_v45 = vshrl.u32 %v10963_v27, 16 }
 0x2ec   : > { %v11118_v63 = vsel %vm2704_vm4, %v2711_v26, %v2713_v51  ;;  %v2553_v59 = vsel %vm2551_vm11, %v10823_v40, 2102212464  ;;  %v2608_v28 = vadd.s32 %v2607_v10, %v2598_v29  ;;  %v11126_v12 = vsel %vm2704_vm4, %v2715_v53, %v2717_v35 }
 0x2ed   : > { %v11128_v19 = vshll.u32 %v2679_v41, 8  ;;  %v622_v27 = vmul.f32 %v10712_v15, %v9303_v60  ;;  %v2532_v22 = vshrl.u32 %v15128_v33, %v10727_v31  ;;  %v11134_v46 = vadd.s32 %v2585_v0, %v2576_v45 }
 0x2ee   : > { %v15312_v39 = vxor.u32 2147483648, %v10910_v7  ;;  %v11143_v10 = vmul.f32 %v11110_v25, %v11110_v25  ;;  %v11147_v13 = vand.u32 8388607, %v14912_v6  ;;  %v2375_v15 = vand.u32 31, %v2373_v20 }
 0x2ef   : > { %v14914_v16 = vshrl.u32 %v11118_v63, 16  ;;  %v2552_v31 = vsel %vm2548_vm13, %v2532_v22, %v10819_v2  ;;  %v2554_v5 = vsel %vm2550_vm10, %v10821_v44, %v2553_v59  ;;  %v15313_v42 = vshll.u32 %v10954_v61, 16  ;;  %1058 = vrot.lane.b32.xlu1 %v622_v27, %s9065_s9 }
 0x2f0   : > { %v4987_v40 = vsel %vm4985_vm0, %v11046_v30, %v15312_v39  ;;  %v14913_v38 = vshrl.u32 %v11126_v12, 16  ;;  %v2612_v41 = vadd.s32 1, %v2608_v28  ;;  %v2720_v26 = vand.u32 65535, %v11128_v19 }
 0x2f1   : > { %v11159_v36 = vadd.s32 %v10965_v18, %v15313_v42  ;;  %v11168_v2 = vsel %vm4830_vm2, %v10987_v56, %v10975_v52  ;;  %v4990_v44 = vsel %vm4988_vm8, %v14911_v21, %v10910_v7  ;;  %v11178_v61 = vsel %vm11077_vm7, %v15301_v54, %v2174_v4 }
 0x2f2   : > { %v11185_v1 = vsel %vm4984_vm3, %v4987_v40, %v4990_v44  ;;  %vm15314_vm2 = vcmp.lt.s32.totalorder %v10785_v49, 2  ;;  %v11192_v51 = vmul.u32 %v14914_v16, %v2720_v26  ;;  %v2342_v3 = vmul.f32 -0.00019511016, %v11143_v10  ;;  %982 = vrot.lane.b32.xlu0 %v10757_v11, %s9064_s8  ;;  %v15317_v16 = vld [vmem:[#allocation10_spill] sm:$0xff] }
 0x2f3   : > { %vm2611_vm11 = vc.u32 %v11134_v46, %v11159_v36  ;;  %v2555_v56 = vsel %vm15314_vm2, %v2552_v31, %v2554_v5  ;;  %v11195_v4 = vshrl.u32 %v2373_v20, 5  ;;  %v11197_v0 = vsub.s32 32, %v2375_v15 }
 0x2f4   : > { %v11201_v50 = vmul.u32 %v14913_v38, %v2720_v26  ;;  %v921_v53 = vmul.f32 %v11020_v34, %v9303_v60  ;;  %v2378_v49 = vshll.u32 %v15128_v33, %v2375_v15  ;;  %v2381_v35 = vshll.u32 %v15257_v62, %v2375_v15 }
 0x2f5   : > { %v2613_v29 = vsel %vm2611_vm11, %v2612_v41, %v2608_v28  ;;  %v2744_v20 = vand.u32 65535, %v11118_v63  ;;  %v2384_v45 = vshll.u32 %v15258_v9, %v2375_v15  ;;  %v2387_v59 = vshll.u32 %v15255_v58, %v2375_v15 }
 0x2f6   : > { %v2609_v27 = vmul.u32 %v10886_v32, %v2555_v56  ;;  %v2722_v22 = vand.u32 65535, %v11126_v12  ;;  %v15315_v39 = vmov 920167782   ;;  %v2721_v40 = vshrl.u32 %v11128_v19, 16 }
 0x2f7   : > { %v2390_v34 = vshll.u32 %v15315_v39, %v2375_v15  ;;  %v2750_v11 = vshll.u32 %v11192_v51, 16  ;;  %v2343_v31 = vadd.f32 0.008332121, %v2342_v3  ;;  %v2379_v28 = vshrl.u32 %v15257_v62, %v11197_v0  ;;  %1296 = vrot.lane.b32.xlu1 %v921_v53, %s9068_s12 }
 0x2f8   : > { %v2388_v5 = vshrl.u32 %v15315_v39, %v11197_v0  ;;  %v11221_v42 = vadd.s32 %v2613_v29, %v2609_v27  ;;  %v2728_v41 = vshll.u32 %v11201_v50, 16  ;;  %v2382_v32 = vshrl.u32 %v15258_v9, %v11197_v0 }
 0x2f9   : > { %v15316_v15 = vmov 1326507024   ;;  %v2746_v56 = vmul.u32 %v2744_v20, %v2720_v26  ;;  %v11229_v3 = vmul.u32 %v2744_v20, %v2721_v40  ;;  %v2385_v21 = vshrl.u32 %v15255_v58, %v11197_v0 }
 0x2fa   : > { %v2391_v44 = vshrl.u32 %v15316_v15, %v11197_v0  ;;  %v2724_v6 = vmul.u32 %v2722_v22, %v2720_v26  ;;  %v11233_v18 = vmul.u32 %v2722_v22, %v2721_v40  ;;  %v2335_v29 = vmul.f32 -0.001358992, %v11143_v10  ;;  %7631 = vrot.lane.b32.xlu0 %v15317_v16, %s9076_s13  ;;  %v15320_v16 = vld [vmem:[#allocation32_spill] sm:$0xff] }
 0x2fb   : > { %vm2396_vm3 = vcmp.lt.s32.totalorder %v11195_v4, 4  ;;  %vm2754_vm13 = vc.u32 %v2746_v56, %v2750_v11  ;;  %v11237_v53 = vadd.s32 %v2750_v11, %v2746_v56  ;;  %v2344_v27 = vmul.f32 %v2343_v31, %v11143_v10 }
 0x2fc   : > { %v2389_v52 = vor.u32 %v2388_v5, %v2387_v59  ;;  %v2615_v38 = vadd.s32 536870912, %v11221_v42  ;;  %vm2732_vm10 = vc.u32 %v2724_v6, %v2728_v41  ;;  %v2734_v20 = vadd.s32 %v2728_v41, %v2724_v6 }
 0x2fd   : > { %v11243_v26 = vor.u32 %v2379_v28, %v2378_v49  ;;  %v11245_v22 = vor.u32 %v2382_v32, %v2381_v35  ;;  %v2392_v30 = vor.u32 %v2391_v44, %v2390_v34  ;;  %v14921_v7 = vshll.u32 %v11229_v3, 16  ;;  %v15322_v28 = vld [vmem:[#allocation48_spill] sm:$0xff] }
 0x2fe   : > { %v11248_v11 = vor.u32 %v2385_v21, %v2384_v45  ;;  %v2730_v31 = vshll.u32 %v11233_v18, 16  ;;  %v15318_v59 = vmov 0   ;;  %v2336_v56 = vadd.f32 0.041655596, %v2335_v29 }
 0x2ff   : > { %v2755_v5 = vsel %vm2754_vm13, 1, %v15318_v59  ;;  %v2733_v6 = vsel %vm2732_vm10, 1, %v15318_v59  ;;  %v15319_v41 = vshrl.u32 %v11118_v63, 16  ;;  %vm2758_vm8 = vc.u32 %v11237_v53, %v14921_v7  ;;  %980 = vrot.lane.b32.xlu1 %v15322_v28, %s9064_s8  ;;  %v11298_v7 = vpop.permute.xlu0 %1288 }
 0x300   : > { %vm14978_vm0 = vweird.f32 %v15320_v16  ;;  %v2345_v49 = vadd.f32 -0.16666654, %v2344_v27  ;;  %v2402_v21 = vsel %vm2396_vm3, %v2389_v52, 920167782  ;;  %v11261_v35 = vshrl.u32 %v2615_v38, 30 }
 0x301   : > { %v2749_v48 = vmul.u32 %v15319_v41, %v2721_v40  ;;  %v15321_v45 = vshrl.u32 %v11126_v12, 16  ;;  %vm2736_vm5 = vc.u32 %v2734_v20, %v2730_v31  ;;  %vm2393_vm11 = vcmp.lt.s32.totalorder %v11195_v4, 1  ;;  %v15323_v41 = vld [vmem:[#allocation11_spill] sm:$0xff] }
 0x302   : > { %v2406_v63 = vsel %vm2396_vm3, %v2392_v30, 1326507024  ;;  %v2984_v44 = vand.u32 2139095040, %v11089_v43  ;;  %vm2395_vm2 = vcmp.lt.s32.totalorder %v11195_v4, 3  ;;  %v2759_v38 = vsel %vm2758_vm8, 1, %v15318_v59  ;;  %v796_v30 = vpop.permute.xlu2 %795  ;;  %984 = vrot.lane.b32.xlu0 %v15323_v41, %s9064_s8  ;;  %v15329_v41 = vld [vmem:[#allocation28_spill] sm:$0xff] }
 0x303   : > { %v2727_v34 = vmul.u32 %v15321_v45, %v2721_v40  ;;  %v2757_v32 = vadd.s32 %v2755_v5, %v2749_v48  ;;  %v2337_v12 = vmul.f32 %v2336_v56, %v11143_v10  ;;  %v2401_v40 = vsel %vm2393_vm11, %v11243_v26, %v11245_v22 }
 0x304   : > { %v2403_v27 = vsel %vm2395_vm2, %v11248_v11, %v2402_v21  ;;  %v2737_v48 = vsel %vm2736_vm5, 1, %v15318_v59  ;;  %v2346_v20 = vmul.f32 %v2345_v49, %v11143_v10  ;;  %v2405_v31 = vsel %vm2393_vm11, %v11245_v22, %v11248_v11 }
 0x305   : > { %v2735_v29 = vadd.s32 %v2733_v6, %v2727_v34  ;;  %v2407_v5 = vsel %vm2395_vm2, %v2389_v52, %v2406_v63  ;;  %v2617_v56 = vshll.u32 %v11261_v35, 30  ;;  %v823_v6 = vmul.f32 %v796_v30, %v9303_v60  ;;  %v15325_v52 = vld [vmem:[#allocation30_spill] sm:$0xff] }
 0x306   : > { %v15324_v21 = vor.u32 8388608, %v11147_v13  ;;  %v2761_v49 = vadd.s32 %v2759_v38, %v2757_v32  ;;  %v2985_v34 = vshrl.u32 %v2984_v44, 23  ;;  %vm2394_vm13 = vcmp.lt.s32.totalorder %v11195_v4, 2 }
 0x307   : > { %v2739_v28 = vadd.s32 %v2737_v48, %v2735_v29  ;;  %vm15326_vm10 = vweird.f32 %v15325_v52  ;;  %v2338_v24 = vadd.f32 -0.4999988, %v2337_v12  ;;  %v11305_v30 = vsel %vm2394_vm13, %v2401_v40, %v2403_v27  ;;  %v969_v27 = vpop.permute.xlu1 %968  ;;  %1220 = vrot.lane.b32.xlu1 %v823_v6, %s9066_s10 }
 0x308   : > { %v11295_v45 = vshll.u32 %v15324_v21, 8  ;;  %v4838_v63 = vsel %vm15326_vm10, nan, %v11168_v2  ;;  %v11309_v13 = vmul.f32 %v11178_v61, %v11178_v61  ;;  %v2751_v32 = vshrl.u32 %v11192_v51, 16 }
 0x309   : > { %v2347_v44 = vadd.f32 1.0, %v2346_v20  ;;  %v11314_v29 = vsel %vm2394_vm13, %v2405_v31, %v2407_v5  ;;  %v15327_v38 = vsub.s32 4, %v10653_v57  ;;  %vm15328_vm8 = vcmp.lt.s32.totalorder %v15299_v47, 0 }
 0x30a   : > { %v11322_v12 = vsub.s32 %v11221_v42, %v2617_v56  ;;  %v2729_v40 = vshrl.u32 %v11201_v50, 16  ;;  %v4992_v51 = vsel %vm14978_vm0, nan, %v11185_v1  ;;  %v2410_v48 = vand.u32 65535, %v11295_v45  ;;  %7633 = vrot.lane.b32.xlu0 %v4838_v63, %s9076_s13 }
 0x30b   : > { %v2331_v2 = vsel %vm15328_vm8, %v15327_v38, %v10653_v57  ;;  %v2762_v20 = vadd.s32 %v2761_v49, %v2751_v32  ;;  %v8697_v31 = vadd.s32 4294967169, %v2985_v34  ;;  %v2435_v5 = vshrl.u32 %v11305_v30, 16 }
 0x30c   : > { %v11332_v57 = vshrl.u32 %v11295_v45, 16  ;;  %v2740_v42 = vadd.s32 %v2739_v28, %v2729_v40  ;;  %v2339_v56 = vmul.f32 %v2338_v24, %v11143_v10  ;;  %v14924_v50 = vshrl.u32 %v11314_v29, 16 }
 0x30d   : > { %v2687_v21 = vshrl.u32 %v15128_v33, %v15329_v41  ;;  %v2753_v1 = vshrl.u32 %v11229_v3, 16  ;;  %v11341_v6 = vsel %vm11034_vm14, 0, %v2331_v2  ;;  %v11344_v49 = vmul.f32 %v2347_v44, %v11110_v25  ;;  %v15337_v41 = vld [vmem:[#allocation23_spill] sm:$0xff] }
 0x30e   : > { %15330 = vst [vmem:[#allocation41_spill] sm:$0xff] %v11341_v6  ;;  %vm2619_vm5 = vcmp.lt.s32.totalorder %v11322_v12, 0  ;;  %v2620_v34 = vsub.s32 0, %v11322_v12  ;;  %v2708_v24 = vsel %vm2706_vm15, %v11050_v14, 2102212464  ;;  %v2731_v10 = vshrl.u32 %v11233_v18, 16 }
 0x30f   : > { %15331 = vst [vmem:[#allocation43_spill] sm:$0xff] %v11344_v49  ;;  %v2763_v28 = vadd.s32 %v2762_v20, %v2753_v1  ;;  %v2991_v52 = vadd.s32 1, %v8697_v31  ;;  %vm15333_vm14 = vcmask 48128   ;;  %v11357_v25 = vmul.u32 %v2435_v5, %v2410_v48 }
 0x310   : > { %v1338_v32 = vsel %vm15333_vm14, %v15332_v8, %v969_v27  ;;  %v11359_v44 = vadd.s32 %v2740_v42, %v2731_v10  ;;  %v11361_v38 = vadd.f32 1.0, %v2339_v56  ;;  %v5445_v2 = vand.u32 3, %v11341_v6  ;;  %v11384_v56 = vpop.permute.xlu0 %1050 }
 0x311   : > { %v11366_v14 = vmul.u32 %v14924_v50, %v2410_v48  ;;  %v2707_v18 = vsel %vm2703_vm9, %v2687_v21, %v11043_v37  ;;  %v2709_v63 = vsel %vm2705_vm1, %v11048_v55, %v2708_v24  ;;  %v14926_v40 = vxor.u32 2147483648, %v11344_v49  ;;  %15336 = vst [vmem:[#allocation39_spill] sm:$0xff] %v11384_v56  ;;  %v1129_v37 = vpop.permute.xlu1 %1128 }
 0x312   : > { %15334 = vst [vmem:[#allocation3_spill] sm:$0xff] %v11361_v38  ;;  %v2434_v27 = vand.u32 65535, %v11305_v30  ;;  %v2621_v20 = vsel %vm2619_vm5, %v2620_v34, %v11322_v12  ;;  %v15335_v31 = vshll.u32 %v11229_v3, 16  ;;  %vm15338_vm15 = vcmask 97280   ;;  %7635 = vrot.lane.b32.xlu0 %v4992_v51, %s9076_s13 }
 0x313   : > { %v1359_v21 = vsel %vm15338_vm15, %v1338_v32, %v15337_v41  ;;  %v2412_v55 = vand.u32 65535, %v11314_v29  ;;  %v2767_v1 = vadd.s32 1, %v2763_v28  ;;  %vm2992_vm1 = vcmp.gt.s32.totalorder %v2991_v52, 0 }
 0x314   : > { %v11382_v42 = vadd.s32 %v11237_v53, %v15335_v31  ;;  %vm15339_vm9 = vcmask 146432   ;;  %v2440_v34 = vshll.u32 %v11357_v25, 16  ;;  %v14925_v3 = vxor.u32 2147483648, %v11361_v38 }
 0x315   : > { %v11390_v24 = vsel %vm15339_vm9, %v1359_v21, %v1129_v37  ;;  %vm5446_vm8 = vcmp.lt.s32.totalorder %v5445_v2, 2  ;;  %v2418_v53 = vshll.u32 %v11366_v14, 16  ;;  %v2622_v10 = vclz %v2621_v20 }
 0x316   : > { %vm2766_vm10 = vc.u32 %v11359_v44, %v11382_v42  ;;  %v2710_v8 = vsel %vm2704_vm4, %v2707_v18, %v2709_v63  ;;  %v2436_v32 = vmul.u32 %v2434_v27, %v2410_v48  ;;  %v11400_v31 = vmul.u32 %v2434_v27, %v11332_v57 }
 0x317   : > { %v2993_v37 = vsel %vm2992_vm1, %v2991_v52, 0  ;;  %vm5447_vm5 = vcmp.eq.s32.totalorder %v5445_v2, 0  ;;  %v2414_v41 = vmul.u32 %v2412_v55, %v2410_v48  ;;  %v11404_v21 = vmul.u32 %v2412_v55, %v11332_v57 }
 0x318   : > { %v2768_v50 = vsel %vm2766_vm10, %v2767_v1, %v2763_v28  ;;  %v5449_v20 = vsel %vm5447_vm5, %v11361_v38, %v14926_v40  ;;  %vm2444_vm14 = vc.u32 %v2436_v32, %v2440_v34  ;;  %v11409_v17 = vadd.s32 %v2440_v34, %v2436_v32 }
 0x319   : > { %v2764_v18 = vmul.u32 %v11128_v19, %v2710_v8  ;;  %vm5450_vm4 = vcmp.eq.s32.totalorder %v5445_v2, 2  ;;  %vm2422_vm15 = vc.u32 %v2414_v41, %v2418_v53  ;;  %v2424_v52 = vadd.s32 %v2418_v53, %v2414_v41  ;;  %v15340_v19 = vld [vmem:[#allocation12_spill] sm:$0xff]  ;;  %v15341_v8 = vld [vmem:[#allocation21_spill] sm:$0xff]  ;;  %v11431_v2 = vpop.permute.xlu0 %699 }
 0x31a   : > { %v8689_v63 = vadd.s32 4294967294, %v2622_v10  ;;  %v2995_v51 = vand.u32 31, %v2993_v37  ;;  %v5452_v48 = vsel %vm5450_vm4, %v14925_v3, %v11344_v49  ;;  %v14927_v28 = vshll.u32 %v11400_v31, 16  ;;  %15342 = vst [vmem:[#allocation29_spill] sm:$0xff] %v11431_v2  ;;  %v1209_v2 = vpop.permute.xlu1 %1208 }
 0x31b   : > { %v11416_v27 = vadd.s32 %v2768_v50, %v2764_v18  ;;  %v5453_v55 = vsel %vm5446_vm8, %v5449_v20, %v5452_v48  ;;  %v2420_v1 = vshll.u32 %v11404_v21, 16  ;;  %v2445_v34 = vsel %vm2444_vm14, 1, %v15318_v59 }
 0x31c   : > { %v2034_v32 = vmul.f32 %v15341_v8, %v15340_v19  ;;  %v2423_v53 = vsel %vm2422_vm15, 1, %v15318_v59  ;;  %v2439_v10 = vmul.u32 %v2435_v5, %v11332_v57  ;;  %vm2448_vm1 = vc.u32 %v11409_v17, %v14927_v28 }
 0x31d   : > { %v2187_v50 = vmul.f32 -0.00019511016, %v11309_v13  ;;  %vm14975_vm9 = vweird.f32 %v15299_v47  ;;  %v15343_v41 = vshrl.u32 %v11314_v29, 16  ;;  %vm2426_vm10 = vc.u32 %v2424_v52, %v2420_v1  ;;  %v15344_v29 = vld [vmem:[#allocation15_spill] sm:$0xff]  ;;  %v15346_v52 = vld [vmem:[#allocation26_spill] sm:$0xff] }
 0x31e   : > { %vm8690_vm8 = vcmp.lt.s32.totalorder %v8689_v63, 0  ;;  %v11437_v18 = vsub.s32 32, %v2995_v51  ;;  %v5454_v30 = vsel %vm14975_vm9, nan, %v5453_v55  ;;  %v2447_v5 = vadd.s32 %v2445_v34, %v2439_v10  ;;  %v15349_v34 = vld [vmem:[#allocation37_spill] sm:$0xff] }
 0x31f   : > { %v2417_v20 = vmul.u32 %v15343_v41, %v11332_v57  ;;  %v2770_v48 = vadd.s32 536870912, %v11416_v27  ;;  %7641 = vrot.lane.b32.xlu0 %v5454_v30, %s9076_s13  ;;  %v2449_v40 = vsel %vm2448_vm1, 1, %v15318_v59  ;;  %v11447_v57 = vmul.f32 %v15344_v29, %v9303_v60  ;;  %v15347_v41 = vld [vmem:[#allocation8_spill] sm:$0xff] }
 0x320   : > { %v11451_v1 = vmul.f32 %v15346_v52, %v9303_v60  ;;  %v15348_v55 = vsub.s32 4, %v15347_v41  ;;  %vm15350_vm5 = vcmp.lt.s32.totalorder %v15349_v34, 0  ;;  %v2427_v28 = vsel %vm2426_vm10, 1, %v15318_v59 }
 0x321   : > { %v2425_v3 = vadd.s32 %v2423_v53, %v2417_v20  ;;  %15345 = vst [vmem:[#allocation46_spill] sm:$0xff] %v11447_v57  ;;  %v11459_v30 = vadd.f32 -0.16666654, %v2034_v32  ;;  %v2188_v53 = vadd.f32 0.008332121, %v2187_v50  ;;  %v2377_v29 = vshrl.u32 %v15128_v33, %v11197_v0  ;;  %v780_v57 = vpop.permute.xlu0 %779 }
 0x322   : > { %v2021_v10 = vsel %vm15350_vm5, %v15348_v55, %v15347_v41  ;;  %v2025_v20 = vmul.f32 -0.001358992, %v15340_v19  ;;  %v11465_v8 = vsel %vm8690_vm8, 0, %v8689_v63  ;;  %v3008_v52 = vshrl.u32 %v15315_v39, %v11437_v18 }
 0x323   : > { %v2398_v41 = vsel %vm2396_vm3, %v11248_v11, 2102212464  ;;  %v2451_v55 = vadd.s32 %v2449_v40, %v2447_v5  ;;  %v11472_v47 = vshrl.u32 %v2770_v48, 30  ;;  %v15352_v32 = vand.u32 2147483647, %v11089_v43 }
 0x324   : > { %v3011_v16 = vshrl.u32 %v15316_v15, %v11437_v18  ;;  %v2429_v0 = vadd.s32 %v2427_v28, %v2425_v3  ;;  %v2999_v63 = vshrl.u32 %v15257_v62, %v11437_v18  ;;  %v3007_v38 = vshll.u32 %v15255_v58, %v2995_v51 }
 0x325   : > { %15351 = vst [vmem:[#allocation49_spill] sm:$0xff] %v11472_v47  ;;  %v2988_v50 = vand.u32 8388607, %v15352_v32  ;;  %v2419_v49 = vshrl.u32 %v11366_v14, 16  ;;  %v2441_v6 = vshrl.u32 %v11357_v25, 16  ;;  %v11483_v11 = vshrl.u32 %v2993_v37, 5 }
 0x326   : > { %v3002_v40 = vshrl.u32 %v15258_v9, %v11437_v18  ;;  %v3005_v5 = vshrl.u32 %v15255_v58, %v11437_v18  ;;  %v3010_v48 = vshll.u32 %v15315_v39, %v2995_v51  ;;  %v2998_v3 = vshll.u32 %v15128_v33, %v2995_v51 }
 0x327   : > { %v3009_v28 = vor.u32 %v3008_v52, %v3007_v38  ;;  %v2421_v32 = vshrl.u32 %v11404_v21, 16  ;;  %v2452_v43 = vadd.s32 %v2451_v55, %v2441_v6  ;;  %v3001_v14 = vshll.u32 %v15257_v62, %v2995_v51 }
 0x328   : > { %v3004_v25 = vshll.u32 %v15258_v9, %v2995_v51  ;;  %v3012_v37 = vor.u32 %v3011_v16, %v3010_v48  ;;  %v2430_v15 = vadd.s32 %v2429_v0, %v2419_v49  ;;  %v11494_v56 = vor.u32 %v2999_v63, %v2998_v3  ;;  %v15363_v0 = vld [vmem:[#allocation54_spill] sm:$0xff] }
 0x329   : > { %v819_v58 = vmul.f32 %v780_v57, %v9303_v60  ;;  %vm15353_vm3 = vcmask 195584   ;;  %v2443_v38 = vshrl.u32 %v11400_v31, 16  ;;  %v11500_v52 = vor.u32 %v3002_v40, %v3001_v14 }
 0x32a   : > { %v1401_v39 = vsel %vm15353_vm3, %v11390_v24, %v1209_v2  ;;  %v11502_v6 = vor.u32 %v3005_v5, %v3004_v25  ;;  %vm3016_vm14 = vcmp.lt.s32.totalorder %v11483_v11, 4  ;;  %vm15354_vm4 = vcmask 244736  }
 0x32b   : > { %v11507_v16 = vsel %vm15354_vm4, %v1401_v39, %v11298_v7  ;;  %v2189_v49 = vmul.f32 %v2188_v53, %v11309_v13  ;;  %v3022_v21 = vsel %vm3016_vm14, %v3009_v28, 920167782  ;;  %1212 = vrot.lane.b32.xlu2 %v819_v58, %s9066_s10  ;;  %v2026_v24 = vadd.f32 0.041655596, %v2025_v20  ;;  %vm15370_vm10 = vmmov %vm15354_vm4 }
 0x32c   : > { %15355 = vst [vmem:[#allocation51_spill] sm:$0xff] %v11507_v16  ;;  %v2453_v51 = vadd.s32 %v2452_v43, %v2443_v38  ;;  %v2630_v2 = vsub.s32 4294967266, %v11465_v8  ;;  %v3026_v57 = vsel %vm3016_vm14, %v3012_v37, 1326507024  ;;  %v2397_v55 = vsel %vm2393_vm11, %v2377_v29, %v11243_v26  ;;  %v9028_v37 = vld [vmem:[%s9134_s30 + $0x98] sm:$0xff] }
 0x32d   : > { %v11519_v7 = vadd.s32 %v2430_v15, %v2421_v32  ;;  %v2772_v39 = vshll.u32 %v11472_v47, 30  ;;  %vm3013_vm15 = vcmp.lt.s32.totalorder %v11483_v11, 1  ;;  %vm3015_vm1 = vcmp.lt.s32.totalorder %v11483_v11, 3 }
 0x32e   : > { %v2399_v58 = vsel %vm2395_vm2, %v11245_v22, %v2398_v41  ;;  %v2989_v43 = vor.u32 8388608, %v2988_v50  ;;  %v3021_v53 = vsel %vm3013_vm15, %v11494_v56, %v11500_v52  ;;  %v3023_v15 = vsel %vm3015_vm1, %v11502_v6, %v3022_v21 }
 0x32f   : > { %v15356_v26 = vshll.u32 %v11400_v31, 16  ;;  %v3025_v22 = vsel %vm3013_vm15, %v11500_v52, %v11502_v6  ;;  %v3027_v29 = vsel %vm3015_vm1, %v3009_v28, %v3026_v57  ;;  %v2180_v41 = vmul.f32 -0.001358992, %v11309_v13 }
 0x330   : > { %v2457_v50 = vadd.s32 1, %v2453_v51  ;;  %v11548_v63 = vsel %vm10802_vm6, 0, %v2021_v10  ;;  %v2631_v31 = vadd.s32 127, %v2630_v2  ;;  %vm3014_vm11 = vcmp.lt.s32.totalorder %v11483_v11, 2 }
 0x331   : > { %v11537_v20 = vadd.s32 %v11409_v17, %v15356_v26  ;;  %15358 = vst [vmem:[#allocation52_spill] sm:$0xff] %v11548_v63  ;;  %v2036_v17 = vmul.f32 %v11459_v30, %v15340_v19  ;;  %v11557_v40 = vsel %vm3014_vm11, %v3021_v53, %v3023_v15  ;;  %v2027_v5 = vmul.f32 %v2026_v24, %v15340_v19  ;;  %v15359_v30 = vld [vmem:[#allocation24_spill] sm:$0xff] }
 0x332   : > { %v2400_v48 = vsel %vm2394_vm13, %v2397_v55, %v2399_v58  ;;  %v2626_v10 = vsub.s32 32, %v11465_v8  ;;  %v11564_v3 = vsub.s32 %v11416_v27, %v2772_v39  ;;  %v11568_v28 = vsel %vm3014_vm11, %v3025_v22, %v3027_v29  ;;  %v15360_v55 = vld [vmem:[#allocation34_spill] sm:$0xff]  ;;  %v15361_v39 = vld [vmem:[#allocation45_spill] sm:$0xff] }
 0x333   : > { %vm2456_vm2 = vc.u32 %v11519_v7, %v11537_v20  ;;  %v11570_v32 = vshll.u32 %v2989_v43, 8  ;;  %v2175_v14 = vsub.s32 4, %v15359_v30  ;;  %v2190_v25 = vadd.f32 -0.16666654, %v2189_v49  ;;  %903 = vperm.xlu2 %8932, %v9028_v37  }
 0x334   : > { %v2181_v38 = vadd.f32 0.041655596, %v2180_v41  ;;  %v2458_v21 = vsel %vm2456_vm2, %v2457_v50, %v2453_v51  ;;  %v2610_v4 = vadd.s32 %v11159_v36, %v11134_v46  ;;  %v2632_v24 = vshll.u32 %v2631_v31, 23 }
 0x335   : > { %v3055_v27 = vshrl.u32 %v11557_v40, 16  ;;  %v2454_v2 = vmul.u32 %v11295_v45, %v2400_v48  ;;  %v2037_v57 = vadd.f32 1.0, %v2036_v17  ;;  %vm15362_vm6 = vcmask 146432   ;;  %v15364_v17 = vld [vmem:[#allocation42_spill] sm:$0xff] }
 0x336   : > { %v1378_v58 = vsel %vm15362_vm6, %v15361_v39, %v15360_v55  ;;  %v3033_v43 = vshrl.u32 %v11568_v28, 16  ;;  %v2028_v49 = vadd.f32 -0.4999988, %v2027_v5  ;;  %v2628_v53 = vshrl.u32 %v2610_v4, %v2626_v10 }
 0x337   : > { %v2775_v15 = vsub.s32 0, %v11564_v3  ;;  %v3030_v51 = vand.u32 65535, %v11570_v32  ;;  %v11584_v26 = vadd.s32 %v2458_v21, %v2454_v2  ;;  %v2176_v46 = vsel %vm2053_vm12, %v2175_v14, %v15359_v30  ;;  %vm15365_vm12 = vmmov %vm15353_vm3 }
 0x338   : > { %v2191_v36 = vmul.f32 %v2190_v25, %v11309_v13  ;;  %vm2774_vm13 = vcmp.lt.s32.totalorder %v11564_v3, 0  ;;  %v2182_v45 = vmul.f32 %v2181_v38, %v11309_v13  ;;  %v2627_v22 = vshll.u32 %v11322_v12, %v11465_v8  ;;  %v15366_v25 = vld [vmem:[#allocation40_spill] sm:$0xff] }
 0x339   : > { %v2633_v29 = vor.u32 4788187, %v2632_v24  ;;  %v11596_v41 = vmul.u32 %v3055_v27, %v3030_v51  ;;  %v11599_v50 = vand.u32 3, %v11548_v63  ;;  %v620_v31 = vmul.f32 %v15363_v0, %v9303_v60 }
 0x33a   : > { %v1399_v5 = vsel %vm15365_vm12, %v1378_v58, %v15364_v17  ;;  %v11607_v48 = vmul.u32 %v3033_v43, %v3030_v51  ;;  %v2029_v12 = vmul.f32 %v2028_v49, %v15340_v19  ;;  %v2629_v8 = vor.u32 %v2628_v53, %v2627_v22  ;;  %v15369_v58 = vld [vmem:[#allocation44_spill] sm:$0xff] }
 0x33b   : > { %v2776_v10 = vsel %vm2774_vm13, %v2775_v15, %v11564_v3  ;;  %v3054_v30 = vand.u32 65535, %v11557_v40  ;;  %v2460_v14 = vadd.s32 536870912, %v11584_v26  ;;  %v11614_v37 = vmul.f32 %v2037_v57, %v15366_v25  ;;  %1054 = vrot.lane.b32.xlu2 %v620_v31, %s9065_s9 }
 0x33c   : > { %v2192_v38 = vadd.f32 1.0, %v2191_v36  ;;  %v3032_v21 = vand.u32 65535, %v11568_v28  ;;  %v2183_v4 = vadd.f32 -0.4999988, %v2182_v45  ;;  %v11620_v24 = vsel %vm11077_vm7, 0, %v2176_v46 }
 0x33d   : > { %15367 = vst [vmem:[#allocation10_spill] sm:$0xff] %v11614_v37  ;;  %v2634_v19 = vand.u32 2147483647, %v2633_v29  ;;  %v3031_v2 = vshrl.u32 %v11570_v32, 16  ;;  %v3060_v55 = vshll.u32 %v11596_v41, 16  ;;  %v2777_v39 = vclz %v2776_v10  ;;  %v15374_v10 = vld [vmem:[#allocation9_spill] sm:$0xff] }
 0x33e   : > { %15368 = vst [vmem:[#allocation48_spill] sm:$0xff] %v11620_v24  ;;  %v11626_v57 = vsel %vm15370_vm10, %v1399_v5, %v15369_v58  ;;  %v3038_v49 = vshll.u32 %v11607_v48, 16  ;;  %v11629_v53 = vadd.f32 1.0, %v2029_v12  ;;  %vm5139_vm8 = vcmp.eq.s32.totalorder %v11599_v50, 0 }
 0x33f   : > { %15371 = vst [vmem:[#allocation11_spill] sm:$0xff] %v11626_v57  ;;  %vm5142_vm5 = vcmp.eq.s32.totalorder %v11599_v50, 2  ;;  %v2636_v23 = vcvt.s32.f32 %v2629_v8  ;;  %v3056_v15 = vmul.u32 %v3054_v30, %v3030_v51  ;;  %v11633_v46 = vmul.u32 %v3054_v30, %v3031_v2  ;;  %v11647_v8 = vpop.permute.xlu2 %970 }
 0x340   : > { %15372 = vst [vmem:[#allocation30_spill] sm:$0xff] %v11629_v53  ;;  %v11635_v36 = vshrl.u32 %v2460_v14, 30  ;;  %v11638_v45 = vmul.f32 %v2192_v38, %v11178_v61  ;;  %v3034_v22 = vmul.u32 %v3032_v21, %v3030_v51  ;;  %v11640_v29 = vmul.u32 %v3032_v21, %v3031_v2 }
 0x341   : > { %v2184_v0 = vmul.f32 %v2183_v4, %v11309_v13  ;;  %v2637_v31 = vmul.f32 %v2636_v23, %v2634_v19  ;;  %v2829_v17 = vand.u32 2139095040, %v11626_v57  ;;  %vm3064_vm7 = vc.u32 %v3056_v15, %v3060_v55 }
 0x342   : > { %15373 = vst [vmem:[#allocation28_spill] sm:$0xff] %v11638_v45  ;;  %v11644_v5 = vadd.s32 %v3060_v55, %v3056_v15  ;;  %vm5138_vm3 = vcmp.lt.s32.totalorder %v11599_v50, 2  ;;  %v8692_v12 = vadd.s32 4294967294, %v2777_v39  ;;  %v920_v61 = vmul.f32 %v15374_v10, %v9303_v60 }
 0x343   : > { %vm3042_vm4 = vc.u32 %v3034_v22, %v3038_v49  ;;  %v3044_v51 = vadd.s32 %v3038_v49, %v3034_v22  ;;  %v14945_v30 = vshll.u32 %v11633_v46, 16  ;;  %v14942_v13 = vxor.u32 2147483648, %v11614_v37  ;;  %v11667_v49 = vpop.permute.xlu0 %791 }
 0x344   : > { %v14940_v14 = vxor.u32 2147483648, %v11629_v53  ;;  %v2462_v25 = vshll.u32 %v11635_v36, 30  ;;  %v3040_v38 = vshll.u32 %v11640_v29, 16  ;;  %v3065_v21 = vsel %vm3064_vm7, 1, %v15318_v59  ;;  %1294 = vrot.lane.b32.xlu2 %v920_v61, %s9068_s12 }
 0x345   : > { %v11658_v4 = vadd.f32 1.0, %v2184_v0  ;;  %v5291_v19 = vand.u32 3, %v11620_v24  ;;  %v2830_v55 = vshrl.u32 %v2829_v17, 23  ;;  %v3043_v39 = vsel %vm3042_vm4, 1, %v15318_v59  ;;  %v15376_v17 = vld [vmem:[#allocation38_spill] sm:$0xff] }
 0x346   : > { %v3059_v58 = vmul.u32 %v3055_v27, %v3031_v2  ;;  %vm3068_vm2 = vc.u32 %v11644_v5, %v14945_v30  ;;  %v2638_v23 = vxor.u32 2147483648, %v2637_v31  ;;  %vm8693_vm6 = vcmp.lt.s32.totalorder %v8692_v12, 0 }
 0x347   : > { %15375 = vst [vmem:[#allocation2_spill] sm:$0xff] %v11658_v4  ;;  %v3037_v15 = vmul.u32 %v3033_v43, %v3031_v2  ;;  %vm3046_vm13 = vc.u32 %v3044_v51, %v3040_v38  ;;  %v5141_v40 = vsel %vm5139_vm8, %v11629_v53, %v14942_v13  ;;  %v5144_v27 = vsel %vm5142_vm5, %v14940_v14, %v11614_v37 }
 0x348   : > { %v3067_v22 = vadd.s32 %v3065_v21, %v3059_v58  ;;  %v11682_v0 = vsub.s32 %v11584_v26, %v2462_v25  ;;  %vm2518_vm12 = vcmp.lt.s32.totalorder %v15376_v17, 0  ;;  %v3069_v43 = vsel %vm3068_vm2, 1, %v15318_v59  ;;  %v11693_v58 = vpop.permute.xlu2 %1130  ;;  %v11695_v26 = vpop.permute.xlu1 %895 }
 0x349   : > { %v3045_v28 = vadd.s32 %v3043_v39, %v3037_v15  ;;  %v14941_v2 = vxor.u32 2147483648, %v11638_v45  ;;  %v11687_v10 = vsel %vm8693_vm6, 0, %v8692_v12  ;;  %v14944_v61 = vand.u32 2147483647, %v11626_v57 }
 0x34a   : > { %v8694_v51 = vadd.s32 4294967169, %v2830_v55  ;;  %v3047_v38 = vsel %vm3046_vm13, 1, %v15318_v59  ;;  %v2639_v21 = vsel %vm2518_vm12, %v2638_v23, %v2637_v31  ;;  %v5145_v25 = vsel %vm5138_vm3, %v5141_v40, %v5144_v27 }
 0x34b   : > { %v14943_v39 = vxor.u32 2147483648, %v11658_v4  ;;  %vm5293_vm10 = vcmp.eq.s32.totalorder %v5291_v19, 0  ;;  %v15377_v12 = vand.u32 2147483647, %v15376_v17  ;;  %v3071_v55 = vadd.s32 %v3069_v43, %v3067_v22 }
 0x34c   : > { %vm5296_vm5 = vcmp.eq.s32.totalorder %v5291_v19, 2  ;;  %v2465_v31 = vsub.s32 0, %v11682_v0  ;;  %v2785_v23 = vsub.s32 4294967266, %v11687_v10  ;;  %v3049_v14 = vadd.s32 %v3047_v38, %v3045_v28  ;;  %978 = vrot.lane.b32.xlu2 %v11451_v1, %s9064_s8 }
 0x34d   : > { %vm11702_vm8 = vcmp.le.f32.partialorder %v15377_v12, 0.7853982  ;;  %v5295_v50 = vsel %vm5293_vm10, %v11658_v4, %v14941_v2  ;;  %vm2464_vm7 = vcmp.lt.s32.totalorder %v11682_v0, 0  ;;  %v2833_v22 = vand.u32 8388607, %v14944_v61  ;;  %v11727_v12 = vpop.permute.xlu0 %972 }
 0x34e   : > { %v11717_v40 = vsel %vm11702_vm8, %v15376_v17, %v2639_v21  ;;  %v2836_v27 = vadd.s32 1, %v8694_v51  ;;  %v3061_v28 = vshrl.u32 %v11596_v41, 16  ;;  %v3039_v43 = vshrl.u32 %v11607_v48, 16 }
 0x34f   : > { %vm14974_vm3 = vweird.f32 %v15349_v34  ;;  %vm5292_vm4 = vcmp.lt.s32.totalorder %v5291_v19, 2  ;;  %v5298_v1 = vsel %vm5296_vm5, %v14943_v39, %v11638_v45  ;;  %v2466_v51 = vsel %vm2464_vm7, %v2465_v31, %v11682_v0 }
 0x350   : > { %v3072_v38 = vadd.s32 %v3071_v55, %v3061_v28  ;;  %v11731_v21 = vsel %vm14974_vm3, nan, %v5145_v25  ;;  %v5299_v2 = vsel %vm5292_vm4, %v5295_v50, %v5298_v1  ;;  %v2640_v41 = vsub.s32 4, %v11261_v35  ;;  %v15380_v50 = vld [vmem:[#allocation27_spill] sm:$0xff]  ;;  %v800_v61 = vpop.permute.xlu2 %799  ;;  %v600_v45 = vpop.permute.xlu1 %599 }
 0x351   : > { %v11737_v48 = vmul.f32 %v11717_v40, %v11717_v40  ;;  %v2786_v19 = vadd.s32 127, %v2785_v23  ;;  %v3050_v13 = vadd.s32 %v3049_v14, %v3039_v43  ;;  %vm14971_vm2 = vweird.f32 %v15301_v54 }
 0x352   : > { %v2781_v55 = vsub.s32 32, %v11687_v10  ;;  %v2834_v28 = vor.u32 8388608, %v2833_v22  ;;  %vm2837_vm6 = vcmp.gt.s32.totalorder %v2836_v27, 0  ;;  %v3063_v25 = vshrl.u32 %v11633_v46, 16 }
 0x353   : > { %v821_v1 = vmul.f32 %v15380_v50, %v9303_v60  ;;  %v3041_v31 = vshrl.u32 %v11640_v29, 16  ;;  %v3139_v39 = vand.u32 2139095040, %v11507_v16  ;;  %v2467_v30 = vclz %v2466_v51 }
 0x354   : > { %v2765_v14 = vadd.s32 %v11382_v42, %v11359_v44  ;;  %v2997_v23 = vshrl.u32 %v15128_v33, %v11437_v18  ;;  %v3018_v22 = vsel %vm3016_vm14, %v11502_v6, 2102212464  ;;  %v3073_v43 = vadd.s32 %v3072_v38, %v3063_v25  ;;  %v15382_v44 = vld [vmem:[#allocation31_spill] sm:$0xff] }
 0x355   : > { %v2652_v34 = vmul.f32 -0.00019511016, %v11737_v48  ;;  %v2787_v50 = vshll.u32 %v2786_v19, 23  ;;  %v2838_v4 = vsel %vm2837_vm6, %v2836_v27, 0  ;;  %v11754_v29 = vadd.s32 %v3050_v13, %v3041_v31  ;;  %1216 = vrot.lane.b32.xlu2 %v821_v1, %s9066_s10 }
 0x356   : > { %v2783_v51 = vshrl.u32 %v2765_v14, %v2781_v55  ;;  %vm15383_vm13 = vcmask 48128   ;;  %v3017_v18 = vsel %vm3013_vm15, %v2997_v23, %v11494_v56  ;;  %v624_v6 = vmul.f32 %v600_v45, %v9303_v60  ;;  %v11778_v45 = vpop.permute.xlu0 %1132 }
 0x357   : > { %15381 = vst [vmem:[#allocation23_spill] sm:$0xff] %v11754_v29  ;;  %v1339_v42 = vsel %vm15383_vm13, %v15382_v44, %v11647_v8  ;;  %v3019_v27 = vsel %vm3015_vm1, %v11500_v52, %v3018_v22  ;;  %v15384_v13 = vshll.u32 %v11633_v46, 16  ;;  %v3140_v19 = vshrl.u32 %v3139_v39, 23 }
 0x358   : > { %v8686_v55 = vadd.s32 4294967294, %v2467_v30  ;;  %v2641_v8 = vsel %vm2518_vm12, %v2640_v41, %v11261_v35  ;;  %v2840_v25 = vand.u32 31, %v2838_v4  ;;  %v11775_v1 = vshll.u32 %v2834_v28, 8  ;;  %1062 = vrot.lane.b32.xlu1 %v624_v6, %s9065_s9  ;;  %v15387_v30 = vld [vmem:[#allocation36_spill] sm:$0xff]  ;;  %v15388_v41 = vld [vmem:[#allocation39_spill] sm:$0xff] }
 0x359   : > { %v11770_v38 = vadd.s32 %v11644_v5, %v15384_v13  ;;  %v3077_v56 = vadd.s32 1, %v3073_v43  ;;  %v2653_v52 = vadd.f32 0.008332121, %v2652_v34  ;;  %v2782_v46 = vshll.u32 %v11564_v3, %v11687_v10  ;;  %v11796_v10 = vpop.permute.xlu2 %899 }
 0x35a   : > { %15386 = vst [vmem:[#allocation21_spill] sm:$0xff] %v11775_v1  ;;  %v2788_v5 = vor.u32 4788187, %v2787_v50  ;;  %v623_v39 = vmul.f32 %v15387_v30, %v9303_v60  ;;  %v3020_v35 = vsel %vm3014_vm11, %v3017_v18, %v3019_v27  ;;  %vm15389_vm15 = vcmask 97280  }
 0x35b   : > { %15385 = vst [vmem:[#allocation12_spill] sm:$0xff] %v11770_v38  ;;  %vm3076_vm14 = vc.u32 %v11754_v29, %v11770_v38  ;;  %v1360_v28 = vsel %vm15389_vm15, %v1339_v42, %v15388_v41  ;;  %v11792_v31 = vsel %vm14971_vm2, nan, %v5299_v2  ;;  %v2784_v34 = vor.u32 %v2783_v51, %v2782_v46  ;;  %v1211_v42 = vpop.permute.xlu1 %1210 }
 0x35c   : > { %15390 = vst [vmem:[#allocation15_spill] sm:$0xff] %v11792_v31  ;;  %v8700_v14 = vadd.s32 4294967169, %v3140_v19  ;;  %v822_v3 = vmul.f32 %v11667_v49, %v9303_v60  ;;  %vm8687_vm1 = vcmp.lt.s32.totalorder %v8686_v55, 0  ;;  %v11800_v23 = vsel %vm11702_vm8, 0, %v2641_v8  ;;  %v15394_v8 = vld [vmem:[#allocation5_spill] sm:$0xff] }
 0x35d   : > { %15391 = vst [vmem:[#allocation26_spill] sm:$0xff] %v11800_v23  ;;  %v11802_v11 = vsub.s32 32, %v2840_v25  ;;  %v11805_v22 = vand.u32 65535, %v11775_v1  ;;  %v3078_v50 = vsel %vm3076_vm14, %v3077_v56, %v3073_v43  ;;  %v2654_v2 = vmul.f32 %v2653_v52, %v11737_v48 }
 0x35e   : > { %v2789_v51 = vand.u32 2147483647, %v2788_v5  ;;  %v3074_v44 = vmul.u32 %v11570_v32, %v3020_v35  ;;  %vm15392_vm11 = vcmask 146432   ;;  %1218 = vrot.lane.b32.xlu2 %v822_v3, %s9066_s10  ;;  %v11813_v15 = vshrl.u32 %v11775_v1, 16 }
 0x35f   : > { %v1381_v49 = vsel %vm15392_vm11, %v1360_v28, %v11693_v58  ;;  %v824_v18 = vmul.f32 %v800_v61, %v9303_v60  ;;  %vm15393_vm12 = vcmask 195584   ;;  %v11817_v27 = vsel %vm8687_vm1, 0, %v8686_v55 }
 0x360   : > { %v1402_v6 = vsel %vm15393_vm12, %v1381_v49, %v1211_v42  ;;  %v2791_v43 = vcvt.s32.f32 %v2784_v34  ;;  %v11819_v13 = vshrl.u32 %v2838_v4, 5  ;;  %v11821_v19 = vadd.s32 %v3078_v50, %v3074_v44  ;;  %v804_v4 = vpop.permute.xlu0 %803 }
 0x361   : > { %v3146_v32 = vadd.s32 1, %v8700_v14  ;;  %vm2673_vm10 = vcmp.lt.s32.totalorder %v15394_v8, 0  ;;  %v2843_v58 = vshll.u32 %v15128_v33, %v2840_v25  ;;  %v2844_v56 = vshrl.u32 %v15257_v62, %v11802_v11  ;;  %1222 = vrot.lane.b32.xlu1 %v824_v18, %s9066_s10 }
 0x362   : > { %v2847_v61 = vshrl.u32 %v15258_v9, %v11802_v11  ;;  %v15395_v52 = vmov 920167782   ;;  %v2655_v46 = vadd.f32 -0.16666654, %v2654_v2  ;;  %v2792_v5 = vmul.f32 %v2791_v43, %v2789_v51 }
 0x363   : > { %v2853_v55 = vshrl.u32 %v15395_v52, %v11802_v11  ;;  %v15396_v30 = vmov 2102212464   ;;  %v2475_v41 = vsub.s32 4294967266, %v11817_v27  ;;  %v2846_v28 = vshll.u32 %v15257_v62, %v2840_v25  ;;  %v1291_v57 = vpop.permute.xlu1 %1290 }
 0x364   : > { %v2850_v35 = vshrl.u32 %v15396_v30, %v11802_v11  ;;  %v2849_v34 = vshll.u32 %v15258_v9, %v2840_v25  ;;  %v2852_v14 = vshll.u32 %v15396_v30, %v2840_v25  ;;  %v2645_v3 = vmul.f32 -0.001358992, %v11737_v48 }
 0x365   : > { %v15397_v50 = vand.u32 2147483647, %v15394_v8  ;;  %v15398_v44 = vmov 0  ;;  %v2855_v2 = vshll.u32 %v15395_v52, %v2840_v25  ;;  %v15401_v51 = vmov 1326507024   ;;  %v604_v25 = vpop.permute.xlu2 %603 }
 0x366   : > { %v2856_v49 = vshrl.u32 %v15401_v51, %v11802_v11  ;;  %v3080_v42 = vadd.s32 536870912, %v11821_v19  ;;  %vm3147_vm5 = vcmp.gt.s32.totalorder %v3146_v32, 0  ;;  %v11850_v43 = vor.u32 %v2844_v56, %v2843_v58  ;;  %1060 = vrot.lane.b32.xlu2 %v623_v39, %s9065_s9 }
 0x367   : > { %vm11841_vm8 = vcmp.le.f32.partialorder %v15397_v50, 0.7853982  ;;  %v11852_v54 = vor.u32 %v2847_v61, %v2846_v28  ;;  %v2854_v53 = vor.u32 %v2853_v55, %v2852_v14  ;;  %v2656_v50 = vmul.f32 %v2655_v46, %v11737_v48 }
 0x368   : > { %v15399_v44 = vsel %vm11841_vm8, 4294967295, %v15398_v44  ;;  %15402 = vst [vmem:[#allocation25_spill] sm:$0xff] %v11850_v43  ;;  %v2793_v37 = vxor.u32 2147483648, %v2792_v5  ;;  %v11855_v24 = vor.u32 %v2850_v35, %v2849_v34  ;;  %v2476_v63 = vadd.s32 127, %v2475_v41  ;;  %v11872_v39 = vpop.permute.xlu0 %1134 }
 0x369   : > { %15400 = vst [vmem:[#allocation8_spill] sm:$0xff] %v15399_v44  ;;  %v3148_v38 = vsel %vm3147_vm5, %v3146_v32, 0  ;;  %vm15404_vm7 = vcmask 244736   ;;  %v625_v58 = vmul.f32 %v604_v25, %v9303_v60  ;;  %v2646_v56 = vadd.f32 0.041655596, %v2645_v3  ;;  %v15409_v25 = vld [vmem:[#allocation13_spill] sm:$0xff] }
 0x36a   : > { %15403 = vst [vmem:[#allocation24_spill] sm:$0xff] %v11852_v54  ;;  %v11859_v29 = vsel %vm15404_vm7, %v1402_v6, %v1291_v57  ;;  %vm2861_vm4 = vcmp.lt.s32.totalorder %v11819_v13, 4  ;;  %v11863_v61 = vshrl.u32 %v3080_v42, 30  ;;  %v2471_v46 = vsub.s32 32, %v11817_v27 }
 0x36b   : > { %15405 = vst [vmem:[#allocation34_spill] sm:$0xff] %v11859_v29  ;;  %v3294_v55 = vand.u32 2139095040, %v11859_v29  ;;  %v2857_v35 = vor.u32 %v2856_v49, %v2855_v2  ;;  %vm2858_vm6 = vcmp.lt.s32.totalorder %v11819_v13, 1  ;;  %vm2860_vm13 = vcmp.lt.s32.totalorder %v11819_v13, 3  ;;  %1064 = vrot.lane.b32.xlu1 %v625_v58, %s9065_s9 }
 0x36c   : > { %15406 = vst [vmem:[#allocation45_spill] sm:$0xff] %v11863_v61  ;;  %v2867_v57 = vsel %vm2861_vm4, %v2854_v53, 920167782  ;;  %v2794_v6 = vsel %vm2673_vm10, %v2793_v37, %v2792_v5  ;;  %v11876_v32 = vand.u32 31, %v3148_v38  ;;  %v2455_v41 = vadd.s32 %v11537_v20, %v11519_v7 }
 0x36d   : > { %15407 = vst [vmem:[#allocation54_spill] sm:$0xff] %v11872_v39  ;;  %v2477_v28 = vshll.u32 %v2476_v63, 23  ;;  %v11884_v34 = vsel %vm2858_vm6, %v11850_v43, %v11852_v54  ;;  %v11890_v14 = vsel %vm2858_vm6, %v11852_v54, %v11855_v24  ;;  %v3295_v3 = vshrl.u32 %v3294_v55, 23  ;;  %v1053_v55 = vpop.permute.xlu1 %1052 }
 0x36e   : > { %v2647_v37 = vmul.f32 %v2646_v56, %v11737_v48  ;;  %v2657_v5 = vadd.f32 1.0, %v2656_v50  ;;  %v3082_v2 = vshll.u32 %v11863_v61, 30  ;;  %v923_v7 = vmul.f32 %v11695_v26, %v9303_v60  ;;  %v15411_v26 = vld [vmem:[#allocation35_spill] sm:$0xff] }
 0x36f   : > { %v2473_v20 = vshrl.u32 %v2455_v41, %v2471_v46  ;;  %v11899_v63 = vsel %vm11841_vm8, %v15394_v8, %v2794_v6  ;;  %v11904_v49 = vsel %vm2860_vm13, %v11855_v24, %v2867_v57  ;;  %v2871_v42 = vsel %vm2861_vm4, %v2857_v35, 1326507024 }
 0x370   : > { %15408 = vst [vmem:[#allocation42_spill] sm:$0xff] %v11899_v63  ;;  %v8703_v50 = vadd.s32 4294967169, %v3295_v3  ;;  %vm2363_vm14 = vcmp.lt.s32.totalorder %v15409_v25, 0  ;;  %v11910_v58 = vsub.s32 32, %v11876_v32  ;;  %vm15412_vm15 = vcmask 48128   ;;  %1300 = vrot.lane.b32.xlu2 %v923_v7, %s9068_s12 }
 0x371   : > { %v1340_v56 = vsel %vm15412_vm15, %v15411_v26, %v11727_v12  ;;  %v2472_v46 = vshll.u32 %v11682_v0, %v11817_v27  ;;  %v2478_v57 = vor.u32 4788187, %v2477_v28  ;;  %v825_v6 = vmul.f32 %v804_v4, %v9303_v60 }
 0x372   : > { %15410 = vst [vmem:[#allocation40_spill] sm:$0xff] %v11910_v58  ;;  %v3301_v35 = vadd.s32 1, %v8703_v50  ;;  %vm15413_vm1 = vcmask 97280   ;;  %v2648_v3 = vadd.f32 -0.4999988, %v2647_v37  ;;  %v11921_v18 = vmul.f32 %v2657_v5, %v11717_v40  ;;  %v11939_v40 = vpop.permute.xlu0 %976 }
 0x373   : > { %v1361_v41 = vsel %vm15413_vm1, %v1340_v56, %v1053_v55  ;;  %v11924_v61 = vsub.s32 %v11821_v19, %v3082_v2  ;;  %v2474_v7 = vor.u32 %v2473_v20, %v2472_v46  ;;  %v11932_v0 = vmul.f32 %v11899_v63, %v11899_v63  ;;  %1224 = vrot.lane.b32.xlu1 %v825_v6, %s9066_s10 }
 0x374   : > { %15414 = vst [vmem:[#allocation44_spill] sm:$0xff] %v11921_v18  ;;  %v11928_v12 = vsel %vm15392_vm11, %v1361_v41, %v11778_v45  ;;  %v11936_v27 = vsel %vm2860_vm13, %v2854_v53, %v2871_v42  ;;  %vm3302_vm12 = vcmp.gt.s32.totalorder %v3301_v35, 0  ;;  %v11942_v19 = vand.u32 3, %v11800_v23  ;;  %v15416_v45 = vld [vmem:[#allocation29_spill] sm:$0xff] }
 0x375   : > { %15415 = vst [vmem:[#allocation9_spill] sm:$0xff] %v11924_v61  ;;  %v724_v4 = vmul.f32 %v15416_v45, %v9303_v60  ;;  %v3163_v28 = vshrl.u32 %v15395_v52, %v11910_v58  ;;  %v3303_v37 = vsel %vm3302_vm12, %v3301_v35, 0  ;;  %v2479_v5 = vand.u32 2147483647, %v2478_v57  ;;  %v11968_v45 = vpop.permute.xlu1 %703 }
 0x376   : > { %v14965_v2 = vand.u32 2147483647, %v11507_v16  ;;  %v3305_v53 = vand.u32 31, %v3303_v37  ;;  %v2649_v20 = vmul.f32 %v2648_v3, %v11737_v48  ;;  %v2485_v42 = vsub.s32 4, %v11635_v36 }
 0x377   : > { %v3154_v26 = vshrl.u32 %v15257_v62, %v11910_v58  ;;  %v3162_v56 = vshll.u32 %v15396_v30, %v11876_v32  ;;  %v2481_v55 = vcvt.s32.f32 %v2474_v7  ;;  %v11956_v46 = vshrl.u32 %v3148_v38, 5 }
 0x378   : > { %v3153_v57 = vshll.u32 %v15128_v33, %v11876_v32  ;;  %v3157_v6 = vshrl.u32 %v15258_v9, %v11910_v58  ;;  %v11962_v48 = vsub.s32 32, %v3305_v53  ;;  %v3160_v35 = vshrl.u32 %v15396_v30, %v11910_v58  ;;  %1142 = vrot.lane.b32.xlu2 %v724_v4, %s9067_s11 }
 0x379   : > { %15417 = vst [vmem:[#allocation27_spill] sm:$0xff] %v11956_v46  ;;  %v3164_v41 = vor.u32 %v3163_v28, %v3162_v56  ;;  %v3166_v3 = vshrl.u32 %v15401_v51, %v11910_v58  ;;  %v2482_v38 = vmul.f32 %v2481_v55, %v2479_v5  ;;  %v11973_v7 = vand.u32 8388607, %v14965_v2 }
 0x37a   : > { %v3156_v50 = vshll.u32 %v15257_v62, %v11876_v32  ;;  %v11977_v23 = vadd.f32 1.0, %v2649_v20  ;;  %v11982_v28 = vsel %vm2363_vm14, %v2485_v42, %v11635_v36  ;;  %v11984_v56 = vor.u32 %v3154_v26, %v3153_v57  ;;  %v12000_v42 = vpop.permute.xlu0 %1136 }
 0x37b   : > { %v3159_v4 = vshll.u32 %v15258_v9, %v11876_v32  ;;  %v3165_v5 = vshll.u32 %v15395_v52, %v11876_v32  ;;  %vm14979_vm5 = vcmp.lt.s32.totalorder %v11956_v46, 4  ;;  %v3318_v20 = vshrl.u32 %v15395_v52, %v11962_v48  ;;  %7637 = vrot.lane.b32.xlu1 %v11731_v21, %s9076_s13  ;;  %15421 = vst [vmem:[#allocation35_spill] sm:$0xff] %v12000_v42 }
 0x37c   : > { %15418 = vst [vmem:[#allocation31_spill] sm:$0xff] %v11977_v23  ;;  %v11991_v2 = vor.u32 %v3157_v6, %v3156_v50  ;;  %v3321_v36 = vshrl.u32 %v15401_v51, %v11962_v48  ;;  %vm3084_vm7 = vcmp.lt.s32.totalorder %v11924_v61, 0  ;;  %v3177_v50 = vsel %vm14979_vm5, %v3164_v41, 920167782 }
 0x37d   : > { %15419 = vst [vmem:[#allocation36_spill] sm:$0xff] %v11984_v56  ;;  %v12003_v32 = vor.u32 %v3160_v35, %v3159_v4  ;;  %v3167_v26 = vor.u32 %v3166_v3, %v3165_v5  ;;  %v15423_v57 = vand.u32 2147483647, %v15409_v25  ;;  %v2483_v55 = vxor.u32 2147483648, %v2482_v38 }
 0x37e   : > { %15420 = vst [vmem:[#allocation39_spill] sm:$0xff] %v11991_v2  ;;  %v924_v21 = vmul.f32 %v11796_v10, %v9303_v60  ;;  %v3317_v42 = vshll.u32 %v15396_v30, %v3305_v53  ;;  %v3320_v35 = vshll.u32 %v15395_v52, %v3305_v53  ;;  %v12018_v3 = vshrl.u32 %v3303_v37, 5 }
 0x37f   : > { %15422 = vst [vmem:[#allocation29_spill] sm:$0xff] %v12003_v32  ;;  %vm12009_vm15 = vcmp.le.f32.partialorder %v15423_v57, 0.7853982  ;;  %v3309_v4 = vshrl.u32 %v15257_v62, %v11962_v48  ;;  %v3312_v5 = vshrl.u32 %v15258_v9, %v11962_v48  ;;  %v3315_v57 = vshrl.u32 %v15396_v30, %v11962_v48  ;;  %v12036_v30 = vpop.permute.xlu1 %1292 }
 0x380   : > { %vm5755_vm1 = vcmp.eq.s32.totalorder %v11942_v19, 0  ;;  %vm14981_vm11 = vcmp.lt.s32.totalorder %v11956_v46, 1  ;;  %vm14980_vm12 = vcmp.lt.s32.totalorder %v11956_v46, 3  ;;  %v3319_v10 = vor.u32 %v3318_v20, %v3317_v42  ;;  %15426 = vst [vmem:[#allocation55_spill] sm:$0xff] %v12036_v30  ;;  %1302 = vrot.lane.b32.xlu2 %v924_v21, %s9068_s12 }
 0x381   : > { %v3322_v16 = vor.u32 %v3321_v36, %v3320_v35  ;;  %v3176_v37 = vsel %vm14981_vm11, %v11984_v56, %v11991_v2  ;;  %v3308_v52 = vshll.u32 %v15128_v33, %v3305_v53  ;;  %v3311_v51 = vshll.u32 %v15257_v62, %v3305_v53 }
 0x382   : > { %v3314_v39 = vshll.u32 %v15258_v9, %v3305_v53  ;;  %v3178_v20 = vsel %vm14980_vm12, %v12003_v32, %v3177_v50  ;;  %v3181_v36 = vsel %vm14979_vm5, %v3167_v26, 1326507024  ;;  %v15427_v42 = vand.u32 2147483647, %v11859_v29  ;;  %v12062_v29 = vpop.permute.xlu0 %1138 }
 0x383   : > { %vm5754_vm2 = vcmp.lt.s32.totalorder %v11942_v19, 2  ;;  %v2484_v62 = vsel %vm2363_vm14, %v2483_v55, %v2482_v38  ;;  %v12049_v53 = vor.u32 %v3309_v4, %v3308_v52  ;;  %v12051_v9 = vor.u32 %v3312_v5, %v3311_v51  ;;  %15429 = vst [vmem:[#allocation57_spill] sm:$0xff] %v12062_v29 }
 0x384   : > { %v3298_v35 = vand.u32 8388607, %v15427_v42  ;;  %v12053_v21 = vor.u32 %v3315_v57, %v3314_v39  ;;  %vm3326_vm3 = vcmp.lt.s32.totalorder %v12018_v3, 4  ;;  %v3144_v50 = vor.u32 8388608, %v11973_v7 }
 0x385   : > { %15428 = vst [vmem:[#allocation56_spill] sm:$0xff] %v12051_v9  ;;  %vm15004_vm9 = vcmp.lt.s32.totalorder %v11956_v46, 2  ;;  %v3332_v26 = vsel %vm3326_vm3, %v3319_v10, 920167782  ;;  %v3336_v42 = vsel %vm3326_vm3, %v3322_v16, 1326507024  ;;  %v3180_v51 = vsel %vm14981_vm11, %v11991_v2, %v12003_v32 }
 0x386   : > { %v3179_v52 = vsel %vm15004_vm9, %v3176_v37, %v3178_v20  ;;  %v3182_v39 = vsel %vm14980_vm12, %v3164_v41, %v3181_v36  ;;  %v14983_v38 = vxor.u32 2147483648, %v11977_v23  ;;  %v3299_v7 = vor.u32 8388608, %v3298_v35 }
 0x387   : > { %vm3323_vm14 = vcmp.lt.s32.totalorder %v12018_v3, 1  ;;  %vm3325_vm0 = vcmp.lt.s32.totalorder %v12018_v3, 3  ;;  %vm15003_vm5 = vweird.f32 %v15376_v17  ;;  %v12079_v16 = vsel %vm12009_vm15, %v15409_v25, %v2484_v62  ;;  %v12112_v35 = vpop.permute.xlu1 %974 }
 0x388   : > { %v3331_v55 = vsel %vm3323_vm14, %v12049_v53, %v12051_v9  ;;  %v3333_v41 = vsel %vm3325_vm0, %v12053_v21, %v3332_v26  ;;  %v3335_v4 = vsel %vm3323_vm14, %v12051_v9, %v12053_v21  ;;  %v3337_v5 = vsel %vm3325_vm0, %v3319_v10, %v3336_v42  ;;  %15434 = vst [vmem:[#allocation60_spill] sm:$0xff] %v12112_v35 }
 0x389   : > { %v15430_v62 = vsub.s32 0, %v11924_v61  ;;  %v12101_v37 = vshll.u32 %v3144_v50, 8  ;;  %v15433_v20 = vxor.u32 2147483648, %v11921_v18  ;;  %vm5758_vm12 = vcmp.eq.s32.totalorder %v11942_v19, 2 }
 0x38a   : > { %v3183_v10 = vsel %vm15004_vm9, %v3180_v51, %v3182_v39  ;;  %vm3324_vm11 = vcmp.lt.s32.totalorder %v12018_v3, 2  ;;  %v12117_v50 = vsel %vm12009_vm15, 0, %v11982_v28  ;;  %v12121_v26 = vmul.f32 %v12079_v16, %v12079_v16 }
 0x38b   : > { %v12099_v57 = vsel %vm3084_vm7, %v15430_v62, %v11924_v61  ;;  %15432 = vst [vmem:[#allocation59_spill] sm:$0xff] %v12101_v37  ;;  %v5757_v36 = vsel %vm5755_vm1, %v11977_v23, %v15433_v20  ;;  %v3210_v42 = vshrl.u32 %v3179_v52, 16  ;;  %v12125_v62 = vsel %vm3324_vm11, %v3331_v55, %v3333_v41  ;;  %v12140_v61 = vpop.permute.xlu0 %1298 }
 0x38c   : > { %15431 = vst [vmem:[#allocation58_spill] sm:$0xff] %v12099_v57  ;;  %v12129_v51 = vsel %vm3324_vm11, %v3335_v4, %v3337_v5  ;;  %v5760_v39 = vsel %vm5758_vm12, %v14983_v38, %v11921_v18  ;;  %v3209_v6 = vand.u32 65535, %v3179_v52  ;;  %v12134_v28 = vshll.u32 %v3299_v7, 8 }
 0x38d   : > { %15435 = vst [vmem:[#allocation61_spill] sm:$0xff] %v12117_v50  ;;  %v5761_v20 = vsel %vm5754_vm2, %v5757_v36, %v5760_v39  ;;  %vm15008_vm7 = vcmp.lt.s32.totalorder %v11819_v13, 2  ;;  %v3185_v29 = vand.u32 65535, %v12101_v37  ;;  %v3187_v55 = vand.u32 65535, %v3183_v10 }
 0x38e   : > { %15436 = vst [vmem:[#allocation62_spill] sm:$0xff] %v12134_v28  ;;  %v3188_v41 = vshrl.u32 %v3183_v10, 16  ;;  %v12146_v4 = vsel %vm15008_vm7, %v11890_v14, %v11936_v27  ;;  %v3186_v52 = vshrl.u32 %v12101_v37, 16  ;;  %v3365_v19 = vshrl.u32 %v12125_v62, 16 }
 0x38f   : > { %15437 = vst [vmem:[#allocation63_spill] sm:$0xff] %v12140_v61  ;;  %v2490_v5 = vmul.f32 -0.001358992, %v12121_v26  ;;  %v12152_v36 = vmul.u32 %v3210_v42, %v3185_v29  ;;  %v2497_v10 = vmul.f32 -0.00019511016, %v12121_v26  ;;  %v12156_v39 = vand.u32 3, %v12117_v50  ;;  %v12186_v35 = vpop.permute.xlu1 %1214 }
 0x390   : > { %v12162_v14 = vsel %vm15008_vm7, %v11884_v34, %v11904_v49  ;;  %v12164_v27 = vmul.u32 %v3209_v6, %v3186_v52  ;;  %v3340_v38 = vand.u32 65535, %v12134_v28  ;;  %v12169_v7 = vsel %vm15003_vm5, nan, %v5761_v20  ;;  %15440 = vst [vmem:[#allocation65_spill] sm:$0xff] %v12186_v35 }
 0x391   : > { %15438 = vst [vmem:[#allocation64_spill] sm:$0xff] %v12156_v39  ;;  %v12172_v18 = vmul.u32 %v3188_v41, %v3185_v29  ;;  %v12174_v50 = vmul.u32 %v3187_v55, %v3186_v52  ;;  %v12176_v61 = vmul.u32 %v3209_v6, %v3185_v29  ;;  %v12178_v37 = vmul.u32 %v3210_v42, %v3186_v52 }
 0x392   : > { %v15439_v34 = vshrl.u32 %v12129_v51, 16  ;;  %v12184_v30 = vmul.u32 %v3365_v19, %v3340_v38  ;;  %v2491_v20 = vadd.f32 0.041655596, %v2490_v5  ;;  %v2900_v17 = vshrl.u32 %v12162_v14, 16  ;;  %v15443_v5 = vld [vmem:[#allocation46_spill] sm:$0xff] }
 0x393   : > { %v12189_v23 = vmul.u32 %v3187_v55, %v3185_v29  ;;  %v12191_v2 = vmul.u32 %v3188_v41, %v3186_v52  ;;  %v2498_v56 = vadd.f32 0.008332121, %v2497_v10  ;;  %v3342_v46 = vand.u32 65535, %v12129_v51  ;;  %v12204_v55 = vpop.permute.xlu0 %1140 }
 0x394   : > { %v12182_v49 = vmul.u32 %v15439_v34, %v3340_v38  ;;  %v3364_v34 = vand.u32 65535, %v12125_v62  ;;  %v15441_v32 = vshrl.u32 %v12146_v4, 16  ;;  %15442 = vst [vmem:[#allocation66_spill] sm:$0xff] %v12204_v55  ;;  %v2899_v41 = vand.u32 65535, %v12162_v14 }
 0x395   : > { %v12208_v52 = vmul.u32 %v2900_v17, %v11805_v22  ;;  %v3370_v62 = vshll.u32 %v12184_v30, 16  ;;  %v2492_v42 = vmul.f32 %v2491_v20, %v12121_v26  ;;  %v3341_v6 = vshrl.u32 %v12134_v28, 16 }
 0x396   : > { %v12200_v35 = vmul.u32 %v15441_v32, %v11805_v22  ;;  %v3348_v10 = vshll.u32 %v12182_v49, 16  ;;  %v2877_v32 = vand.u32 65535, %v12146_v4  ;;  %vm15444_vm2 = vcmask 48128  }
 0x397   : > { %v1342_v29 = vsel %vm15444_vm2, %v15443_v5, %v11939_v40  ;;  %v2499_v55 = vmul.f32 %v2498_v56, %v12121_v26  ;;  %v2807_v14 = vmul.f32 -0.00019511016, %v11932_v0  ;;  %v3344_v58 = vmul.u32 %v3342_v46, %v3340_v38  ;;  %v1057_v39 = vpop.permute.xlu1 %1056 }
 0x398   : > { %v3366_v25 = vmul.u32 %v3364_v34, %v3340_v38  ;;  %v2883_v1 = vshll.u32 %v12200_v35, 16  ;;  %v2905_v63 = vshll.u32 %v12208_v52, 16  ;;  %v15445_v20 = vshll.u32 %v12172_v18, 16 }
 0x399   : > { %v15448_v28 = vshll.u32 %v12152_v36, 16  ;;  %v12236_v56 = vmul.u32 %v3342_v46, %v3341_v6  ;;  %v12238_v38 = vmul.u32 %v3364_v34, %v3341_v6  ;;  %v2901_v5 = vmul.u32 %v2899_v41, %v11805_v22 }
 0x39a   : > { %vm12225_vm15 = vc.u32 %v12189_v23, %v15445_v20  ;;  %v12242_v31 = vmul.u32 %v2899_v41, %v11813_v15  ;;  %vm3352_vm12 = vc.u32 %v3344_v58, %v3348_v10  ;;  %vm12244_vm2 = vc.u32 %v3366_v25, %v3370_v62 }
 0x39b   : > { %vm12232_vm1 = vc.u32 %v12176_v61, %v15448_v28  ;;  %v2879_v28 = vmul.u32 %v2877_v32, %v11805_v22  ;;  %v12250_v57 = vmul.u32 %v2877_v32, %v11813_v15  ;;  %v12252_v46 = vadd.s32 %v3370_v62, %v3366_v25  ;;  %v12262_v32 = vpop.permute.xlu0 %982 }
 0x39c   : > { %vm15454_vm5 = vcmask 97280   ;;  %vm2909_vm9 = vc.u32 %v2901_v5, %v2905_v63  ;;  %v12257_v8 = vadd.s32 %v2905_v63, %v2901_v5  ;;  %v3354_v41 = vadd.s32 %v3348_v10, %v3344_v58  ;;  %15456 = vst [vmem:[#allocation68_spill] sm:$0xff] %v12262_v32 }
 0x39d   : > { %15453 = vst [vmem:[#allocation46_spill] sm:$0xff] %v12252_v46  ;;  %v12255_v34 = vsel %vm15454_vm5, %v1342_v29, %v1057_v39  ;;  %v3369_v47 = vmul.u32 %v3365_v19, %v3341_v6  ;;  %vm2887_vm7 = vc.u32 %v2879_v28, %v2883_v1  ;;  %v2889_v9 = vadd.s32 %v2883_v1, %v2879_v28 }
 0x39e   : > { %15455 = vst [vmem:[#allocation67_spill] sm:$0xff] %v12255_v34  ;;  %v3350_v54 = vshll.u32 %v12236_v56, 16  ;;  %v3353_v43 = vsel %vm3352_vm12, 1, %v15318_v59  ;;  %v15012_v22 = vshll.u32 %v12238_v38, 16  ;;  %v15014_v25 = vshll.u32 %v12242_v31, 16 }
 0x39f   : > { %v3375_v39 = vsel %vm12244_vm2, 1, %v15318_v59  ;;  %v725_v63 = vmul.f32 %v11968_v45, %v9303_v60  ;;  %v2885_v58 = vshll.u32 %v12250_v57, 16  ;;  %v2910_v1 = vsel %vm2909_vm9, 1, %v15318_v59 }
 0x3a0   : > { %vm3378_vm5 = vc.u32 %v12252_v46, %v15012_v22  ;;  %v2888_v19 = vsel %vm2887_vm7, 1, %v15318_v59  ;;  %v2904_v29 = vmul.u32 %v2900_v17, %v11813_v15  ;;  %vm2913_vm12 = vc.u32 %v12257_v8, %v15014_v25  ;;  %v1213_v46 = vpop.permute.xlu2 %1212 }
 0x3a1   : > { %v15457_v10 = vshrl.u32 %v12129_v51, 16  ;;  %vm3356_vm2 = vc.u32 %v3354_v41, %v3350_v54  ;;  %1144 = vrot.lane.b32.xlu2 %v725_v63, %s9067_s11  ;;  %v15458_v45 = vshrl.u32 %v12146_v4, 16  ;;  %vm2891_vm9 = vc.u32 %v2889_v9, %v2885_v58  ;;  %v15461_v63 = vld [vmem:[#allocation22_spill] sm:$0xff] }
 0x3a2   : > { %v3377_v20 = vadd.s32 %v3375_v39, %v3369_v47  ;;  %v2500_v28 = vadd.f32 -0.16666654, %v2499_v55  ;;  %v2808_v22 = vadd.f32 0.008332121, %v2807_v14  ;;  %v2912_v32 = vadd.s32 %v2910_v1, %v2904_v29 }
 0x3a3   : > { %v3347_v62 = vmul.u32 %v15457_v10, %v3341_v6  ;;  %v2882_v5 = vmul.u32 %v15458_v45, %v11813_v15  ;;  %v3379_v34 = vsel %vm3378_vm5, 1, %v15318_v59  ;;  %v2914_v51 = vsel %vm2913_vm12, 1, %v15318_v59  ;;  %v7632_v41 = vpop.permute.xlu0 %7631  ;;  %v15480_v10 = vld [vmem:[#allocation5_spill] sm:$0xff] }
 0x3a4   : > { %v15459_v54 = vshll.u32 %v12152_v36, 16  ;;  %v3357_v4 = vsel %vm3356_vm2, 1, %v15318_v59  ;;  %vm15460_vm7 = vcmask 195584   ;;  %v2892_v47 = vsel %vm2891_vm9, 1, %v15318_v59 }
 0x3a5   : > { %v3355_v17 = vadd.s32 %v3353_v43, %v3347_v62  ;;  %v2890_v25 = vadd.s32 %v2888_v19, %v2882_v5  ;;  %v12296_v9 = vsel %vm15460_vm7, %v11928_v12, %v1213_v46  ;;  %v3198_v15 = vsel %vm12225_vm15, 1, %v15318_v59 }
 0x3a6   : > { %v12291_v6 = vadd.s32 %v15459_v54, %v12176_v61  ;;  %v3220_v43 = vsel %vm12232_vm1, 1, %v15318_v59  ;;  %v2493_v55 = vadd.f32 -0.4999988, %v2492_v42  ;;  %v2800_v61 = vmul.f32 -0.001358992, %v11932_v0 }
 0x3a7   : > { %v3381_v14 = vadd.s32 %v3379_v34, %v3377_v20  ;;  %vm7691_vm5 = vcmask 293888   ;;  %v2501_v39 = vmul.f32 %v2500_v28, %v12121_v26  ;;  %v2916_v12 = vadd.s32 %v2914_v51, %v2912_v32 }
 0x3a8   : > { %v3359_v46 = vadd.s32 %v3357_v4, %v3355_v17  ;;  %v7692_v58 = vsel %vm7691_vm5, %v15461_v63, %v7632_v41  ;;  %v2809_v44 = vmul.f32 %v2808_v22, %v11932_v0  ;;  %v2894_v1 = vadd.s32 %v2892_v47, %v2890_v25 }
 0x3a9   : > { %v15462_v40 = vshll.u32 %v12172_v18, 16  ;;  %v3222_v42 = vadd.s32 %v3220_v43, %v12178_v37  ;;  %v3371_v34 = vshrl.u32 %v12184_v30, 16  ;;  %7732 = vrot.lane.b32.xlu1 %v7692_v58, %s9077_s14  ;;  %v2906_v32 = vshrl.u32 %v12208_v52, 16  ;;  %v904_v52 = vpop.permute.xlu2 %903  ;;  %v15473_v58 = vld [vmem:[#allocation56_spill] sm:$0xff] }
 0x3aa   : > { %v15463_v29 = vshll.u32 %v12164_v27, 16  ;;  %v3349_v22 = vshrl.u32 %v12182_v49, 16  ;;  %v2801_v25 = vadd.f32 0.041655596, %v2800_v61  ;;  %v3200_v37 = vadd.s32 %v3198_v15, %v12191_v2 }
 0x3ab   : > { %v3199_v19 = vadd.s32 %v15462_v40, %v12189_v23  ;;  %v2884_v23 = vshrl.u32 %v12200_v35, 16  ;;  %v3382_v30 = vadd.s32 %v3381_v14, %v3371_v34  ;;  %v2494_v62 = vmul.f32 %v2493_v55, %v12121_v26 }
 0x3ac   : > { %vm12320_vm15 = vc.u32 %v12291_v6, %v15463_v29  ;;  %v2917_v45 = vadd.s32 %v2916_v12, %v2906_v32  ;;  %v3360_v5 = vadd.s32 %v3359_v46, %v3349_v22  ;;  %v2502_v20 = vadd.f32 1.0, %v2501_v39  ;;  %v15471_v39 = vld [vmem:[#allocation25_spill] sm:$0xff]  ;;  %v15472_v46 = vld [vmem:[#allocation24_spill] sm:$0xff] }
 0x3ad   : > { %v2810_v28 = vadd.f32 -0.16666654, %v2809_v44  ;;  %v2895_v17 = vadd.s32 %v2894_v1, %v2884_v23  ;;  %v3373_v51 = vshrl.u32 %v12238_v38, 16  ;;  %v925_v54 = vmul.f32 %v904_v52, %v9303_v60  ;;  %v15475_v1 = vld [vmem:[#allocation46_spill] sm:$0xff] }
 0x3ae   : > { %v2842_v49 = vshrl.u32 %v15128_v33, %v11802_v11  ;;  %v2908_v35 = vshrl.u32 %v12242_v31, 16  ;;  %v3351_v2 = vshrl.u32 %v12236_v56, 16  ;;  %v2802_v4 = vmul.f32 %v2801_v25, %v11932_v0 }
 0x3af   : > { %v2863_v26 = vsel %vm2861_vm4, %v11855_v24, 2102212464  ;;  %v2886_v47 = vshrl.u32 %v12250_v57, 16  ;;  %v3307_v15 = vshrl.u32 %v15128_v33, %v11962_v48  ;;  %v3328_v43 = vsel %vm3326_vm3, %v12053_v21, 2102212464  ;;  %1304 = vrot.lane.b32.xlu2 %v925_v54, %s9068_s12  ;;  %v12359_v21 = vpop.permute.xlu0 %984 }
 0x3b0   : > { %v3383_v11 = vadd.s32 %v3382_v30, %v3373_v51  ;;  %v2918_v55 = vadd.s32 %v2917_v45, %v2908_v35  ;;  %v15466_v56 = vshll.u32 %v12174_v50, 16  ;;  %v12351_v24 = vadd.s32 %v3360_v5, %v3351_v2  ;;  %15469 = vst [vmem:[#allocation22_spill] sm:$0xff] %v12359_v21  ;;  %v15482_v5 = vld [vmem:[#allocation58_spill] sm:$0xff] }
 0x3b1   : > { %v2811_v57 = vmul.f32 %v2810_v28, %v11932_v0  ;;  %v12354_v14 = vadd.s32 %v2895_v17, %v2886_v47  ;;  %v3327_v48 = vsel %vm3323_vm14, %v3307_v15, %v12049_v53  ;;  %7645 = vrot.lane.b32.xlu1 %v12169_v7, %s9076_s13  ;;  %v12364_v41 = vmul.f32 %v2502_v20, %v12079_v16  ;;  %v15483_v28 = vld [vmem:[#allocation64_spill] sm:$0xff]  ;;  %v15485_v2 = vld [vmem:[#allocation62_spill] sm:$0xff]  ;;  %v15490_v15 = vld [vmem:[#allocation21_spill] sm:$0xff] }
 0x3b2   : > { %vm12347_vm1 = vc.u32 %v3199_v19, %v15466_v56  ;;  %v2862_v12 = vsel %vm2858_vm6, %v2842_v49, %v15471_v39  ;;  %v2864_v63 = vsel %vm2860_vm13, %v15472_v46, %v2863_v26  ;;  %v3329_v53 = vsel %vm3325_vm0, %v15473_v58, %v3328_v43  ;;  %v15484_v49 = vld [vmem:[#allocation15_spill] sm:$0xff]  ;;  %v15488_v47 = vld [vmem:[#allocation42_spill] sm:$0xff] }
 0x3b3   : > { %15470 = vst [vmem:[#allocation69_spill] sm:$0xff] %v12364_v41  ;;  %v15474_v44 = vshll.u32 %v12238_v38, 16  ;;  %v2803_v7 = vadd.f32 -0.4999988, %v2802_v4  ;;  %v15476_v16 = vshll.u32 %v12242_v31, 16  ;;  %v3224_v34 = vsel %vm12320_vm15, 1, %v15318_v59 }
 0x3b4   : > { %v3387_v32 = vadd.s32 1, %v3383_v11  ;;  %v12388_v29 = vadd.f32 1.0, %v2494_v62  ;;  %v2922_v22 = vadd.s32 1, %v2918_v55  ;;  %v3202_v38 = vsel %vm12347_vm1, 1, %v15318_v59  ;;  %v15478_v31 = vld [vmem:[#allocation49_spill] sm:$0xff] }
 0x3b5   : > { %v12378_v40 = vadd.s32 %v15475_v1, %v15474_v44  ;;  %v12383_v19 = vadd.s32 %v12257_v8, %v15476_v16  ;;  %v2812_v25 = vadd.f32 1.0, %v2811_v57  ;;  %v15479_v8 = vsub.s32 4, %v15478_v31  ;;  %v15494_v1 = vld [vmem:[#allocation29_spill] sm:$0xff] }
 0x3b6   : > { %15477 = vst [vmem:[#allocation25_spill] sm:$0xff] %v12388_v29  ;;  %v3330_v30 = vsel %vm3324_vm11, %v3327_v48, %v3329_v53  ;;  %v15019_v62 = vxor.u32 2147483648, %v12364_v41  ;;  %vm15481_vm4 = vcmp.lt.s32.totalorder %v11819_v13, 2  ;;  %v3087_v52 = vclz %v15482_v5 }
 0x3b7   : > { %vm3386_vm0 = vc.u32 %v12351_v24, %v12378_v40  ;;  %vm2921_vm3 = vc.u32 %v12354_v14, %v12383_v19  ;;  %v2796_v23 = vsel %vm2673_vm10, %v15479_v8, %v15478_v31  ;;  %v2865_v45 = vsel %vm15481_vm4, %v2862_v12, %v2864_v63  ;;  %7639 = vrot.lane.b32.xlu2 %v15484_v49, %s9076_s13  ;;  %v7634_v39 = vpop.permute.xlu0 %7633 }
 0x3b8   : > { %v3226_v20 = vadd.s32 %v3224_v34, %v3222_v42  ;;  %vm5601_vm6 = vcmp.eq.s32.totalorder %v15483_v28, 0  ;;  %v2804_v17 = vmul.f32 %v2803_v7, %v11932_v0  ;;  %v3204_v51 = vadd.s32 %v3202_v38, %v3200_v37  ;;  %v15491_v37 = vld [vmem:[#allocation13_spill] sm:$0xff]  ;;  %v15495_v7 = vld [vmem:[#allocation27_spill] sm:$0xff] }
 0x3b9   : > { %v3388_v54 = vsel %vm3386_vm0, %v3387_v32, %v3383_v11  ;;  %v15018_v3 = vxor.u32 2147483648, %v12388_v29  ;;  %v2923_v35 = vsel %vm2921_vm3, %v2922_v22, %v2918_v55  ;;  %v3384_v4 = vmul.u32 %v15485_v2, %v3330_v30  ;;  %v1055_v22 = vpop.permute.xlu2 %1054  ;;  %v15498_v30 = vld [vmem:[#allocation6_spill] sm:$0xff] }
 0x3ba   : > { %v12416_v13 = vsel %vm11841_vm8, 0, %v2796_v23  ;;  %v12419_v42 = vmul.f32 %v2812_v25, %v15488_v47  ;;  %v2919_v43 = vmul.u32 %v15490_v15, %v2865_v45  ;;  %v3216_v0 = vshrl.u32 %v12152_v36, 16  ;;  %v15497_v25 = vld [vmem:[#allocation33_spill] sm:$0xff] }
 0x3bb   : > { %15487 = vst [vmem:[#allocation24_spill] sm:$0xff] %v12416_v13  ;;  %vm15047_vm10 = vweird.f32 %v15491_v37  ;;  %v5603_v11 = vsel %vm5601_vm6, %v12388_v29, %v15019_v62  ;;  %vm5604_vm13 = vcmp.eq.s32.totalorder %v15483_v28, 2  ;;  %v3194_v55 = vshrl.u32 %v12172_v18, 16  ;;  %v15493_v18 = vld [vmem:[#allocation40_spill] sm:$0xff] }
 0x3bc   : > { %15489 = vst [vmem:[#allocation56_spill] sm:$0xff] %v12419_v42  ;;  %v3389_v56 = vadd.s32 %v3388_v54, %v3384_v4  ;;  %v12429_v61 = vadd.f32 1.0, %v2804_v17  ;;  %v2924_v57 = vadd.s32 %v2923_v35, %v2919_v43  ;;  %v3227_v48 = vadd.s32 %v3226_v20, %v3216_v0  ;;  %v15507_v4 = vld [vmem:[#allocation60_spill] sm:$0xff] }
 0x3bd   : > { %vm5600_vm8 = vcmp.lt.s32.totalorder %v15483_v28, 2  ;;  %v5606_v36 = vsel %vm5604_vm13, %v15018_v3, %v12364_v41  ;;  %v5907_v12 = vand.u32 3, %v12416_v13  ;;  %v8698_v46 = vadd.s32 4294967294, %v3087_v52 }
 0x3be   : > { %15492 = vst [vmem:[#allocation46_spill] sm:$0xff] %v12429_v61  ;;  %v3205_v63 = vadd.s32 %v3204_v51, %v3194_v55  ;;  %v5607_v58 = vsel %vm5600_vm8, %v5603_v11, %v5606_v36  ;;  %v15016_v53 = vxor.u32 2147483648, %v12419_v42  ;;  %v3152_v44 = vshrl.u32 %v15128_v33, %v15493_v18  ;;  %v15502_v51 = vld [vmem:[#allocation39_spill] sm:$0xff]  ;;  %v15514_v36 = vld [vmem:[#allocation54_spill] sm:$0xff] }
 0x3bf   : > { %vm15496_vm11 = vcmp.lt.s32.totalorder %v15495_v7, 4  ;;  %v3196_v34 = vshrl.u32 %v12174_v50, 16  ;;  %v3218_v32 = vshrl.u32 %v12164_v27, 16  ;;  %v3390_v38 = vadd.s32 536870912, %v3389_v56  ;;  %v15499_v50 = vld [vmem:[#allocation36_spill] sm:$0xff]  ;;  %v15511_v55 = vld [vmem:[#allocation55_spill] sm:$0xff] }
 0x3c0   : > { %v3173_v16 = vsel %vm15496_vm11, %v15494_v1, 2102212464  ;;  %v7693_v31 = vsel %vm7691_vm5, %v15497_v25, %v7634_v39  ;;  %v15015_v8 = vxor.u32 2147483648, %v12429_v61  ;;  %v2925_v23 = vadd.s32 536870912, %v2924_v57 }
 0x3c1   : > { %v420_v45 = vmul.f32 %v15498_v30, %v9303_v60  ;;  %v3228_v5 = vadd.s32 %v3227_v48, %v3218_v32  ;;  %7734 = vrot.lane.b32.xlu0 %v7693_v31, %s9077_s14  ;;  %v5608_v52 = vsel %vm15047_vm10, nan, %v5607_v58  ;;  %vm5909_vm14 = vcmp.eq.s32.totalorder %v5907_v12, 0  ;;  %v1295_v18 = vpop.permute.xlu2 %1294 }
 0x3c2   : > { %vm8699_vm12 = vcmp.lt.s32.totalorder %v8698_v46, 0  ;;  %vm15500_vm2 = vcmp.lt.s32.totalorder %v15495_v7, 1  ;;  %v12455_v28 = vadd.s32 %v3205_v63, %v3196_v34  ;;  %7643 = vrot.lane.b32.xlu2 %v5608_v52, %s9076_s13  ;;  %v5911_v17 = vsel %vm5909_vm14, %v12429_v61, %v15016_v53 }
 0x3c3   : > { %v3172_v20 = vsel %vm15500_vm2, %v3152_v44, %v15499_v50  ;;  %vm15503_vm9 = vcmp.lt.s32.totalorder %v15495_v7, 3  ;;  %v15504_v49 = vshll.u32 %v12164_v27, 16  ;;  %vm5908_vm7 = vcmp.lt.s32.totalorder %v5907_v12, 2  ;;  %v15516_v44 = vld [vmem:[#allocation59_spill] sm:$0xff] }
 0x3c4   : > { %15501 = vst [vmem:[#allocation49_spill] sm:$0xff] %v12455_v28  ;;  %v3174_v54 = vsel %vm15503_vm9, %v15502_v51, %v3173_v16  ;;  %vm5912_vm15 = vcmp.eq.s32.totalorder %v5907_v12, 2  ;;  %v12469_v2 = vshrl.u32 %v3390_v38, 30  ;;  %vm15508_vm1 = vcmask 48128   ;;  %v15517_v16 = vld [vmem:[#allocation65_spill] sm:$0xff] }
 0x3c5   : > { %v12467_v35 = vadd.s32 %v12291_v6, %v15504_v49  ;;  %v1341_v26 = vsel %vm15508_vm1, %v420_v45, %v15507_v4  ;;  %v5914_v47 = vsel %vm5912_vm15, %v15015_v8, %v12419_v42  ;;  %v12476_v15 = vshrl.u32 %v2925_v23, 30 }
 0x3c6   : > { %15506 = vst [vmem:[#allocation64_spill] sm:$0xff] %v12469_v2  ;;  %v3232_v43 = vadd.s32 1, %v3228_v5  ;;  %vm15509_vm0 = vcmask 97280   ;;  %v5915_v27 = vsel %vm5908_vm7, %v5911_v17, %v5914_v47  ;;  %v3090_v6 = vsel %vm8699_vm12, 0, %v8698_v46  ;;  %v15522_v17 = vld [vmem:[#allocation12_spill] sm:$0xff] }
 0x3c7   : > { %15505 = vst [vmem:[#allocation58_spill] sm:$0xff] %v12467_v35  ;;  %v1362_v0 = vsel %vm15509_vm0, %v1341_v26, %v1055_v22  ;;  %vm3231_vm3 = vc.u32 %v12455_v28, %v12467_v35  ;;  %vm15510_vm4 = vcmp.lt.s32.totalorder %v15495_v7, 2  ;;  %vm15512_vm6 = vcmask 244736  }
 0x3c8   : > { %v3175_v11 = vsel %vm15510_vm4, %v3172_v20, %v3174_v54  ;;  %v12487_v48 = vsel %vm15512_vm6, %v12296_v9, %v15511_v55  ;;  %vm15046_vm13 = vweird.f32 %v15480_v10  ;;  %v3392_v39 = vshll.u32 %v12469_v2, 30  ;;  %vm15519_vm14 = vmmov %vm15512_vm6  ;;  %v15521_v20 = vld [vmem:[#allocation23_spill] sm:$0xff] }
 0x3c9   : > { %15513 = vst [vmem:[#allocation15_spill] sm:$0xff] %v12487_v48  ;;  %vm15515_vm8 = vcmask 146432   ;;  %v5916_v63 = vsel %vm15046_vm13, nan, %v5915_v27  ;;  %v2927_v46 = vshll.u32 %v12476_v15, 30  ;;  %v3233_v58 = vsel %vm3231_vm3, %v3232_v43, %v3228_v5  ;;  %v15524_v43 = vld [vmem:[#allocation4_spill] sm:$0xff]  ;;  %v15525_v27 = vld [vmem:[#allocation9_spill] sm:$0xff] }
 0x3ca   : > { %v1383_v12 = vsel %vm15515_vm8, %v1362_v0, %v15514_v36  ;;  %7647 = vrot.lane.b32.xlu0 %v5916_v63, %s9076_s13  ;;  %v3229_v1 = vmul.u32 %v15516_v44, %v3175_v11  ;;  %v3449_v9 = vand.u32 2139095040, %v12487_v48  ;;  %v3095_v7 = vsub.s32 4294967266, %v3090_v6  ;;  %v15526_v44 = vld [vmem:[#allocation41_spill] sm:$0xff] }
 0x3cb   : > { %vm15518_vm11 = vcmask 195584   ;;  %v12501_v22 = vsub.s32 %v3389_v56, %v3392_v39  ;;  %v12506_v25 = vsub.s32 %v2924_v57, %v2927_v46  ;;  %v3091_v50 = vsub.s32 32, %v3090_v6 }
 0x3cc   : > { %v1404_v34 = vsel %vm15518_vm11, %v1383_v12, %v15517_v16  ;;  %v3234_v32 = vadd.s32 %v3233_v58, %v3229_v1  ;;  %v3450_v31 = vshrl.u32 %v3449_v9, 23  ;;  %v3096_v23 = vadd.s32 127, %v3095_v7 }
 0x3cd   : > { %v12504_v38 = vsel %vm15519_vm14, %v1404_v34, %v1295_v18  ;;  %v3395_v5 = vsub.s32 0, %v12501_v22  ;;  %v2930_v52 = vsub.s32 0, %v12506_v25  ;;  %vm3394_vm12 = vcmp.lt.s32.totalorder %v12501_v22, 0 }
 0x3ce   : > { %15520 = vst [vmem:[#allocation62_spill] sm:$0xff] %v12504_v38  ;;  %v3604_v30 = vand.u32 2139095040, %v12504_v38  ;;  %v3235_v45 = vadd.s32 536870912, %v3234_v32  ;;  %vm2929_vm2 = vcmp.lt.s32.totalorder %v12506_v25, 0  ;;  %v8706_v56 = vadd.s32 4294967169, %v3450_v31 }
 0x3cf   : > { %v3075_v51 = vadd.s32 %v15522_v17, %v15521_v20  ;;  %v3097_v57 = vshll.u32 %v3096_v23, 23  ;;  %v3396_v4 = vsel %vm3394_vm12, %v3395_v5, %v12501_v22  ;;  %v2931_v26 = vsel %vm2929_vm2, %v2930_v52, %v12506_v25  ;;  %v15530_v17 = vld [vmem:[#allocation18_spill] sm:$0xff] }
 0x3d0   : > { %v3605_v54 = vshrl.u32 %v3604_v30, 23  ;;  %v12515_v49 = vshrl.u32 %v3235_v45, 30  ;;  %v1885_v0 = vadd.s32 3, %v15524_v43  ;;  %v3092_v11 = vshll.u32 %v15525_v27, %v3090_v6 }
 0x3d1   : > { %v3093_v47 = vshrl.u32 %v3075_v51, %v3091_v50  ;;  %v3456_v55 = vadd.s32 1, %v8706_v56  ;;  %v3098_v39 = vor.u32 4788187, %v3097_v57  ;;  %v3397_v36 = vclz %v3396_v4  ;;  %v15528_v56 = vld [vmem:[#allocation19_spill] sm:$0xff] }
 0x3d2   : > { %15523 = vst [vmem:[#allocation8_spill] sm:$0xff] %v12515_v49  ;;  %v8709_v12 = vadd.s32 4294967169, %v3605_v54  ;;  %v2932_v63 = vclz %v2931_v26  ;;  %v3237_v46 = vshll.u32 %v12515_v49, 30  ;;  %v1886_v18 = vand.u32 3, %v1885_v0 }
 0x3d3   : > { %v3094_v58 = vor.u32 %v3093_v47, %v3092_v11  ;;  %vm3457_vm9 = vcmp.gt.s32.totalorder %v3456_v55, 0  ;;  %v2350_v1 = vadd.s32 3, %v15526_v44  ;;  %v3099_v9 = vand.u32 2147483647, %v3098_v39 }
 0x3d4   : > { %v8704_v7 = vadd.s32 4294967294, %v3397_v36  ;;  %v3611_v16 = vadd.s32 1, %v8709_v12  ;;  %v8695_v34 = vadd.s32 4294967294, %v2932_v63  ;;  %v12523_v31 = vsub.s32 %v3234_v32, %v3237_v46  ;;  %v15531_v32 = vld [vmem:[#allocation7_spill] sm:$0xff] }
 0x3d5   : > { %v3101_v23 = vcvt.s32.f32 %v3094_v58  ;;  %v3458_v6 = vsel %vm3457_vm9, %v3456_v55, 0  ;;  %vm1888_vm7 = vcmp.eq.s32.totalorder %v1886_v18, 0  ;;  %v2351_v30 = vand.u32 3, %v2350_v1  ;;  %v15534_v36 = vld [vmem:[#allocation43_spill] sm:$0xff] }
 0x3d6   : > { %15527 = vst [vmem:[#allocation42_spill] sm:$0xff] %v12523_v31  ;;  %vm8705_vm15 = vcmp.lt.s32.totalorder %v8704_v7, 0  ;;  %vm3612_vm1 = vcmp.gt.s32.totalorder %v3611_v16, 0  ;;  %vm8696_vm0 = vcmp.lt.s32.totalorder %v8695_v34, 0  ;;  %v3240_v5 = vsub.s32 0, %v12523_v31  ;;  %v15536_v63 = vld [vmem:[#allocation3_spill] sm:$0xff] }
 0x3d7   : > { %v3102_v45 = vmul.f32 %v3101_v23, %v3099_v9  ;;  %v15017_v52 = vand.u32 2147483647, %v12487_v48  ;;  %v3460_v50 = vand.u32 31, %v3458_v6  ;;  %v15529_v20 = vxor.u32 2147483648, %v15528_v56  ;;  %v15537_v9 = vld [vmem:[#allocation52_spill] sm:$0xff] }
 0x3d8   : > { %v12532_v57 = vmul.f32 %v15531_v32, %v9303_v60  ;;  %vm3239_vm3 = vcmp.lt.s32.totalorder %v12523_v31, 0  ;;  %vm1887_vm4 = vcmp.lt.s32.totalorder %v1886_v18, 2  ;;  %vm1891_vm6 = vcmp.eq.s32.totalorder %v1886_v18, 2 }
 0x3d9   : > { %v1890_v51 = vsel %vm1888_vm7, %v15530_v17, %v15529_v20  ;;  %v12535_v54 = vsel %vm8705_vm15, 0, %v8704_v7  ;;  %v3613_v4 = vsel %vm3612_vm1, %v3611_v16, 0  ;;  %v15533_v26 = vxor.u32 2147483648, %v15530_v17  ;;  %v15538_v16 = vld [vmem:[#allocation53_spill] sm:$0xff] }
 0x3da   : > { %15532 = vst [vmem:[#allocation21_spill] sm:$0xff] %v12532_v57  ;;  %v2935_v43 = vsel %vm8696_vm0, 0, %v8695_v34  ;;  %v3103_v0 = vxor.u32 2147483648, %v3102_v45  ;;  %vm2353_vm8 = vcmp.eq.s32.totalorder %v2351_v30, 0  ;;  %vm2356_vm11 = vcmp.eq.s32.totalorder %v2351_v30, 2 }
 0x3db   : > { %v1893_v47 = vsel %vm1891_vm6, %v15533_v26, %v15528_v56  ;;  %v12541_v11 = vsel %vm3239_vm3, %v3240_v5, %v12523_v31  ;;  %v12545_v55 = vand.u32 8388607, %v15017_v52  ;;  %v12547_v39 = vsub.s32 32, %v3460_v50  ;;  %v15540_v56 = vld [vmem:[#allocation32_spill] sm:$0xff] }
 0x3dc   : > { %v1894_v27 = vsel %vm1887_vm4, %v1890_v51, %v1893_v47  ;;  %v15535_v12 = vxor.u32 2147483648, %v15534_v36  ;;  %v3405_v58 = vsub.s32 4294967266, %v12535_v54  ;;  %v3615_v18 = vand.u32 31, %v3613_v4 }
 0x3dd   : > { %v2936_v44 = vsub.s32 32, %v2935_v43  ;;  %v2940_v1 = vsub.s32 4294967266, %v2935_v43  ;;  %v12554_v7 = vadd.s32 3, %v15537_v9  ;;  %vm15048_vm14 = vcmp.lt.s32.totalorder %v15538_v16, 0 }
 0x3de   : > { %v2355_v46 = vsel %vm2353_vm8, %v15536_v63, %v15535_v12  ;;  %vm2352_vm12 = vcmp.lt.s32.totalorder %v2351_v30, 2  ;;  %v15539_v34 = vxor.u32 2147483648, %v15536_v63  ;;  %v12562_v5 = vsel %vm15048_vm14, %v3103_v0, %v3102_v45 }
 0x3df   : > { %vm15541_vm2 = vweird.f32 %v15540_v56  ;;  %v2920_v51 = vadd.s32 %v12383_v19, %v12354_v14  ;;  %v12575_v30 = vadd.s32 %v12378_v40, %v12351_v24  ;;  %v15542_v45 = vmov 2131351028  }
 0x3e0   : > { %v2358_v23 = vsel %vm2356_vm11, %v15539_v34, %v15534_v36  ;;  %v12566_v20 = vsel %vm15541_vm2, nan, %v1894_v27  ;;  %v3467_v47 = vshrl.u32 %v15542_v45, %v12547_v39  ;;  %v12580_v0 = vadd.s32 127, %v3405_v58 }
 0x3e1   : > { %v12568_v17 = vsel %vm2352_vm12, %v2355_v46, %v2358_v23  ;;  %v12582_v27 = vsub.s32 32, %v3615_v18  ;;  %v2938_v36 = vshrl.u32 %v2920_v51, %v2936_v44  ;;  %v2941_v12 = vadd.s32 127, %v2940_v1 }
 0x3e2   : > { %v12584_v63 = vshrl.u32 %v3458_v6, 5  ;;  %v3463_v14 = vshll.u32 %v15128_v33, %v3460_v50  ;;  %v15543_v19 = vmov 2475754826   ;;  %v15544_v24 = vmov 1326507024  }
 0x3e3   : > { %v3466_v46 = vshll.u32 %v15543_v19, %v3460_v50  ;;  %v3476_v40 = vshrl.u32 %v15544_v24, %v12547_v39  ;;  %v3469_v9 = vshll.u32 %v15542_v45, %v3460_v50  ;;  %v15545_v34 = vmov 2102212464  }
 0x3e4   : > { %v3472_v23 = vshll.u32 %v15545_v34, %v3460_v50  ;;  %v15546_v56 = vmov 920167782   ;;  %v2937_v8 = vshll.u32 %v12506_v25, %v2935_v43  ;;  %v3464_v44 = vshrl.u32 %v15543_v19, %v12547_v39  ;;  %v15547_v25 = vld [vmem:[#allocation11_spill] sm:$0xff] }
 0x3e5   : > { %v3475_v58 = vshll.u32 %v15546_v56, %v3460_v50  ;;  %v12596_v6 = vor.u32 %v3467_v47, %v3466_v46  ;;  %v3470_v1 = vshrl.u32 %v15545_v34, %v12547_v39  ;;  %v3473_v51 = vshrl.u32 %v15546_v56, %v12547_v39 }
 0x3e6   : > { %v3628_v53 = vshrl.u32 %v15546_v56, %v12582_v27  ;;  %v3631_v52 = vshrl.u32 %v15544_v24, %v12582_v27  ;;  %v2939_v50 = vor.u32 %v2938_v36, %v2937_v8  ;;  %v2942_v3 = vshll.u32 %v2941_v12, 23 }
 0x3e7   : > { %vm2828_vm9 = vcmp.lt.s32.totalorder %v15547_v25, 0  ;;  %v3477_v43 = vor.u32 %v3476_v40, %v3475_v58  ;;  %vm3481_vm7 = vcmp.lt.s32.totalorder %v12584_v63, 4  ;;  %v3627_v46 = vshll.u32 %v15545_v34, %v3615_v18 }
 0x3e8   : > { %v3619_v62 = vshrl.u32 %v15543_v19, %v12582_v27  ;;  %v3622_v26 = vshrl.u32 %v15542_v45, %v12582_v27  ;;  %v3630_v32 = vshll.u32 %v15546_v56, %v3615_v18  ;;  %v15548_v8 = vand.u32 2147483647, %v15547_v25 }
 0x3e9   : > { %v2943_v12 = vor.u32 4788187, %v2942_v3  ;;  %v12621_v40 = vshrl.u32 %v3613_v4, 5  ;;  %v3618_v58 = vshll.u32 %v15128_v33, %v3615_v18  ;;  %v3621_v47 = vshll.u32 %v15543_v19, %v3615_v18 }
 0x3ea   : > { %vm12617_vm15 = vcmp.le.f32.partialorder %v15548_v8, 0.7853982  ;;  %v3625_v10 = vshrl.u32 %v15545_v34, %v12582_v27  ;;  %v3629_v61 = vor.u32 %v3628_v53, %v3627_v46  ;;  %v3632_v42 = vor.u32 %v3631_v52, %v3630_v32 }
 0x3eb   : > { %v2944_v37 = vand.u32 2147483647, %v2943_v12  ;;  %v2946_v21 = vcvt.s32.f32 %v2939_v50  ;;  %v12627_v48 = vor.u32 %v3470_v1, %v3469_v9  ;;  %v3474_v8 = vor.u32 %v3473_v51, %v3472_v23 }
 0x3ec   : > { %v3491_v13 = vsel %vm3481_vm7, %v3477_v43, 1326507024  ;;  %v3624_v3 = vshll.u32 %v15542_v45, %v3615_v18  ;;  %v15551_v4 = vand.u32 2147483647, %v15538_v16  ;;  %v15552_v29 = vmov 0 }
 0x3ed   : > { %v15555_v41 = vand.u32 2147483647, %v12504_v38  ;;  %v12640_v52 = vor.u32 %v3619_v62, %v3618_v58  ;;  %v12642_v32 = vor.u32 %v3622_v26, %v3621_v47  ;;  %v2947_v9 = vmul.f32 %v2946_v21, %v2944_v37 }
 0x3ee   : > { %vm12634_vm1 = vcmp.le.f32.partialorder %v15551_v4, 0.7853982  ;;  %v12644_v23 = vor.u32 %v3464_v44, %v3463_v14  ;;  %vm3478_vm0 = vcmp.lt.s32.totalorder %v12584_v63, 1  ;;  %v12647_v1 = vor.u32 %v3625_v10, %v3624_v3 }
 0x3ef   : > { %v15553_v29 = vsel %vm12634_vm1, 4294967295, %v15552_v29  ;;  %v3608_v53 = vand.u32 8388607, %v15555_v41  ;;  %vm3636_vm3 = vcmp.lt.s32.totalorder %v12621_v40, 4  ;;  %vm3480_vm4 = vcmp.lt.s32.totalorder %v12584_v63, 3 }
 0x3f0   : > { %15554 = vst [vmem:[#allocation40_spill] sm:$0xff] %v15553_v29  ;;  %v3642_v18 = vsel %vm3636_vm3, %v3629_v61, 920167782  ;;  %v3646_v41 = vsel %vm3636_vm3, %v3632_v42, 1326507024  ;;  %v2948_v62 = vxor.u32 2147483648, %v2947_v9  ;;  %v3490_v10 = vsel %vm3478_vm0, %v12596_v6, %v12627_v48 }
 0x3f1   : > { %v3487_v21 = vsel %vm3481_vm7, %v3474_v8, 920167782  ;;  %v3492_v37 = vsel %vm3480_vm4, %v3474_v8, %v3491_v13  ;;  %vm3633_vm6 = vcmp.lt.s32.totalorder %v12621_v40, 1  ;;  %v3609_v26 = vor.u32 8388608, %v3608_v53 }
 0x3f2   : > { %vm3635_vm8 = vcmp.lt.s32.totalorder %v12621_v40, 3  ;;  %v3641_v42 = vsel %vm3633_vm6, %v12640_v52, %v12642_v32  ;;  %v2949_v14 = vsel %vm2828_vm9, %v2948_v62, %v2947_v9  ;;  %v3645_v13 = vsel %vm3633_vm6, %v12642_v32, %v12647_v1 }
 0x3f3   : > { %v3643_v44 = vsel %vm3635_vm8, %v12647_v1, %v3642_v18  ;;  %v3647_v51 = vsel %vm3635_vm8, %v3629_v61, %v3646_v41  ;;  %v2952_v50 = vsel %vm12617_vm15, %v15547_v25, %v2949_v14  ;;  %v3401_v43 = vsub.s32 32, %v12535_v54 }
 0x3f4   : > { %v3407_v47 = vshll.u32 %v12580_v0, 23  ;;  %vm15049_vm11 = vcmp.lt.s32.totalorder %v12584_v63, 2  ;;  %v2954_v46 = vmul.f32 %v2952_v50, %v2952_v50  ;;  %v3486_v12 = vsel %vm3478_vm0, %v12644_v23, %v12596_v6 }
 0x3f5   : > { %v3488_v61 = vsel %vm3480_vm4, %v12627_v48, %v3487_v21  ;;  %v12695_v58 = vsel %vm15049_vm11, %v3490_v10, %v3492_v37  ;;  %vm15050_vm12 = vcmp.lt.s32.totalorder %v12621_v40, 2  ;;  %v12710_v53 = vsel %vm12634_vm1, %v15538_v16, %v12562_v5 }
 0x3f6   : > { %v12700_v0 = vsel %vm15050_vm12, %v3641_v42, %v3643_v44  ;;  %v12704_v8 = vsel %vm15050_vm12, %v3645_v13, %v3647_v51  ;;  %v2955_v3 = vmul.f32 -0.001358992, %v2954_v46  ;;  %v2962_v4 = vmul.f32 -0.00019511016, %v2954_v46 }
 0x3f7   : > { %v15556_v9 = vclz %v12541_v11  ;;  %v15557_v41 = vor.u32 8388608, %v12545_v55  ;;  %v12720_v21 = vshll.u32 %v3609_v26, 8  ;;  %v3403_v10 = vshrl.u32 %v12575_v30, %v3401_v43 }
 0x3f8   : > { %v2950_v37 = vsub.s32 4, %v12476_v15  ;;  %v2956_v42 = vadd.f32 0.041655596, %v2955_v3  ;;  %v2963_v14 = vadd.f32 0.008332121, %v2962_v4  ;;  %v12726_v5 = vsel %vm15049_vm11, %v3486_v12, %v3488_v61 }
 0x3f9   : > { %v12714_v18 = vadd.s32 4294967294, %v15556_v9  ;;  %v12718_v62 = vshll.u32 %v15557_v41, 8  ;;  %v3498_v11 = vshrl.u32 %v12695_v58, 16  ;;  %v15036_v44 = vshrl.u32 %v12704_v8, 16 }
 0x3fa   : > { %v15035_v55 = vshrl.u32 %v12700_v0, 16  ;;  %v3402_v26 = vshll.u32 %v12501_v22, %v12535_v54  ;;  %v12733_v13 = vor.u32 4788187, %v3407_v47  ;;  %v2957_v30 = vmul.f32 %v2956_v42, %v2954_v46 }
 0x3fb   : > { %15558 = vst [vmem:[#allocation29_spill] sm:$0xff] %v12718_v62  ;;  %v2964_v51 = vmul.f32 %v2963_v14, %v2954_v46  ;;  %v3495_v43 = vand.u32 65535, %v12718_v62  ;;  %v12737_v3 = vshrl.u32 %v12718_v62, 16  ;;  %v3497_v12 = vand.u32 65535, %v12695_v58 }
 0x3fc   : > { %v3650_v61 = vand.u32 65535, %v12720_v21  ;;  %v2951_v9 = vsel %vm2828_vm9, %v2950_v37, %v12476_v15  ;;  %v2958_v22 = vadd.f32 -0.4999988, %v2957_v30  ;;  %v12745_v47 = vor.u32 %v3403_v10, %v3402_v26 }
 0x3fd   : > { %v2965_v54 = vadd.f32 -0.16666654, %v2964_v51  ;;  %v12747_v41 = vmul.u32 %v3498_v11, %v3495_v43  ;;  %v3674_v4 = vand.u32 65535, %v12700_v0  ;;  %v3499_v37 = vmul.u32 %v3497_v12, %v3495_v43 }
 0x3fe   : > { %v12751_v42 = vmul.u32 %v15036_v44, %v3650_v61  ;;  %v12755_v58 = vmul.u32 %v15035_v55, %v3650_v61  ;;  %v2959_v38 = vmul.f32 %v2958_v22, %v2954_v46  ;;  %v3519_v10 = vand.u32 65535, %v12726_v5 }
 0x3ff   : > { %v2966_v15 = vmul.f32 %v2965_v54, %v2954_v46  ;;  %v3652_v26 = vand.u32 65535, %v12704_v8  ;;  %v12763_v30 = vsel %vm12617_vm15, 0, %v2951_v9  ;;  %v12766_v51 = vmul.u32 %v3497_v12, %v12737_v3  ;;  %v7636_v9 = vpop.permute.xlu0 %7635 }
 0x400   : > { %v15559_v55 = vshrl.u32 %v12726_v5, 16  ;;  %v12772_v14 = vadd.f32 1.0, %v2959_v38  ;;  %v3503_v46 = vshll.u32 %v12747_v41, 16  ;;  %v3651_v54 = vshrl.u32 %v12720_v21, 16 }
 0x401   : > { %v2967_v22 = vadd.f32 1.0, %v2966_v15  ;;  %v3658_v57 = vshll.u32 %v12751_v42, 16  ;;  %v3680_v36 = vshll.u32 %v12755_v58, 16  ;;  %vm2969_vm2 = vweird.f32 %v15547_v25  ;;  %v12784_v15 = vpop.permute.xlu1 %1058 }
 0x402   : > { %v12770_v44 = vmul.u32 %v15559_v55, %v3495_v43  ;;  %v3676_v12 = vmul.u32 %v3674_v4, %v3650_v61  ;;  %v7694_v49 = vsel %vm7691_vm5, %v12566_v20, %v7636_v9  ;;  %v6061_v38 = vand.u32 3, %v12763_v30  ;;  %15560 = vst [vmem:[#allocation27_spill] sm:$0xff] %v12784_v15 }
 0x403   : > { %v12781_v55 = vmul.f32 %v2967_v22, %v2952_v50  ;;  %v3654_v2 = vmul.u32 %v3652_v26, %v3650_v61  ;;  %v12786_v29 = vmul.u32 %v3652_v26, %v3651_v54  ;;  %v12788_v16 = vmul.u32 %v3674_v4, %v3651_v54  ;;  %7736 = vrot.lane.b32.xlu2 %v7694_v49, %s9077_s14  ;;  %v12794_v50 = vpop.permute.xlu2 %978 }
 0x404   : > { %v2977_v31 = vxor.u32 2147483648, %v12772_v14  ;;  %v3502_v35 = vmul.u32 %v3498_v11, %v12737_v3  ;;  %v3521_v28 = vmul.u32 %v3519_v10, %v3495_v43  ;;  %v3525_v20 = vshll.u32 %v12770_v44, 16  ;;  %15561 = vst [vmem:[#allocation33_spill] sm:$0xff] %v12794_v50 }
 0x405   : > { %v15052_v22 = vxor.u32 2147483648, %v12781_v55  ;;  %vm3662_vm9 = vc.u32 %v3654_v2, %v3658_v57  ;;  %v3664_v9 = vadd.s32 %v3658_v57, %v3654_v2  ;;  %vm3684_vm15 = vc.u32 %v3676_v12, %v3680_v36 }
 0x406   : > { %v12797_v61 = vadd.s32 %v3680_v36, %v3676_v12  ;;  %vm12799_vm13 = vc.u32 %v3499_v37, %v3503_v46  ;;  %vm6062_vm10 = vcmp.lt.s32.totalorder %v6061_v38, 2  ;;  %vm6063_vm14 = vcmp.eq.s32.totalorder %v6061_v38, 0 }
 0x407   : > { %vm6066_vm11 = vcmp.eq.s32.totalorder %v6061_v38, 2  ;;  %v3660_v49 = vshll.u32 %v12786_v29, 16  ;;  %v6065_v43 = vsel %vm6063_vm14, %v12772_v14, %v15052_v22  ;;  %v3509_v57 = vadd.s32 %v3503_v46, %v3499_v37 }
 0x408   : > { %v6068_v2 = vsel %vm6066_vm11, %v2977_v31, %v12781_v55  ;;  %v3663_v26 = vsel %vm3662_vm9, 1, %v15318_v59  ;;  %v3685_v36 = vsel %vm3684_vm15, 1, %v15318_v59  ;;  %v15564_v38 = vshrl.u32 %v12704_v8, 16 }
 0x409   : > { %v6069_v12 = vsel %vm6062_vm10, %v6065_v43, %v6068_v2  ;;  %vm3666_vm12 = vc.u32 %v3664_v9, %v3660_v49  ;;  %v15565_v11 = vshrl.u32 %v12700_v0, 16  ;;  %v15566_v62 = vshll.u32 %v12788_v16, 16  ;;  %v15570_v43 = vld [vmem:[#allocation67_spill] sm:$0xff]  ;;  %v15577_v9 = vld [vmem:[#allocation50_spill] sm:$0xff] }
 0x40a   : > { %v3657_v15 = vmul.u32 %v15564_v38, %v3651_v54  ;;  %v3505_v22 = vshll.u32 %v12766_v51, 16  ;;  %v3508_v37 = vsel %vm12799_vm13, 1, %v15318_v59  ;;  %v12825_v46 = vmul.u32 %v3519_v10, %v12737_v3 }
 0x40b   : > { %v3679_v50 = vmul.u32 %v15565_v11, %v3651_v54  ;;  %vm3688_vm14 = vc.u32 %v12797_v61, %v15566_v62  ;;  %v6070_v8 = vsel %vm2969_vm2, nan, %v6069_v12  ;;  %vm12829_vm10 = vc.u32 %v3521_v28, %v3525_v20  ;;  %v1217_v10 = vpop.permute.xlu2 %1216  ;;  %v15569_v11 = vld [vmem:[#allocation35_spill] sm:$0xff] }
 0x40c   : > { %v12833_v0 = vadd.s32 %v3525_v20, %v3521_v28  ;;  %v3665_v54 = vadd.s32 %v3663_v26, %v3657_v15  ;;  %7649 = vrot.lane.b32.xlu2 %v6070_v8, %s9076_s13  ;;  %vm3511_vm11 = vc.u32 %v3509_v57, %v3505_v22  ;;  %v3667_v4 = vsel %vm3666_vm12, 1, %v15318_v59  ;;  %v1297_v15 = vpop.permute.xlu1 %1296 }
 0x40d   : > { %v3687_v62 = vadd.s32 %v3685_v36, %v3679_v50  ;;  %v3689_v49 = vsel %vm3688_vm14, 1, %v15318_v59  ;;  %vm15571_vm13 = vcmask 146432   ;;  %v12843_v12 = vmul.f32 %v12710_v53, %v12710_v53 }
 0x40e   : > { %v1384_v2 = vsel %vm15571_vm13, %v15570_v43, %v15569_v11  ;;  %vm8702_vm9 = vcmp.lt.s32.totalorder %v12714_v18, 0  ;;  %v3411_v28 = vcvt.s32.f32 %v12745_v47  ;;  %vm15572_vm15 = vcmask 195584   ;;  %v7642_v11 = vpop.permute.xlu0 %7641 }
 0x40f   : > { %v1405_v20 = vsel %vm15572_vm15, %v1384_v2, %v1217_v10  ;;  %v3510_v50 = vadd.s32 %v3508_v37, %v3502_v35  ;;  %v3527_v22 = vshll.u32 %v12825_v46, 16  ;;  %v3530_v57 = vsel %vm12829_vm10, 1, %v15318_v59 }
 0x410   : > { %vm15573_vm12 = vcmask 244736   ;;  %v3512_v36 = vsel %vm3511_vm11, 1, %v15318_v59  ;;  %v3669_v38 = vadd.s32 %v3667_v4, %v3665_v54  ;;  %v3691_v8 = vadd.s32 %v3689_v49, %v3687_v62 }
 0x411   : > { %v12853_v26 = vsel %vm15573_vm12, %v1405_v20, %v1297_v15  ;;  %v15575_v43 = vand.u32 2147483647, %v12733_v13  ;;  %v15576_v35 = vshrl.u32 %v12726_v5, 16  ;;  %vm3533_vm14 = vc.u32 %v12833_v0, %v3527_v22 }
 0x412   : > { %15574 = vst [vmem:[#allocation6_spill] sm:$0xff] %v12853_v26  ;;  %v3759_v47 = vand.u32 2139095040, %v12853_v26  ;;  %vm15578_vm10 = vweird.f32 %v15577_v9  ;;  %v12869_v54 = vmul.f32 -0.00019511016, %v12843_v12  ;;  %v3659_v62 = vshrl.u32 %v12751_v42, 16 }
 0x413   : > { %v12859_v10 = vmul.f32 %v3411_v28, %v15575_v43  ;;  %v3524_v37 = vmul.u32 %v15576_v35, %v12737_v3  ;;  %v2360_v2 = vsel %vm15578_vm10, nan, %v12568_v17  ;;  %v3681_v4 = vshrl.u32 %v12755_v58, 16 }
 0x414   : > { %v3760_v13 = vshrl.u32 %v3759_v47, 23  ;;  %v12876_v49 = vsel %vm8702_vm9, 0, %v12714_v18  ;;  %v3514_v5 = vadd.s32 %v3512_v36, %v3510_v50  ;;  %v7697_v28 = vsel %vm7691_vm5, %v2360_v2, %v7642_v11 }
 0x415   : > { %v3532_v3 = vadd.s32 %v3530_v57, %v3524_v37  ;;  %v3534_v15 = vsel %vm3533_vm14, 1, %v15318_v59  ;;  %v3670_v17 = vadd.s32 %v3669_v38, %v3659_v62  ;;  %v3692_v20 = vadd.s32 %v3691_v8, %v3681_v4  ;;  %7742 = vrot.lane.b32.xlu2 %v7697_v28, %s9077_s14 }
 0x416   : > { %v8712_v43 = vadd.s32 4294967169, %v3760_v13  ;;  %v3413_v42 = vxor.u32 2147483648, %v12859_v10  ;;  %v3462_v58 = vshrl.u32 %v15128_v33, %v12547_v39  ;;  %v3483_v18 = vsel %vm3481_vm7, %v12627_v48, 2102212464 }
 0x417   : > { %v3504_v50 = vshrl.u32 %v12747_v41, 16  ;;  %v3638_v57 = vsel %vm3636_vm3, %v12647_v1, 2102212464  ;;  %v3661_v36 = vshrl.u32 %v12786_v29, 16  ;;  %v3683_v38 = vshrl.u32 %v12788_v16, 16 }
 0x418   : > { %v3766_v8 = vadd.s32 1, %v8712_v43  ;;  %v3506_v11 = vshrl.u32 %v12766_v51, 16  ;;  %v3536_v35 = vadd.s32 %v3534_v15, %v3532_v3  ;;  %v3617_v39 = vshrl.u32 %v15128_v33, %v12582_v27 }
 0x419   : > { %v3515_v47 = vadd.s32 %v3514_v5, %v3504_v50  ;;  %v3526_v48 = vshrl.u32 %v12770_v44, 16  ;;  %v12897_v37 = vadd.s32 %v3670_v17, %v3661_v36  ;;  %v3693_v41 = vadd.s32 %v3692_v20, %v3683_v38 }
 0x41a   : > { %vm3767_vm7 = vcmp.gt.s32.totalorder %v3766_v8, 0  ;;  %v3637_v29 = vsel %vm3633_vm6, %v3617_v39, %v12640_v52  ;;  %v3639_v1 = vsel %vm3635_vm8, %v12642_v32, %v3638_v57  ;;  %v15053_v51 = vand.u32 2147483647, %v12853_v26 }
 0x41b   : > { %v3768_v9 = vsel %vm3767_vm7, %v3766_v8, 0  ;;  %v3482_v27 = vsel %vm3478_vm0, %v3462_v58, %v12644_v23  ;;  %v3484_v44 = vsel %vm3480_vm4, %v12596_v6, %v3483_v18  ;;  %v15579_v2 = vshll.u32 %v12788_v16, 16 }
 0x41c   : > { %v3770_v52 = vand.u32 31, %v3768_v9  ;;  %v12917_v4 = vadd.s32 %v3515_v47, %v3506_v11  ;;  %v3528_v32 = vshrl.u32 %v12825_v46, 16  ;;  %v12921_v13 = vadd.s32 %v12833_v0, %v3527_v22 }
 0x41d   : > { %v12915_v62 = vadd.s32 %v12797_v61, %v15579_v2  ;;  %v3537_v5 = vadd.s32 %v3536_v35, %v3526_v48  ;;  %vm15580_vm0 = vcmp.lt.s32.totalorder %v12621_v40, 2  ;;  %v3697_v6 = vadd.s32 1, %v3693_v41 }
 0x41e   : > { %v3640_v23 = vsel %vm15580_vm0, %v3637_v29, %v3639_v1  ;;  %v12927_v16 = vsub.s32 32, %v3770_v52  ;;  %v3763_v61 = vand.u32 8388607, %v15053_v51  ;;  %v12931_v3 = vshrl.u32 %v3768_v9, 5 }
 0x41f   : > { %vm3696_vm3 = vc.u32 %v12897_v37, %v12915_v62  ;;  %v3773_v46 = vshll.u32 %v15128_v33, %v3770_v52  ;;  %v3776_v0 = vshll.u32 %v15543_v19, %v3770_v52  ;;  %v3779_v28 = vshll.u32 %v15542_v45, %v3770_v52 }
 0x420   : > { %v3774_v22 = vshrl.u32 %v15543_v19, %v12927_v16  ;;  %v3777_v40 = vshrl.u32 %v15542_v45, %v12927_v16  ;;  %v3780_v15 = vshrl.u32 %v15545_v34, %v12927_v16  ;;  %v3782_v17 = vshll.u32 %v15545_v34, %v3770_v52 }
 0x421   : > { %v3783_v20 = vshrl.u32 %v15546_v56, %v12927_v16  ;;  %v3785_v43 = vshll.u32 %v15546_v56, %v3770_v52  ;;  %v3786_v58 = vshrl.u32 %v15544_v24, %v12927_v16  ;;  %v3538_v18 = vadd.s32 %v3537_v5, %v3528_v32 }
 0x422   : > { %v12948_v50 = vor.u32 %v3774_v22, %v3773_v46  ;;  %v12950_v57 = vor.u32 %v3777_v40, %v3776_v0  ;;  %v12952_v36 = vor.u32 %v3780_v15, %v3779_v28  ;;  %v3694_v38 = vmul.u32 %v12720_v21, %v3640_v23  ;;  %v15582_v46 = vld [vmem:[#allocation14_spill] sm:$0xff]  ;;  %v15585_v15 = vld [vmem:[#allocation29_spill] sm:$0xff] }
 0x423   : > { %v3784_v8 = vor.u32 %v3783_v20, %v3782_v17  ;;  %v3787_v11 = vor.u32 %v3786_v58, %v3785_v43  ;;  %vm3788_vm4 = vcmp.lt.s32.totalorder %v12931_v3, 1  ;;  %v3698_v47 = vsel %vm3696_vm3, %v3697_v6, %v3693_v41  ;;  %v15583_v40 = vld [vmem:[#allocation34_spill] sm:$0xff] }
 0x424   : > { %v3764_v35 = vor.u32 8388608, %v3763_v61  ;;  %vm3791_vm6 = vcmp.lt.s32.totalorder %v12931_v3, 4  ;;  %v3796_v39 = vsel %vm3788_vm4, %v12948_v50, %v12950_v57  ;;  %vm3790_vm8 = vcmp.lt.s32.totalorder %v12931_v3, 3 }
 0x425   : > { %v3797_v21 = vsel %vm3791_vm6, %v3784_v8, 920167782  ;;  %v3800_v48 = vsel %vm3788_vm4, %v12950_v57, %v12952_v36  ;;  %v3801_v41 = vsel %vm3791_vm6, %v3787_v11, 1326507024  ;;  %v3542_v29 = vadd.s32 1, %v3538_v18 }
 0x426   : > { %vm3789_vm11 = vcmp.lt.s32.totalorder %v12931_v3, 2  ;;  %v3798_v1 = vsel %vm3790_vm8, %v12952_v36, %v3797_v21  ;;  %v3802_v9 = vsel %vm3790_vm8, %v3784_v8, %v3801_v41  ;;  %vm3541_vm13 = vc.u32 %v12917_v4, %v12921_v13  ;;  %v15593_v41 = vld [vmem:[#allocation45_spill] sm:$0xff] }
 0x427   : > { %v12981_v2 = vadd.s32 %v3698_v47, %v3694_v38  ;;  %v12985_v52 = vsel %vm3789_vm11, %v3796_v39, %v3798_v1  ;;  %v2970_v32 = vadd.s32 3, %v12763_v30  ;;  %v3250_v5 = vsub.s32 4294967266, %v12876_v49  ;;  %v15587_v38 = vld [vmem:[#allocation48_spill] sm:$0xff] }
 0x428   : > { %vm15581_vm9 = vcmp.lt.s32.totalorder %v12584_v63, 2  ;;  %v12993_v6 = vsel %vm3789_vm11, %v3800_v48, %v3802_v9  ;;  %v12995_v61 = vshll.u32 %v3764_v35, 8  ;;  %v12999_v0 = vmul.f32 %v15582_v46, %v9303_v60  ;;  %v13034_v48 = vpop.permute.xlu1 %980 }
 0x429   : > { %v3485_v23 = vsel %vm15581_vm9, %v3482_v27, %v3484_v44  ;;  %v3118_v22 = vadd.f32 0.008332121, %v12869_v54  ;;  %vm3293_vm15 = vcmp.lt.s32.totalorder %v15583_v40, 0  ;;  %v13004_v30 = vand.u32 3, %v12554_v7  ;;  %v15586_v7 = vld [vmem:[#allocation17_spill] sm:$0xff] }
 0x42a   : > { %v3246_v63 = vsub.s32 32, %v12876_v49  ;;  %v3414_v27 = vsel %vm3293_vm15, %v3413_v42, %v12859_v10  ;;  %v3543_v44 = vsel %vm3541_vm13, %v3542_v29, %v3538_v18  ;;  %v15055_v28 = vshrl.u32 %v12985_v52, 16  ;;  %v15588_v42 = vld [vmem:[#allocation49_spill] sm:$0xff]  ;;  %v15589_v18 = vld [vmem:[#allocation58_spill] sm:$0xff] }
 0x42b   : > { %15584 = vst [vmem:[#allocation36_spill] sm:$0xff] %v13004_v30  ;;  %v3539_v17 = vmul.u32 %v15585_v15, %v3485_v23  ;;  %v3700_v54 = vadd.s32 536870912, %v12981_v2  ;;  %v15054_v20 = vshrl.u32 %v12993_v6, 16  ;;  %v2971_v43 = vand.u32 3, %v2970_v32 }
 0x42c   : > { %v13018_v58 = vmul.f32 %v15586_v7, %v9303_v60  ;;  %v13021_v8 = vadd.s32 3, %v15587_v38  ;;  %v3251_v11 = vadd.s32 127, %v3250_v5  ;;  %v3805_v10 = vand.u32 65535, %v12995_v61 }
 0x42d   : > { %v3230_v47 = vadd.s32 %v15589_v18, %v15588_v42  ;;  %v15590_v35 = vand.u32 2147483647, %v15583_v40  ;;  %v13032_v21 = vadd.s32 %v3543_v44, %v3539_v17  ;;  %vm2043_vm14 = vcmp.eq.s32.totalorder %v13004_v30, 0  ;;  %v15595_v44 = vld [vmem:[#allocation42_spill] sm:$0xff] }
 0x42e   : > { %v3105_v29 = vsub.s32 4, %v15593_v41  ;;  %v3119_v1 = vmul.f32 %v3118_v22, %v12843_v12  ;;  %v13046_v32 = vmul.u32 %v15055_v28, %v3805_v10  ;;  %v13048_v23 = vshrl.u32 %v3700_v54, 30 }
 0x42f   : > { %vm13028_vm12 = vcmp.le.f32.partialorder %v15590_v35, 0.7853982  ;;  %v3248_v5 = vshrl.u32 %v3230_v47, %v3246_v63  ;;  %v13052_v46 = vmul.u32 %v15054_v20, %v3805_v10  ;;  %vm2973_vm10 = vcmp.eq.s32.totalorder %v2971_v43, 0 }
 0x430   : > { %v13042_v9 = vsel %vm13028_vm12, %v15583_v40, %v3414_v27  ;;  %15594 = vst [vmem:[#allocation39_spill] sm:$0xff] %v13048_v23  ;;  %v3247_v22 = vshll.u32 %v15595_v44, %v12876_v49  ;;  %v3252_v15 = vshll.u32 %v3251_v11, 23  ;;  %v3829_v17 = vand.u32 65535, %v12985_v52 }
 0x431   : > { %v15596_v27 = vxor.u32 2147483648, %v12781_v55  ;;  %v13062_v63 = vmul.f32 %v13042_v9, %v13042_v9  ;;  %v3545_v54 = vadd.s32 536870912, %v13032_v21  ;;  %v3807_v38 = vand.u32 65535, %v12993_v6 }
 0x432   : > { %vm2976_vm7 = vcmp.eq.s32.totalorder %v2971_v43, 2  ;;  %v3806_v42 = vshrl.u32 %v12995_v61, 16  ;;  %v3835_v49 = vshll.u32 %v13046_v32, 16  ;;  %vm2972_vm0 = vcmp.lt.s32.totalorder %v2971_v43, 2  ;;  %v15598_v43 = vld [vmem:[#allocation53_spill] sm:$0xff] }
 0x433   : > { %v2975_v7 = vsel %vm2973_vm10, %v12772_v14, %v15596_v27  ;;  %v2978_v11 = vsel %vm2976_vm7, %v2977_v31, %v12781_v55  ;;  %v3249_v18 = vor.u32 %v3248_v5, %v3247_v22  ;;  %v3702_v47 = vshll.u32 %v13048_v23, 30  ;;  %v13084_v55 = vpop.permute.xlu1 %1220  ;;  %v15607_v23 = vld [vmem:[#allocation33_spill] sm:$0xff] }
 0x434   : > { %v3813_v35 = vshll.u32 %v13052_v46, 16  ;;  %v2979_v44 = vsel %vm2972_vm0, %v2975_v7, %v2978_v11  ;;  %v3253_v27 = vor.u32 4788187, %v3252_v15  ;;  %v3831_v51 = vmul.u32 %v3829_v17, %v3805_v10  ;;  %v15601_v7 = vld [vmem:[#allocation10_spill] sm:$0xff] }
 0x435   : > { %v13073_v20 = vmul.u32 %v3829_v17, %v3806_v42  ;;  %vm2046_vm3 = vcmp.eq.s32.totalorder %v13004_v30, 2  ;;  %v13078_v28 = vsel %vm2969_vm2, nan, %v2979_v44  ;;  %vm15599_vm13 = vcmp.lt.s32.totalorder %v15598_v43, 0  ;;  %v15603_v11 = vld [vmem:[#allocation30_spill] sm:$0xff] }
 0x436   : > { %15597 = vst [vmem:[#allocation60_spill] sm:$0xff] %v13078_v28  ;;  %v3106_v31 = vsel %vm15599_vm13, %v3105_v29, %v15593_v41  ;;  %v3427_v14 = vmul.f32 -0.00019511016, %v13062_v63  ;;  %v3809_v5 = vmul.u32 %v3807_v38, %v3805_v10  ;;  %v13086_v22 = vmul.u32 %v3807_v38, %v3806_v42  ;;  %v15611_v38 = vld [vmem:[#allocation27_spill] sm:$0xff] }
 0x437   : > { %v13088_v15 = vshrl.u32 %v3545_v54, 30  ;;  %vm3839_vm9 = vc.u32 %v3831_v51, %v3835_v49  ;;  %v13090_v17 = vadd.s32 %v3835_v49, %v3831_v51  ;;  %v15602_v25 = vxor.u32 2147483648, %v15601_v7 }
 0x438   : > { %v3120_v41 = vadd.f32 -0.16666654, %v3119_v1  ;;  %v13100_v29 = vsub.s32 %v12981_v2, %v3702_v47  ;;  %vm3817_vm2 = vc.u32 %v3809_v5, %v3813_v35  ;;  %v3819_v10 = vadd.s32 %v3813_v35, %v3809_v5 }
 0x439   : > { %15600 = vst [vmem:[#allocation55_spill] sm:$0xff] %v13088_v15  ;;  %v13097_v44 = vsel %vm2043_vm14, %v15603_v11, %v15602_v25  ;;  %v13104_v54 = vsel %vm12634_vm1, 0, %v3106_v31  ;;  %v3254_v28 = vand.u32 2147483647, %v3253_v27  ;;  %v3256_v51 = vcvt.s32.f32 %v3249_v18 }
 0x43a   : > { %15604 = vst [vmem:[#allocation54_spill] sm:$0xff] %v13097_v44  ;;  %v15063_v49 = vshll.u32 %v13073_v20, 16  ;;  %v3428_v26 = vadd.f32 0.008332121, %v3427_v14  ;;  %vm15608_vm10 = vcmask 48128   ;;  %v3815_v1 = vshll.u32 %v13086_v22, 16 }
 0x43b   : > { %15606 = vst [vmem:[#allocation59_spill] sm:$0xff] %v13104_v54  ;;  %v1343_v25 = vsel %vm15608_vm10, %v12999_v0, %v15607_v23  ;;  %v3840_v2 = vsel %vm3839_vm9, 1, %v15318_v59  ;;  %v3547_v47 = vshll.u32 %v13088_v15, 30  ;;  %v3818_v35 = vsel %vm3817_vm2, 1, %v15318_v59  ;;  %vm15617_vm13 = vmmov %vm15608_vm10 }
 0x43c   : > { %v15609_v31 = vshrl.u32 %v12985_v52, 16  ;;  %vm3843_vm1 = vc.u32 %v13090_v17, %v15063_v49  ;;  %v3121_v18 = vmul.f32 %v3120_v41, %v12843_v12  ;;  %v3705_v27 = vsub.s32 0, %v13100_v29 }
 0x43d   : > { %v15610_v0 = vshrl.u32 %v12993_v6, 16  ;;  %vm3821_vm14 = vc.u32 %v3819_v10, %v3815_v1  ;;  %v3257_v14 = vmul.f32 %v3256_v51, %v3254_v28  ;;  %vm3704_vm7 = vcmp.lt.s32.totalorder %v13100_v29, 0  ;;  %v15616_v1 = vld [vmem:[#allocation68_spill] sm:$0xff] }
 0x43e   : > { %v3834_v5 = vmul.u32 %v15609_v31, %v3806_v42  ;;  %vm15612_vm0 = vcmask 97280   ;;  %v13127_v31 = vadd.s32 3, %v13104_v54  ;;  %v3844_v49 = vsel %vm3843_vm1, 1, %v15318_v59 }
 0x43f   : > { %v3812_v23 = vmul.u32 %v15610_v0, %v3806_v42  ;;  %v1364_v15 = vsel %vm15612_vm0, %v1343_v25, %v15611_v38  ;;  %v15613_v41 = vxor.u32 2147483648, %v15603_v11  ;;  %v3429_v28 = vmul.f32 %v3428_v26, %v13062_v63  ;;  %vm15620_vm9 = vmmov %vm15612_vm0 }
 0x440   : > { %v3842_v52 = vadd.s32 %v3840_v2, %v3834_v5  ;;  %v13139_v42 = vsub.s32 %v13032_v21, %v3547_v47  ;;  %v3822_v10 = vsel %vm3821_vm14, 1, %v15318_v59  ;;  %v13143_v51 = vand.u32 3, %v13021_v8  ;;  %v15618_v5 = vld [vmem:[#allocation57_spill] sm:$0xff] }
 0x441   : > { %v3820_v60 = vadd.s32 %v3818_v35, %v3812_v23  ;;  %v13135_v6 = vsel %vm2046_vm3, %v15613_v41, %v15601_v7  ;;  %v3122_v25 = vadd.f32 1.0, %v3121_v18  ;;  %v1345_v2 = vsel %vm15617_vm13, %v13018_v58, %v15616_v1  ;;  %v1063_v35 = vpop.permute.xlu1 %1062  ;;  %v1219_v7 = vpop.permute.xlu2 %1218  ;;  %v15622_v23 = vld [vmem:[#allocation51_spill] sm:$0xff] }
 0x442   : > { %15614 = vst [vmem:[#allocation65_spill] sm:$0xff] %v13135_v6  ;;  %v3706_v11 = vsel %vm3704_vm7, %v3705_v27, %v13100_v29  ;;  %vm15619_vm3 = vcmask 146432   ;;  %v3258_v0 = vxor.u32 2147483648, %v3257_v14  ;;  %v3846_v21 = vadd.s32 %v3844_v49, %v3842_v52  ;;  %v15626_v27 = vld [vmem:[#allocation63_spill] sm:$0xff] }
 0x443   : > { %15615 = vst [vmem:[#allocation23_spill] sm:$0xff] %v13143_v51  ;;  %v1385_v26 = vsel %vm15619_vm3, %v1364_v15, %v15618_v5  ;;  %v13152_v47 = vsel %vm15620_vm9, %v1345_v2, %v1063_v35  ;;  %vm15621_vm2 = vcmask 195584   ;;  %v15623_v18 = vand.u32 2147483647, %v15622_v23 }
 0x444   : > { %v1406_v8 = vsel %vm15621_vm2, %v1385_v26, %v1219_v7  ;;  %vm3138_vm1 = vcmp.lt.s32.totalorder %v15622_v23, 0  ;;  %v3824_v58 = vadd.s32 %v3822_v10, %v3820_v60  ;;  %vm15627_vm14 = vcmask 244736   ;;  %v15629_v10 = vld [vmem:[#allocation64_spill] sm:$0xff] }
 0x445   : > { %vm13157_vm10 = vcmp.le.f32.partialorder %v15623_v18, 0.7853982  ;;  %v13164_v41 = vsel %vm15627_vm14, %v1406_v8, %v15626_v27  ;;  %v3430_v15 = vadd.f32 -0.16666654, %v3429_v28  ;;  %v3550_v49 = vsub.s32 0, %v13139_v42 }
 0x446   : > { %15628 = vst [vmem:[#allocation12_spill] sm:$0xff] %v13164_v41  ;;  %v3707_v52 = vclz %v3706_v11  ;;  %v3836_v1 = vshrl.u32 %v13046_v32, 16  ;;  %v13169_v2 = vmul.f32 %v3122_v25, %v12710_v53  ;;  %vm3549_vm7 = vcmp.lt.s32.totalorder %v13139_v42, 0 }
 0x447   : > { %v3814_v35 = vshrl.u32 %v13052_v46, 16  ;;  %v3914_v7 = vand.u32 2139095040, %v13164_v41  ;;  %v3259_v60 = vsel %vm3138_vm1, %v3258_v0, %v3257_v14  ;;  %v3415_v5 = vsub.s32 4, %v15629_v10 }
 0x448   : > { %v3847_v28 = vadd.s32 %v3846_v21, %v3836_v1  ;;  %vm2198_vm0 = vcmp.eq.s32.totalorder %v13143_v51, 0  ;;  %v3772_v32 = vshrl.u32 %v15128_v33, %v12927_v16  ;;  %v3793_v53 = vsel %vm3791_vm6, %v12952_v36, 2102212464 }
 0x449   : > { %v3825_v25 = vadd.s32 %v3824_v58, %v3814_v35  ;;  %v3915_v11 = vshrl.u32 %v3914_v7, 23  ;;  %v3431_v46 = vmul.f32 %v3430_v15, %v13062_v63  ;;  %v3551_v26 = vsel %vm3549_vm7, %v3550_v49, %v13139_v42  ;;  %v15630_v49 = vld [vmem:[#allocation8_spill] sm:$0xff] }
 0x44a   : > { %v8710_v8 = vadd.s32 4294967294, %v3707_v52  ;;  %v3838_v14 = vshrl.u32 %v13073_v20, 16  ;;  %v3792_v0 = vsel %vm3788_vm4, %v3772_v32, %v12948_v50  ;;  %v3816_v21 = vshrl.u32 %v13086_v22, 16 }
 0x44b   : > { %v8715_v16 = vadd.s32 4294967169, %v3915_v11  ;;  %v3420_v18 = vmul.f32 -0.001358992, %v13062_v63  ;;  %v3794_v36 = vsel %vm3790_vm8, %v12950_v57, %v3793_v53  ;;  %v15064_v27 = vand.u32 2147483647, %v13164_v41 }
 0x44c   : > { %v3848_v58 = vadd.s32 %v3847_v28, %v3838_v14  ;;  %v3110_v15 = vmul.f32 -0.001358992, %v12843_v12  ;;  %v13200_v50 = vsel %vm13157_vm10, %v15622_v23, %v3259_v60  ;;  %v13202_v22 = vadd.s32 %v3825_v25, %v3816_v21 }
 0x44d   : > { %v3921_v1 = vadd.s32 1, %v8715_v16  ;;  %v3416_v35 = vsel %vm3293_vm15, %v3415_v5, %v15629_v10  ;;  %v3432_v57 = vadd.f32 1.0, %v3431_v46  ;;  %v3552_v7 = vclz %v3551_v26 }
 0x44e   : > { %15631 = vst [vmem:[#allocation4_spill] sm:$0xff] %v13202_v22  ;;  %vm8711_vm4 = vcmp.lt.s32.totalorder %v8710_v8, 0  ;;  %v3795_v28 = vsel %vm3789_vm11, %v3792_v0, %v3794_v36  ;;  %v15632_v32 = vshll.u32 %v13073_v20, 16  ;;  %v3421_v60 = vadd.f32 0.041655596, %v3420_v18  ;;  %v15634_v20 = vld [vmem:[#allocation28_spill] sm:$0xff]  ;;  %vm15639_vm11 = vmmov %vm15617_vm13 }
 0x44f   : > { %vm3922_vm6 = vcmp.gt.s32.totalorder %v3921_v1, 0  ;;  %v3852_v25 = vadd.s32 1, %v3848_v58  ;;  %v3918_v11 = vand.u32 8388607, %v15064_v27  ;;  %v3111_v21 = vadd.f32 0.041655596, %v3110_v15 }
 0x450   : > { %v13212_v53 = vadd.s32 %v13090_v17, %v15632_v32  ;;  %v3923_v14 = vsel %vm3922_vm6, %v3921_v1, 0  ;;  %v13218_v10 = vmul.f32 %v13200_v50, %v13200_v50  ;;  %v15635_v5 = vxor.u32 2147483648, %v15634_v20  ;;  %v15636_v17 = vld [vmem:[#allocation2_spill] sm:$0xff]  ;;  %v15638_v18 = vld [vmem:[#allocation21_spill] sm:$0xff] }
 0x451   : > { %v3925_v3 = vand.u32 31, %v3923_v14  ;;  %v13231_v26 = vsel %vm13028_vm12, 0, %v3416_v35  ;;  %v13234_v0 = vmul.f32 %v3432_v57, %v13042_v9  ;;  %v13236_v16 = vadd.s32 4294967294, %v3552_v7 }
 0x452   : > { %15633 = vst [vmem:[#allocation9_spill] sm:$0xff] %v13212_v53  ;;  %vm3851_vm8 = vc.u32 %v13202_v22, %v13212_v53  ;;  %v13227_v46 = vsel %vm2198_vm0, %v15636_v17, %v15635_v5  ;;  %v13241_v36 = vsel %vm15639_vm11, %v15638_v18, %v13034_v48  ;;  %v13244_v15 = vsel %vm8711_vm4, 0, %v8710_v8 }
 0x453   : > { %15637 = vst [vmem:[#allocation41_spill] sm:$0xff] %v13227_v46  ;;  %v3849_v1 = vmul.u32 %v12995_v61, %v3795_v28  ;;  %v13247_v32 = vsub.s32 32, %v3925_v3  ;;  %v3422_v39 = vmul.f32 %v3421_v60, %v13062_v63  ;;  %v3853_v35 = vsel %vm3851_vm8, %v3852_v25, %v3848_v58 }
 0x454   : > { %v3919_v5 = vor.u32 8388608, %v3918_v11  ;;  %v13250_v9 = vshrl.u32 %v3923_v14, 5  ;;  %v3112_v57 = vmul.f32 %v3111_v21, %v12843_v12  ;;  %v3928_v7 = vshll.u32 %v15128_v33, %v3925_v3 }
 0x455   : > { %v3929_v48 = vshrl.u32 %v15543_v19, %v13247_v32  ;;  %v3931_v8 = vshll.u32 %v15543_v19, %v3925_v3  ;;  %v3934_v18 = vshll.u32 %v15542_v45, %v3925_v3  ;;  %v3932_v61 = vshrl.u32 %v15542_v45, %v13247_v32 }
 0x456   : > { %v3935_v58 = vshrl.u32 %v15545_v34, %v13247_v32  ;;  %v3937_v28 = vshll.u32 %v15545_v34, %v3925_v3  ;;  %v3938_v60 = vshrl.u32 %v15546_v56, %v13247_v32  ;;  %v3940_v11 = vshll.u32 %v15546_v56, %v3925_v3 }
 0x457   : > { %v13265_v25 = vor.u32 %v3929_v48, %v3928_v7  ;;  %v3941_v14 = vshrl.u32 %v15544_v24, %v13247_v32  ;;  %v3423_v21 = vadd.f32 -0.4999988, %v3422_v39  ;;  %v13270_v27 = vadd.s32 %v3853_v35, %v3849_v1 }
 0x458   : > { %v13272_v52 = vor.u32 %v3932_v61, %v3931_v8  ;;  %v13274_v41 = vor.u32 %v3935_v58, %v3934_v18  ;;  %v3939_v54 = vor.u32 %v3938_v60, %v3937_v28  ;;  %vm3943_vm15 = vcmp.lt.s32.totalorder %v13250_v9, 1 }
 0x459   : > { %v3942_v53 = vor.u32 %v3941_v14, %v3940_v11  ;;  %v13277_v22 = vshll.u32 %v3919_v5, 8  ;;  %v3113_v7 = vadd.f32 -0.4999988, %v3112_v57  ;;  %vm3946_vm12 = vcmp.lt.s32.totalorder %v13250_v9, 4 }
 0x45a   : > { %v3951_v3 = vsel %vm3943_vm15, %v13265_v25, %v13272_v52  ;;  %v6523_v1 = vand.u32 3, %v13231_v26  ;;  %vm3945_vm13 = vcmp.lt.s32.totalorder %v13250_v9, 3  ;;  %v3952_v39 = vsel %vm3946_vm12, %v3939_v54, 920167782 }
 0x45b   : > { %v3955_v35 = vsel %vm3943_vm15, %v13272_v52, %v13274_v41  ;;  %v3424_v5 = vmul.f32 %v3423_v21, %v13062_v63  ;;  %v3855_v57 = vadd.s32 536870912, %v13270_v27  ;;  %vm3944_vm3 = vcmp.lt.s32.totalorder %v13250_v9, 2 }
 0x45c   : > { %v3953_v8 = vsel %vm3945_vm13, %v13274_v41, %v3952_v39  ;;  %v3956_v18 = vsel %vm3946_vm12, %v3942_v53, 1326507024  ;;  %v3960_v28 = vand.u32 65535, %v13277_v22  ;;  %v3114_v63 = vmul.f32 %v3113_v7, %v12843_v12 }
 0x45d   : > { %v3954_v61 = vsel %vm3944_vm3, %v3951_v3, %v3953_v8  ;;  %v3957_v58 = vsel %vm3945_vm13, %v3939_v54, %v3956_v18  ;;  %v3961_v11 = vshrl.u32 %v13277_v22, 16  ;;  %vm8708_vm9 = vcmp.lt.s32.totalorder %v13236_v16, 0 }
 0x45e   : > { %v3958_v60 = vsel %vm3944_vm3, %v3955_v35, %v3957_v58  ;;  %v3984_v14 = vand.u32 65535, %v3954_v61  ;;  %v3985_v21 = vshrl.u32 %v3954_v61, 16  ;;  %v13311_v48 = vadd.f32 1.0, %v3424_v5 }
 0x45f   : > { %v3962_v53 = vand.u32 65535, %v3958_v60  ;;  %v3963_v39 = vshrl.u32 %v3958_v60, 16  ;;  %vm6524_vm2 = vcmp.lt.s32.totalorder %v6523_v1, 2  ;;  %vm3434_vm14 = vweird.f32 %v15583_v40 }
 0x460   : > { %v3987_v3 = vmul.u32 %v3985_v21, %v3960_v28  ;;  %v13313_v54 = vmul.u32 %v3984_v14, %v3961_v11  ;;  %vm6525_vm7 = vcmp.eq.s32.totalorder %v6523_v1, 0  ;;  %vm6528_vm0 = vcmp.eq.s32.totalorder %v6523_v1, 2 }
 0x461   : > { %v13316_v12 = vshrl.u32 %v3855_v57, 30  ;;  %v3965_v7 = vmul.u32 %v3963_v39, %v3960_v28  ;;  %v3966_v35 = vmul.u32 %v3962_v53, %v3961_v11  ;;  %v13319_v8 = vand.u32 3, %v13127_v31 }
 0x462   : > { %v3986_v18 = vmul.u32 %v3984_v14, %v3960_v28  ;;  %v3990_v61 = vshll.u32 %v3987_v3, 16  ;;  %v13322_v58 = vadd.f32 1.0, %v3114_v63  ;;  %v3964_v60 = vmul.u32 %v3962_v53, %v3960_v28 }
 0x463   : > { %v3968_v46 = vshll.u32 %v3965_v7, 16  ;;  %v3989_v44 = vmul.u32 %v3985_v21, %v3961_v11  ;;  %v15077_v6 = vxor.u32 2147483648, %v13311_v48  ;;  %v3967_v17 = vmul.u32 %v3963_v39, %v3961_v11  ;;  %v1061_v11 = vpop.permute.xlu2 %1060 }
 0x464   : > { %v3970_v20 = vshll.u32 %v3966_v35, 16  ;;  %v3992_v57 = vshll.u32 %v13313_v54, 16  ;;  %vm3994_vm4 = vc.u32 %v3986_v18, %v3990_v61  ;;  %v3996_v14 = vadd.s32 %v3990_v61, %v3986_v18 }
 0x465   : > { %vm3972_vm6 = vc.u32 %v3964_v60, %v3968_v46  ;;  %v3974_v30 = vadd.s32 %v3968_v46, %v3964_v60  ;;  %v3995_v31 = vsel %vm3994_vm4, 1, %v15318_v59  ;;  %v3991_v5 = vshrl.u32 %v3987_v3, 16 }
 0x466   : > { %v3973_v51 = vsel %vm3972_vm6, 1, %v15318_v59  ;;  %v3997_v63 = vadd.s32 %v3995_v31, %v3989_v44  ;;  %v15640_v28 = vxor.u32 2147483648, %v13234_v0  ;;  %vm3998_vm11 = vc.u32 %v3996_v14, %v3992_v57 }
 0x467   : > { %v3975_v53 = vadd.s32 %v3973_v51, %v3967_v17  ;;  %vm3976_vm8 = vc.u32 %v3974_v30, %v3970_v20  ;;  %v6530_v46 = vsel %vm6528_vm0, %v15077_v6, %v13234_v0  ;;  %v3969_v39 = vshrl.u32 %v3965_v7, 16 }
 0x468   : > { %v6527_v21 = vsel %vm6525_vm7, %v13311_v48, %v15640_v28  ;;  %v3977_v18 = vsel %vm3976_vm8, 1, %v15318_v59  ;;  %v3999_v3 = vsel %vm3998_vm11, 1, %v15318_v59  ;;  %vm15641_vm7 = vcmask 97280  }
 0x469   : > { %v6531_v44 = vsel %vm6524_vm2, %v6527_v21, %v6530_v46  ;;  %v3979_v61 = vadd.s32 %v3977_v18, %v3975_v53  ;;  %v4001_v60 = vadd.s32 %v3999_v3, %v3997_v63  ;;  %v1365_v51 = vsel %vm15641_vm7, %v13241_v36, %v1061_v11 }
 0x46a   : > { %v6532_v30 = vsel %vm3434_vm14, nan, %v6531_v44  ;;  %v15642_v20 = vsub.s32 4, %v15630_v49  ;;  %v13353_v1 = vsel %vm8708_vm9, 0, %v13236_v16  ;;  %v15643_v7 = vsub.s32 4294967266, %v13244_v15  ;;  %v15644_v16 = vld [vmem:[#allocation66_spill] sm:$0xff] }
 0x46b   : > { %7655 = vrot.lane.b32.xlu2 %v6532_v30, %s9076_s13  ;;  %v15075_v36 = vxor.u32 2147483648, %v13322_v58  ;;  %v3695_v63 = vadd.s32 %v12915_v62, %v12897_v37  ;;  %v3857_v28 = vshll.u32 %v13316_v12, 30  ;;  %v3980_v21 = vadd.s32 %v3979_v61, %v3969_v39 }
 0x46c   : > { %v13348_v17 = vsel %vm3138_vm1, %v15642_v20, %v15630_v49  ;;  %v3716_v31 = vadd.s32 127, %v15643_v7  ;;  %v4002_v49 = vadd.s32 %v4001_v60, %v3991_v5  ;;  %v3711_v53 = vsub.s32 32, %v13244_v15 }
 0x46d   : > { %v3993_v11 = vshrl.u32 %v13313_v54, 16  ;;  %vm15645_vm1 = vcmask 146432   ;;  %v15076_v18 = vxor.u32 2147483648, %v13169_v2  ;;  %v3948_v3 = vsel %vm3946_vm12, %v13274_v41, 2102212464  ;;  %v1301_v41 = vpop.permute.xlu2 %1300 }
 0x46e   : > { %v1386_v46 = vsel %vm15645_vm1, %v1365_v51, %v15644_v16  ;;  %v3971_v44 = vshrl.u32 %v3966_v35, 16  ;;  %v3272_v37 = vmul.f32 -0.00019511016, %v13218_v10  ;;  %vm3131_vm9 = vcmp.eq.s32.totalorder %v13319_v8, 2 }
 0x46f   : > { %v3717_v62 = vshll.u32 %v3716_v31, 23  ;;  %v3927_v5 = vshrl.u32 %v15128_v33, %v13247_v32  ;;  %v4003_v39 = vadd.s32 %v4002_v49, %v3993_v11  ;;  %v3133_v54 = vsel %vm3131_vm9, %v15075_v36, %v13169_v2 }
 0x470   : > { %v13378_v61 = vsub.s32 %v13270_v27, %v3857_v28  ;;  %v13380_v60 = vadd.s32 %v3980_v21, %v3971_v44  ;;  %vm15646_vm12 = vcmask 195584   ;;  %vm3128_vm2 = vcmp.eq.s32.totalorder %v13319_v8, 0 }
 0x471   : > { %v1407_v35 = vsel %vm15646_vm12, %v1386_v46, %v13084_v55  ;;  %v3947_v32 = vsel %vm3943_vm15, %v3927_v5, %v13265_v25  ;;  %v3949_v51 = vsel %vm3945_vm13, %v13272_v52, %v3948_v3  ;;  %vm15647_vm0 = vcmask 244736  }
 0x472   : > { %v13392_v30 = vsel %vm15647_vm0, %v1407_v35, %v1301_v41  ;;  %v3130_v27 = vsel %vm3128_vm2, %v13322_v58, %v15076_v18  ;;  %v13397_v20 = vadd.s32 %v3996_v14, %v3992_v57  ;;  %v3265_v7 = vmul.f32 -0.001358992, %v13218_v10 }
 0x473   : > { %15648 = vst [vmem:[#allocation19_spill] sm:$0xff] %v13392_v30  ;;  %v4069_v55 = vand.u32 2139095040, %v13392_v30  ;;  %v3273_v31 = vadd.f32 0.008332121, %v3272_v37  ;;  %v3560_v25 = vsub.s32 4294967266, %v13353_v1  ;;  %v3713_v28 = vshrl.u32 %v3695_v63, %v3711_v53 }
 0x474   : > { %v4007_v21 = vadd.s32 1, %v4003_v39  ;;  %vm3127_vm15 = vcmp.lt.s32.totalorder %v13319_v8, 2  ;;  %vm4006_vm13 = vc.u32 %v13380_v60, %v13397_v20  ;;  %vm15080_vm4 = vweird.f32 %v15598_v43 }
 0x475   : > { %v4070_v52 = vshrl.u32 %v4069_v55, 23  ;;  %v3134_v49 = vsel %vm3127_vm15, %v3130_v27, %v3133_v54  ;;  %v3712_v57 = vshll.u32 %v13100_v29, %v13244_v15  ;;  %v3718_v14 = vor.u32 4788187, %v3717_v62  ;;  %v1143_v5 = vpop.permute.xlu2 %1142  ;;  %v15651_v55 = vld [vmem:[#allocation61_spill] sm:$0xff] }
 0x476   : > { %v3860_v11 = vsub.s32 0, %v13378_v61  ;;  %v3950_v16 = vsel %vm3944_vm3, %v3947_v32, %v3949_v51  ;;  %vm3859_vm6 = vcmp.lt.s32.totalorder %v13378_v61, 0  ;;  %v3266_v8 = vadd.f32 0.041655596, %v3265_v7  ;;  %vm15650_vm3 = vmmov %vm15645_vm1 }
 0x477   : > { %v8718_v63 = vadd.s32 4294967169, %v4070_v52  ;;  %v3274_v53 = vmul.f32 %v3273_v31, %v13218_v10  ;;  %v3714_v46 = vor.u32 %v3713_v28, %v3712_v57  ;;  %v4008_v3 = vsel %vm4006_vm13, %v4007_v21, %v4003_v39 }
 0x478   : > { %v15074_v44 = vand.u32 2147483647, %v13392_v30  ;;  %v13416_v37 = vsel %vm15080_vm4, nan, %v3134_v49  ;;  %v3540_v29 = vadd.s32 %v12921_v13, %v12917_v4  ;;  %v3556_v15 = vsub.s32 32, %v13353_v1 }
 0x479   : > { %15649 = vst [vmem:[#allocation18_spill] sm:$0xff] %v13416_v37  ;;  %v4004_v9 = vmul.u32 %v13277_v22, %v3950_v16  ;;  %v4076_v62 = vadd.s32 1, %v8718_v63  ;;  %v13422_v54 = vadd.s32 127, %v3560_v25  ;;  %v3719_v41 = vand.u32 2147483647, %v3718_v14  ;;  %v13543_v37 = vpop.permute.xlu1 %1222 }
 0x47a   : > { %v3861_v39 = vsel %vm3859_vm6, %v3860_v11, %v13378_v61  ;;  %v13427_v35 = vsel %vm15650_vm3, %v13152_v47, %v1143_v5  ;;  %v3267_v4 = vmul.f32 %v3266_v8, %v13218_v10  ;;  %v3275_v13 = vadd.f32 -0.16666654, %v3274_v53 }
 0x47b   : > { %v13429_v32 = vadd.s32 %v4008_v3, %v4004_v9  ;;  %vm4077_vm8 = vcmp.gt.s32.totalorder %v4076_v62, 0  ;;  %v3721_v51 = vcvt.s32.f32 %v3714_v46  ;;  %v4073_v22 = vand.u32 8388607, %v15074_v44 }
 0x47c   : > { %v4078_v27 = vsel %vm4077_vm8, %v4076_v62, 0  ;;  %v13435_v7 = vadd.s32 3, %v15651_v55  ;;  %v13438_v31 = vadd.s32 3, %v13231_v26  ;;  %v13442_v25 = vshrl.u32 %v3540_v29, %v3556_v15 }
 0x47d   : > { %v4080_v28 = vand.u32 31, %v4078_v27  ;;  %v3562_v21 = vshll.u32 %v13422_v54, 23  ;;  %v3722_v52 = vmul.f32 %v3721_v51, %v3719_v41  ;;  %v3862_v49 = vclz %v3861_v39  ;;  %v15652_v54 = vld [vmem:[#allocation62_spill] sm:$0xff] }
 0x47e   : > { %v13448_v57 = vsel %vm13157_vm10, 0, %v13348_v17  ;;  %v4010_v14 = vadd.s32 536870912, %v13429_v32  ;;  %v3268_v26 = vadd.f32 -0.4999988, %v3267_v4  ;;  %v3276_v16 = vmul.f32 %v3275_v13, %v13218_v10 }
 0x47f   : > { %v13451_v11 = vsub.s32 32, %v4080_v28  ;;  %v4074_v63 = vor.u32 8388608, %v4073_v22  ;;  %v13454_v8 = vshrl.u32 %v4078_v27, 5  ;;  %v4083_v53 = vshll.u32 %v15128_v33, %v4080_v28 }
 0x480   : > { %v4086_v46 = vshll.u32 %v15543_v19, %v4080_v28  ;;  %v4089_v17 = vshll.u32 %v15542_v45, %v4080_v28  ;;  %v4092_v29 = vshll.u32 %v15545_v34, %v4080_v28  ;;  %v4095_v62 = vshll.u32 %v15546_v56, %v4080_v28 }
 0x481   : > { %v4084_v3 = vshrl.u32 %v15543_v19, %v13451_v11  ;;  %v4087_v38 = vshrl.u32 %v15542_v45, %v13451_v11  ;;  %v4090_v15 = vshrl.u32 %v15545_v34, %v13451_v11  ;;  %v4093_v9 = vshrl.u32 %v15546_v56, %v13451_v11 }
 0x482   : > { %v4096_v5 = vshrl.u32 %v15544_v24, %v13451_v11  ;;  %vm3603_vm10 = vcmp.lt.s32.totalorder %v15652_v54, 0  ;;  %v13472_v41 = vshrl.u32 %v4010_v14, 30  ;;  %v3280_v13 = vadd.s32 3, %v13448_v57 }
 0x483   : > { %v13474_v39 = vor.u32 %v4084_v3, %v4083_v53  ;;  %v13476_v4 = vor.u32 %v4087_v38, %v4086_v46  ;;  %v13479_v51 = vor.u32 %v4090_v15, %v4089_v17  ;;  %v4094_v22 = vor.u32 %v4093_v9, %v4092_v29 }
 0x484   : > { %v4097_v27 = vor.u32 %v4096_v5, %v4095_v62  ;;  %v3269_v55 = vmul.f32 %v3268_v26, %v13218_v10  ;;  %vm4098_vm11 = vcmp.lt.s32.totalorder %v13454_v8, 1  ;;  %vm4101_vm7 = vcmp.lt.s32.totalorder %v13454_v8, 4 }
 0x485   : > { %v13484_v28 = vshll.u32 %v4074_v63, 8  ;;  %v3277_v14 = vadd.f32 1.0, %v3276_v16  ;;  %v3723_v44 = vxor.u32 2147483648, %v3722_v52  ;;  %v13486_v53 = vadd.s32 4294967294, %v3862_v49 }
 0x486   : > { %v4106_v46 = vsel %vm4098_vm11, %v13474_v39, %v13476_v4  ;;  %v4107_v3 = vsel %vm4101_vm7, %v4094_v22, 920167782  ;;  %v4012_v10 = vshll.u32 %v13472_v41, 30  ;;  %vm4100_vm1 = vcmp.lt.s32.totalorder %v13454_v8, 3 }
 0x487   : > { %v4110_v26 = vsel %vm4098_vm11, %v13476_v4, %v13479_v51  ;;  %v3281_v16 = vand.u32 3, %v3280_v13  ;;  %vm4099_vm9 = vcmp.lt.s32.totalorder %v13454_v8, 2  ;;  %v4108_v49 = vsel %vm4100_vm1, %v13479_v51, %v4107_v3 }
 0x488   : > { %v4111_v63 = vsel %vm4101_vm7, %v4097_v27, 1326507024  ;;  %v13506_v38 = vadd.f32 1.0, %v3269_v55  ;;  %v4109_v17 = vsel %vm4099_vm9, %v4106_v46, %v4108_v49  ;;  %v4115_v15 = vand.u32 65535, %v13484_v28 }
 0x489   : > { %v4112_v29 = vsel %vm4100_vm1, %v4094_v22, %v4111_v63  ;;  %v13514_v9 = vmul.f32 %v3277_v14, %v13200_v50  ;;  %v4116_v5 = vshrl.u32 %v13484_v28, 16  ;;  %v4139_v13 = vand.u32 65535, %v4109_v17 }
 0x48a   : > { %v4113_v62 = vsel %vm4099_vm9, %v4110_v26, %v4112_v29  ;;  %v4140_v27 = vshrl.u32 %v4109_v17, 16  ;;  %v13519_v55 = vor.u32 4788187, %v3562_v21  ;;  %v13522_v3 = vsub.s32 %v13429_v32, %v4012_v10 }
 0x48b   : > { %v4117_v46 = vand.u32 65535, %v4113_v62  ;;  %v4118_v49 = vshrl.u32 %v4113_v62, 16  ;;  %v13526_v22 = vsel %vm3603_vm10, %v3723_v44, %v3722_v52  ;;  %v13528_v14 = vmul.u32 %v4139_v13, %v4116_v5 }
 0x48c   : > { %v4142_v50 = vmul.u32 %v4140_v27, %v4115_v15  ;;  %vm3279_vm12 = vweird.f32 %v15622_v23  ;;  %vm8714_vm2 = vcmp.lt.s32.totalorder %v13486_v53, 0  ;;  %vm3282_vm0 = vcmp.lt.s32.totalorder %v3281_v16, 2 }
 0x48d   : > { %v4120_v26 = vmul.u32 %v4118_v49, %v4115_v15  ;;  %vm3283_vm15 = vcmp.eq.s32.totalorder %v3281_v16, 0  ;;  %v4121_v32 = vmul.u32 %v4117_v46, %v4116_v5  ;;  %v4141_v10 = vmul.u32 %v4139_v13, %v4115_v15 }
 0x48e   : > { %v4145_v63 = vshll.u32 %v4142_v50, 16  ;;  %v4015_v44 = vsub.s32 0, %v13522_v3  ;;  %v4119_v52 = vmul.u32 %v4117_v46, %v4115_v15  ;;  %vm3286_vm13 = vcmp.eq.s32.totalorder %v3281_v16, 2 }
 0x48f   : > { %v4123_v29 = vshll.u32 %v4120_v26, 16  ;;  %v4122_v62 = vmul.u32 %v4118_v49, %v4116_v5  ;;  %v4144_v36 = vmul.u32 %v4140_v27, %v4116_v5  ;;  %v4147_v18 = vshll.u32 %v13528_v14, 16 }
 0x490   : > { %vm4149_vm6 = vc.u32 %v4141_v10, %v4145_v63  ;;  %v15653_v6 = vand.u32 2147483647, %v15652_v54  ;;  %v4125_v13 = vshll.u32 %v4121_v32, 16  ;;  %v4151_v46 = vadd.s32 %v4145_v63, %v4141_v10 }
 0x491   : > { %vm4127_vm8 = vc.u32 %v4119_v52, %v4123_v29  ;;  %v4129_v21 = vadd.s32 %v4123_v29, %v4119_v52  ;;  %v4150_v17 = vsel %vm4149_vm6, 1, %v15318_v59  ;;  %v15656_v27 = vxor.u32 2147483648, %v13514_v9 }
 0x492   : > { %vm13538_vm3 = vcmp.le.f32.partialorder %v15653_v6, 0.7853982  ;;  %v4128_v15 = vsel %vm4127_vm8, 1, %v15318_v59  ;;  %v4152_v5 = vadd.s32 %v4150_v17, %v4144_v36  ;;  %v4082_v6 = vshrl.u32 %v15128_v33, %v13451_v11 }
 0x493   : > { %v3285_v49 = vsel %vm3283_vm15, %v13506_v38, %v15656_v27  ;;  %v4130_v30 = vadd.s32 %v4128_v15, %v4122_v62  ;;  %vm4131_vm4 = vc.u32 %v4129_v21, %v4125_v13  ;;  %v15657_v52 = vxor.u32 2147483648, %v13506_v38  ;;  %v15658_v62 = vld [vmem:[#allocation23_spill] sm:$0xff] }
 0x494   : > { %v4103_v10 = vsel %vm4101_vm7, %v13479_v51, 2102212464  ;;  %v4132_v36 = vsel %vm4131_vm4, 1, %v15318_v59  ;;  %vm4153_vm6 = vc.u32 %v4151_v46, %v4147_v18  ;;  %v4124_v17 = vshrl.u32 %v4120_v26, 16  ;;  %v15660_v51 = vld [vmem:[#allocation36_spill] sm:$0xff] }
 0x495   : > { %v3288_v29 = vsel %vm3286_vm13, %v15657_v52, %v13514_v9  ;;  %v4134_v27 = vadd.s32 %v4132_v36, %v4130_v30  ;;  %v4154_v11 = vsel %vm4153_vm6, 1, %v15318_v59  ;;  %vm2201_vm15 = vcmp.eq.s32.totalorder %v15658_v62, 2 }
 0x496   : > { %v3289_v63 = vsel %vm3282_vm0, %v3285_v49, %v3288_v29  ;;  %vm4014_vm13 = vcmp.lt.s32.totalorder %v13522_v3, 0  ;;  %v4146_v13 = vshrl.u32 %v4142_v50, 16  ;;  %v4156_v15 = vadd.s32 %v4154_v11, %v4152_v5 }
 0x497   : > { %v13565_v21 = vsel %vm3279_vm12, nan, %v3289_v63  ;;  %vm2042_vm7 = vcmp.lt.s32.totalorder %v15660_v51, 2  ;;  %vm2197_vm4 = vcmp.lt.s32.totalorder %v15658_v62, 2  ;;  %v3436_v16 = vand.u32 3, %v13438_v31 }
 0x498   : > { %15659 = vst [vmem:[#allocation7_spill] sm:$0xff] %v13565_v21  ;;  %v4102_v30 = vsel %vm4098_vm11, %v4082_v6, %v13474_v39  ;;  %v4104_v26 = vsel %vm4100_vm1, %v13476_v4, %v4103_v10  ;;  %v4126_v49 = vshrl.u32 %v4121_v32, 16  ;;  %v4135_v52 = vadd.s32 %v4134_v27, %v4124_v17 }
 0x499   : > { %v15661_v50 = vshll.u32 %v13139_v42, %v13353_v1  ;;  %v13584_v29 = vsel %vm8714_vm2, 0, %v13486_v53  ;;  %v4148_v31 = vshrl.u32 %v13528_v14, 16  ;;  %v4157_v36 = vadd.s32 %v4156_v15, %v4146_v13  ;;  %v15664_v15 = vld [vmem:[#allocation28_spill] sm:$0xff] }
 0x49a   : > { %v3564_v39 = vand.u32 2147483647, %v13519_v55  ;;  %v4016_v6 = vsel %vm4014_vm13, %v4015_v44, %v13522_v3  ;;  %v13589_v4 = vadd.s32 %v4135_v52, %v4126_v49  ;;  %v13591_v32 = vadd.s32 %v4151_v46, %v4147_v18  ;;  %v13607_v44 = vpop.permute.xlu1 %1064  ;;  %v15668_v52 = vld [vmem:[#allocation65_spill] sm:$0xff] }
 0x49b   : > { %v3559_v5 = vor.u32 %v13442_v25, %v15661_v50  ;;  %v13597_v42 = vsel %vm13538_vm3, %v15652_v54, %v13526_v22  ;;  %v4105_v1 = vsel %vm4099_vm9, %v4102_v30, %v4104_v26  ;;  %v4158_v25 = vadd.s32 %v4157_v36, %v4148_v31  ;;  %v15665_v30 = vld [vmem:[#allocation2_spill] sm:$0xff]  ;;  %v15671_v31 = vld [vmem:[#allocation20_spill] sm:$0xff] }
 0x49c   : > { %vm3441_vm11 = vcmp.eq.s32.totalorder %v3436_v16, 2  ;;  %v3870_v53 = vsub.s32 4294967266, %v13584_v29  ;;  %vm4161_vm1 = vc.u32 %v13589_v4, %v13591_v32  ;;  %vm3438_vm2 = vcmp.eq.s32.totalorder %v3436_v16, 0  ;;  %v15669_v50 = vld [vmem:[#allocation54_spill] sm:$0xff]  ;;  %v15672_v36 = vld [vmem:[#allocation16_spill] sm:$0xff] }
 0x49d   : > { %v15662_v18 = vxor.u32 2147483648, %v13311_v48  ;;  %v4017_v14 = vclz %v4016_v6  ;;  %v4162_v22 = vadd.s32 1, %v4158_v25  ;;  %vm3437_vm0 = vcmp.lt.s32.totalorder %v3436_v16, 2 }
 0x49e   : > { %v15663_v8 = vxor.u32 2147483648, %v13234_v0  ;;  %v13614_v10 = vmul.f32 %v13597_v42, %v13597_v42  ;;  %v4159_v63 = vmul.u32 %v13484_v28, %v4105_v1  ;;  %v2506_v17 = vand.u32 3, %v13435_v7  ;;  %v15670_v28 = vld [vmem:[#allocation41_spill] sm:$0xff]  ;;  %v15673_v1 = vld [vmem:[#allocation26_spill] sm:$0xff] }
 0x49f   : > { %v3443_v55 = vsel %vm3441_vm11, %v15662_v18, %v13234_v0  ;;  %v3566_v11 = vcvt.s32.f32 %v3559_v5  ;;  %v4163_v13 = vsel %vm4161_vm1, %v4162_v22, %v4158_v25  ;;  %v15666_v26 = vxor.u32 2147483648, %v15665_v30 }
 0x4a0   : > { %v3440_v46 = vsel %vm3438_vm2, %v13311_v48, %v15663_v8  ;;  %v3871_v48 = vadd.s32 127, %v3870_v53  ;;  %v4164_v49 = vadd.s32 %v4163_v13, %v4159_v63  ;;  %v2049_v7 = vsel %vm2042_vm7, %v15669_v50, %v15668_v52  ;;  %v15674_v8 = vld [vmem:[#allocation37_spill] sm:$0xff] }
 0x4a1   : > { %v3444_v27 = vsel %vm3437_vm0, %v3440_v46, %v3443_v55  ;;  %v2203_v16 = vsel %vm2201_vm15, %v15666_v26, %v15664_v15  ;;  %v425_v6 = vmul.f32 %v15672_v36, %v15671_v31  ;;  %v2660_v25 = vadd.s32 3, %v15673_v1  ;;  %v15676_v46 = vld [vmem:[#allocation47_spill] sm:$0xff]  ;;  %v15678_v63 = vld [vmem:[#allocation69_spill] sm:$0xff] }
 0x4a2   : > { %v13625_v0 = vsel %vm3434_vm14, nan, %v3444_v27  ;;  %v2204_v5 = vsel %vm2197_vm4, %v15670_v28, %v2203_v16  ;;  %v3567_v18 = vmul.f32 %v3566_v11, %v3564_v39  ;;  %v8716_v40 = vadd.s32 4294967294, %v4017_v14  ;;  %v15680_v13 = vld [vmem:[#allocation25_spill] sm:$0xff]  ;;  %v15681_v14 = vld [vmem:[#allocation4_spill] sm:$0xff] }
 0x4a3   : > { %15667 = vst [vmem:[#allocation43_spill] sm:$0xff] %v13625_v0  ;;  %v3737_v55 = vmul.f32 -0.00019511016, %v13614_v10  ;;  %v3866_v53 = vsub.s32 32, %v13584_v29  ;;  %v4165_v22 = vadd.s32 536870912, %v4164_v49  ;;  %vm2508_vm14 = vcmp.eq.s32.totalorder %v2506_v17, 0 }
 0x4a4   : > { %vm15675_vm9 = vweird.f32 %v15674_v8  ;;  %vm15677_vm8 = vweird.f32 %v15676_v46  ;;  %vm2507_vm6 = vcmp.lt.s32.totalorder %v2506_v17, 2  ;;  %v15679_v27 = vxor.u32 2147483648, %v15678_v63  ;;  %v15682_v11 = vld [vmem:[#allocation9_spill] sm:$0xff]  ;;  %v15684_v16 = vld [vmem:[#allocation24_spill] sm:$0xff]  ;;  %v15686_v8 = vld [vmem:[#allocation15_spill] sm:$0xff] }
 0x4a5   : > { %v13641_v51 = vsel %vm15675_vm9, nan, %v2049_v7  ;;  %v13645_v62 = vsel %vm15677_vm8, nan, %v2204_v5  ;;  %v3850_v15 = vadd.s32 %v15682_v11, %v15681_v14  ;;  %v3872_v30 = vshll.u32 %v3871_v48, 23  ;;  %v13667_v14 = vpop.permute.xlu1 %1224 }
 0x4a6   : > { %v2510_v39 = vsel %vm2508_vm14, %v15680_v13, %v15679_v27  ;;  %v13652_v26 = vshrl.u32 %v4165_v22, 30  ;;  %v2815_v52 = vadd.s32 3, %v15684_v16  ;;  %v3568_v50 = vxor.u32 2147483648, %v3567_v18  ;;  %v15690_v22 = vld [vmem:[#allocation55_spill] sm:$0xff] }
 0x4a7   : > { %vm8717_vm15 = vcmp.lt.s32.totalorder %v8716_v40, 0  ;;  %vm2511_vm13 = vcmp.eq.s32.totalorder %v2506_v17, 2  ;;  %v2661_v7 = vand.u32 3, %v2660_v25  ;;  %v3738_v28 = vadd.f32 0.008332121, %v3737_v55 }
 0x4a8   : > { %15683 = vst [vmem:[#allocation3_spill] sm:$0xff] %v13652_v26  ;;  %v3868_v5 = vshrl.u32 %v3850_v15, %v3866_v53  ;;  %v4167_v31 = vshll.u32 %v13652_v26, 30  ;;  %v15685_v36 = vxor.u32 2147483648, %v15680_v13  ;;  %v15687_v46 = vand.u32 2147483647, %v15686_v8  ;;  %v15691_v15 = vld [vmem:[#allocation22_spill] sm:$0xff] }
 0x4a9   : > { %vm3448_vm4 = vcmp.lt.s32.totalorder %v15686_v8, 0  ;;  %v3570_v27 = vsub.s32 4, %v15690_v22  ;;  %v3867_v55 = vshll.u32 %v13378_v61, %v13584_v29  ;;  %v3873_v53 = vor.u32 4788187, %v3872_v30  ;;  %v15694_v61 = vld [vmem:[#allocation44_spill] sm:$0xff] }
 0x4aa   : > { %v2513_v1 = vsel %vm2511_vm13, %v15685_v36, %v15678_v63  ;;  %vm13661_vm7 = vcmp.le.f32.partialorder %v15687_v46, 0.7853982  ;;  %v13672_v13 = vsel %vm8717_vm15, 0, %v8716_v40  ;;  %v2816_v63 = vand.u32 3, %v2815_v52  ;;  %v15693_v36 = vld [vmem:[#allocation39_spill] sm:$0xff]  ;;  %v15697_v52 = vld [vmem:[#allocation13_spill] sm:$0xff] }
 0x4ab   : > { %v2514_v25 = vsel %vm2507_vm6, %v2510_v39, %v2513_v1  ;;  %v3569_v11 = vsel %vm3448_vm4, %v3568_v50, %v3567_v18  ;;  %vm15692_vm11 = vcmask 48128   ;;  %v3725_v46 = vsub.s32 4, %v15693_v36  ;;  %v15696_v40 = vld [vmem:[#allocation31_spill] sm:$0xff] }
 0x4ac   : > { %v13678_v16 = vsel %vm15692_vm11, %v425_v6, %v15691_v15  ;;  %vm2663_vm1 = vcmp.eq.s32.totalorder %v2661_v7, 0  ;;  %v3739_v17 = vmul.f32 %v3738_v28, %v13614_v10  ;;  %v3869_v39 = vor.u32 %v3868_v5, %v3867_v55  ;;  %v15702_v15 = vld [vmem:[#allocation46_spill] sm:$0xff] }
 0x4ad   : > { %v13682_v1 = vsub.s32 %v4164_v49, %v4167_v31  ;;  %v15695_v29 = vxor.u32 2147483648, %v15694_v61  ;;  %v13690_v18 = vsel %vm3448_vm4, %v3570_v27, %v15690_v22  ;;  %v4025_v6 = vsub.s32 4294967266, %v13672_v13 }
 0x4ae   : > { %vm15698_vm2 = vweird.f32 %v15697_v52  ;;  %vm2666_vm0 = vcmp.eq.s32.totalorder %v2661_v7, 2  ;;  %v3874_v28 = vand.u32 2147483647, %v3873_v53  ;;  %vm2662_vm14 = vcmp.lt.s32.totalorder %v2661_v7, 2 }
 0x4af   : > { %v2665_v30 = vsel %vm2663_vm1, %v15696_v40, %v15695_v29  ;;  %v13695_v50 = vsel %vm15698_vm2, nan, %v2514_v25  ;;  %v15699_v49 = vxor.u32 2147483648, %v15696_v40  ;;  %vm2818_vm9 = vcmp.eq.s32.totalorder %v2816_v63, 0  ;;  %v15700_v25 = vld [vmem:[#allocation56_spill] sm:$0xff] }
 0x4b0   : > { %v13703_v31 = vsel %vm13661_vm7, %v15686_v8, %v3569_v11  ;;  %v3726_v22 = vsel %vm3603_vm10, %v3725_v46, %v15693_v36  ;;  %v15701_v55 = vxor.u32 2147483648, %v15700_v25  ;;  %v3740_v7 = vadd.f32 -0.16666654, %v3739_v17  ;;  %v15704_v11 = vld [vmem:[#allocation59_spill] sm:$0xff] }
 0x4b1   : > { %v2668_v5 = vsel %vm2666_vm0, %v15699_v49, %v15694_v61  ;;  %v3876_v29 = vcvt.s32.f32 %v3869_v39  ;;  %v4170_v40 = vsub.s32 0, %v13682_v1  ;;  %vm15703_vm8 = vcmask 195584  }
 0x4b2   : > { %v2669_v27 = vsel %vm2662_vm14, %v2665_v30, %v2668_v5  ;;  %v2820_v53 = vsel %vm2818_vm9, %v15702_v15, %v15701_v55  ;;  %v1408_v61 = vsel %vm15703_vm8, %v13427_v35, %v13543_v37  ;;  %v4026_v52 = vadd.s32 127, %v4025_v6  ;;  %v7638_v35 = vpop.permute.xlu1 %7637  ;;  %v1303_v6 = vpop.permute.xlu2 %1302  ;;  %v15706_v5 = vld [vmem:[#allocation38_spill] sm:$0xff] }
 0x4b3   : > { %vm4169_vm6 = vcmp.lt.s32.totalorder %v13682_v1, 0  ;;  %v6215_v49 = vand.u32 3, %v15704_v11  ;;  %vm2821_vm15 = vcmp.eq.s32.totalorder %v2816_v63, 2  ;;  %v13719_v36 = vmul.f32 %v13703_v31, %v13703_v31 }
 0x4b4   : > { %v3877_v46 = vmul.f32 %v3876_v29, %v3874_v28  ;;  %vm2817_vm10 = vcmp.lt.s32.totalorder %v2816_v63, 2  ;;  %v15705_v17 = vxor.u32 2147483648, %v15702_v15  ;;  %v13726_v30 = vsel %vm13538_vm3, 0, %v3726_v22  ;;  %v15710_v22 = vld [vmem:[#allocation6_spill] sm:$0xff] }
 0x4b5   : > { %v4021_v37 = vsub.s32 32, %v13672_v13  ;;  %vm15707_vm13 = vweird.f32 %v15706_v5  ;;  %v3741_v28 = vmul.f32 %v3740_v7, %v13614_v10  ;;  %v4171_v63 = vsel %vm4169_vm6, %v4170_v40, %v13682_v1 }
 0x4b6   : > { %v2823_v39 = vsel %vm2821_vm15, %v15705_v17, %v15700_v25  ;;  %v13731_v55 = vsel %vm15707_vm13, nan, %v2669_v27  ;;  %v7695_v25 = vsel %vm7691_vm5, %v13641_v51, %v7638_v35  ;;  %vm15708_vm4 = vcmask 244736  }
 0x4b7   : > { %v2824_v11 = vsel %vm2817_vm10, %v2820_v53, %v2823_v39  ;;  %v13738_v47 = vsel %vm15708_vm4, %v1408_v61, %v1303_v6  ;;  %vm3758_vm3 = vcmp.lt.s32.totalorder %v15710_v22, 0  ;;  %v4005_v15 = vadd.s32 %v13397_v20, %v13380_v60  ;;  %7738 = vrot.lane.b32.xlu1 %v7695_v25, %s9077_s14 }
 0x4b8   : > { %15709 = vst [vmem:[#allocation52_spill] sm:$0xff] %v13738_v47  ;;  %v4027_v29 = vshll.u32 %v4026_v52, 23  ;;  %vm6217_vm11 = vcmp.eq.s32.totalorder %v6215_v49, 0  ;;  %v3878_v27 = vxor.u32 2147483648, %v3877_v46  ;;  %v4224_v7 = vand.u32 2139095040, %v13738_v47 }
 0x4b9   : > { %v15711_v40 = vxor.u32 2147483648, %v13169_v2  ;;  %v4023_v61 = vshrl.u32 %v4005_v15, %v4021_v37  ;;  %v4172_v17 = vclz %v4171_v63  ;;  %vm6220_vm1 = vcmp.eq.s32.totalorder %v6215_v49, 2 }
 0x4ba   : > { %v3582_v39 = vmul.f32 -0.00019511016, %v13719_v36  ;;  %v3742_v35 = vadd.f32 1.0, %v3741_v28  ;;  %v4225_v60 = vshrl.u32 %v4224_v7, 23  ;;  %vm6216_vm2 = vcmp.lt.s32.totalorder %v6215_v49, 2 }
 0x4bb   : > { %v6219_v51 = vsel %vm6217_vm11, %v13322_v58, %v15711_v40  ;;  %v15712_v20 = vxor.u32 2147483648, %v13322_v58  ;;  %v4022_v6 = vshll.u32 %v13522_v3, %v13672_v13  ;;  %v4028_v5 = vor.u32 4788187, %v4027_v29 }
 0x4bc   : > { %v6369_v53 = vand.u32 3, %v13448_v57  ;;  %v3879_v37 = vsel %vm3758_vm3, %v3878_v27, %v3877_v46  ;;  %v8721_v63 = vadd.s32 4294967169, %v4225_v60  ;;  %v15713_v15 = vand.u32 2147483647, %v13738_v47 }
 0x4bd   : > { %v6222_v52 = vsel %vm6220_vm1, %v15712_v20, %v13169_v2  ;;  %v3575_v49 = vmul.f32 -0.001358992, %v13719_v36  ;;  %v4024_v7 = vor.u32 %v4023_v61, %v4022_v6  ;;  %v8719_v40 = vadd.s32 4294967294, %v4172_v17  ;;  %v15714_v2 = vld [vmem:[#allocation5_spill] sm:$0xff] }
 0x4be   : > { %v6223_v25 = vsel %vm6216_vm2, %v6219_v51, %v6222_v52  ;;  %v4228_v28 = vand.u32 8388607, %v15713_v15  ;;  %v3583_v58 = vadd.f32 0.008332121, %v3582_v39  ;;  %vm15715_vm0 = vweird.f32 %v15714_v2  ;;  %v1145_v2 = vpop.permute.xlu2 %1144 }
 0x4bf   : > { %v13763_v20 = vsel %vm15715_vm0, nan, %v2824_v11  ;;  %v13766_v3 = vmul.f32 %v3742_v35, %v13597_v42  ;;  %v15716_v57 = vand.u32 2147483647, %v15710_v22  ;;  %v15717_v13 = vmov 0 }
 0x4c0   : > { %v4231_v46 = vadd.s32 1, %v8721_v63  ;;  %vm15720_vm9 = vweird.f32 %v15598_v43  ;;  %v4029_v11 = vand.u32 2147483647, %v4028_v5  ;;  %vm6371_vm8 = vcmp.eq.s32.totalorder %v6369_v53, 0 }
 0x4c1   : > { %vm13770_vm14 = vcmp.le.f32.partialorder %v15716_v57, 0.7853982  ;;  %v6224_v29 = vsel %vm15720_vm9, nan, %v6223_v25  ;;  %vm6374_vm6 = vcmp.eq.s32.totalorder %v6369_v53, 2  ;;  %v4229_v42 = vor.u32 8388608, %v4228_v28 }
 0x4c2   : > { %v15718_v13 = vsel %vm13770_vm14, 4294967295, %v15717_v13  ;;  %v13779_v27 = vsel %vm13770_vm14, %v15710_v22, %v3879_v37  ;;  %7651 = vrot.lane.b32.xlu1 %v6224_v29, %s9076_s13  ;;  %vm4232_vm15 = vcmp.gt.s32.totalorder %v4231_v46, 0  ;;  %v15722_v51 = vxor.u32 2147483648, %v13514_v9 }
 0x4c3   : > { %15719 = vst [vmem:[#allocation32_spill] sm:$0xff] %v15718_v13  ;;  %v3576_v17 = vadd.f32 0.041655596, %v3575_v49  ;;  %v4031_v39 = vcvt.s32.f32 %v4024_v7  ;;  %vm8720_vm10 = vcmp.lt.s32.totalorder %v8719_v40, 0  ;;  %v4233_v43 = vsel %vm4232_vm15, %v4231_v46, 0 }
 0x4c4   : > { %15721 = vst [vmem:[#allocation11_spill] sm:$0xff] %v13779_v27  ;;  %v6373_v61 = vsel %vm6371_vm8, %v13506_v38, %v15722_v51  ;;  %v3584_v35 = vmul.f32 %v3583_v58, %v13719_v36  ;;  %v4235_v52 = vand.u32 31, %v4233_v43  ;;  %vm6370_vm13 = vcmp.lt.s32.totalorder %v6369_v53, 2 }
 0x4c5   : > { %v15723_v6 = vxor.u32 2147483648, %v13506_v38  ;;  %v13792_v25 = vmul.f32 %v13779_v27, %v13779_v27  ;;  %v13794_v37 = vmul.f32 %v4031_v39, %v4029_v11  ;;  %vm15724_vm4 = vcmask 97280  }
 0x4c6   : > { %v1367_v63 = vsel %vm15724_vm4, %v13678_v16, %v13607_v44  ;;  %v13801_v28 = vsel %vm8720_vm10, 0, %v8719_v40  ;;  %v13803_v49 = vsub.s32 32, %v4235_v52  ;;  %v13805_v53 = vshll.u32 %v4229_v42, 8 }
 0x4c7   : > { %v6376_v5 = vsel %vm6374_vm6, %v15723_v6, %v13514_v9  ;;  %v3577_v38 = vmul.f32 %v3576_v17, %v13719_v36  ;;  %v13808_v9 = vshrl.u32 %v4233_v43, 5  ;;  %v4238_v7 = vshll.u32 %v15128_v33, %v4235_v52 }
 0x4c8   : > { %v13799_v15 = vsel %vm6370_vm13, %v6373_v61, %v6376_v5  ;;  %v4241_v58 = vshll.u32 %v15543_v19, %v4235_v52  ;;  %v3585_v57 = vadd.f32 -0.16666654, %v3584_v35  ;;  %v4239_v44 = vshrl.u32 %v15543_v19, %v13803_v49 }
 0x4c9   : > { %v4242_v16 = vshrl.u32 %v15542_v45, %v13803_v49  ;;  %v4244_v40 = vshll.u32 %v15542_v45, %v4235_v52  ;;  %v4247_v46 = vshll.u32 %v15545_v34, %v4235_v52  ;;  %v4245_v29 = vshrl.u32 %v15545_v34, %v13803_v49 }
 0x4ca   : > { %v4248_v11 = vshrl.u32 %v15546_v56, %v13803_v49  ;;  %v4250_v42 = vshll.u32 %v15546_v56, %v4235_v52  ;;  %v4251_v51 = vshrl.u32 %v15544_v24, %v13803_v49  ;;  %v13825_v61 = vor.u32 %v4239_v44, %v4238_v7 }
 0x4cb   : > { %v13827_v17 = vor.u32 %v4242_v16, %v4241_v58  ;;  %v13832_v39 = vsel %vm13661_vm7, 0, %v13690_v18  ;;  %v3578_v43 = vadd.f32 -0.4999988, %v3577_v38  ;;  %v4246_v35 = vor.u32 %v4245_v29, %v4244_v40 }
 0x4cc   : > { %v4249_v6 = vor.u32 %v4248_v11, %v4247_v46  ;;  %v4252_v5 = vor.u32 %v4251_v51, %v4250_v42  ;;  %vm4253_vm11 = vcmp.lt.s32.totalorder %v13808_v9, 1  ;;  %v4180_v52 = vsub.s32 4294967266, %v13801_v28  ;;  %v1305_v11 = vpop.permute.xlu2 %1304 }
 0x4cd   : > { %vm4256_vm1 = vcmp.lt.s32.totalorder %v13808_v9, 4  ;;  %v4261_v7 = vsel %vm4253_vm11, %v13825_v61, %v13827_v17  ;;  %v3586_v58 = vmul.f32 %v3585_v57, %v13719_v36  ;;  %vm4255_vm7 = vcmp.lt.s32.totalorder %v13808_v9, 3 }
 0x4ce   : > { %v4262_v48 = vsel %vm4256_vm1, %v4249_v6, 920167782  ;;  %v4265_v18 = vsel %vm4253_vm11, %v13827_v17, %v4246_v35  ;;  %v4270_v38 = vand.u32 65535, %v13805_v53  ;;  %vm4254_vm2 = vcmp.lt.s32.totalorder %v13808_v9, 2 }
 0x4cf   : > { %v4263_v44 = vsel %vm4255_vm7, %v4246_v35, %v4262_v48  ;;  %v4266_v16 = vsel %vm4256_vm1, %v4252_v5, 1326507024  ;;  %v4271_v57 = vshrl.u32 %v13805_v53, 16  ;;  %vm15725_vm0 = vcmask 146432  }
 0x4d0   : > { %v4264_v40 = vsel %vm4254_vm2, %v4261_v7, %v4263_v44  ;;  %v4267_v46 = vsel %vm4255_vm7, %v4249_v6, %v4266_v16  ;;  %v1388_v29 = vsel %vm15725_vm0, %v1367_v63, %v1145_v2  ;;  %v3579_v42 = vmul.f32 %v3578_v43, %v13719_v36 }
 0x4d1   : > { %v4268_v51 = vsel %vm4254_vm2, %v4265_v18, %v4267_v46  ;;  %v4294_v48 = vand.u32 65535, %v4264_v40  ;;  %v4295_v60 = vshrl.u32 %v4264_v40, 16  ;;  %v3587_v21 = vadd.f32 1.0, %v3586_v58 }
 0x4d2   : > { %v4272_v47 = vand.u32 65535, %v4268_v51  ;;  %v4273_v26 = vshrl.u32 %v4268_v51, 16  ;;  %v13865_v7 = vand.u32 3, %v13832_v39  ;;  %v13869_v6 = vadd.s32 %v13591_v32, %v13589_v4 }
 0x4d3   : > { %v4176_v63 = vsub.s32 32, %v13801_v28  ;;  %v4297_v36 = vmul.u32 %v4295_v60, %v4270_v38  ;;  %v13872_v2 = vmul.u32 %v4294_v48, %v4271_v57  ;;  %v13874_v43 = vadd.s32 127, %v4180_v52 }
 0x4d4   : > { %v4275_v18 = vmul.u32 %v4273_v26, %v4270_v38  ;;  %v4276_v58 = vmul.u32 %v4272_v47, %v4271_v57  ;;  %vm15726_vm9 = vcmask 195584   ;;  %v4296_v16 = vmul.u32 %v4294_v48, %v4270_v38 }
 0x4d5   : > { %v1409_v44 = vsel %vm15726_vm9, %v1388_v29, %v13667_v14  ;;  %v4300_v40 = vshll.u32 %v4297_v36, 16  ;;  %v13878_v46 = vadd.f32 1.0, %v3579_v42  ;;  %v13881_v51 = vmul.f32 %v3587_v21, %v13703_v31  ;;  %v7640_v42 = vpop.permute.xlu2 %7639 }
 0x4d6   : > { %v4274_v4 = vmul.u32 %v4272_v47, %v4270_v38  ;;  %v4278_v32 = vshll.u32 %v4275_v18, 16  ;;  %v4299_v5 = vmul.u32 %v4295_v60, %v4271_v57  ;;  %vm15727_vm8 = vcmask 244736  }
 0x4d7   : > { %v13884_v0 = vsel %vm15727_vm8, %v1409_v44, %v1305_v11  ;;  %v4277_v52 = vmul.u32 %v4273_v26, %v4271_v57  ;;  %v4302_v27 = vshll.u32 %v13872_v2, 16  ;;  %vm4304_vm6 = vc.u32 %v4296_v16, %v4300_v40  ;;  %v7822_v57 = vld [vmem:[%s14802_s1 + $0x48] sm:$0x7f] }
 0x4d8   : > { %v4306_v13 = vadd.s32 %v4300_v40, %v4296_v16  ;;  %v4280_v22 = vshll.u32 %v4276_v58, 16  ;;  %vm4282_vm15 = vc.u32 %v4274_v4, %v4278_v32  ;;  %v4284_v14 = vadd.s32 %v4278_v32, %v4274_v4  ;;  %v15728_v40 = vld [vmem:[#allocation12_spill] sm:$0xff] }
 0x4d9   : > { %v4305_v29 = vsel %vm4304_vm6, 1, %v15318_v59  ;;  %vm6679_vm10 = vcmp.eq.s32.totalorder %v13865_v7, 0  ;;  %v4237_v21 = vshrl.u32 %v15128_v33, %v13803_v49  ;;  %v4283_v31 = vsel %vm4282_vm15, 1, %v15318_v59 }
 0x4da   : > { %v4307_v47 = vadd.s32 %v4305_v29, %v4299_v5  ;;  %vm4308_vm13 = vc.u32 %v4306_v13, %v4302_v27  ;;  %v4258_v26 = vsel %vm4256_vm1, %v4246_v35, 2102212464  ;;  %v4285_v60 = vadd.s32 %v4283_v31, %v4277_v52  ;;  %v7821_v35 = vld [vmem:[%s14802_s1 + $0x40] sm:$0xff] }
 0x4db   : > { %vm4286_vm4 = vc.u32 %v4284_v14, %v4280_v22  ;;  %v4309_v38 = vsel %vm4308_vm13, 1, %v15318_v59  ;;  %v4301_v48 = vshrl.u32 %v4297_v36, 16  ;;  %v4379_v49 = vand.u32 2139095040, %v13884_v0 }
 0x4dc   : > { %v4287_v11 = vsel %vm4286_vm4, 1, %v15318_v59  ;;  %v4311_v44 = vadd.s32 %v4309_v38, %v4307_v47  ;;  %v4279_v16 = vshrl.u32 %v4275_v18, 16  ;;  %vm7888_vm0 = vcmask 1046528   ;;  %v7820_v47 = vld [vmem:[%s14802_s1 + $0x38] sm:$0xff]  ;;  %v7819_v38 = vld [vmem:[%s14802_s1 + $0x30] sm:$0xff] }
 0x4dd   : > { %v4289_v5 = vadd.s32 %v4287_v11, %v4285_v60  ;;  %v3594_v22 = vxor.u32 2147483648, %v13881_v51  ;;  %vm3913_vm1 = vcmp.lt.s32.totalorder %v15728_v40, 0  ;;  %v4303_v4 = vshrl.u32 %v13872_v2, 16  ;;  %8787 = vmatpush.msk.msra.mxu0 %vm7888_vm0, %v7822_v57  ;;  %8810 = vmatpush.msk.msra.mxu3 %vm7888_vm0, %v7822_v57  ;;  %v7644_v57 = vpop.permute.xlu2 %7643 }
 0x4de   : > { %v4312_v32 = vadd.s32 %v4311_v44, %v4301_v48  ;;  %v4380_v52 = vshrl.u32 %v4379_v49, 23  ;;  %v7696_v36 = vsel %vm7691_vm5, %v13645_v62, %v7640_v42  ;;  %v4257_v18 = vsel %vm4253_vm11, %v4237_v21, %v13825_v61  ;;  %v7817_v49 = vld [vmem:[%s14802_s1 + $0x20] sm:$0xff] }
 0x4df   : > { %v4281_v14 = vshrl.u32 %v4276_v58, 16  ;;  %v4290_v29 = vadd.s32 %v4289_v5, %v4279_v16  ;;  %v4376_v31 = vand.u32 2147483647, %v13884_v0  ;;  %7740 = vrot.lane.b32.xlu0 %v7696_v36, %s9077_s14  ;;  %v4259_v2 = vsel %vm4255_vm7, %v13827_v17, %v4258_v26  ;;  %7899 = vmatpush.msra.mxu0 %v7821_v35 }
 0x4e0   : > { %v4313_v62 = vadd.s32 %v4312_v32, %v4303_v4  ;;  %v8724_v42 = vadd.s32 4294967169, %v4380_v52  ;;  %v3597_v60 = vxor.u32 2147483648, %v13878_v46  ;;  %8811 = vmatpush.msra.mxu3 %v7821_v35  ;;  %v4178_v61 = vshrl.u32 %v13869_v6, %v4176_v63 }
 0x4e1   : > { %v13921_v58 = vadd.s32 %v4290_v29, %v4281_v14  ;;  %v13923_v21 = vadd.s32 %v4306_v13, %v4302_v27  ;;  %vm6682_vm11 = vcmp.eq.s32.totalorder %v13865_v7, 2  ;;  %7900 = vmatpush.msra.mxu0 %v7820_v47  ;;  %v7698_v11 = vsel %vm7691_vm5, %v13695_v50, %v7644_v57  ;;  %v7818_v50 = vld [vmem:[%s14802_s1 + $0x28] sm:$0xff] }
 0x4e2   : > { %v4317_v17 = vadd.s32 1, %v4313_v62  ;;  %v4386_v26 = vadd.s32 1, %v8724_v42  ;;  %v6681_v13 = vsel %vm6679_vm10, %v13878_v46, %v3594_v22  ;;  %8812 = vmatpush.msra.mxu3 %v7820_v47  ;;  %v4182_v27 = vshll.u32 %v13874_v43, 23  ;;  %7744 = vrot.lane.b32.xlu1 %v7698_v11, %s9077_s14 }
 0x4e3   : > { %v4260_v6 = vsel %vm4254_vm2, %v4257_v18, %v4259_v2  ;;  %vm4316_vm7 = vc.u32 %v13921_v58, %v13923_v21  ;;  %v13943_v63 = vand.u32 8388607, %v4376_v31  ;;  %7901 = vmatpush.msra.mxu0 %v7819_v38  ;;  %vm15088_vm8 = vweird.f32 %v15686_v8 }
 0x4e4   : > { %vm4387_vm9 = vcmp.gt.s32.totalorder %v4386_v26, 0  ;;  %vm6678_vm6 = vcmp.lt.s32.totalorder %v13865_v7, 2  ;;  %v6684_v9 = vsel %vm6682_vm11, %v3597_v60, %v13881_v51  ;;  %8813 = vmatpush.msra.mxu3 %v7819_v38  ;;  %v4177_v43 = vshll.u32 %v13682_v1, %v13801_v28  ;;  %v7733_v1 = vpop.permute.xlu1 %7732  ;;  %v7815_v38 = vld [vmem:[%s14802_s1 + $0x10] sm:$0xff] }
 0x4e5   : > { %v4318_v48 = vsel %vm4316_vm7, %v4317_v17, %v4313_v62  ;;  %v4388_v44 = vsel %vm4387_vm9, %v4386_v26, 0  ;;  %v6685_v16 = vsel %vm6678_vm6, %v6681_v13, %v6684_v9  ;;  %v15729_v5 = vand.u32 2147483647, %v15728_v40  ;;  %7902 = vmatpush.msra.mxu0 %v7818_v50 }
 0x4e6   : > { %v4035_v7 = vsub.s32 4, %v13472_v41  ;;  %v4314_v4 = vmul.u32 %v13805_v53, %v4260_v6  ;;  %v4390_v32 = vand.u32 31, %v4388_v44  ;;  %v6378_v28 = vsel %vm3279_vm12, nan, %v13799_v15  ;;  %8814 = vmatpush.msra.mxu3 %v7818_v50  ;;  %v7816_v53 = vld [vmem:[%s14802_s1 + $0x18] sm:$0xff] }
 0x4e7   : > { %vm13963_vm2 = vcmp.le.f32.partialorder %v15729_v5, 0.7853982  ;;  %v15732_v52 = vxor.u32 2147483648, %v13794_v37  ;;  %v13977_v18 = vor.u32 %v4178_v61, %v4177_v43  ;;  %v4183_v14 = vor.u32 4788187, %v4182_v27  ;;  %7653 = vrot.lane.b32.xlu0 %v6378_v28, %s9076_s13  ;;  %7903 = vmatpush.msra.mxu0 %v7817_v49  ;;  %v7813_v43 = vld [vmem:[%s14802_s1] sm:$0xff] }
 0x4e8   : > { %v4384_v29 = vor.u32 8388608, %v13943_v63  ;;  %v13984_v23 = vadd.s32 %v4318_v48, %v4314_v4  ;;  %v13986_v15 = vsub.s32 32, %v4390_v32  ;;  %v6686_v47 = vsel %vm15088_vm8, nan, %v6685_v16  ;;  %8815 = vmatpush.msra.mxu3 %v7817_v49  ;;  %v9029_v49 = vld [vmem:[%s9134_s30] sm:$0xff] }
 0x4e9   : > { %v4034_v36 = vsel %vm3913_vm1, %v15732_v52, %v13794_v37  ;;  %v3730_v37 = vmul.f32 -0.001358992, %v13614_v10  ;;  %v13991_v2 = vshrl.u32 %v4388_v44, 5  ;;  %v4393_v62 = vshll.u32 %v15128_v33, %v4390_v32  ;;  %7904 = vmatpush.msra.mxu0 %v7816_v53 }
 0x4ea   : > { %v4396_v42 = vshll.u32 %v15543_v19, %v4390_v32  ;;  %v4399_v61 = vshll.u32 %v15542_v45, %v4390_v32  ;;  %v4394_v57 = vshrl.u32 %v15543_v19, %v13986_v15  ;;  %v4397_v17 = vshrl.u32 %v15542_v45, %v13986_v15  ;;  %v7814_v19 = vld [vmem:[%s14802_s1 + $0x8] sm:$0xff]  ;;  %7657 = vrot.lane.b32.xlu1 %v6686_v47, %s9076_s13 }
 0x4eb   : > { %v4400_v26 = vshrl.u32 %v15545_v34, %v13986_v15  ;;  %v4402_v11 = vshll.u32 %v15545_v34, %v4390_v32  ;;  %v4403_v13 = vshrl.u32 %v15546_v56, %v13986_v15  ;;  %v4405_v27 = vshll.u32 %v15546_v56, %v4390_v32  ;;  %8816 = vmatpush.msra.mxu3 %v7816_v53 }
 0x4ec   : > { %v4406_v6 = vshrl.u32 %v15544_v24, %v13986_v15  ;;  %vm7792_vm12 = vcmask 56320   ;;  %v4320_v45 = vadd.s32 536870912, %v13984_v23  ;;  %v14016_v34 = vor.u32 %v4394_v57, %v4393_v62  ;;  %7905 = vmatpush.msra.mxu0 %v7815_v38 }
 0x4ed   : > { %v14018_v63 = vor.u32 %v4397_v17, %v4396_v42  ;;  %v14020_v50 = vor.u32 %v4400_v26, %v4399_v61  ;;  %v4184_v56 = vand.u32 2147483647, %v4183_v14  ;;  %v4404_v24 = vor.u32 %v4403_v13, %v4402_v11  ;;  %8817 = vmatpush.msra.mxu3 %v7815_v38  ;;  %v14065_v42 = vpop.permute.xlu2 %7736 }
 0x4ee   : > { %v4407_v9 = vor.u32 %v4406_v6, %v4405_v27  ;;  %v3731_v48 = vadd.f32 0.041655596, %v3730_v37  ;;  %vm4408_vm15 = vcmp.lt.s32.totalorder %v13991_v2, 1  ;;  %v14026_v44 = vshll.u32 %v4384_v29, 8  ;;  %7906 = vmatpush.msra.mxu0 %v7814_v19 }
 0x4ef   : > { %v7793_v16 = vsel %vm7792_vm12, %v9029_v49, %v7733_v1  ;;  %vm7827_vm10 = vcmask 646144   ;;  %v14033_v5 = vsel %vm13963_vm2, %v15728_v40, %v4034_v36  ;;  %v4186_v4 = vcvt.s32.f32 %v13977_v18  ;;  %8818 = vmatpush.msra.mxu3 %v7814_v19  ;;  %v7646_v36 = vpop.permute.xlu1 %7645 }
 0x4f0   : > { %vm4411_vm13 = vcmp.lt.s32.totalorder %v13991_v2, 4  ;;  %v4416_v32 = vsel %vm4408_vm15, %v14016_v34, %v14018_v63  ;;  %v14041_v28 = vshrl.u32 %v4320_v45, 30  ;;  %vm4410_vm4 = vcmp.lt.s32.totalorder %v13991_v2, 3  ;;  %7907 = vmatpush.msra.mxu0 %v7813_v43 }
 0x4f1   : > { %v4417_v1 = vsel %vm4411_vm13, %v4404_v24, 920167782  ;;  %v4420_v52 = vsel %vm4408_vm15, %v14018_v63, %v14020_v50  ;;  %vm4409_vm0 = vcmp.lt.s32.totalorder %v13991_v2, 2  ;;  %v4421_v14 = vsel %vm4411_vm13, %v4407_v9, 1326507024  ;;  %8788 = vmatmul.msk.f32.vlgmr.msra.gmra.mxu0 %vm7827_vm10, %v7793_v16  ;;  %8819 = vmatpush.msra.mxu3 %v7813_v43  ;;  %v7735_v16 = vpop.permute.xlu0 %7734 }
 0x4f2   : > { %v4418_v18 = vsel %vm4410_vm4, %v14020_v50, %v4417_v1  ;;  %v3732_v29 = vmul.f32 %v3731_v48, %v13614_v10  ;;  %v14058_v53 = vmul.f32 %v4186_v4, %v4184_v56  ;;  %v4422_v37 = vsel %vm4410_vm4, %v4404_v24, %v4421_v14 }
 0x4f3   : > { %v4419_v47 = vsel %vm4409_vm0, %v4416_v32, %v4418_v18  ;;  %v4425_v62 = vand.u32 65535, %v14026_v44  ;;  %v4423_v61 = vsel %vm4409_vm0, %v4420_v52, %v4422_v37  ;;  %v7699_v17 = vsel %vm7691_vm5, %v13731_v55, %v7646_v36 }
 0x4f4   : > { %v4449_v38 = vand.u32 65535, %v4419_v47  ;;  %v4450_v57 = vshrl.u32 %v4419_v47, 16  ;;  %v4322_v26 = vshll.u32 %v14041_v28, 30  ;;  %v4426_v11 = vshrl.u32 %v14026_v44, 16  ;;  %7746 = vrot.lane.b32.xlu0 %v7699_v17, %s9077_s14 }
 0x4f5   : > { %v4427_v13 = vand.u32 65535, %v4423_v61  ;;  %v4428_v27 = vshrl.u32 %v4423_v61, 16  ;;  %v14079_v6 = vsel %vm3913_vm1, %v4035_v7, %v13472_v41  ;;  %v3733_v45 = vadd.f32 -0.4999988, %v3732_v29  ;;  %v15733_v29 = vld [vmem:[#allocation19_spill] sm:$0xff]  ;;  %v7650_v61 = vpop.permute.xlu2 %7649 }
 0x4f6   : > { %v14081_v19 = vmul.u32 %v4450_v57, %v4425_v62  ;;  %v14084_v55 = vand.u32 3, %v13726_v30  ;;  %v14088_v56 = vmul.f32 %v14033_v5, %v14033_v5  ;;  %v14091_v43 = vadd.s32 3, %v13832_v39 }
 0x4f7   : > { %v4430_v24 = vmul.u32 %v4428_v27, %v4425_v62  ;;  %v4431_v9 = vmul.u32 %v4427_v13, %v4426_v11  ;;  %v4188_v48 = vxor.u32 2147483648, %v14058_v53  ;;  %v4392_v41 = vshrl.u32 %v15128_v33, %v13986_v15 }
 0x4f8   : > { %v14096_v7 = vmul.u32 %v4449_v38, %v4426_v11  ;;  %v4455_v49 = vshll.u32 %v14081_v19, 16  ;;  %v14100_v4 = vsub.s32 %v13984_v23, %v4322_v26  ;;  %v4429_v32 = vmul.u32 %v4427_v13, %v4425_v62 }
 0x4f9   : > { %v4433_v1 = vshll.u32 %v4430_v24, 16  ;;  %v3749_v52 = vxor.u32 2147483648, %v13766_v3  ;;  %v4412_v39 = vsel %vm4408_vm15, %v4392_v41, %v14016_v34  ;;  %v4413_v33 = vsel %vm4411_vm13, %v14020_v50, 2102212464 }
 0x4fa   : > { %v4451_v15 = vmul.u32 %v4449_v38, %v4425_v62  ;;  %v3734_v36 = vmul.f32 %v3733_v45, %v13614_v10  ;;  %vm6833_vm1 = vcmp.eq.s32.totalorder %v14084_v55, 0  ;;  %v4432_v18 = vmul.u32 %v4428_v27, %v4426_v11 }
 0x4fb   : > { %v4435_v23 = vshll.u32 %v4431_v9, 16  ;;  %vm4437_vm11 = vc.u32 %v4429_v32, %v4433_v1  ;;  %v4439_v14 = vadd.s32 %v4433_v1, %v4429_v32  ;;  %vm4068_vm7 = vcmp.lt.s32.totalorder %v15733_v29, 0 }
 0x4fc   : > { %v4438_v47 = vsel %vm4437_vm11, 1, %v15318_v59  ;;  %v4457_v37 = vshll.u32 %v14096_v7, 16  ;;  %vm4459_vm9 = vc.u32 %v4451_v15, %v4455_v49  ;;  %v4461_v34 = vadd.s32 %v4455_v49, %v4451_v15 }
 0x4fd   : > { %vm6836_vm6 = vcmp.eq.s32.totalorder %v14084_v55, 2  ;;  %v4325_v50 = vsub.s32 0, %v14100_v4  ;;  %v4440_v62 = vadd.s32 %v4438_v47, %v4432_v18  ;;  %vm4441_vm15 = vc.u32 %v4439_v14, %v4435_v23 }
 0x4fe   : > { %v4454_v10 = vmul.u32 %v4450_v57, %v4426_v11  ;;  %vm6832_vm13 = vcmp.lt.s32.totalorder %v14084_v55, 2  ;;  %v4414_v38 = vsel %vm4410_vm4, %v14018_v63, %v4413_v33  ;;  %v4442_v17 = vsel %vm4441_vm15, 1, %v15318_v59  ;;  %v15734_v11 = vld [vmem:[#allocation60_spill] sm:$0xff]  ;;  %v9030_v63 = vld [vmem:[%s9134_s30 + $0x8] sm:$0xff]  ;;  %v7648_v33 = vpop.permute.xlu0 %7647 }
 0x4ff   : > { %v4460_v26 = vsel %vm4459_vm9, 1, %v15318_v59  ;;  %vm4463_vm11 = vc.u32 %v4461_v34, %v4457_v37  ;;  %vm3744_vm8 = vweird.f32 %v15652_v54  ;;  %v4434_v13 = vshrl.u32 %v4430_v24, 16 }
 0x500   : > { %v4444_v27 = vadd.s32 %v4442_v17, %v4440_v62  ;;  %v4456_v45 = vshrl.u32 %v14081_v19, 16  ;;  %v4462_v41 = vadd.s32 %v4460_v26, %v4454_v10  ;;  %v4464_v57 = vsel %vm4463_vm11, 1, %v15318_v59 }
 0x501   : > { %v7701_v49 = vsel %vm7691_vm5, %v15734_v11, %v7650_v61  ;;  %v14127_v32 = vadd.f32 1.0, %v3734_v36  ;;  %v7794_v1 = vsel %vm7792_vm12, %v9030_v63, %v7735_v16  ;;  %v4436_v15 = vshrl.u32 %v4431_v9, 16 }
 0x502   : > { %v4445_v18 = vadd.s32 %v4444_v27, %v4434_v13  ;;  %v4466_v23 = vadd.s32 %v4464_v57, %v4462_v41  ;;  %7750 = vrot.lane.b32.xlu1 %v7701_v49, %s9077_s14  ;;  %8789 = vmatmul.msk.f32.gmra.mxu0 %vm7827_vm10, %v7794_v1  ;;  %v7700_v19 = vsel %vm7691_vm5, %v13763_v20, %v7648_v33  ;;  %vm4324_vm4 = vcmp.lt.s32.totalorder %v14100_v4, 0 }
 0x503   : > { %v4458_v59 = vshrl.u32 %v14096_v7, 16  ;;  %v3752_v24 = vxor.u32 2147483648, %v14127_v32  ;;  %7748 = vrot.lane.b32.xlu2 %v7700_v19, %s9077_s14  ;;  %v4040_v16 = vmul.f32 -0.001358992, %v14088_v56  ;;  %v6835_v14 = vsel %vm6833_vm1, %v14127_v32, %v3749_v52 }
 0x504   : > { %v14140_v9 = vadd.s32 %v4445_v18, %v4436_v15  ;;  %v4467_v36 = vadd.s32 %v4466_v23, %v4456_v45  ;;  %v4047_v20 = vmul.f32 -0.00019511016, %v14088_v56  ;;  %v4415_v7 = vsel %vm4409_vm0, %v4412_v39, %v4414_v38  ;;  %v9031_v38 = vld [vmem:[%s9134_s30 + $0x10] sm:$0xff]  ;;  %v15736_v15 = vld [vmem:[#allocation6_spill] sm:$0xff] }
 0x505   : > { %v14150_v47 = vadd.s32 %v4461_v34, %v4457_v37  ;;  %v4041_v62 = vadd.f32 0.041655596, %v4040_v16  ;;  %v14153_v10 = vand.u32 3, %v14091_v43  ;;  %v4189_v61 = vsel %vm4068_vm7, %v4188_v48, %v14058_v53 }
 0x506   : > { %v4326_v17 = vsel %vm4324_vm4, %v4325_v50, %v14100_v4  ;;  %v4468_v26 = vadd.s32 %v4467_v36, %v4458_v59  ;;  %v6838_v2 = vsel %vm6836_vm6, %v3752_v24, %v13766_v3  ;;  %v4048_v37 = vadd.f32 0.008332121, %v4047_v20 }
 0x507   : > { %vm4471_vm0 = vc.u32 %v14140_v9, %v14150_v47  ;;  %v6839_v43 = vsel %vm6832_vm13, %v6835_v14, %v6838_v2  ;;  %v4042_v39 = vmul.f32 %v4041_v62, %v14088_v56  ;;  %v4469_v53 = vmul.u32 %v14026_v44, %v4415_v7 }
 0x508   : > { %v4472_v48 = vadd.s32 1, %v4468_v26  ;;  %v6840_v34 = vsel %vm3744_vm8, nan, %v6839_v43  ;;  %v3885_v50 = vmul.f32 -0.001358992, %v13792_v25  ;;  %v7795_v13 = vsel %vm7792_vm12, %v9031_v38, %v14065_v42 }
 0x509   : > { %7659 = vrot.lane.b32.xlu0 %v6840_v34, %s9076_s13  ;;  %v4043_v27 = vadd.f32 -0.4999988, %v4042_v39  ;;  %v4049_v55 = vmul.f32 %v4048_v37, %v14088_v56  ;;  %v3892_v45 = vmul.f32 -0.00019511016, %v13792_v25  ;;  %v4327_v41 = vclz %v4326_v17 }
 0x50a   : > { %v4473_v57 = vsel %vm4471_vm0, %v4472_v48, %v4468_v26  ;;  %8790 = vmatmul.msk.f32.gmra.mxu0 %vm7827_vm10, %v7795_v13  ;;  %v14185_v44 = vsel %vm13963_vm2, 0, %v14079_v6  ;;  %v3886_v11 = vadd.f32 0.041655596, %v3885_v50  ;;  %v15735_v33 = vsub.s32 4, %v13316_v12  ;;  %v14231_v50 = vpop.permute.xlu2 %7742 }
 0x50b   : > { %v4474_v49 = vadd.s32 %v4473_v57, %v4469_v53  ;;  %v4044_v63 = vmul.f32 %v4043_v27, %v14088_v56  ;;  %v4050_v1 = vadd.f32 -0.16666654, %v4049_v55  ;;  %v3893_v42 = vadd.f32 0.008332121, %v3892_v45  ;;  %v15741_v57 = vld [vmem:[#allocation11_spill] sm:$0xff] }
 0x50c   : > { %v3881_v18 = vsel %vm3758_vm3, %v15735_v33, %v13316_v12  ;;  %v15737_v23 = vand.u32 2147483647, %v15733_v29  ;;  %v3887_v35 = vmul.f32 %v3886_v11, %v13792_v25  ;;  %v7139_v12 = vand.u32 3, %v14185_v44 }
 0x50d   : > { %v4475_v6 = vadd.s32 536870912, %v4474_v49  ;;  %v14200_v59 = vadd.f32 1.0, %v4044_v63  ;;  %v4051_v16 = vmul.f32 %v4050_v1, %v14088_v56  ;;  %v3894_v36 = vmul.f32 %v3893_v42, %v13792_v25 }
 0x50e   : > { %vm14195_vm1 = vcmp.le.f32.partialorder %v15737_v23, 0.7853982  ;;  %v3888_v20 = vadd.f32 -0.4999988, %v3887_v35  ;;  %vm3593_vm3 = vcmp.eq.s32.totalorder %v14153_v10, 0  ;;  %v8722_v7 = vadd.s32 4294967294, %v4327_v41 }
 0x50f   : > { %v14207_v14 = vsel %vm14195_vm1, %v15733_v29, %v4189_v61  ;;  %v14211_v62 = vshrl.u32 %v4475_v6, 30  ;;  %v4052_v17 = vadd.f32 1.0, %v4051_v16  ;;  %v3895_v26 = vadd.f32 -0.16666654, %v3894_v36 }
 0x510   : > { %v14215_v56 = vsel %vm13770_vm14, 0, %v3881_v18  ;;  %v3889_v43 = vmul.f32 %v3888_v20, %v13792_v25  ;;  %v3595_v61 = vsel %vm3593_vm3, %v13878_v46, %v3594_v22  ;;  %v4062_v53 = vxor.u32 2147483648, %v14200_v59 }
 0x511   : > { %v4477_v39 = vshll.u32 %v14211_v62, 30  ;;  %v14223_v37 = vmul.f32 %v4052_v17, %v14033_v5  ;;  %v3896_v48 = vmul.f32 %v3895_v26, %v13792_v25  ;;  %v14229_v34 = vmul.f32 %v14207_v14, %v14207_v14 }
 0x512   : > { %v14233_v38 = vadd.f32 1.0, %v3889_v43  ;;  %vm8723_vm14 = vcmp.lt.s32.totalorder %v8722_v7, 0  ;;  %vm7140_vm2 = vcmp.lt.s32.totalorder %v7139_v12, 2  ;;  %vm7141_vm9 = vcmp.eq.s32.totalorder %v7139_v12, 0  ;;  %v7656_v20 = vpop.permute.xlu2 %7655 }
 0x513   : > { %v4478_v13 = vsub.s32 %v4474_v49, %v4477_v39  ;;  %v4059_v22 = vxor.u32 2147483648, %v14223_v37  ;;  %vm7144_vm6 = vcmp.eq.s32.totalorder %v7139_v12, 2  ;;  %v3897_v5 = vadd.f32 1.0, %v3896_v48 }
 0x514   : > { %v6985_v27 = vand.u32 3, %v14215_v56  ;;  %v7146_v45 = vsel %vm7144_vm6, %v4062_v53, %v14223_v37  ;;  %vm4054_vm13 = vweird.f32 %v15728_v40  ;;  %v3907_v49 = vxor.u32 2147483648, %v14233_v38 }
 0x515   : > { %vm4479_vm15 = vcmp.lt.s32.totalorder %v4478_v13, 0  ;;  %v4480_v25 = vsub.s32 0, %v4478_v13  ;;  %v7143_v55 = vsel %vm7141_vm9, %v14200_v59, %v4059_v22  ;;  %v14245_v11 = vmul.f32 %v3897_v5, %v15741_v57 }
 0x516   : > { %v7147_v41 = vsel %vm7140_vm2, %v7143_v55, %v7146_v45  ;;  %v4330_v42 = vsel %vm8723_vm14, 0, %v8722_v7  ;;  %v4202_v23 = vmul.f32 -0.00019511016, %v14229_v34  ;;  %vm6987_vm11 = vcmp.eq.s32.totalorder %v6985_v27, 0 }
 0x517   : > { %v4481_v63 = vsel %vm4479_vm15, %v4480_v25, %v4478_v13  ;;  %v7148_v1 = vsel %vm4054_vm13, nan, %v7147_v41  ;;  %v3904_v18 = vxor.u32 2147483648, %v14245_v11  ;;  %vm6990_vm4 = vcmp.eq.s32.totalorder %v6985_v27, 2 }
 0x518   : > { %v4482_v33 = vclz %v4481_v63  ;;  %7663 = vrot.lane.b32.xlu1 %v7148_v1, %s9076_s13  ;;  %vm6986_vm0 = vcmp.lt.s32.totalorder %v6985_v27, 2  ;;  %v6992_v16 = vsel %vm6990_vm4, %v3907_v49, %v14245_v11  ;;  %v4335_v36 = vsub.s32 4294967266, %v4330_v42  ;;  %v15742_v27 = vld [vmem:[#allocation43_spill] sm:$0xff]  ;;  %v8003_v1 = vld [vmem:[%s14804_s3 + $0x70] sm:$0xff] }
 0x519   : > { %v6989_v6 = vsel %vm6987_vm11, %v14233_v38, %v3904_v18  ;;  %vm3899_vm3 = vweird.f32 %v15736_v15  ;;  %vm3596_vm14 = vcmp.eq.s32.totalorder %v14153_v10, 2  ;;  %vm3592_vm9 = vcmp.lt.s32.totalorder %v14153_v10, 2 }
 0x51a   : > { %v8725_v35 = vadd.s32 4294967294, %v4482_v33  ;;  %v6993_v12 = vsel %vm6986_vm0, %v6989_v6, %v6992_v16  ;;  %v3598_v17 = vsel %vm3596_vm14, %v3597_v60, %v13881_v51  ;;  %v4203_v2 = vadd.f32 0.008332121, %v4202_v23 }
 0x51b   : > { %v6994_v7 = vsel %vm3899_vm3, nan, %v6993_v12  ;;  %v4470_v43 = vadd.s32 %v14150_v47, %v14140_v9  ;;  %v4336_v5 = vadd.s32 127, %v4335_v36  ;;  %v7704_v25 = vsel %vm7691_vm5, %v15742_v27, %v7656_v20 }
 0x51c   : > { %vm8726_vm2 = vcmp.lt.s32.totalorder %v8725_v35, 0  ;;  %7661 = vrot.lane.b32.xlu2 %v6994_v7, %s9076_s13  ;;  %v3599_v55 = vsel %vm3592_vm9, %v3595_v61, %v3598_v17  ;;  %v4195_v51 = vmul.f32 -0.001358992, %v14229_v34  ;;  %v4331_v60 = vsub.s32 32, %v4330_v42 }
 0x51d   : > { %v4485_v26 = vsel %vm8726_vm2, 0, %v8725_v35  ;;  %vm15743_vm6 = vweird.f32 %v15686_v8  ;;  %v4204_v9 = vmul.f32 %v4203_v2, %v14229_v34  ;;  %v4315_v63 = vadd.s32 %v13923_v21, %v13921_v58  ;;  %v8002_v35 = vld [vmem:[%s14804_s3 + $0x68] sm:$0xff] }
 0x51e   : > { %v4486_v39 = vsub.s32 32, %v4485_v26  ;;  %v4490_v48 = vsub.s32 4294967266, %v4485_v26  ;;  %v4487_v45 = vshll.u32 %v4478_v13, %v4485_v26  ;;  %v14277_v10 = vsel %vm15743_vm6, nan, %v3599_v55  ;;  %v8004_v13 = vld [vmem:[%s14804_s3 + $0x78] sm:$0xff] }
 0x51f   : > { %v4337_v61 = vshll.u32 %v4336_v5, 23  ;;  %v4196_v8 = vadd.f32 0.041655596, %v4195_v51  ;;  %8009 = vmatpush.msra.mxu1 %v8004_v13  ;;  %8820 = vmatpush.msrb.mxu3 %v8004_v13  ;;  %v4333_v23 = vshrl.u32 %v4315_v63, %v4331_v60  ;;  %v4205_v6 = vadd.f32 -0.16666654, %v4204_v9  ;;  %v9032_v9 = vld [vmem:[%s9134_s30 + $0x18] sm:$0xff] }
 0x520   : > { %v4488_v41 = vshrl.u32 %v4470_v43, %v4486_v39  ;;  %v4491_v46 = vadd.s32 127, %v4490_v48  ;;  %7756 = vrot.lane.b32.xlu1 %v7704_v25, %s9077_s14  ;;  %v4332_v16 = vshll.u32 %v14100_v4, %v4330_v42  ;;  %v3745_v2 = vadd.s32 3, %v13726_v30  ;;  %v15744_v43 = vld [vmem:[#allocation3_spill] sm:$0xff] }
 0x521   : > { %8010 = vmatpush.msra.mxu1 %v8003_v1  ;;  %8821 = vmatpush.msrb.mxu3 %v8003_v1  ;;  %v4338_v36 = vor.u32 4788187, %v4337_v61  ;;  %v4197_v20 = vmul.f32 %v4196_v8, %v14229_v34  ;;  %v4206_v17 = vmul.f32 %v4205_v6, %v14229_v34  ;;  %v4190_v39 = vsub.s32 4, %v15744_v43  ;;  %v15747_v8 = vld [vmem:[#allocation52_spill] sm:$0xff] }
 0x522   : > { %v4489_v47 = vor.u32 %v4488_v41, %v4487_v45  ;;  %v4492_v57 = vshll.u32 %v4491_v46, 23  ;;  %v4334_v7 = vor.u32 %v4333_v23, %v4332_v16  ;;  %vm4378_vm15 = vcmp.lt.s32.totalorder %v13884_v0, 0 }
 0x523   : > { %8011 = vmatpush.msra.mxu1 %v8002_v35  ;;  %8822 = vmatpush.msrb.mxu3 %v8002_v35  ;;  %v4339_v48 = vand.u32 2147483647, %v4338_v36  ;;  %vm14299_vm11 = vcmp.le.f32.partialorder %v4376_v31, 0.7853982  ;;  %v4198_v5 = vadd.f32 -0.4999988, %v4197_v20  ;;  %v4191_v31 = vsel %vm4068_vm7, %v4190_v39, %v15744_v43 }
 0x524   : > { %v4493_v33 = vor.u32 4788187, %v4492_v57  ;;  %v4496_v21 = vcvt.s32.f32 %v4489_v47  ;;  %v4341_v27 = vcvt.s32.f32 %v4334_v7  ;;  %v4207_v25 = vadd.f32 1.0, %v4206_v17 }
 0x525   : > { %v4500_v41 = vsub.s32 4, %v14211_v62  ;;  %v3746_v51 = vand.u32 3, %v3745_v2  ;;  %v4199_v63 = vmul.f32 %v4198_v5, %v14229_v34  ;;  %v14322_v61 = vsel %vm14195_vm1, 0, %v4191_v31  ;;  %v8001_v34 = vld [vmem:[%s14804_s3 + $0x60] sm:$0xff] }
 0x526   : > { %v4494_v58 = vand.u32 2147483647, %v4493_v33  ;;  %v4342_v45 = vmul.f32 %v4341_v27, %v4339_v48  ;;  %v14325_v13 = vmul.f32 %v4207_v25, %v14207_v14  ;;  %vm4223_vm7 = vcmp.lt.s32.totalorder %v15747_v8, 0  ;;  %8012 = vmatpush.msra.mxu1 %v8001_v34  ;;  %8823 = vmatpush.msrb.mxu3 %v8001_v34  ;;  %v15748_v48 = vld [vmem:[#allocation18_spill] sm:$0xff] }
 0x527   : > { %v4501_v35 = vsel %vm4378_vm15, %v4500_v41, %v14211_v62  ;;  %vm3748_vm4 = vcmp.eq.s32.totalorder %v3746_v51, 0  ;;  %vm3751_vm1 = vcmp.eq.s32.totalorder %v3746_v51, 2  ;;  %v7293_v14 = vand.u32 3, %v14322_v61  ;;  %v7999_v62 = vld [vmem:[%s14804_s3 + $0x50] sm:$0xff] }
 0x528   : > { %v4497_v12 = vmul.f32 %v4496_v21, %v4494_v58  ;;  %v4343_v23 = vxor.u32 2147483648, %v4342_v45  ;;  %v14334_v58 = vadd.f32 1.0, %v4199_v63  ;;  %v8000_v21 = vld [vmem:[%s14804_s3 + $0x58] sm:$0xff]  ;;  %vm3747_vm0 = vcmp.lt.s32.totalorder %v3746_v51, 2  ;;  %v7995_v63 = vld [vmem:[%s14804_s3 + $0x30] sm:$0xff] }
 0x529   : > { %v7739_v46 = vpop.permute.xlu1 %7738  ;;  %v3750_v16 = vsel %vm3748_vm4, %v14127_v32, %v3749_v52  ;;  %v3753_v36 = vsel %vm3751_vm1, %v3752_v24, %v13766_v3  ;;  %v4214_v7 = vxor.u32 2147483648, %v14325_v13  ;;  %8013 = vmatpush.msra.mxu1 %v8000_v21  ;;  %8824 = vmatpush.msrb.mxu3 %v8000_v21  ;;  %v14354_v2 = vsel %vm14299_vm11, 0, %v4501_v35  ;;  %v7998_v52 = vld [vmem:[%s14804_s3 + $0x48] sm:$0xff]  ;;  %v7993_v21 = vld [vmem:[%s14804_s3 + $0x20] sm:$0xff] }
 0x52a   : > { %v4498_v26 = vxor.u32 2147483648, %v4497_v12  ;;  %v7796_v47 = vsel %vm7792_vm12, %v9032_v9, %v7739_v46  ;;  %v3754_v17 = vsel %vm3747_vm0, %v3750_v16, %v3753_v36  ;;  %v3900_v3 = vadd.s32 3, %v14215_v56  ;;  %v7994_v35 = vld [vmem:[%s14804_s3 + $0x28] sm:$0xff] }
 0x52b   : > { %8791 = vmatmul.msk.f32.gmra.mxu0 %vm7827_vm10, %v7796_v47  ;;  %v14362_v32 = vsel %vm3744_vm8, nan, %v3754_v17  ;;  %v4217_v4 = vxor.u32 2147483648, %v14334_v58  ;;  %8014 = vmatpush.msra.mxu1 %v7999_v62  ;;  %vm7295_vm14 = vcmp.eq.s32.totalorder %v7293_v14, 0  ;;  %v15749_v5 = vand.u32 2147483647, %v15747_v8  ;;  %v7996_v47 = vld [vmem:[%s14804_s3 + $0x38] sm:$0xff] }
 0x52c   : > { %v4499_v42 = vsel %vm4378_vm15, %v4498_v26, %v4497_v12  ;;  %v4344_v26 = vsel %vm4223_vm7, %v4343_v23, %v4342_v45  ;;  %8825 = vmatpush.msrb.mxu3 %v7999_v62  ;;  %v7297_v25 = vsel %vm7295_vm14, %v14334_v58, %v4214_v7  ;;  %v7601_v31 = vand.u32 3, %v14354_v2 }
 0x52d   : > { %v14308_v30 = vsel %vm14299_vm11, %v13884_v0, %v4499_v42  ;;  %vm14370_vm2 = vcmp.le.f32.partialorder %v15749_v5, 0.7853982  ;;  %8015 = vmatpush.msra.mxu1 %v7998_v52  ;;  %vm7298_vm8 = vcmp.eq.s32.totalorder %v7293_v14, 2  ;;  %v3901_v45 = vand.u32 3, %v3900_v3 }
 0x52e   : > { %v4504_v55 = vmul.f32 %v14308_v30, %v14308_v30  ;;  %8826 = vmatpush.msrb.mxu3 %v7998_v52  ;;  %vm7294_vm9 = vcmp.lt.s32.totalorder %v7293_v14, 2  ;;  %v7300_v51 = vsel %vm7298_vm8, %v4217_v4, %v14325_v13  ;;  %vm4519_vm6 = vweird.f32 %v13884_v0 }
 0x52f   : > { %v7301_v9 = vsel %vm7294_vm9, %v7297_v25, %v7300_v51  ;;  %vm4209_vm15 = vweird.f32 %v15733_v29  ;;  %vm7602_vm11 = vcmp.lt.s32.totalorder %v7601_v31, 2  ;;  %vm7603_vm4 = vcmp.eq.s32.totalorder %v7601_v31, 0  ;;  %v7990_v25 = vld [vmem:[%s14804_s3 + $0x8] sm:$0xff] }
 0x530   : > { %v4512_v60 = vmul.f32 -0.00019511016, %v4504_v55  ;;  %v4505_v57 = vmul.f32 -0.001358992, %v4504_v55  ;;  %vm7606_vm1 = vcmp.eq.s32.totalorder %v7601_v31, 2  ;;  %vm3903_vm0 = vcmp.eq.s32.totalorder %v3901_v45, 0 }
 0x531   : > { %v7302_v23 = vsel %vm4209_vm15, nan, %v7301_v9  ;;  %vm3906_vm14 = vcmp.eq.s32.totalorder %v3901_v45, 2  ;;  %vm3902_vm8 = vcmp.lt.s32.totalorder %v3901_v45, 2  ;;  %v4345_v3 = vsub.s32 4, %v14041_v28  ;;  %v15752_v45 = vld [vmem:[#allocation7_spill] sm:$0xff]  ;;  %v7989_v9 = vld [vmem:[%s14804_s3] sm:$0xff] }
 0x532   : > { %v4513_v1 = vadd.f32 0.008332121, %v4512_v60  ;;  %v4506_v33 = vadd.f32 0.041655596, %v4505_v57  ;;  %v7997_v60 = vld [vmem:[%s14804_s3 + $0x40] sm:$0xff] }
 0x533   : > { %8016 = vmatpush.msra.mxu1 %v7997_v60  ;;  %8827 = vmatpush.msrb.mxu3 %v7997_v60  ;;  %v4346_v40 = vsel %vm4223_vm7, %v4345_v3, %v14041_v28  ;;  %v9034_v60 = vld [vmem:[%s9134_s30 + $0x28] sm:$0xff] }
 0x534   : > { %v4514_v19 = vmul.f32 %v4513_v1, %v4504_v55  ;;  %v4507_v6 = vmul.f32 %v4506_v33, %v4504_v55  ;;  %v7652_v43 = vpop.permute.xlu1 %7651  ;;  %v4348_v5 = vsel %vm14370_vm2, 0, %v4346_v40  ;;  %v7798_v56 = vsel %vm7792_vm12, %v9034_v60, %v14231_v50 }
 0x535   : > { %v7702_v42 = vsel %vm7691_vm5, %v15748_v48, %v7652_v43  ;;  %8017 = vmatpush.msra.mxu1 %v7996_v47  ;;  %8828 = vmatpush.msrb.mxu3 %v7996_v47  ;;  %v7991_v48 = vld [vmem:[%s14804_s3 + $0x10] sm:$0xff] }
 0x536   : > { %v4515_v12 = vadd.f32 -0.16666654, %v4514_v19  ;;  %v4508_v20 = vadd.f32 -0.4999988, %v4507_v6  ;;  %7752 = vrot.lane.b32.xlu0 %v7702_v42, %s9077_s14  ;;  %v3905_v19 = vsel %vm3903_vm0, %v14233_v38, %v3904_v18  ;;  %v3908_v6 = vsel %vm3906_vm14, %v3907_v49, %v14245_v11 }
 0x537   : > { %8018 = vmatpush.msra.mxu1 %v7995_v63  ;;  %v3909_v62 = vsel %vm3902_vm8, %v3905_v19, %v3908_v6  ;;  %8829 = vmatpush.msrb.mxu3 %v7995_v63  ;;  %v4055_v38 = vadd.s32 3, %v14185_v44  ;;  %vm4364_vm0 = vweird.f32 %v15747_v8 }
 0x538   : > { %v4516_v24 = vmul.f32 %v4515_v12, %v4504_v55  ;;  %v4509_v39 = vmul.f32 %v4508_v20, %v4504_v55  ;;  %v14382_v55 = vsel %vm14370_vm2, %v15747_v8, %v4344_v26  ;;  %v14435_v18 = vsel %vm3899_vm3, nan, %v3909_v62  ;;  %v9037_v8 = vld [vmem:[%s9134_s30 + $0x40] sm:$0xff] }
 0x539   : > { %8019 = vmatpush.msra.mxu1 %v7994_v35  ;;  %8830 = vmatpush.msrb.mxu3 %v7994_v35  ;;  %v4056_v49 = vand.u32 3, %v4055_v38  ;;  %v4210_v26 = vadd.s32 3, %v14322_v61  ;;  %v4520_v62 = vadd.s32 3, %v14354_v2 }
 0x53a   : > { %v4517_v54 = vadd.f32 1.0, %v4516_v24  ;;  %v14374_v27 = vadd.f32 1.0, %v4509_v39  ;;  %v7992_v39 = vld [vmem:[%s14804_s3 + $0x18] sm:$0xff] }
 0x53b   : > { %8020 = vmatpush.msra.mxu1 %v7993_v21  ;;  %8831 = vmatpush.msrb.mxu3 %v7993_v21  ;;  %vm4061_vm9 = vcmp.eq.s32.totalorder %v4056_v49, 2 }
 0x53c   : > { %v14386_v41 = vmul.f32 %v4517_v54, %v14308_v30  ;;  %v4527_v46 = vxor.u32 2147483648, %v14374_v27  ;;  %v14400_v30 = vmul.f32 %v14382_v55, %v14382_v55  ;;  %v4063_v12 = vsel %vm4061_vm9, %v4062_v53, %v14223_v37  ;;  %v9033_v53 = vld [vmem:[%s9134_s30 + $0x20] sm:$0xff] }
 0x53d   : > { %v4211_v37 = vand.u32 3, %v4210_v26  ;;  %8021 = vmatpush.msra.mxu1 %v7992_v39  ;;  %8832 = vmatpush.msrb.mxu3 %v7992_v39 }
 0x53e   : > { %v4524_v57 = vxor.u32 2147483648, %v14386_v41  ;;  %v7608_v33 = vsel %vm7606_vm1, %v4527_v46, %v14386_v41  ;;  %7665 = vrot.lane.b32.xlu0 %v7302_v23, %s9076_s13  ;;  %v4357_v16 = vmul.f32 -0.00019511016, %v14400_v30  ;;  %v4350_v61 = vmul.f32 -0.001358992, %v14400_v30 }
 0x53f   : > { %8022 = vmatpush.msra.mxu1 %v7991_v48  ;;  %8833 = vmatpush.msrb.mxu3 %v7991_v48  ;;  %vm4213_vm3 = vcmp.eq.s32.totalorder %v4211_v37, 0  ;;  %vm4212_vm7 = vcmp.lt.s32.totalorder %v4211_v37, 2 }
 0x540   : > { %v7605_v1 = vsel %vm7603_vm4, %v14374_v27, %v4524_v57  ;;  %v4358_v11 = vadd.f32 0.008332121, %v4357_v16  ;;  %vm4057_vm4 = vcmp.lt.s32.totalorder %v4056_v49, 2  ;;  %v4351_v42 = vadd.f32 0.041655596, %v4350_v61 }
 0x541   : > { %v7609_v34 = vsel %vm7602_vm11, %v7605_v1, %v7608_v33  ;;  %vm4058_vm11 = vcmp.eq.s32.totalorder %v4056_v49, 0  ;;  %8023 = vmatpush.msra.mxu1 %v7990_v25  ;;  %8834 = vmatpush.msrb.mxu3 %v7990_v25  ;;  %v7447_v1 = vand.u32 3, %v4348_v5  ;;  %v9039_v25 = vld [vmem:[%s9134_s30 + $0x50] sm:$0xff] }
 0x542   : > { %v7610_v14 = vsel %vm4519_vm6, nan, %v7609_v34  ;;  %v4359_v36 = vmul.f32 %v4358_v11, %v14400_v30  ;;  %v4060_v15 = vsel %vm4058_vm11, %v14200_v59, %v4059_v22  ;;  %v9036_v11 = vld [vmem:[%s9134_s30 + $0x38] sm:$0xff] }
 0x543   : > { %7669 = vrot.lane.b32.xlu1 %v7610_v14, %s9076_s13  ;;  %v4064_v20 = vsel %vm4057_vm4, %v4060_v15, %v4063_v12  ;;  %8024 = vmatpush.msra.mxu1 %v7989_v9  ;;  %vm7449_vm2 = vcmp.eq.s32.totalorder %v7447_v1, 0  ;;  %vm7448_vm1 = vcmp.lt.s32.totalorder %v7447_v1, 2  ;;  %v14509_v12 = vld [vmem:[%s14803_s2] ss:$0 sm:$0xff]  ;;  %v4521_v15 = vand.u32 3, %v4520_v62 }
 0x544   : > { %v4360_v44 = vadd.f32 -0.16666654, %v4359_v36  ;;  %v14447_v17 = vsel %vm4054_vm13, nan, %v4064_v20  ;;  %vm4216_vm13 = vcmp.eq.s32.totalorder %v4211_v37, 2  ;;  %8835 = vmatpush.msrb.mxu3 %v7989_v9  ;;  %v14628_v62 = vld [vmem:[%s14806_s5 + $0x20] sm:$0xff] }
 0x545   : > { %v4218_v31 = vsel %vm4216_vm13, %v4217_v4, %v14325_v13  ;;  %v4215_v4 = vsel %vm4213_vm3, %v14334_v58, %v4214_v7  ;;  %v4365_v13 = vadd.s32 3, %v4348_v5  ;;  %v9035_v7 = vld [vmem:[%s9134_s30 + $0x30] sm:$0xff]  ;;  %vm4523_vm11 = vcmp.eq.s32.totalorder %v4521_v15, 0 }
 0x546   : > { %v4361_v43 = vmul.f32 %v4360_v44, %v14400_v30  ;;  %v4219_v50 = vsel %vm4212_vm7, %v4215_v4, %v4218_v31  ;;  %vm4526_vm4 = vcmp.eq.s32.totalorder %v4521_v15, 2  ;;  %vm4522_vm13 = vcmp.lt.s32.totalorder %v4521_v15, 2 }
 0x547   : > { %v14490_v33 = vsel %vm4209_vm15, nan, %v4219_v50  ;;  %vm7452_vm15 = vcmp.eq.s32.totalorder %v7447_v1, 2  ;;  %v4528_v3 = vsel %vm4526_vm4, %v4527_v46, %v14386_v41  ;;  %v9038_v46 = vld [vmem:[%s9134_s30 + $0x48] sm:$0xff]  ;;  %v14554_v50 = vld [vmem:[%s14806_s5 + $0x78] sm:$0xff] }
 0x548   : > { %v4362_v59 = vadd.f32 1.0, %v4361_v43  ;;  %v9040_v1 = vld [vmem:[%s9134_s30 + $0x58] sm:$0xff]  ;;  %8126 = vmatpush.msra.mxu2 %v14554_v50 }
 0x54a   : > { %v4363_v28 = vmul.f32 %v4362_v59, %v14382_v55  ;;  %v4352_v55 = vmul.f32 %v4351_v42, %v14400_v30 }
 0x54c   : > { %v4353_v47 = vadd.f32 -0.4999988, %v4352_v55  ;;  %v4369_v34 = vxor.u32 2147483648, %v4363_v28 }
 0x54e   : > { %v4354_v35 = vmul.f32 %v4353_v47, %v14400_v30  ;;  %v4366_v30 = vand.u32 3, %v4365_v13  ;;  %v14586_v13 = vld [vmem:[%s14806_s5 + $0x50] sm:$0xff] }
 0x550   : > { %v4355_v58 = vadd.f32 1.0, %v4354_v35  ;;  %vm4371_vm14 = vcmp.eq.s32.totalorder %v4366_v30, 2  ;;  %vm4368_vm8 = vcmp.eq.s32.totalorder %v4366_v30, 0  ;;  %vm4367_vm9 = vcmp.lt.s32.totalorder %v4366_v30, 2  ;;  %v14574_v35 = vld [vmem:[%s14806_s5 + $0x60] sm:$0xff]  ;;  %v14611_v30 = vld [vmem:[%s14806_s5 + $0x38] sm:$0xff] }
 0x551   : > { %v7741_v52 = vpop.permute.xlu0 %7740 }
 0x552   : > { %v7797_v24 = vsel %vm7792_vm12, %v9033_v53, %v7741_v52  ;;  %v4372_v29 = vxor.u32 2147483648, %v4355_v58  ;;  %v7451_v6 = vsel %vm7449_vm2, %v4355_v58, %v4369_v34  ;;  %v4370_v2 = vsel %vm4368_vm8, %v4355_v58, %v4369_v34  ;;  %v14580_v34 = vld [vmem:[%s14806_s5 + $0x58] sm:$0xff]  ;;  %v9041_v58 = vld [vmem:[%s9134_s30 + $0x60] sm:$0xff] }
 0x553   : > { %8792 = vmatmul.msk.f32.gmra.mxu0 %vm7827_vm10, %v7797_v24  ;;  %v4525_v52 = vsel %vm4523_vm11, %v14374_v27, %v4524_v57 }
 0x554   : > { %v7745_v22 = vpop.permute.xlu1 %7744  ;;  %v4373_v38 = vsel %vm4371_vm14, %v4372_v29, %v4363_v28  ;;  %v4529_v24 = vsel %vm4522_vm13, %v4525_v52, %v4528_v3  ;;  %v9043_v52 = vld [vmem:[%s9134_s30 + $0x70] sm:$0xff] }
 0x555   : > { %v7799_v19 = vsel %vm7792_vm12, %v9035_v7, %v7745_v22  ;;  %v4374_v44 = vsel %vm4367_vm9, %v4370_v2, %v4373_v38  ;;  %v4530_v59 = vsel %vm4519_vm6, nan, %v4529_v24  ;;  %v8107_v24 = vld [vmem:[%s14806_s5 + $0x8] sm:$0xff]  ;;  %vm8583_vm6 = vcmask 23552  }
 0x556   : > { %v14514_v20 = vsel %vm4364_vm0, nan, %v4374_v44  ;;  %v14645_v44 = vld [vmem:[%s14806_s5 + $0x10] sm:$0xff] }
 0x559   : > { %v7654_v54 = vpop.permute.xlu0 %7653 }
 0x55a   : > { %v7703_v51 = vsel %vm7691_vm5, %v15752_v45, %v7654_v54 }
 0x55b   : > { %8793 = vmatmul.msk.f32.gmra.mxu0 %vm7827_vm10, %v7798_v56  ;;  %7754 = vrot.lane.b32.xlu2 %v7703_v51, %s9077_s14 }
 0x55c   : > { %v7658_v63 = vpop.permute.xlu1 %7657 }
 0x55d   : > { %v7705_v23 = vsel %vm7691_vm5, %v14277_v10, %v7658_v63  ;;  %v7454_v10 = vsel %vm7452_vm15, %v4372_v29, %v4363_v28  ;;  %v7749_v36 = vpop.permute.xlu2 %7748  ;;  %v14559_v63 = vld [vmem:[%s14806_s5 + $0x70] sm:$0xff] }
 0x55e   : > { %7758 = vrot.lane.b32.xlu0 %v7705_v23, %s9077_s14  ;;  %v7455_v14 = vsel %vm7448_vm1, %v7451_v6, %v7454_v10  ;;  %v7801_v37 = vsel %vm7792_vm12, %v9037_v8, %v7749_v36  ;;  %v14568_v23 = vld [vmem:[%s14806_s5 + $0x68] sm:$0xff]  ;;  %8127 = vmatpush.msra.mxu2 %v14559_v63  ;;  %v14601_v6 = vld [vmem:[%s14806_s5 + $0x40] sm:$0xff] }
 0x55f   : > { %v7456_v21 = vsel %vm4364_vm0, nan, %v7455_v14  ;;  %v14616_v14 = vld [vmem:[%s14806_s5 + $0x30] sm:$0xff]  ;;  %v9042_v36 = vld [vmem:[%s9134_s30 + $0x68] sm:$0xff]  ;;  %v8106_v8 = vld [vmem:[%s14806_s5] sm:$0xff] }
 0x560   : > { %8128 = vmatpush.msra.mxu2 %v14568_v23 }
 0x562   : > { %8129 = vmatpush.msra.mxu2 %v14574_v35 }
 0x563   : > { %8794 = vmatmul.msk.f32.gmra.mxu0 %vm7827_vm10, %v7799_v19  ;;  %7667 = vrot.lane.b32.xlu2 %v7456_v21, %s9076_s13  ;;  %v14595_v19 = vld [vmem:[%s14806_s5 + $0x48] sm:$0xff]  ;;  %s14727_s13 = scalar_lea.vmem %s14808_s7, %s8665_s27 }
 0x564   : > { %8130 = vmatpush.msra.mxu2 %v14580_v34  ;;  %v14622_v21 = vld [vmem:[%s14806_s5 + $0x28] sm:$0xff] }
 0x566   : > { %v7747_v16 = vpop.permute.xlu0 %7746  ;;  %8131 = vmatpush.msra.mxu2 %v14586_v13 }
 0x567   : > { %v7800_v49 = vsel %vm7792_vm12, %v9036_v11, %v7747_v16  ;;  %v14634_v16 = vld [vmem:[%s14806_s5 + $0x18] sm:$0xff] }
 0x568   : > { %8132 = vmatpush.msra.mxu2 %v14595_v19 }
 0x56a   : > { %8133 = vmatpush.msra.mxu2 %v14601_v6 }
 0x56b   : > { %8795 = vmatmul.msk.f32.gmra.mxu0 %vm7827_vm10, %v7800_v49 }
 0x56c   : > { %8134 = vmatpush.msra.mxu2 %v14611_v30 }
 0x56e   : > { %v7909_v26 = vpop.f32.mrf.mxu0  ;;  %8135 = vmatpush.msra.mxu2 %v14616_v14 }
 0x56f   : > { %v7910_v43 = vadd.f32 %v14509_v12, %v7909_v26 }
 0x570   : > { %8136 = vmatpush.msra.mxu2 %v14622_v21 }
 0x571   : > { %v7969_v53 = vmax.f32 %v7910_v43, 0.0 }
 0x572   : > { %8137 = vmatpush.msra.mxu2 %v14628_v62 }
 0x573   : > { %8025 = vmatmul.f32.vlgmr.msra.gmra.mxu1 %v7969_v53  ;;  %8796 = vmatmul.msk.f32.gmra.mxu0 %vm7827_vm10, %v7801_v37 }
 0x574   : > { %v7751_v57 = vpop.permute.xlu1 %7750  ;;  %8138 = vmatpush.msra.mxu2 %v14634_v16 }
 0x575   : > { %v7802_v61 = vsel %vm7792_vm12, %v9038_v46, %v7751_v57 }
 0x576   : > { %v7662_v22 = vpop.permute.xlu2 %7661  ;;  %8139 = vmatpush.msra.mxu2 %v14645_v44 }
 0x577   : > { %v7707_v40 = vsel %vm7691_vm5, %v14435_v18, %v7662_v22 }
 0x578   : > { %7762 = vrot.lane.b32.xlu0 %v7707_v40, %s9077_s14  ;;  %8140 = vmatpush.msra.mxu2 %v8107_v24 }
 0x57a   : > { %8141 = vmatpush.msra.mxu2 %v8106_v8 }
 0x57b   : > { %v7660_v27 = vpop.permute.xlu0 %7659  ;;  %8797 = vmatmul.msk.f32.gmra.mxu0 %vm7827_vm10, %v7802_v61 }
 0x57c   : > { %v7706_v41 = vsel %vm7691_vm5, %v14362_v32, %v7660_v27 }
 0x57d   : > { %7760 = vrot.lane.b32.xlu2 %v7706_v41, %s9077_s14  ;;  %v9044_v41 = vld [vmem:[%s9134_s30 + $0x78] sm:$0xff] }
 0x57f   : > { %v7912_v0 = vpop.f32.mrf.mxu0 }
 0x580   : > { %v7913_v39 = vadd.f32 %v14509_v12, %v7912_v0  ;;  %v14666_v0 = vld [vmem:[%s14805_s4] ss:$0 sm:$0xff] }
 0x582   : > { %v7970_v48 = vmax.f32 %v7913_v39, 0.0 }
 0x584   : > { %8028 = vmatmul.f32.gmra.mxu1 %v7970_v48 }
 0x587   : > { %v7915_v18 = vpop.f32.mrf.mxu0 }
 0x588   : > { %v7916_v42 = vadd.f32 %v14509_v12, %v7915_v18 }
 0x58a   : > { %v7664_v5 = vpop.permute.xlu1 %7663  ;;  %v7971_v28 = vmax.f32 %v7916_v42, 0.0 }
 0x58b   : > { %v7708_v32 = vsel %vm7691_vm5, %v14447_v17, %v7664_v5 }
 0x58c   : > { %7764 = vrot.lane.b32.xlu1 %v7708_v32, %s9077_s14  ;;  %8031 = vmatmul.f32.gmra.mxu1 %v7971_v28 }
 0x592   : > { %v7757_v45 = vpop.permute.xlu1 %7756 }
 0x593   : > { %v7805_v7 = vsel %vm7792_vm12, %v9041_v58, %v7757_v45  ;;  %v9045_v45 = vld [vmem:[%s9134_s30 + $0x80] sm:$0xff] }
 0x5a8   : > { %v7753_v54 = vpop.permute.xlu0 %7752  ;;  %v7918_v51 = vpop.f32.mrf.mxu0 }
 0x5a9   : > { %v7803_v31 = vsel %vm7792_vm12, %v9039_v25, %v7753_v54  ;;  %v7919_v60 = vadd.f32 %v14509_v12, %v7918_v51 }
 0x5aa   : > { %8798 = vmatmul.msk.f32.gmra.mxu0 %vm7827_vm10, %v7803_v31 }
 0x5ab   : > { %v7972_v56 = vmax.f32 %v7919_v60, 0.0 }
 0x5ad   : > { %8034 = vmatmul.f32.gmra.mxu1 %v7972_v56 }
 0x5b0   : > { %v7666_v55 = vpop.permute.xlu0 %7665 }
 0x5b1   : > { %v7709_v17 = vsel %vm7691_vm5, %v14490_v33, %v7666_v55 }
 0x5b2   : > { %7766 = vrot.lane.b32.xlu2 %v7709_v17, %s9077_s14 }
 0x5b5   : > { %v7670_v9 = vpop.permute.xlu1 %7669  ;;  %v7755_v47 = vpop.permute.xlu2 %7754 }
 0x5b6   : > { %v7711_v4 = vsel %vm7691_vm5, %v4530_v59, %v7670_v9  ;;  %v7804_v33 = vsel %vm7792_vm12, %v9040_v1, %v7755_v47 }
 0x5b7   : > { %7770 = vrot.lane.b32.xlu1 %v7711_v4, %s9077_s14  ;;  %8799 = vmatmul.msk.f32.gmra.mxu0 %vm7827_vm10, %v7804_v33 }
 0x5bd   : > { %v7668_v29 = vpop.permute.xlu2 %7667 }
 0x5be   : > { %v7710_v10 = vsel %vm7691_vm5, %v14514_v20, %v7668_v29  ;;  %v9047_v29 = vld [vmem:[%s9134_s30 + $0x90] sm:$0xff] }
 0x5bf   : > { %8800 = vmatmul.msk.f32.gmra.mxu0 %vm7827_vm10, %v7805_v7  ;;  %7768 = vrot.lane.b32.xlu0 %v7710_v10, %s9077_s14 }
 0x5d0   : > { %v7921_v38 = vpop.f32.mrf.mxu0  ;;  %v7759_v49 = vpop.permute.xlu0 %7758 }
 0x5d1   : > { %v7922_v11 = vadd.f32 %v14509_v12, %v7921_v38  ;;  %v7806_v15 = vsel %vm7792_vm12, %v9042_v36, %v7759_v49 }
 0x5d2   : > { %8801 = vmatmul.msk.f32.gmra.mxu0 %vm7827_vm10, %v7806_v15 }
 0x5d3   : > { %v7973_v2 = vmax.f32 %v7922_v11, 0.0 }
 0x5d5   : > { %8037 = vmatmul.f32.gmra.mxu1 %v7973_v2 }
 0x5d7   : > { %v7761_v20 = vpop.permute.xlu2 %7760 }
 0x5d8   : > { %v7924_v26 = vpop.f32.mrf.mxu0  ;;  %v7807_v3 = vsel %vm7792_vm12, %v9043_v52, %v7761_v20 }
 0x5d9   : > { %v7925_v43 = vadd.f32 %v14509_v12, %v7924_v26 }
 0x5da   : > { %8802 = vmatmul.msk.f32.gmra.mxu0 %vm7827_vm10, %v7807_v3 }
 0x5db   : > { %v7974_v53 = vmax.f32 %v7925_v43, 0.0 }
 0x5dd   : > { %8040 = vmatmul.f32.gmra.mxu1 %v7974_v53 }
 0x5e0   : > { %v7927_v37 = vpop.f32.mrf.mxu0 }
 0x5e1   : > { %v7928_v59 = vadd.f32 %v14509_v12, %v7927_v37 }
 0x5e3   : > { %v7975_v22 = vmax.f32 %v7928_v59, 0.0 }
 0x5e5   : > { %8043 = vmatmul.f32.gmra.mxu1 %v7975_v22 }
 0x5e8   : > { %v7930_v40 = vpop.f32.mrf.mxu0 }
 0x5e9   : > { %v7931_v27 = vadd.f32 %v14509_v12, %v7930_v40 }
 0x5ea   : > { %v7763_v57 = vpop.permute.xlu0 %7762 }
 0x5eb   : > { %v7808_v46 = vsel %vm7792_vm12, %v9044_v41, %v7763_v57  ;;  %v7976_v61 = vmax.f32 %v7931_v27, 0.0 }
 0x5ec   : > { %8803 = vmatmul.msk.f32.gmra.mxu0 %vm7827_vm10, %v7808_v46  ;;  %v14713_v46 = vld [vmem:[%s14807_s6] ss:$0 sm:$0xff] }
 0x5ed   : > { %8046 = vmatmul.f32.gmra.mxu1 %v7976_v61 }
 0x5f0   : > { %v8026_v39 = vpop.f32.mrf.mxu1  ;;  %v7933_v48 = vpop.f32.mrf.mxu0 }
 0x5f1   : > { %v8027_v18 = vadd.f32 %v14666_v0, %v8026_v39  ;;  %v7934_v42 = vadd.f32 %v14509_v12, %v7933_v48 }
 0x5f3   : > { %v8086_v5 = vmax.f32 %v8027_v18, 0.0  ;;  %v7977_v28 = vmax.f32 %v7934_v42, 0.0 }
 0x5f5   : > { %8142 = vmatmul.f32.vlgmr.msra.gmra.mxu2 %v8086_v5  ;;  %8049 = vmatmul.f32.gmra.mxu1 %v7977_v28 }
 0x5f8   : > { %v7936_v32 = vpop.f32.mrf.mxu0 }
 0x5f9   : > { %v7937_v54 = vadd.f32 %v14509_v12, %v7936_v32 }
 0x5fb   : > { %v7978_v25 = vmax.f32 %v7937_v54, 0.0 }
 0x5fd   : > { %8052 = vmatmul.f32.gmra.mxu1 %v7978_v25 }
 0x5fe   : > { %v7765_v31 = vpop.permute.xlu1 %7764 }
 0x5ff   : > { %v7809_v51 = vsel %vm7792_vm12, %v9045_v45, %v7765_v31 }
 0x600   : > { %8804 = vmatmul.msk.f32.vlgmr.msra.gmra.mxu3 %vm7827_vm10, %v7809_v51 }
 0x601   : > { %v8029_v60 = vpop.f32.mrf.mxu1  ;;  %8836 = vmatpush.msra.mxu3 %v14554_v50  ;;  %v9046_v50 = vld [vmem:[%s9134_s30 + $0x88] sm:$0xff] }
 0x602   : > { %v8030_v56 = vadd.f32 %v14666_v0, %v8029_v60 }
 0x603   : > { %8837 = vmatpush.msra.mxu3 %v14559_v63 }
 0x604   : > { %v8087_v55 = vmax.f32 %v8030_v56, 0.0 }
 0x605   : > { %8838 = vmatpush.msra.mxu3 %v14568_v23 }
 0x606   : > { %8145 = vmatmul.f32.gmra.mxu2 %v8087_v55 }
 0x607   : > { %8839 = vmatpush.msra.mxu3 %v14574_v35 }
 0x609   : > { %v8032_v17 = vpop.f32.mrf.mxu1  ;;  %8840 = vmatpush.msra.mxu3 %v14580_v34 }
 0x60a   : > { %v8033_v9 = vadd.f32 %v14666_v0, %v8032_v17 }
 0x60b   : > { %8841 = vmatpush.msra.mxu3 %v14586_v13 }
 0x60c   : > { %v8088_v4 = vmax.f32 %v8033_v9, 0.0  ;;  %v7767_v47 = vpop.permute.xlu2 %7766 }
 0x60d   : > { %8842 = vmatpush.msra.mxu3 %v14595_v19  ;;  %v7810_v63 = vsel %vm7792_vm12, %v9046_v50, %v7767_v47 }
 0x60e   : > { %8148 = vmatmul.f32.gmra.mxu2 %v8088_v4  ;;  %8805 = vmatmul.msk.f32.gmra.mxu3 %vm7827_vm10, %v7810_v63 }
 0x60f   : > { %8843 = vmatpush.msra.mxu3 %v14601_v6 }
 0x611   : > { %8844 = vmatpush.msra.mxu3 %v14611_v30 }
 0x613   : > { %8845 = vmatpush.msra.mxu3 %v14616_v14 }
 0x615   : > { %8846 = vmatpush.msra.mxu3 %v14622_v21 }
 0x617   : > { %8847 = vmatpush.msra.mxu3 %v14628_v62  ;;  %v9048_v62 = vld [vmem:[%s9134_s30 + $0x98] sm:$0xff] }
 0x619   : > { %8848 = vmatpush.msra.mxu3 %v14634_v16 }
 0x61b   : > { %8849 = vmatpush.msra.mxu3 %v14645_v44 }
 0x61d   : > { %8850 = vmatpush.msra.mxu3 %v8107_v24 }
 0x61f   : > { %8851 = vmatpush.msra.mxu3 %v8106_v8 }
 0x627   : > { %v7939_v1 = vpop.f32.mrf.mxu0 }
 0x628   : > { %v7940_v33 = vadd.f32 %v14509_v12, %v7939_v1 }
 0x629   : > { %v7771_v30 = vpop.permute.xlu1 %7770 }
 0x62a   : > { %v7979_v23 = vmax.f32 %v7940_v33, 0.0  ;;  %v8035_v35 = vpop.f32.mrf.mxu1  ;;  %v7812_v16 = vsel %vm7792_vm12, %v9048_v62, %v7771_v30 }
 0x62b   : > { %v8036_v34 = vadd.f32 %v14666_v0, %v8035_v35 }
 0x62c   : > { %8055 = vmatmul.f32.gmra.mxu1 %v7979_v23 }
 0x62d   : > { %v8089_v13 = vmax.f32 %v8036_v34, 0.0 }
 0x62f   : > { %8151 = vmatmul.f32.gmra.mxu2 %v8089_v13 }
 0x631   : > { %v7769_v7 = vpop.permute.xlu0 %7768 }
 0x632   : > { %v7811_v6 = vsel %vm7792_vm12, %v9047_v29, %v7769_v7 }
 0x633   : > { %8806 = vmatmul.msk.f32.gmra.mxu3 %vm7827_vm10, %v7811_v6 }
 0x634   : > { %v7942_v58 = vpop.f32.mrf.mxu0 }
 0x635   : > { %v7943_v19 = vadd.f32 %v14509_v12, %v7942_v58 }
 0x637   : > { %v7980_v10 = vmax.f32 %v7943_v19, 0.0 }
 0x639   : > { %8058 = vmatmul.f32.gmra.mxu1 %v7980_v10 }
 0x63b   : > { %8807 = vmatmul.msk.f32.gmra.mxu3 %vm7827_vm10, %v7812_v16 }
 0x63c   : > { %v7945_v14 = vpop.f32.mrf.mxu0 }
 0x63d   : > { %v7946_v21 = vadd.f32 %v14509_v12, %v7945_v14 }
 0x63f   : > { %v7981_v38 = vmax.f32 %v7946_v21, 0.0 }
 0x641   : > { %8061 = vmatmul.f32.gmra.mxu1 %v7981_v38 }
 0x64f   : > { %v7948_v11 = vpop.f32.mrf.mxu0 }
 0x650   : > { %v7949_v49 = vadd.f32 %v14509_v12, %v7948_v11 }
 0x652   : > { %v8038_v36 = vpop.f32.mrf.mxu1  ;;  %v7982_v2 = vmax.f32 %v7949_v49, 0.0 }
 0x653   : > { %v8039_v15 = vadd.f32 %v14666_v0, %v8038_v36 }
 0x654   : > { %8064 = vmatmul.f32.gmra.mxu1 %v7982_v2 }
 0x655   : > { %v8090_v44 = vmax.f32 %v8039_v15, 0.0 }
 0x657   : > { %8154 = vmatmul.f32.gmra.mxu2 %v8090_v44  ;;  %v7951_v20 = vpop.f32.mrf.mxu0 }
 0x658   : > { %v7952_v26 = vadd.f32 %v14509_v12, %v7951_v20 }
 0x65a   : > { %v8041_v43 = vpop.f32.mrf.mxu1  ;;  %v7983_v3 = vmax.f32 %v7952_v26, 0.0 }
 0x65b   : > { %v8042_v52 = vadd.f32 %v14666_v0, %v8041_v43 }
 0x65c   : > { %8067 = vmatmul.f32.gmra.mxu1 %v7983_v3 }
 0x65d   : > { %v8091_v53 = vmax.f32 %v8042_v52, 0.0 }
 0x65f   : > { %8157 = vmatmul.f32.gmra.mxu2 %v8091_v53 }
 0x662   : > { %v8044_v24 = vpop.f32.mrf.mxu1 }
 0x663   : > { %v8045_v8 = vadd.f32 %v14666_v0, %v8044_v24 }
 0x665   : > { %v8092_v37 = vmax.f32 %v8045_v8, 0.0 }
 0x667   : > { %8160 = vmatmul.f32.gmra.mxu2 %v8092_v37 }
 0x669   : > { %v7954_v59 = vpop.f32.mrf.mxu0 }
 0x66a   : > { %v7955_v22 = vadd.f32 %v14509_v12, %v7954_v59  ;;  %v8047_v40 = vpop.f32.mrf.mxu1 }
 0x66b   : > { %v8048_v27 = vadd.f32 %v14666_v0, %v8047_v40 }
 0x66c   : > { %v7984_v57 = vmax.f32 %v7955_v22, 0.0 }
 0x66d   : > { %v8093_v41 = vmax.f32 %v8048_v27, 0.0 }
 0x66e   : > { %8070 = vmatmul.f32.vlgmr.msrb.gmra.mxu3 %v7984_v57 }
 0x66f   : > { %8163 = vmatmul.f32.gmra.mxu2 %v8093_v41 }
 0x672   : > { %v8050_v48 = vpop.f32.mrf.mxu1 }
 0x673   : > { %v8051_v18 = vadd.f32 %v14666_v0, %v8050_v48 }
 0x675   : > { %v8094_v5 = vmax.f32 %v8051_v18, 0.0 }
 0x677   : > { %8166 = vmatmul.f32.gmra.mxu2 %v8094_v5 }
 0x678   : > { %v8143_v61 = vpop.f32.mrf.mxu2 }
 0x679   : > { %v8144_v39 = vadd.f32 %v14713_v46, %v8143_v61 }
 0x67a   : > { %v8053_v54 = vpop.f32.mrf.mxu1 }
 0x67b   : > { %v8203_v42 = vsub.f32 0.0, %v8144_v39  ;;  %v8054_v31 = vadd.f32 %v14666_v0, %v8053_v54 }
 0x67d   : > { %v8223_v28 = vmul.f32 1.442695, %v8203_v42  ;;  %v8095_v51 = vmax.f32 %v8054_v31, 0.0 }
 0x67f   : > { %8937 = vpow2.f32 %v8223_v28  ;;  %8169 = vmatmul.f32.gmra.mxu2 %v8095_v51 }
 0x683   : > { %v7957_v32 = vpop.f32.mrf.mxu3 }
 0x684   : > { %v7958_v25 = vadd.f32 %v14509_v12, %v7957_v32 }
 0x685   : > { %v8938_v60 = vpop.eup %8937 }
 0x686   : > { %v7985_v45 = vmax.f32 %v7958_v25, 0.0  ;;  %v8263_v56 = vadd.f32 1.0, %v8938_v60 }
 0x688   : > { %8073 = vmatmul.f32.gmra.mxu3 %v7985_v45  ;;  %8939 = vrcp.f32 %v8263_v56  ;;  %v8294_v23 = vand.u32 2147483648, %v8263_v56  ;;  %v8292_v58 = vand.u32 2147483647, %v8263_v56  ;;  %vm8288_vm12 = vweird.f32 %v8263_v56 }
 0x689   : > { %v8146_v55 = vpop.f32.mrf.mxu2 }
 0x68a   : > { %v8147_v17 = vadd.f32 %v14713_v46, %v8146_v55  ;;  %v8295_v30 = vor.u32 1.1754944e-38, %v8294_v23  ;;  %vm8293_vm3 = vcmp.eq.f32.partialorder %v8292_v58, 8.507059e+37 }
 0x68c   : > { %v8204_v9 = vsub.f32 0.0, %v8147_v17 }
 0x68e   : > { %v8225_v4 = vmul.f32 1.442695, %v8204_v9  ;;  %v8940_v47 = vpop.eup %8939 }
 0x68f   : > { %v8284_v50 = vmul.f32 %v8940_v47, %v8263_v56  ;;  %vm8289_vm5 = vweird.f32 %v8940_v47 }
 0x690   : > { %8941 = vpow2.f32 %v8225_v4  ;;  %vm8290_vm10 = vmor %vm8288_vm12, %vm8289_vm5 }
 0x691   : > { %v8149_v63 = vpop.f32.mrf.mxu2  ;;  %v8285_v33 = vsub.f32 1.0, %v8284_v50  ;;  %v7960_v34 = vpop.f32.mrf.mxu3 }
 0x692   : > { %v8150_v1 = vadd.f32 %v14713_v46, %v8149_v63  ;;  %v7961_v7 = vadd.f32 %v14509_v12, %v7960_v34 }
 0x693   : > { %v8286_v13 = vmul.f32 %v8940_v47, %v8285_v33 }
 0x694   : > { %v8205_v35 = vsub.f32 0.0, %v8150_v1  ;;  %v7986_v10 = vmax.f32 %v7961_v7, 0.0 }
 0x695   : > { %v8287_v6 = vadd.f32 %v8940_v47, %v8286_v13 }
 0x696   : > { %v8227_v19 = vmul.f32 1.442695, %v8205_v35  ;;  %v8942_v29 = vpop.eup %8941  ;;  %8076 = vmatmul.f32.gmra.mxu3 %v7986_v10 }
 0x697   : > { %v8264_v14 = vadd.f32 1.0, %v8942_v29  ;;  %v8291_v21 = vsel %vm8290_vm10, %v8940_v47, %v8287_v6 }
 0x698   : > { %8943 = vpow2.f32 %v8227_v19  ;;  %v8296_v62 = vsel %vm8293_vm3, %v8295_v30, %v8291_v21 }
 0x699   : > { %8945 = vrcp.f32 %v8264_v14  ;;  %8584 = vst.msk [vmem:[%s14727_s13] sm:$0xff] %vm8583_vm6, %v8296_v62  ;;  %v8309_v15 = vand.u32 2147483648, %v8264_v14  ;;  %v8307_v44 = vand.u32 2147483647, %v8264_v14  ;;  %vm8303_vm2 = vweird.f32 %v8264_v14 }
 0x69b   : > { %v8310_v43 = vor.u32 1.1754944e-38, %v8309_v15  ;;  %vm8308_vm1 = vcmp.eq.f32.partialorder %v8307_v44, 8.507059e+37 }
 0x69e   : > { %v8944_v16 = vpop.eup %8943 }
 0x69f   : > { %v8265_v38 = vadd.f32 1.0, %v8944_v16  ;;  %v8946_v11 = vpop.eup %8945 }
 0x6a0   : > { %v8299_v49 = vmul.f32 %v8946_v11, %v8264_v14  ;;  %vm8304_vm7 = vweird.f32 %v8946_v11 }
 0x6a1   : > { %8947 = vrcp.f32 %v8265_v38  ;;  %vm8305_vm15 = vmor %vm8303_vm2, %vm8304_vm7  ;;  %v8324_v8 = vand.u32 2147483648, %v8265_v38  ;;  %v8322_v59 = vand.u32 2147483647, %v8265_v38  ;;  %vm8318_vm14 = vweird.f32 %v8265_v38 }
 0x6a2   : > { %v8300_v36 = vsub.f32 1.0, %v8299_v49 }
 0x6a3   : > { %v8325_v27 = vor.u32 1.1754944e-38, %v8324_v8  ;;  %vm8323_vm9 = vcmp.eq.f32.partialorder %v8322_v59, 8.507059e+37 }
 0x6a4   : > { %v8301_v2 = vmul.f32 %v8946_v11, %v8300_v36 }
 0x6a6   : > { %v8302_v26 = vadd.f32 %v8946_v11, %v8301_v2 }
 0x6a7   : > { %v8948_v20 = vpop.eup %8947 }
 0x6a8   : > { %v8314_v52 = vmul.f32 %v8948_v20, %v8265_v38  ;;  %v8306_v3 = vsel %vm8305_vm15, %v8946_v11, %v8302_v26  ;;  %vm8319_vm0 = vweird.f32 %v8948_v20 }
 0x6a9   : > { %v8311_v53 = vsel %vm8308_vm1, %v8310_v43, %v8306_v3  ;;  %v8056_v22 = vpop.f32.mrf.mxu1  ;;  %vm8320_vm8 = vmor %vm8318_vm14, %vm8319_vm0 }
 0x6aa   : > { %v8315_v24 = vsub.f32 1.0, %v8314_v52  ;;  %8585 = vst.msk [vmem:[%s14727_s13 + $0x8] sm:$0xff] %vm8583_vm6, %v8311_v53  ;;  %v8057_v40 = vadd.f32 %v14666_v0, %v8056_v22 }
 0x6ac   : > { %v8316_v37 = vmul.f32 %v8948_v20, %v8315_v24  ;;  %v8096_v41 = vmax.f32 %v8057_v40, 0.0 }
 0x6ae   : > { %v8317_v57 = vadd.f32 %v8948_v20, %v8316_v37  ;;  %8172 = vmatmul.f32.gmra.mxu2 %v8096_v41 }
 0x6b0   : > { %v8321_v61 = vsel %vm8320_vm8, %v8948_v20, %v8317_v57 }
 0x6b1   : > { %v8326_v39 = vsel %vm8323_vm9, %v8325_v27, %v8321_v61 }
 0x6b2   : > { %8586 = vst.msk [vmem:[%s14727_s13 + $0x10] sm:$0xff] %vm8583_vm6, %v8326_v39  ;;  %v8152_v18 = vpop.f32.mrf.mxu2 }
 0x6b3   : > { %v8153_v5 = vadd.f32 %v14713_v46, %v8152_v18 }
 0x6b5   : > { %v8206_v32 = vsub.f32 0.0, %v8153_v5 }
 0x6b6   : > { %v8059_v48 = vpop.f32.mrf.mxu1  ;;  %v7963_v54 = vpop.f32.mrf.mxu3 }
 0x6b7   : > { %v8060_v42 = vadd.f32 %v14666_v0, %v8059_v48  ;;  %v7964_v25 = vadd.f32 %v14509_v12, %v7963_v54  ;;  %v8229_v31 = vmul.f32 1.442695, %v8206_v32 }
 0x6b9   : > { %v8097_v28 = vmax.f32 %v8060_v42, 0.0  ;;  %v7987_v45 = vmax.f32 %v7964_v25, 0.0  ;;  %8949 = vpow2.f32 %v8229_v31 }
 0x6bb   : > { %8175 = vmatmul.f32.gmra.mxu2 %v8097_v28  ;;  %8079 = vmatmul.f32.gmra.mxu3 %v7987_v45 }
 0x6be   : > { %v8062_v51 = vpop.f32.mrf.mxu1  ;;  %v7966_v55 = vpop.f32.mrf.mxu3 }
 0x6bf   : > { %v8063_v60 = vadd.f32 %v14666_v0, %v8062_v51  ;;  %v8950_v17 = vpop.eup %8949  ;;  %v7967_v9 = vadd.f32 %v14509_v12, %v7966_v55 }
 0x6c0   : > { %v8266_v4 = vadd.f32 1.0, %v8950_v17 }
 0x6c1   : > { %v8098_v56 = vmax.f32 %v8063_v60, 0.0  ;;  %v7988_v47 = vmax.f32 %v7967_v9, 0.0 }
 0x6c2   : > { %8951 = vrcp.f32 %v8266_v4  ;;  %v8339_v33 = vand.u32 2147483648, %v8266_v4  ;;  %v8337_v35 = vand.u32 2147483647, %v8266_v4  ;;  %vm8333_vm4 = vweird.f32 %v8266_v4 }
 0x6c3   : > { %8178 = vmatmul.f32.gmra.mxu2 %v8098_v56  ;;  %8082 = vmatmul.f32.gmra.mxu3 %v7988_v47 }
 0x6c4   : > { %v8340_v12 = vor.u32 1.1754944e-38, %v8339_v33  ;;  %vm8338_vm5 = vcmp.eq.f32.partialorder %v8337_v35, 8.507059e+37 }
 0x6c8   : > { %v8952_v50 = vpop.eup %8951 }
 0x6c9   : > { %v8329_v63 = vmul.f32 %v8952_v50, %v8266_v4  ;;  %vm8334_vm11 = vweird.f32 %v8952_v50 }
 0x6ca   : > { %vm8335_vm13 = vmor %vm8333_vm4, %vm8334_vm11 }
 0x6cb   : > { %v8330_v1 = vsub.f32 1.0, %v8329_v63 }
 0x6cd   : > { %v8331_v23 = vmul.f32 %v8952_v50, %v8330_v1 }
 0x6cf   : > { %v8332_v13 = vadd.f32 %v8952_v50, %v8331_v23 }
 0x6d1   : > { %v8065_v34 = vpop.f32.mrf.mxu1  ;;  %v8336_v7 = vsel %vm8335_vm13, %v8952_v50, %v8332_v13 }
 0x6d2   : > { %v8066_v58 = vadd.f32 %v14666_v0, %v8065_v34  ;;  %v8341_v29 = vsel %vm8338_vm5, %v8340_v12, %v8336_v7 }
 0x6d3   : > { %8587 = vst.msk [vmem:[%s14727_s13 + $0x18] sm:$0xff] %vm8583_vm6, %v8341_v29 }
 0x6d4   : > { %v8099_v19 = vmax.f32 %v8066_v58, 0.0 }
 0x6d6   : > { %8181 = vmatmul.f32.gmra.mxu2 %v8099_v19 }
 0x6d9   : > { %v8068_v30 = vpop.f32.mrf.mxu1 }
 0x6da   : > { %v8155_v6 = vpop.f32.mrf.mxu2  ;;  %v8069_v14 = vadd.f32 %v14666_v0, %v8068_v30 }
 0x6db   : > { %v8156_v10 = vadd.f32 %v14713_v46, %v8155_v6 }
 0x6dc   : > { %v8100_v62 = vmax.f32 %v8069_v14, 0.0 }
 0x6dd   : > { %v8207_v21 = vsub.f32 0.0, %v8156_v10 }
 0x6de   : > { %8184 = vmatmul.f32.gmra.mxu2 %v8100_v62 }
 0x6df   : > { %v8231_v16 = vmul.f32 1.442695, %v8207_v21 }
 0x6e1   : > { %8953 = vpow2.f32 %v8231_v16 }
 0x6e2   : > { %v8158_v38 = vpop.f32.mrf.mxu2 }
 0x6e3   : > { %v8159_v11 = vadd.f32 %v14713_v46, %v8158_v38 }
 0x6e5   : > { %v8208_v49 = vsub.f32 0.0, %v8159_v11 }
 0x6e7   : > { %v8954_v36 = vpop.eup %8953  ;;  %v8233_v15 = vmul.f32 1.442695, %v8208_v49 }
 0x6e8   : > { %v8267_v2 = vadd.f32 1.0, %v8954_v36 }
 0x6e9   : > { %8955 = vpow2.f32 %v8233_v15 }
 0x6ea   : > { %8957 = vrcp.f32 %v8267_v2  ;;  %v8161_v44 = vpop.f32.mrf.mxu2  ;;  %v8354_v27 = vand.u32 2147483648, %v8267_v2  ;;  %v8352_v61 = vand.u32 2147483647, %v8267_v2  ;;  %vm8348_vm10 = vweird.f32 %v8267_v2 }
 0x6eb   : > { %v8162_v20 = vadd.f32 %v14713_v46, %v8161_v44 }
 0x6ec   : > { %v8355_v28 = vor.u32 1.1754944e-38, %v8354_v27  ;;  %vm8353_vm7 = vcmp.eq.f32.partialorder %v8352_v61, 8.507059e+37 }
 0x6ed   : > { %v8209_v26 = vsub.f32 0.0, %v8162_v20 }
 0x6ef   : > { %v8956_v43 = vpop.eup %8955  ;;  %v8235_v52 = vmul.f32 1.442695, %v8209_v26 }
 0x6f0   : > { %v8958_v3 = vpop.eup %8957  ;;  %v8268_v53 = vadd.f32 1.0, %v8956_v43 }
 0x6f1   : > { %v8071_v24 = vpop.f32.mrf.mxu3  ;;  %v8344_v8 = vmul.f32 %v8958_v3, %v8267_v2  ;;  %8959 = vpow2.f32 %v8235_v52  ;;  %vm8349_vm12 = vweird.f32 %v8958_v3 }
 0x6f2   : > { %v8072_v37 = vadd.f32 %v14666_v0, %v8071_v24  ;;  %8961 = vrcp.f32 %v8268_v53  ;;  %v8164_v59 = vpop.f32.mrf.mxu2  ;;  %vm8350_vm3 = vmor %vm8348_vm10, %vm8349_vm12  ;;  %v8369_v51 = vand.u32 2147483648, %v8268_v53  ;;  %v8367_v56 = vand.u32 2147483647, %v8268_v53 }
 0x6f3   : > { %v8345_v22 = vsub.f32 1.0, %v8344_v8  ;;  %v8165_v57 = vadd.f32 %v14713_v46, %v8164_v59  ;;  %vm8363_vm15 = vweird.f32 %v8268_v53 }
 0x6f4   : > { %v8101_v40 = vmax.f32 %v8072_v37, 0.0  ;;  %v8370_v4 = vor.u32 1.1754944e-38, %v8369_v51  ;;  %vm8368_vm0 = vcmp.eq.f32.partialorder %v8367_v56, 8.507059e+37 }
 0x6f5   : > { %v8346_v41 = vmul.f32 %v8958_v3, %v8345_v22  ;;  %v8210_v39 = vsub.f32 0.0, %v8165_v57 }
 0x6f6   : > { %8187 = vmatmul.f32.vlgmr.msra.gmra.mxu3 %v8101_v40 }
 0x6f7   : > { %v8960_v48 = vpop.eup %8959  ;;  %v8347_v18 = vadd.f32 %v8958_v3, %v8346_v41  ;;  %v8237_v42 = vmul.f32 1.442695, %v8210_v39 }
 0x6f8   : > { %v8962_v5 = vpop.eup %8961  ;;  %v8269_v32 = vadd.f32 1.0, %v8960_v48 }
 0x6f9   : > { %v8351_v54 = vsel %vm8350_vm3, %v8958_v3, %v8347_v18  ;;  %v8359_v25 = vmul.f32 %v8962_v5, %v8268_v53  ;;  %8963 = vpow2.f32 %v8237_v42  ;;  %vm8364_vm2 = vweird.f32 %v8962_v5 }
 0x6fa   : > { %v8356_v31 = vsel %vm8353_vm7, %v8355_v28, %v8351_v54  ;;  %8965 = vrcp.f32 %v8269_v32  ;;  %vm8365_vm1 = vmor %vm8363_vm15, %vm8364_vm2  ;;  %v8167_v1 = vpop.f32.mrf.mxu2  ;;  %v8384_v34 = vand.u32 2147483648, %v8269_v32  ;;  %v8382_v58 = vand.u32 2147483647, %v8269_v32 }
 0x6fb   : > { %8588 = vst.msk [vmem:[%s14727_s13 + $0x20] sm:$0xff] %vm8583_vm6, %v8356_v31  ;;  %v8360_v45 = vsub.f32 1.0, %v8359_v25  ;;  %v8168_v35 = vadd.f32 %v14713_v46, %v8167_v1  ;;  %vm8378_vm8 = vweird.f32 %v8269_v32 }
 0x6fc   : > { %v8385_v6 = vor.u32 1.1754944e-38, %v8384_v34  ;;  %vm8383_vm11 = vcmp.eq.f32.partialorder %v8382_v58, 8.507059e+37 }
 0x6fd   : > { %v8361_v60 = vmul.f32 %v8962_v5, %v8360_v45  ;;  %v8211_v12 = vsub.f32 0.0, %v8168_v35 }
 0x6ff   : > { %v8964_v55 = vpop.eup %8963  ;;  %v8362_v17 = vadd.f32 %v8962_v5, %v8361_v60  ;;  %v8239_v19 = vmul.f32 1.442695, %v8211_v12 }
 0x700   : > { %v8966_v9 = vpop.eup %8965  ;;  %v8270_v47 = vadd.f32 1.0, %v8964_v55 }
 0x701   : > { %v8366_v50 = vsel %vm8365_vm1, %v8962_v5, %v8362_v17  ;;  %v8374_v63 = vmul.f32 %v8966_v9, %v8269_v32  ;;  %vm8379_vm14 = vweird.f32 %v8966_v9 }
 0x702   : > { %v8371_v33 = vsel %vm8368_vm0, %v8370_v4, %v8366_v50  ;;  %8967 = vrcp.f32 %v8270_v47  ;;  %vm8380_vm9 = vmor %vm8378_vm8, %vm8379_vm14  ;;  %v8170_v21 = vpop.f32.mrf.mxu2  ;;  %v8399_v49 = vand.u32 2147483648, %v8270_v47  ;;  %v8397_v44 = vand.u32 2147483647, %v8270_v47 }
 0x703   : > { %8589 = vst.msk [vmem:[%s14727_s13 + $0x28] sm:$0xff] %vm8583_vm6, %v8371_v33  ;;  %v8375_v23 = vsub.f32 1.0, %v8374_v63  ;;  %8969 = vpow2.f32 %v8239_v19  ;;  %v8171_v38 = vadd.f32 %v14713_v46, %v8170_v21  ;;  %vm8393_vm13 = vweird.f32 %v8270_v47 }
 0x704   : > { %v8400_v52 = vor.u32 1.1754944e-38, %v8399_v49  ;;  %vm8398_vm12 = vcmp.eq.f32.partialorder %v8397_v44, 8.507059e+37 }
 0x705   : > { %v8376_v13 = vmul.f32 %v8966_v9, %v8375_v23  ;;  %v8212_v15 = vsub.f32 0.0, %v8171_v38 }
 0x707   : > { %v8377_v7 = vadd.f32 %v8966_v9, %v8376_v13  ;;  %v8241_v20 = vmul.f32 1.442695, %v8212_v15 }
 0x708   : > { %v8968_v29 = vpop.eup %8967 }
 0x709   : > { %v8381_v10 = vsel %vm8380_vm9, %v8966_v9, %v8377_v7  ;;  %v8389_v30 = vmul.f32 %v8968_v29, %v8270_v47  ;;  %vm8394_vm4 = vweird.f32 %v8968_v29  ;;  %v8970_v26 = vpop.eup %8969  ;;  %8971 = vpow2.f32 %v8241_v20 }
 0x70a   : > { %v8386_v62 = vsel %vm8383_vm11, %v8385_v6, %v8381_v10  ;;  %vm8395_vm5 = vmor %vm8393_vm13, %vm8394_vm4  ;;  %v8271_v3 = vadd.f32 1.0, %v8970_v26 }
 0x70b   : > { %v8074_v14 = vpop.f32.mrf.mxu3  ;;  %8590 = vst.msk [vmem:[%s14727_s13 + $0x30] sm:$0xff] %vm8583_vm6, %v8386_v62  ;;  %v8390_v11 = vsub.f32 1.0, %v8389_v30 }
 0x70c   : > { %v8075_v16 = vadd.f32 %v14666_v0, %v8074_v14  ;;  %8973 = vrcp.f32 %v8271_v3  ;;  %v8414_v41 = vand.u32 2147483648, %v8271_v3  ;;  %v8412_v39 = vand.u32 2147483647, %v8271_v3 }
 0x70d   : > { %v8391_v2 = vmul.f32 %v8968_v29, %v8390_v11  ;;  %vm8408_vm3 = vweird.f32 %v8271_v3 }
 0x70e   : > { %v8102_v36 = vmax.f32 %v8075_v16, 0.0  ;;  %v8415_v5 = vor.u32 1.1754944e-38, %v8414_v41  ;;  %vm8413_vm2 = vcmp.eq.f32.partialorder %v8412_v39, 8.507059e+37 }
 0x70f   : > { %v8392_v43 = vadd.f32 %v8968_v29, %v8391_v2  ;;  %v8972_v8 = vpop.eup %8971 }
 0x710   : > { %8190 = vmatmul.f32.gmra.mxu3 %v8102_v36  ;;  %v8272_v37 = vadd.f32 1.0, %v8972_v8 }
 0x711   : > { %v8396_v53 = vsel %vm8395_vm5, %v8968_v29, %v8392_v43 }
 0x712   : > { %v8401_v24 = vsel %vm8398_vm12, %v8400_v52, %v8396_v53  ;;  %v8974_v59 = vpop.eup %8973  ;;  %8975 = vrcp.f32 %v8272_v37  ;;  %v8429_v31 = vand.u32 2147483648, %v8272_v37  ;;  %v8427_v51 = vand.u32 2147483647, %v8272_v37 }
 0x713   : > { %8591 = vst.msk [vmem:[%s14727_s13 + $0x38] sm:$0xff] %vm8583_vm6, %v8401_v24  ;;  %v8404_v22 = vmul.f32 %v8974_v59, %v8271_v3  ;;  %vm8409_vm10 = vweird.f32 %v8974_v59  ;;  %vm8423_vm1 = vweird.f32 %v8272_v37 }
 0x714   : > { %vm8410_vm7 = vmor %vm8408_vm3, %vm8409_vm10  ;;  %v8430_v56 = vor.u32 1.1754944e-38, %v8429_v31  ;;  %vm8428_vm14 = vcmp.eq.f32.partialorder %v8427_v51, 8.507059e+37 }
 0x715   : > { %v8405_v57 = vsub.f32 1.0, %v8404_v22 }
 0x717   : > { %v8406_v61 = vmul.f32 %v8974_v59, %v8405_v57 }
 0x718   : > { %v8976_v18 = vpop.eup %8975 }
 0x719   : > { %v8077_v40 = vpop.f32.mrf.mxu3  ;;  %v8407_v42 = vadd.f32 %v8974_v59, %v8406_v61  ;;  %v8419_v28 = vmul.f32 %v8976_v18, %v8272_v37  ;;  %vm8424_vm15 = vweird.f32 %v8976_v18 }
 0x71a   : > { %v8078_v27 = vadd.f32 %v14666_v0, %v8077_v40  ;;  %vm8425_vm0 = vmor %vm8423_vm1, %vm8424_vm15 }
 0x71b   : > { %v8411_v32 = vsel %vm8410_vm7, %v8974_v59, %v8407_v42  ;;  %v8420_v25 = vsub.f32 1.0, %v8419_v28 }
 0x71c   : > { %v8103_v48 = vmax.f32 %v8078_v27, 0.0  ;;  %v8416_v54 = vsel %vm8413_vm2, %v8415_v5, %v8411_v32 }
 0x71d   : > { %8592 = vst.msk [vmem:[%s14727_s13 + $0x40] sm:$0xff] %vm8583_vm6, %v8416_v54  ;;  %v8421_v45 = vmul.f32 %v8976_v18, %v8420_v25 }
 0x71e   : > { %8193 = vmatmul.f32.gmra.mxu3 %v8103_v48 }
 0x71f   : > { %v8422_v60 = vadd.f32 %v8976_v18, %v8421_v45 }
 0x721   : > { %v8426_v55 = vsel %vm8425_vm0, %v8976_v18, %v8422_v60 }
 0x722   : > { %v8431_v17 = vsel %vm8428_vm14, %v8430_v56, %v8426_v55 }
 0x723   : > { %8593 = vst.msk [vmem:[%s14727_s13 + $0x48] sm:$0xff] %vm8583_vm6, %v8431_v17 }
 0x731   : > { %v8173_v9 = vpop.f32.mrf.mxu2 }
 0x732   : > { %v8174_v4 = vadd.f32 %v14713_v46, %v8173_v9 }
 0x734   : > { %v8213_v47 = vsub.f32 0.0, %v8174_v4 }
 0x736   : > { %v8243_v50 = vmul.f32 1.442695, %v8213_v47 }
 0x738   : > { %8977 = vpow2.f32 %v8243_v50 }
 0x73e   : > { %v8176_v63 = vpop.f32.mrf.mxu2  ;;  %v8978_v1 = vpop.eup %8977 }
 0x73f   : > { %v8177_v33 = vadd.f32 %v14713_v46, %v8176_v63  ;;  %v8273_v23 = vadd.f32 1.0, %v8978_v1  ;;  %v8080_v34 = vpop.f32.mrf.mxu3 }
 0x740   : > { %v8081_v13 = vadd.f32 %v14666_v0, %v8080_v34 }
 0x741   : > { %v8214_v35 = vsub.f32 0.0, %v8177_v33  ;;  %8979 = vrcp.f32 %v8273_v23  ;;  %v8442_v38 = vand.u32 2147483647, %v8273_v23  ;;  %v8444_v11 = vand.u32 2147483648, %v8273_v23 }
 0x742   : > { %v8104_v12 = vmax.f32 %v8081_v13, 0.0  ;;  %vm8438_vm9 = vweird.f32 %v8273_v23 }
 0x743   : > { %v8245_v58 = vmul.f32 1.442695, %v8214_v35  ;;  %v8445_v44 = vor.u32 1.1754944e-38, %v8444_v11  ;;  %vm8443_vm4 = vcmp.eq.f32.partialorder %v8442_v38, 8.507059e+37 }
 0x744   : > { %8196 = vmatmul.f32.gmra.mxu3 %v8104_v12 }
 0x745   : > { %8981 = vpow2.f32 %v8245_v58 }
 0x746   : > { %v8179_v7 = vpop.f32.mrf.mxu2 }
 0x747   : > { %v8180_v19 = vadd.f32 %v14713_v46, %v8179_v7  ;;  %v8980_v29 = vpop.eup %8979  ;;  %v8083_v30 = vpop.f32.mrf.mxu3 }
 0x748   : > { %v8434_v6 = vmul.f32 %v8980_v29, %v8273_v23  ;;  %v8084_v62 = vadd.f32 %v14666_v0, %v8083_v30  ;;  %vm8439_vm8 = vweird.f32 %v8980_v29 }
 0x749   : > { %v8215_v10 = vsub.f32 0.0, %v8180_v19  ;;  %vm8440_vm11 = vmor %vm8438_vm9, %vm8439_vm8 }
 0x74a   : > { %v8435_v21 = vsub.f32 1.0, %v8434_v6  ;;  %v8105_v15 = vmax.f32 %v8084_v62, 0.0 }
 0x74b   : > { %v8982_v14 = vpop.eup %8981  ;;  %v8247_v16 = vmul.f32 1.442695, %v8215_v10 }
 0x74c   : > { %v8274_v49 = vadd.f32 1.0, %v8982_v14  ;;  %v8436_v36 = vmul.f32 %v8980_v29, %v8435_v21  ;;  %8199 = vmatmul.f32.gmra.mxu3 %v8105_v15 }
 0x74d   : > { %8983 = vpow2.f32 %v8247_v16 }
 0x74e   : > { %8985 = vrcp.f32 %v8274_v49  ;;  %v8437_v2 = vadd.f32 %v8980_v29, %v8436_v36  ;;  %v8459_v24 = vand.u32 2147483648, %v8274_v49  ;;  %v8457_v37 = vand.u32 2147483647, %v8274_v49 }
 0x74f   : > { %vm8453_vm5 = vweird.f32 %v8274_v49 }
 0x750   : > { %v8441_v20 = vsel %vm8440_vm11, %v8980_v29, %v8437_v2  ;;  %v8460_v27 = vor.u32 1.1754944e-38, %v8459_v24  ;;  %vm8458_vm10 = vcmp.eq.f32.partialorder %v8457_v37, 8.507059e+37 }
 0x751   : > { %v8446_v26 = vsel %vm8443_vm4, %v8445_v44, %v8441_v20 }
 0x752   : > { %8594 = vst.msk [vmem:[%s14727_s13 + $0x50] sm:$0xff] %vm8583_vm6, %v8446_v26 }
 0x753   : > { %v8984_v43 = vpop.eup %8983 }
 0x754   : > { %v8986_v0 = vpop.eup %8985  ;;  %v8275_v52 = vadd.f32 1.0, %v8984_v43 }
 0x755   : > { %v8449_v3 = vmul.f32 %v8986_v0, %v8274_v49  ;;  %vm8454_vm13 = vweird.f32 %v8986_v0 }
 0x756   : > { %8987 = vrcp.f32 %v8275_v52  ;;  %vm8455_vm12 = vmor %vm8453_vm5, %vm8454_vm13  ;;  %v8474_v5 = vand.u32 2147483648, %v8275_v52  ;;  %v8472_v32 = vand.u32 2147483647, %v8275_v52  ;;  %vm8468_vm7 = vweird.f32 %v8275_v52 }
 0x757   : > { %v8450_v53 = vsub.f32 1.0, %v8449_v3 }
 0x758   : > { %v8475_v31 = vor.u32 1.1754944e-38, %v8474_v5  ;;  %vm8473_vm15 = vcmp.eq.f32.partialorder %v8472_v32, 8.507059e+37 }
 0x759   : > { %v8451_v8 = vmul.f32 %v8986_v0, %v8450_v53  ;;  %v8182_v59 = vpop.f32.mrf.mxu2 }
 0x75a   : > { %v8183_v40 = vadd.f32 %v14713_v46, %v8182_v59 }
 0x75b   : > { %v8452_v22 = vadd.f32 %v8986_v0, %v8451_v8 }
 0x75c   : > { %v8988_v57 = vpop.eup %8987  ;;  %v8216_v39 = vsub.f32 0.0, %v8183_v40 }
 0x75d   : > { %v8456_v41 = vsel %vm8455_vm12, %v8986_v0, %v8452_v22  ;;  %v8464_v61 = vmul.f32 %v8988_v57, %v8275_v52  ;;  %vm8469_vm3 = vweird.f32 %v8988_v57 }
 0x75e   : > { %v8461_v48 = vsel %vm8458_vm10, %v8460_v27, %v8456_v41  ;;  %v8249_v42 = vmul.f32 1.442695, %v8216_v39  ;;  %vm8470_vm2 = vmor %vm8468_vm7, %vm8469_vm3 }
 0x75f   : > { %8595 = vst.msk [vmem:[%s14727_s13 + $0x58] sm:$0xff] %vm8583_vm6, %v8461_v48  ;;  %v8465_v18 = vsub.f32 1.0, %v8464_v61 }
 0x760   : > { %8989 = vpow2.f32 %v8249_v42 }
 0x761   : > { %v8466_v28 = vmul.f32 %v8988_v57, %v8465_v18  ;;  %v8185_v25 = vpop.f32.mrf.mxu2 }
 0x762   : > { %v8186_v45 = vadd.f32 %v14713_v46, %v8185_v25 }
 0x763   : > { %v8467_v54 = vadd.f32 %v8988_v57, %v8466_v28 }
 0x764   : > { %v8217_v56 = vsub.f32 0.0, %v8186_v45 }
 0x765   : > { %v8471_v51 = vsel %vm8470_vm2, %v8988_v57, %v8467_v54 }
 0x766   : > { %v8476_v60 = vsel %vm8473_vm15, %v8475_v31, %v8471_v51  ;;  %v8990_v55 = vpop.eup %8989  ;;  %v8251_v9 = vmul.f32 1.442695, %v8217_v56 }
 0x767   : > { %8596 = vst.msk [vmem:[%s14727_s13 + $0x60] sm:$0xff] %vm8583_vm6, %v8476_v60  ;;  %v8276_v17 = vadd.f32 1.0, %v8990_v55 }
 0x769   : > { %8991 = vrcp.f32 %v8276_v17  ;;  %v8489_v33 = vand.u32 2147483648, %v8276_v17  ;;  %v8487_v35 = vand.u32 2147483647, %v8276_v17  ;;  %vm8483_vm0 = vweird.f32 %v8276_v17 }
 0x76a   : > { %8993 = vpow2.f32 %v8251_v9 }
 0x76b   : > { %v8490_v13 = vor.u32 1.1754944e-38, %v8489_v33  ;;  %vm8488_vm8 = vcmp.eq.f32.partialorder %v8487_v35, 8.507059e+37 }
 0x76f   : > { %v8992_v4 = vpop.eup %8991 }
 0x770   : > { %v8994_v47 = vpop.eup %8993  ;;  %v8479_v50 = vmul.f32 %v8992_v4, %v8276_v17  ;;  %vm8484_vm1 = vweird.f32 %v8992_v4 }
 0x771   : > { %v8277_v63 = vadd.f32 1.0, %v8994_v47  ;;  %vm8485_vm14 = vmor %vm8483_vm0, %vm8484_vm1 }
 0x772   : > { %v8480_v1 = vsub.f32 1.0, %v8479_v50 }
 0x773   : > { %8995 = vrcp.f32 %v8277_v63  ;;  %v8504_v21 = vand.u32 2147483648, %v8277_v63  ;;  %v8502_v16 = vand.u32 2147483647, %v8277_v63  ;;  %vm8498_vm11 = vweird.f32 %v8277_v63 }
 0x774   : > { %v8481_v23 = vmul.f32 %v8992_v4, %v8480_v1 }
 0x775   : > { %v8505_v11 = vor.u32 1.1754944e-38, %v8504_v21  ;;  %vm8503_vm13 = vcmp.eq.f32.partialorder %v8502_v16, 8.507059e+37 }
 0x776   : > { %v8482_v34 = vadd.f32 %v8992_v4, %v8481_v23 }
 0x778   : > { %v8486_v12 = vsel %vm8485_vm14, %v8992_v4, %v8482_v34 }
 0x779   : > { %v8188_v58 = vpop.f32.mrf.mxu3  ;;  %v8996_v19 = vpop.eup %8995  ;;  %v8491_v29 = vsel %vm8488_vm8, %v8490_v13, %v8486_v12 }
 0x77a   : > { %v8189_v7 = vadd.f32 %v14713_v46, %v8188_v58  ;;  %8597 = vst.msk [vmem:[%s14727_s13 + $0x68] sm:$0xff] %vm8583_vm6, %v8491_v29  ;;  %v8494_v6 = vmul.f32 %v8996_v19, %v8277_v63  ;;  %vm8499_vm9 = vweird.f32 %v8996_v19 }
 0x77b   : > { %vm8500_vm4 = vmor %vm8498_vm11, %vm8499_vm9 }
 0x77c   : > { %v8218_v10 = vsub.f32 0.0, %v8189_v7  ;;  %v8495_v30 = vsub.f32 1.0, %v8494_v6 }
 0x77e   : > { %v8253_v14 = vmul.f32 1.442695, %v8218_v10  ;;  %v8496_v62 = vmul.f32 %v8996_v19, %v8495_v30 }
 0x780   : > { %8997 = vpow2.f32 %v8253_v14  ;;  %v8497_v38 = vadd.f32 %v8996_v19, %v8496_v62 }
 0x782   : > { %v8501_v49 = vsel %vm8500_vm4, %v8996_v19, %v8497_v38 }
 0x783   : > { %v8506_v36 = vsel %vm8503_vm13, %v8505_v11, %v8501_v49 }
 0x784   : > { %8598 = vst.msk [vmem:[%s14727_s13 + $0x70] sm:$0xff] %vm8583_vm6, %v8506_v36 }
 0x786   : > { %v8998_v15 = vpop.eup %8997 }
 0x787   : > { %v8278_v2 = vadd.f32 1.0, %v8998_v15 }
 0x789   : > { %8999 = vrcp.f32 %v8278_v2  ;;  %v8519_v0 = vand.u32 2147483648, %v8278_v2  ;;  %v8517_v53 = vand.u32 2147483647, %v8278_v2  ;;  %vm8513_vm12 = vweird.f32 %v8278_v2 }
 0x78b   : > { %v8520_v37 = vor.u32 1.1754944e-38, %v8519_v0  ;;  %vm8518_vm3 = vcmp.eq.f32.partialorder %v8517_v53, 8.507059e+37 }
 0x78f   : > { %v9000_v44 = vpop.eup %8999 }
 0x790   : > { %v8509_v20 = vmul.f32 %v9000_v44, %v8278_v2  ;;  %vm8514_vm5 = vweird.f32 %v9000_v44 }
 0x791   : > { %vm8515_vm10 = vmor %vm8513_vm12, %vm8514_vm5 }
 0x792   : > { %v8510_v26 = vsub.f32 1.0, %v8509_v20 }
 0x793   : > { %v8191_v43 = vpop.f32.mrf.mxu3 }
 0x794   : > { %v8192_v52 = vadd.f32 %v14713_v46, %v8191_v43  ;;  %v8511_v3 = vmul.f32 %v9000_v44, %v8510_v26 }
 0x796   : > { %v8219_v24 = vsub.f32 0.0, %v8192_v52  ;;  %v8512_v8 = vadd.f32 %v9000_v44, %v8511_v3 }
 0x798   : > { %v8255_v59 = vmul.f32 1.442695, %v8219_v24  ;;  %v8516_v22 = vsel %vm8515_vm10, %v9000_v44, %v8512_v8 }
 0x799   : > { %v8521_v40 = vsel %vm8518_vm3, %v8520_v37, %v8516_v22 }
 0x79a   : > { %9001 = vpow2.f32 %v8255_v59  ;;  %8599 = vst.msk [vmem:[%s14727_s13 + $0x78] sm:$0xff] %vm8583_vm6, %v8521_v40 }
 0x7a0   : > { %v9002_v57 = vpop.eup %9001 }
 0x7a1   : > { %v8279_v27 = vadd.f32 1.0, %v9002_v57  ;;  %v8194_v41 = vpop.f32.mrf.mxu3 }
 0x7a2   : > { %v8195_v61 = vadd.f32 %v14713_v46, %v8194_v41 }
 0x7a3   : > { %9003 = vrcp.f32 %v8279_v27  ;;  %v8534_v28 = vand.u32 2147483648, %v8279_v27  ;;  %v8532_v54 = vand.u32 2147483647, %v8279_v27  ;;  %vm8528_vm2 = vweird.f32 %v8279_v27 }
 0x7a4   : > { %v8220_v39 = vsub.f32 0.0, %v8195_v61 }
 0x7a5   : > { %v8535_v45 = vor.u32 1.1754944e-38, %v8534_v28  ;;  %vm8533_vm1 = vcmp.eq.f32.partialorder %v8532_v54, 8.507059e+37 }
 0x7a6   : > { %v8257_v18 = vmul.f32 1.442695, %v8220_v39 }
 0x7a8   : > { %9005 = vpow2.f32 %v8257_v18 }
 0x7a9   : > { %v9004_v48 = vpop.eup %9003 }
 0x7aa   : > { %v8524_v42 = vmul.f32 %v9004_v48, %v8279_v27  ;;  %vm8529_vm7 = vweird.f32 %v9004_v48 }
 0x7ab   : > { %vm8530_vm15 = vmor %vm8528_vm2, %vm8529_vm7 }
 0x7ac   : > { %v8525_v5 = vsub.f32 1.0, %v8524_v42 }
 0x7ae   : > { %v8526_v32 = vmul.f32 %v9004_v48, %v8525_v5  ;;  %v9006_v31 = vpop.eup %9005 }
 0x7af   : > { %v8280_v60 = vadd.f32 1.0, %v9006_v31 }
 0x7b0   : > { %v8527_v25 = vadd.f32 %v9004_v48, %v8526_v32 }
 0x7b1   : > { %9007 = vrcp.f32 %v8280_v60  ;;  %v8549_v4 = vand.u32 2147483648, %v8280_v60  ;;  %v8547_v50 = vand.u32 2147483647, %v8280_v60  ;;  %vm8543_vm14 = vweird.f32 %v8280_v60 }
 0x7b2   : > { %v8531_v51 = vsel %vm8530_vm15, %v9004_v48, %v8527_v25 }
 0x7b3   : > { %v8536_v56 = vsel %vm8533_vm1, %v8535_v45, %v8531_v51  ;;  %v8550_v1 = vor.u32 1.1754944e-38, %v8549_v4  ;;  %vm8548_vm9 = vcmp.eq.f32.partialorder %v8547_v50, 8.507059e+37 }
 0x7b4   : > { %8600 = vst.msk [vmem:[%s14727_s13 + $0x80] sm:$0xff] %vm8583_vm6, %v8536_v56 }
 0x7b7   : > { %v9008_v55 = vpop.eup %9007 }
 0x7b8   : > { %v8539_v17 = vmul.f32 %v9008_v55, %v8280_v60  ;;  %vm8544_vm0 = vweird.f32 %v9008_v55 }
 0x7b9   : > { %vm8545_vm8 = vmor %vm8543_vm14, %vm8544_vm0 }
 0x7ba   : > { %v8540_v9 = vsub.f32 1.0, %v8539_v17 }
 0x7bc   : > { %v8541_v47 = vmul.f32 %v9008_v55, %v8540_v9 }
 0x7be   : > { %v8542_v63 = vadd.f32 %v9008_v55, %v8541_v47 }
 0x7c0   : > { %v8546_v33 = vsel %vm8545_vm8, %v9008_v55, %v8542_v63 }
 0x7c1   : > { %v8551_v23 = vsel %vm8548_vm9, %v8550_v1, %v8546_v33 }
 0x7c2   : > { %8601 = vst.msk [vmem:[%s14727_s13 + $0x88] sm:$0xff] %vm8583_vm6, %v8551_v23 }
 0x7c7   : > { %v8197_v35 = vpop.f32.mrf.mxu3 }
 0x7c8   : > { %v8198_v34 = vadd.f32 %v14713_v46, %v8197_v35 }
 0x7ca   : > { %v8221_v13 = vsub.f32 0.0, %v8198_v34 }
 0x7cc   : > { %v8259_v58 = vmul.f32 1.442695, %v8221_v13 }
 0x7ce   : > { %9009 = vpow2.f32 %v8259_v58 }
 0x7cf   : > { %v8200_v12 = vpop.f32.mrf.mxu3 }
 0x7d0   : > { %v8201_v7 = vadd.f32 %v14713_v46, %v8200_v12 }
 0x7d2   : > { %v8222_v19 = vsub.f32 0.0, %v8201_v7 }
 0x7d4   : > { %v9010_v29 = vpop.eup %9009  ;;  %v8261_v6 = vmul.f32 1.442695, %v8222_v19 }
 0x7d5   : > { %v8281_v10 = vadd.f32 1.0, %v9010_v29 }
 0x7d6   : > { %9011 = vpow2.f32 %v8261_v6 }
 0x7d7   : > { %9013 = vrcp.f32 %v8281_v10  ;;  %v8564_v38 = vand.u32 2147483648, %v8281_v10  ;;  %v8562_v49 = vand.u32 2147483647, %v8281_v10  ;;  %vm8558_vm4 = vweird.f32 %v8281_v10 }
 0x7d9   : > { %v8565_v15 = vor.u32 1.1754944e-38, %v8564_v38  ;;  %vm8563_vm5 = vcmp.eq.f32.partialorder %v8562_v49, 8.507059e+37 }
 0x7dc   : > { %v9012_v30 = vpop.eup %9011 }
 0x7dd   : > { %v9014_v14 = vpop.eup %9013  ;;  %v8282_v21 = vadd.f32 1.0, %v9012_v30 }
 0x7de   : > { %v8554_v62 = vmul.f32 %v9014_v14, %v8281_v10  ;;  %vm8559_vm11 = vweird.f32 %v9014_v14 }
 0x7df   : > { %9015 = vrcp.f32 %v8282_v21  ;;  %vm8560_vm13 = vmor %vm8558_vm4, %vm8559_vm11  ;;  %v8579_v43 = vand.u32 2147483648, %v8282_v21  ;;  %v8577_v52 = vand.u32 2147483647, %v8282_v21  ;;  %vm8573_vm10 = vweird.f32 %v8282_v21 }
 0x7e0   : > { %v8555_v16 = vsub.f32 1.0, %v8554_v62 }
 0x7e1   : > { %v8580_v53 = vor.u32 1.1754944e-38, %v8579_v43  ;;  %vm8578_vm7 = vcmp.eq.f32.partialorder %v8577_v52, 8.507059e+37 }
 0x7e2   : > { %v8556_v11 = vmul.f32 %v9014_v14, %v8555_v16 }
 0x7e4   : > { %v8557_v36 = vadd.f32 %v9014_v14, %v8556_v11 }
 0x7e5   : > { %v9016_v46 = vpop.eup %9015 }
 0x7e6   : > { %v8561_v2 = vsel %vm8560_vm13, %v9014_v14, %v8557_v36  ;;  %v8569_v44 = vmul.f32 %v9016_v46, %v8282_v21  ;;  %vm8574_vm12 = vweird.f32 %v9016_v46 }
 0x7e7   : > { %v8566_v20 = vsel %vm8563_vm5, %v8565_v15, %v8561_v2  ;;  %vm8575_vm3 = vmor %vm8573_vm10, %vm8574_vm12 }
 0x7e8   : > { %8602 = vst.msk [vmem:[%s14727_s13 + $0x90] sm:$0xff] %vm8583_vm6, %v8566_v20  ;;  %v8570_v26 = vsub.f32 1.0, %v8569_v44 }
 0x7ea   : > { %v8571_v0 = vmul.f32 %v9016_v46, %v8570_v26 }
 0x7ec   : > { %v8572_v3 = vadd.f32 %v9016_v46, %v8571_v0 }
 0x7ee   : > { %v8576_v24 = vsel %vm8575_vm3, %v9016_v46, %v8572_v3 }
 0x7ef   : > { %v8581_v8 = vsel %vm8578_vm7, %v8580_v53, %v8576_v24 }
 0x7f0   : > { %8603 = vst.msk [vmem:[%s14727_s13 + $0x98] sm:$0xff] %vm8583_vm6, %v8581_v8 }
 0x7f1 PF: > { %s17_s24 = sadd.s32 1, %s9055_s24  }
 0x7f2   : > { %p14_p4 = scmp.ge.s32.totalorder %s17_s24, 4  }
 0x7f4   :  { %16 = sbr.rel (!%p14_p4) target bundleno = 1 (0x1), region = 78 }

</bundles_post_ra>
